<compile_context>
chip_gen: v5e
topology: v5e:2x2
jax: 0.10.0
libtpu: 0.0.40
codegen_flags: <defaults>
</compile_context>

<pallas_src>
import functools

import jax
import jax.numpy as jnp
from jax.experimental import pallas as pl
from jax.experimental.pallas import tpu as pltpu

C = 16          # channel width of every layer (stem input is zero-padded 3 -> 16)
EPS = 1e-5      # BatchNorm eps


# --------------------------------------------------------------------------------------
# Fused kernel: one grid step = full forward pass for `Bt` images stacked along rows.
#   layer 0            : stem conv + folded BN + ReLU
#   layers 1+2i, 2+2i  : residual block i (conv+BN+ReLU, conv+BN, +x, ReLU)
#   layer 2*nb+1       : additional conv (bias) + ReLU
# --------------------------------------------------------------------------------------
def _encoder_kernel(x_ref, w_ref, b_ref, out_ref, pad, *, Bt, Hp, n_blocks):
    R_tot = Bt * Hp          # rows of the stacked padded activation buffer
    R_mid = R_tot - 2        # rows each conv produces / the carried activation has
    WpC = pad.shape[-1]      # lane-dense padded row width = (W+2)*C

    # Zero the outermost halo rows of the stacked scratch buffer once per grid step
    # (re-done every step so it stays correct when the "parallel" batch axis is split
    # across TensorCores); they are never touched by the interior stores below.
    zrow = jnp.zeros((1, WpC), pad.dtype)
    pad[0:1, :] = zrow
    pad[R_tot - 1:R_tot, :] = zrow

    # Row mask that zeroes the inter-image halo rows of every layer's activation: their
    # conv windows straddle two stacked images (garbage), and they must be zero when
    # written back as the next layer's padding.  One broadcast multiply per layer.
    if Bt > 1:
        ri = jax.lax.broadcasted_iota(jnp.int32, (R_mid, 1), 0)
        halo = (ri == Hp - 2) | (ri == Hp - 1)
        for b in range(1, Bt - 1):
            halo = halo | (ri == b * Hp + Hp - 2) | (ri == b * Hp + Hp - 1)
        row_mask = jnp.where(halo, 0.0, 1.0)

        def act(a):
            return jnp.maximum(a, 0.0) * row_mask
    else:
        def act(a):
            return jnp.maximum(a, 0.0)

    def conv_bias(load_rows, layer):
        # Three accumulating band matmuls (one per kernel row ky); bf16 operands,
        # f32 accumulation on the MXU.  BN scale is already folded into w_ref.
        acc = None
        for ky in range(3):
            d = jnp.dot(load_rows(ky), w_ref[3 * layer + ky],
                        preferred_element_type=jnp.float32)
            acc = d if acc is None else acc + d
        return acc + b_ref[layer]

    # ---- stem: conv + folded BN + ReLU, read straight from the pre-padded bf16 input ----
    h = act(conv_bias(lambda ky: x_ref[0, ky:ky + R_mid, :], 0))      # (R_mid, WpC) f32

    # ---- residual blocks: activation stays in vregs, one bf16 pad buffer is reused ----
    pad_rows = lambda ky: pad[ky:ky + R_mid, :]

    def block(i, h):
        pad[1:1 + R_mid, :] = h.astype(pad.dtype)
        t = act(conv_bias(pad_rows, 1 + 2 * i))
        pad[1:1 + R_mid, :] = t.astype(pad.dtype)
        return act(conv_bias(pad_rows, 2 + 2 * i) + h)

    h = jax.lax.fori_loop(0, n_blocks, block, h)

    # ---- additional conv (+ bias) + ReLU ----
    pad[1:1 + R_mid, :] = h.astype(pad.dtype)
    out_ref[0] = act(conv_bias(pad_rows, 2 * n_blocks + 1))


# --------------------------------------------------------------------------------------
# Parameter construction (deterministic, synthetic)
# --------------------------------------------------------------------------------------
def _fold_bn(gamma, beta, mean, var):
    scale = gamma / jnp.sqrt(var + EPS)
    return scale, beta - mean * scale


def make_params(key, n_blocks):
    def bn_params(k):
        ks = jax.random.split(k, 4)
        gamma = 1.0 + 0.1 * jax.random.normal(ks[0], (C,), jnp.float32)
        beta = 0.1 * jax.random.normal(ks[1], (C,), jnp.float32)
        mean = 0.1 * jax.random.normal(ks[2], (C,), jnp.float32)
        var = jnp.abs(jax.random.normal(ks[3], (C,), jnp.float32)) + 0.5
        return _fold_bn(gamma, beta, mean, var)

    k_stem, k_blocks, k_add = jax.random.split(key, 3)
    kw, kb = jax.random.split(k_stem)
    w_stem = 0.15 * jax.random.normal(kw, (3, 3, 3, C), jnp.float32)   # HWIO
    s_stem, b_stem = bn_params(kb)

    blocks = []
    for i in range(n_blocks):
        ks = jax.random.split(jax.random.fold_in(k_blocks, i), 4)
        w1 = 0.08 * jax.random.normal(ks[0], (3, 3, C, C), jnp.float32)
        s1, b1 = bn_params(ks[1])
        w2 = 0.08 * jax.random.normal(ks[2], (3, 3, C, C), jnp.float32)
        s2, b2 = bn_params(ks[3])
        blocks.append((w1, s1, b1, w2, s2, b2))

    kw2, kb2 = jax.random.split(k_add)
    w_add = 0.08 * jax.random.normal(kw2, (3, 3, C, C), jnp.float32)
    b_add = 0.05 * jax.random.normal(kb2, (C,), jnp.float32)

    return {"w_stem": w_stem, "s_stem": s_stem, "b_stem": b_stem,
            "blocks": blocks, "w_add": w_add, "b_add": b_add}


# --------------------------------------------------------------------------------------
# Weight packing: fold BN scale, build banded (block-Toeplitz) matrices, tile biases
# --------------------------------------------------------------------------------------
def _band_matrices(w_hwio, scale, W):
    """BN-scale-folded 3x3 conv -> three (Wp*C, Wp*C) bf16 block-Toeplitz matrices.

    B_ky[p*C + ci, q*C + co] = (w * scale)[ky, p-(q-1), ci, co] for interior output
    columns q in [1, W] and kernel offsets p-(q-1) in {0,1,2}; zero elsewhere, so the
    matmul output is lane-dense in the padded layout with zero halo columns for free.
    """
    w = w_hwio.astype(jnp.float32) * scale[None, None, None, :]
    cin = w.shape[2]
    if cin < C:   # stem: zero-pad input channels 3 -> 16 (matches channel-padded input)
        w = jnp.pad(w, ((0, 0), (0, 0), (0, C - cin), (0, 0)))
    Wp = W + 2
    p = jnp.arange(Wp)[:, None]              # padded input column
    q = jnp.arange(Wp)[None, :]              # padded output column
    kx = p - (q - 1)
    valid = (kx >= 0) & (kx < 3) & (q >= 1) & (q <= W)
    kx = jnp.clip(kx, 0, 2)
    bands = []
    for ky in range(3):
        blk = jnp.where(valid[:, :, None, None], w[ky][kx], 0.0)      # (Wp, Wp, C, C)
        bands.append(jnp.transpose(blk, (0, 2, 1, 3)).reshape(Wp * C, Wp * C))
    return jnp.stack(bands).astype(jnp.bfloat16)                      # (3, Wp*C, Wp*C)


def _pack_bias(b, W):
    """(C,) bias -> (1, (W+2)*C) lane-dense row with zero halo columns."""
    z = jnp.zeros((C,), jnp.float32)
    return jnp.concatenate([z, jnp.tile(b.astype(jnp.float32), W), z]).reshape(1, (W + 2) * C)


def _pack_kernel_params(params, W):
    ones = jnp.ones((C,), jnp.float32)
    layers = [(params["w_stem"], params["s_stem"], params["b_stem"])]
    for (w1, s1, b1, w2, s2, b2) in params["blocks"]:
        layers += [(w1, s1, b1), (w2, s2, b2)]
    layers.append((params["w_add"], ones, params["b_add"]))           # no BN: scale = 1
    w_all = jnp.concatenate([_band_matrices(w, s, W) for (w, s, _) in layers], axis=0)
    b_all = jnp.stack([_pack_bias(b, W) for (_, _, b) in layers], axis=0)
    return w_all, b_all            # (3L, WpC, WpC) bf16, (L, 1, WpC) f32


# --------------------------------------------------------------------------------------
# Forward wrapper: one pallas_call for the whole network
# --------------------------------------------------------------------------------------
def resnet_encoder_forward(x_nchw, params, n_blocks, batch_tile=None):
    N, Cin, H, W = x_nchw.shape
    assert Cin <= C
    Hp, Wp = H + 2, W + 2
    WpC = Wp * C
    L = 2 * n_blocks + 2

    if batch_tile is None:
        # >= 2 grid steps keeps both v7x TensorCores busy; on v5e/v6e the grid is a
        # serial loop so this choice is nearly free at this problem size.
        batch_tile = N // 2 if (N % 2 == 0 and N >= 2) else N
    assert N % batch_tile == 0
    Bt = batch_tile
    G = N // Bt
    R_tot = Bt * Hp
    R_mid = R_tot - 2

    # One-time layout glue: NCHW -> padded, lane-dense (grid, rows, Wp*C) bf16 with the
    # spatial halo and 3->16 channel padding already zero.  The Bt images of one grid
    # step are stacked along the row (sublane) axis so the matmul M dimension grows.
    x = jnp.transpose(x_nchw, (0, 2, 3, 1)).astype(jnp.float32)
    x = jnp.pad(x, ((0, 0), (1, 1), (1, 1), (0, C - Cin)))
    x = x.reshape(G, R_tot, WpC).astype(jnp.bfloat16)

    w_all, b_all = _pack_kernel_params(params, W)

    kernel = functools.partial(_encoder_kernel, Bt=Bt, Hp=Hp, n_blocks=n_blocks)
    out = pl.pallas_call(
        kernel,
        out_shape=jax.ShapeDtypeStruct((G, R_mid, WpC), jnp.float32),
        grid_spec=pltpu.PrefetchScalarGridSpec(
            num_scalar_prefetch=0,
            grid=(G,),
            in_specs=[
                pl.BlockSpec((1, R_tot, WpC), lambda g: (g, 0, 0)),
                pl.BlockSpec((3 * L, WpC, WpC), lambda g: (0, 0, 0)),
                pl.BlockSpec((L, 1, WpC), lambda g: (0, 0, 0)),
            ],
            out_specs=pl.BlockSpec((1, R_mid, WpC), lambda g: (g, 0, 0)),
            scratch_shapes=[pltpu.VMEM((R_tot, WpC), jnp.bfloat16)],
        ),
        compiler_params=pltpu.CompilerParams(
            dimension_semantics=("parallel",)),   # batch tiles independent -> 2 TCs on v7x
    )(x, w_all, b_all)

    # Un-stack images and strip halos (wrapper-side layout plumbing).
    imgs = [out[:, b * Hp:b * Hp + H, C:C + W * C] for b in range(Bt)]   # (G, H, W*C) each
    y = jnp.stack(imgs, axis=1).reshape(N, H, W, C)
    return jnp.transpose(y, (0, 3, 1, 2))          # back to NCHW like PyTorch


# --------------------------------------------------------------------------------------
# Pure-JAX reference (same folded-scale bf16-operand / f32-accumulate precision)
# --------------------------------------------------------------------------------------
def _reference_forward(x_nchw, params):
    x = jnp.transpose(x_nchw, (0, 2, 3, 1)).astype(jnp.float32)

    def conv(inp, w_hwio, scale, bias):
        w = (w_hwio * scale[None, None, None, :]).astype(jnp.bfloat16)
        y = jax.lax.conv_general_dilated(
            inp.astype(jnp.bfloat16), w,
            window_strides=(1, 1), padding="SAME",
            dimension_numbers=("NHWC", "HWIO", "NHWC"),
            preferred_element_type=jnp.float32)
        return y + bias

    one = jnp.ones((C,), jnp.float32)
    h = jnp.maximum(conv(x, params["w_stem"], params["s_stem"], params["b_stem"]), 0.0)
    for (w1, s1, b1, w2, s2, b2) in params["blocks"]:
        t = jnp.maximum(conv(h, w1, s1, b1), 0.0)
        h = jnp.maximum(conv(t, w2, s2, b2) + h, 0.0)
    h = jnp.maximum(conv(h, params["w_add"], one, params["b_add"]), 0.0)
    return jnp.transpose(h, (0, 3, 1, 2))


if __name__ == "__main__":
    key = jax.random.PRNGKey(0)
    N, H, W = 4, 16, 16
    n = 3                                    # ResNetEncoderComplex(n=3) -> 3 residual blocks
    kx, kp = jax.random.split(key)
    x = jax.random.normal(kx, (N, 3, H, W), jnp.float32)   # PyTorch-style NCHW input
    params = make_params(kp, n)

    out = jax.block_until_ready(resnet_encoder_forward(x, params, n, batch_tile=2))
    ref = jax.block_until_ready(_reference_forward(x, params))

    assert out.shape == (N, C, H, W)
    assert jnp.allclose(out, ref, atol=2e-3, rtol=2e-3), "mismatch vs JAX reference"

    print("KERNEL_OK")
</pallas_src>

<mosaic_0001>
module attributes {stable_mosaic.version = 11 : i64} {
  func.func @_encoder_kernel(%arg0: i32, %arg1: memref<1x36x288xbf16, #tpu.memory_space<vmem>>, %arg2: memref<24x288x288xbf16, #tpu.memory_space<vmem>>, %arg3: memref<8x1x288xf32, #tpu.memory_space<vmem>>, %arg4: memref<1x34x288xf32, #tpu.memory_space<vmem>>, %arg5: memref<36x288xbf16, #tpu.memory_space<vmem>>) attributes {dimension_semantics = [#tpu.dimension_semantics<parallel>], iteration_bounds = array<i64: 2>, scalar_prefetch = 0 : i64, scratch_operands = 1 : i64, tpu.core_type = #tpu.core_type<tc>, window_params = [{transform_indices = @transform_0, window_bounds = array<i64: 1, 36, 288>}, {pipeline_mode = #tpu.pipeline_mode<synchronous>, transform_indices = @transform_1, window_bounds = array<i64: 24, 288, 288>}, {pipeline_mode = #tpu.pipeline_mode<synchronous>, transform_indices = @transform_2, window_bounds = array<i64: 8, 1, 288>}, {transform_indices = @transform_3, window_bounds = array<i64: 1, 34, 288>}]} {
    %cst = arith.constant 0.000000e+00 : bf16
    %0 = vector.broadcast %cst : bf16 to vector<1x288xbf16>
    %c0 = arith.constant 0 : index
    %c0_0 = arith.constant 0 : index
    %1 = vector.load %arg5[%c0, %c0_0] : memref<36x288xbf16, #tpu.memory_space<vmem>>, vector<1x288xbf16>
    tpu.vector_store %arg5[%c0, %c0_0], %0 {strides = array<i32>} : memref<36x288xbf16, #tpu.memory_space<vmem>>, vector<1x288xbf16>,
    %c35 = arith.constant 35 : index
    %c0_1 = arith.constant 0 : index
    %2 = vector.load %arg5[%c35, %c0_1] : memref<36x288xbf16, #tpu.memory_space<vmem>>, vector<1x288xbf16>
    tpu.vector_store %arg5[%c35, %c0_1], %0 {strides = array<i32>} : memref<36x288xbf16, #tpu.memory_space<vmem>>, vector<1x288xbf16>,
    %3 = tpu.iota {dimensions = array<i32: 0>} : vector<34x1xi32>
    %c16_i32 = arith.constant 16 : i32
    %4 = vector.broadcast %c16_i32 : i32 to vector<34x1xi32>
    %5 = arith.cmpi eq, %3, %4 : vector<34x1xi32>
    %c17_i32 = arith.constant 17 : i32
    %6 = vector.broadcast %c17_i32 : i32 to vector<34x1xi32>
    %7 = arith.cmpi eq, %3, %6 : vector<34x1xi32>
    %8 = arith.ori %5, %7 : vector<34x1xi1>
    %cst_2 = arith.constant 0.000000e+00 : f32
    %cst_3 = arith.constant 1.000000e+00 : f32
    %9 = vector.broadcast %cst_2 : f32 to vector<34x1xf32>
    %10 = vector.broadcast %cst_3 : f32 to vector<34x1xf32>
    %11 = arith.select %8, %9, %10 : vector<34x1xi1>, vector<34x1xf32>
    %c0_4 = arith.constant 0 : index
    %c0_5 = arith.constant 0 : index
    %c0_6 = arith.constant 0 : index
    %12 = vector.load %arg1[%c0_4, %c0_5, %c0_6] : memref<1x36x288xbf16, #tpu.memory_space<vmem>>, vector<1x34x288xbf16>
    %13 = vector.shape_cast %12 : vector<1x34x288xbf16> to vector<34x288xbf16>
    %c0_7 = arith.constant 0 : index
    %c0_8 = arith.constant 0 : index
    %c0_9 = arith.constant 0 : index
    %14 = vector.load %arg2[%c0_7, %c0_8, %c0_9] : memref<24x288x288xbf16, #tpu.memory_space<vmem>>, vector<1x288x288xbf16>
    %15 = vector.shape_cast %14 : vector<1x288x288xbf16> to vector<288x288xbf16>
    %cst_10 = arith.constant dense<0.000000e+00> : vector<34x288xf32>
    %16 = tpu.matmul %13, %15, %cst_10 {dimension_numbers = #tpu.dot_dimension_numbers<[1], [0], [0], [1], [0, 0, 1, 1], [], []>} : vector<34x288xbf16>, vector<288x288xbf16>, vector<34x288xf32> -> vector<34x288xf32>
    %c0_11 = arith.constant 0 : index
    %c1 = arith.constant 1 : index
    %c0_12 = arith.constant 0 : index
    %17 = vector.load %arg1[%c0_11, %c1, %c0_12] : memref<1x36x288xbf16, #tpu.memory_space<vmem>>, vector<1x34x288xbf16>
    %18 = vector.shape_cast %17 : vector<1x34x288xbf16> to vector<34x288xbf16>
    %c1_13 = arith.constant 1 : index
    %c0_14 = arith.constant 0 : index
    %c0_15 = arith.constant 0 : index
    %19 = vector.load %arg2[%c1_13, %c0_14, %c0_15] : memref<24x288x288xbf16, #tpu.memory_space<vmem>>, vector<1x288x288xbf16>
    %20 = vector.shape_cast %19 : vector<1x288x288xbf16> to vector<288x288xbf16>
    %cst_16 = arith.constant dense<0.000000e+00> : vector<34x288xf32>
    %21 = tpu.matmul %18, %20, %cst_16 {dimension_numbers = #tpu.dot_dimension_numbers<[1], [0], [0], [1], [0, 0, 1, 1], [], []>} : vector<34x288xbf16>, vector<288x288xbf16>, vector<34x288xf32> -> vector<34x288xf32>
    %22 = arith.addf %16, %21 : vector<34x288xf32>
    %c0_17 = arith.constant 0 : index
    %c2 = arith.constant 2 : index
    %c0_18 = arith.constant 0 : index
    %23 = vector.load %arg1[%c0_17, %c2, %c0_18] : memref<1x36x288xbf16, #tpu.memory_space<vmem>>, vector<1x34x288xbf16>
    %24 = vector.shape_cast %23 : vector<1x34x288xbf16> to vector<34x288xbf16>
    %c2_19 = arith.constant 2 : index
    %c0_20 = arith.constant 0 : index
    %c0_21 = arith.constant 0 : index
    %25 = vector.load %arg2[%c2_19, %c0_20, %c0_21] : memref<24x288x288xbf16, #tpu.memory_space<vmem>>, vector<1x288x288xbf16>
    %26 = vector.shape_cast %25 : vector<1x288x288xbf16> to vector<288x288xbf16>
    %cst_22 = arith.constant dense<0.000000e+00> : vector<34x288xf32>
    %27 = tpu.matmul %24, %26, %cst_22 {dimension_numbers = #tpu.dot_dimension_numbers<[1], [0], [0], [1], [0, 0, 1, 1], [], []>} : vector<34x288xbf16>, vector<288x288xbf16>, vector<34x288xf32> -> vector<34x288xf32>
    %28 = arith.addf %22, %27 : vector<34x288xf32>
    %c0_23 = arith.constant 0 : index
    %c0_24 = arith.constant 0 : index
    %c0_25 = arith.constant 0 : index
    %29 = vector.load %arg3[%c0_23, %c0_24, %c0_25] : memref<8x1x288xf32, #tpu.memory_space<vmem>>, vector<1x1x288xf32>
    %30 = vector.shape_cast %29 : vector<1x1x288xf32> to vector<1x288xf32>
    %31 = vector.broadcast %30 : vector<1x288xf32> to vector<34x288xf32>
    %32 = arith.addf %28, %31 : vector<34x288xf32>
    %cst_26 = arith.constant 0.000000e+00 : f32
    %33 = vector.broadcast %cst_26 : f32 to vector<34x288xf32>
    %34 = arith.maximumf %32, %33 : vector<34x288xf32>
    %35 = vector.broadcast %11 : vector<34x1xf32> to vector<34x288xf32>
    %36 = arith.mulf %34, %35 : vector<34x288xf32>
    %c0_i32 = arith.constant 0 : i32
    %c3_i32 = arith.constant 3 : i32
    %37 = arith.addi %c0_i32, %c3_i32 : i32
    %c1_i32 = arith.constant 1 : i32
    %38 = scf.for %arg6 = %c0_i32 to %37 step %c1_i32 iter_args(%arg7 = %36) -> (vector<34x288xf32>)  : i32 {
      %66 = arith.truncf %arg7 : vector<34x288xf32> to vector<34x288xbf16>
      %c1_51 = arith.constant 1 : index
      %c0_52 = arith.constant 0 : index
      %67 = vector.load %arg5[%c1_51, %c0_52] : memref<36x288xbf16, #tpu.memory_space<vmem>>, vector<34x288xbf16>
      tpu.vector_store %arg5[%c1_51, %c0_52], %66 {strides = array<i32>} : memref<36x288xbf16, #tpu.memory_space<vmem>>, vector<34x288xbf16>,
      %c2_i32 = arith.constant 2 : i32
      %68 = arith.muli %c2_i32, %arg6 : i32
      %c1_i32_53 = arith.constant 1 : i32
      %69 = arith.addi %c1_i32_53, %68 : i32
      %c0_54 = arith.constant 0 : index
      %c0_55 = arith.constant 0 : index
      %70 = vector.load %arg5[%c0_54, %c0_55] : memref<36x288xbf16, #tpu.memory_space<vmem>>, vector<34x288xbf16>
      %c3_i32_56 = arith.constant 3 : i32
      %71 = arith.muli %c3_i32_56, %69 : i32
      %c0_i32_57 = arith.constant 0 : i32
      %72 = arith.addi %71, %c0_i32_57 : i32
      %73 = arith.index_cast %72 : i32 to index
      %c0_58 = arith.constant 0 : index
      %c0_59 = arith.constant 0 : index
      %74 = vector.load %arg2[%73, %c0_58, %c0_59] : memref<24x288x288xbf16, #tpu.memory_space<vmem>>, vector<1x288x288xbf16>
      %75 = vector.shape_cast %74 : vector<1x288x288xbf16> to vector<288x288xbf16>
      %cst_60 = arith.constant dense<0.000000e+00> : vector<34x288xf32>
      %76 = tpu.matmul %70, %75, %cst_60 {dimension_numbers = #tpu.dot_dimension_numbers<[1], [0], [0], [1], [0, 0, 1, 1], [], []>} : vector<34x288xbf16>, vector<288x288xbf16>, vector<34x288xf32> -> vector<34x288xf32>
      %c1_61 = arith.constant 1 : index
      %c0_62 = arith.constant 0 : index
      %77 = vector.load %arg5[%c1_61, %c0_62] : memref<36x288xbf16, #tpu.memory_space<vmem>>, vector<34x288xbf16>
      %c3_i32_63 = arith.constant 3 : i32
      %78 = arith.muli %c3_i32_63, %69 : i32
      %c1_i32_64 = arith.constant 1 : i32
      %79 = arith.addi %78, %c1_i32_64 : i32
      %80 = arith.index_cast %79 : i32 to index
      %c0_65 = arith.constant 0 : index
      %c0_66 = arith.constant 0 : index
      %81 = vector.load %arg2[%80, %c0_65, %c0_66] : memref<24x288x288xbf16, #tpu.memory_space<vmem>>, vector<1x288x288xbf16>
      %82 = vector.shape_cast %81 : vector<1x288x288xbf16> to vector<288x288xbf16>
      %cst_67 = arith.constant dense<0.000000e+00> : vector<34x288xf32>
      %83 = tpu.matmul %77, %82, %cst_67 {dimension_numbers = #tpu.dot_dimension_numbers<[1], [0], [0], [1], [0, 0, 1, 1], [], []>} : vector<34x288xbf16>, vector<288x288xbf16>, vector<34x288xf32> -> vector<34x288xf32>
      %84 = arith.addf %76, %83 : vector<34x288xf32>
      %c2_68 = arith.constant 2 : index
      %c0_69 = arith.constant 0 : index
      %85 = vector.load %arg5[%c2_68, %c0_69] : memref<36x288xbf16, #tpu.memory_space<vmem>>, vector<34x288xbf16>
      %c3_i32_70 = arith.constant 3 : i32
      %86 = arith.muli %c3_i32_70, %69 : i32
      %c2_i32_71 = arith.constant 2 : i32
      %87 = arith.addi %86, %c2_i32_71 : i32
      %88 = arith.index_cast %87 : i32 to index
      %c0_72 = arith.constant 0 : index
      %c0_73 = arith.constant 0 : index
      %89 = vector.load %arg2[%88, %c0_72, %c0_73] : memref<24x288x288xbf16, #tpu.memory_space<vmem>>, vector<1x288x288xbf16>
      %90 = vector.shape_cast %89 : vector<1x288x288xbf16> to vector<288x288xbf16>
      %cst_74 = arith.constant dense<0.000000e+00> : vector<34x288xf32>
      %91 = tpu.matmul %85, %90, %cst_74 {dimension_numbers = #tpu.dot_dimension_numbers<[1], [0], [0], [1], [0, 0, 1, 1], [], []>} : vector<34x288xbf16>, vector<288x288xbf16>, vector<34x288xf32> -> vector<34x288xf32>
      %92 = arith.addf %84, %91 : vector<34x288xf32>
      %93 = arith.index_cast %69 : i32 to index
      %c0_75 = arith.constant 0 : index
      %c0_76 = arith.constant 0 : index
      %94 = vector.load %arg3[%93, %c0_75, %c0_76] : memref<8x1x288xf32, #tpu.memory_space<vmem>>, vector<1x1x288xf32>
      %95 = vector.shape_cast %94 : vector<1x1x288xf32> to vector<1x288xf32>
      %96 = vector.broadcast %95 : vector<1x288xf32> to vector<34x288xf32>
      %97 = arith.addf %92, %96 : vector<34x288xf32>
      %cst_77 = arith.constant 0.000000e+00 : f32
      %98 = vector.broadcast %cst_77 : f32 to vector<34x288xf32>
      %99 = arith.maximumf %97, %98 : vector<34x288xf32>
      %100 = vector.broadcast %11 : vector<34x1xf32> to vector<34x288xf32>
      %101 = arith.mulf %99, %100 : vector<34x288xf32>
      %102 = arith.truncf %101 : vector<34x288xf32> to vector<34x288xbf16>
      %c1_78 = arith.constant 1 : index
      %c0_79 = arith.constant 0 : index
      %103 = vector.load %arg5[%c1_78, %c0_79] : memref<36x288xbf16, #tpu.memory_space<vmem>>, vector<34x288xbf16>
      tpu.vector_store %arg5[%c1_78, %c0_79], %102 {strides = array<i32>} : memref<36x288xbf16, #tpu.memory_space<vmem>>, vector<34x288xbf16>,
      %c2_i32_80 = arith.constant 2 : i32
      %104 = arith.muli %c2_i32_80, %arg6 : i32
      %c2_i32_81 = arith.constant 2 : i32
      %105 = arith.addi %c2_i32_81, %104 : i32
      %c0_82 = arith.constant 0 : index
      %c0_83 = arith.constant 0 : index
      %106 = vector.load %arg5[%c0_82, %c0_83] : memref<36x288xbf16, #tpu.memory_space<vmem>>, vector<34x288xbf16>
      %c3_i32_84 = arith.constant 3 : i32
      %107 = arith.muli %c3_i32_84, %105 : i32
      %c0_i32_85 = arith.constant 0 : i32
      %108 = arith.addi %107, %c0_i32_85 : i32
      %109 = arith.index_cast %108 : i32 to index
      %c0_86 = arith.constant 0 : index
      %c0_87 = arith.constant 0 : index
      %110 = vector.load %arg2[%109, %c0_86, %c0_87] : memref<24x288x288xbf16, #tpu.memory_space<vmem>>, vector<1x288x288xbf16>
      %111 = vector.shape_cast %110 : vector<1x288x288xbf16> to vector<288x288xbf16>
      %cst_88 = arith.constant dense<0.000000e+00> : vector<34x288xf32>
      %112 = tpu.matmul %106, %111, %cst_88 {dimension_numbers = #tpu.dot_dimension_numbers<[1], [0], [0], [1], [0, 0, 1, 1], [], []>} : vector<34x288xbf16>, vector<288x288xbf16>, vector<34x288xf32> -> vector<34x288xf32>
      %c1_89 = arith.constant 1 : index
      %c0_90 = arith.constant 0 : index
      %113 = vector.load %arg5[%c1_89, %c0_90] : memref<36x288xbf16, #tpu.memory_space<vmem>>, vector<34x288xbf16>
      %c3_i32_91 = arith.constant 3 : i32
      %114 = arith.muli %c3_i32_91, %105 : i32
      %c1_i32_92 = arith.constant 1 : i32
      %115 = arith.addi %114, %c1_i32_92 : i32
      %116 = arith.index_cast %115 : i32 to index
      %c0_93 = arith.constant 0 : index
      %c0_94 = arith.constant 0 : index
      %117 = vector.load %arg2[%116, %c0_93, %c0_94] : memref<24x288x288xbf16, #tpu.memory_space<vmem>>, vector<1x288x288xbf16>
      %118 = vector.shape_cast %117 : vector<1x288x288xbf16> to vector<288x288xbf16>
      %cst_95 = arith.constant dense<0.000000e+00> : vector<34x288xf32>
      %119 = tpu.matmul %113, %118, %cst_95 {dimension_numbers = #tpu.dot_dimension_numbers<[1], [0], [0], [1], [0, 0, 1, 1], [], []>} : vector<34x288xbf16>, vector<288x288xbf16>, vector<34x288xf32> -> vector<34x288xf32>
      %120 = arith.addf %112, %119 : vector<34x288xf32>
      %c2_96 = arith.constant 2 : index
      %c0_97 = arith.constant 0 : index
      %121 = vector.load %arg5[%c2_96, %c0_97] : memref<36x288xbf16, #tpu.memory_space<vmem>>, vector<34x288xbf16>
      %c3_i32_98 = arith.constant 3 : i32
      %122 = arith.muli %c3_i32_98, %105 : i32
      %c2_i32_99 = arith.constant 2 : i32
      %123 = arith.addi %122, %c2_i32_99 : i32
      %124 = arith.index_cast %123 : i32 to index
      %c0_100 = arith.constant 0 : index
      %c0_101 = arith.constant 0 : index
      %125 = vector.load %arg2[%124, %c0_100, %c0_101] : memref<24x288x288xbf16, #tpu.memory_space<vmem>>, vector<1x288x288xbf16>
      %126 = vector.shape_cast %125 : vector<1x288x288xbf16> to vector<288x288xbf16>
      %cst_102 = arith.constant dense<0.000000e+00> : vector<34x288xf32>
      %127 = tpu.matmul %121, %126, %cst_102 {dimension_numbers = #tpu.dot_dimension_numbers<[1], [0], [0], [1], [0, 0, 1, 1], [], []>} : vector<34x288xbf16>, vector<288x288xbf16>, vector<34x288xf32> -> vector<34x288xf32>
      %128 = arith.addf %120, %127 : vector<34x288xf32>
      %129 = arith.index_cast %105 : i32 to index
      %c0_103 = arith.constant 0 : index
      %c0_104 = arith.constant 0 : index
      %130 = vector.load %arg3[%129, %c0_103, %c0_104] : memref<8x1x288xf32, #tpu.memory_space<vmem>>, vector<1x1x288xf32>
      %131 = vector.shape_cast %130 : vector<1x1x288xf32> to vector<1x288xf32>
      %132 = vector.broadcast %131 : vector<1x288xf32> to vector<34x288xf32>
      %133 = arith.addf %128, %132 : vector<34x288xf32>
      %134 = arith.addf %133, %arg7 : vector<34x288xf32>
      %cst_105 = arith.constant 0.000000e+00 : f32
      %135 = vector.broadcast %cst_105 : f32 to vector<34x288xf32>
      %136 = arith.maximumf %134, %135 : vector<34x288xf32>
      %137 = vector.broadcast %11 : vector<34x1xf32> to vector<34x288xf32>
      %138 = arith.mulf %136, %137 : vector<34x288xf32>
      scf.yield %138 : vector<34x288xf32>
    }
    %c3_i32_27 = arith.constant 3 : i32
    %39 = arith.truncf %38 : vector<34x288xf32> to vector<34x288xbf16>
    %c1_28 = arith.constant 1 : index
    %c0_29 = arith.constant 0 : index
    %40 = vector.load %arg5[%c1_28, %c0_29] : memref<36x288xbf16, #tpu.memory_space<vmem>>, vector<34x288xbf16>
    tpu.vector_store %arg5[%c1_28, %c0_29], %39 {strides = array<i32>} : memref<36x288xbf16, #tpu.memory_space<vmem>>, vector<34x288xbf16>,
    %c0_30 = arith.constant 0 : index
    %c0_31 = arith.constant 0 : index
    %41 = vector.load %arg5[%c0_30, %c0_31] : memref<36x288xbf16, #tpu.memory_space<vmem>>, vector<34x288xbf16>
    %c21 = arith.constant 21 : index
    %c0_32 = arith.constant 0 : index
    %c0_33 = arith.constant 0 : index
    %42 = vector.load %arg2[%c21, %c0_32, %c0_33] : memref<24x288x288xbf16, #tpu.memory_space<vmem>>, vector<1x288x288xbf16>
    %43 = vector.shape_cast %42 : vector<1x288x288xbf16> to vector<288x288xbf16>
    %cst_34 = arith.constant dense<0.000000e+00> : vector<34x288xf32>
    %44 = tpu.matmul %41, %43, %cst_34 {dimension_numbers = #tpu.dot_dimension_numbers<[1], [0], [0], [1], [0, 0, 1, 1], [], []>} : vector<34x288xbf16>, vector<288x288xbf16>, vector<34x288xf32> -> vector<34x288xf32>
    %c1_35 = arith.constant 1 : index
    %c0_36 = arith.constant 0 : index
    %45 = vector.load %arg5[%c1_35, %c0_36] : memref<36x288xbf16, #tpu.memory_space<vmem>>, vector<34x288xbf16>
    %c22 = arith.constant 22 : index
    %c0_37 = arith.constant 0 : index
    %c0_38 = arith.constant 0 : index
    %46 = vector.load %arg2[%c22, %c0_37, %c0_38] : memref<24x288x288xbf16, #tpu.memory_space<vmem>>, vector<1x288x288xbf16>
    %47 = vector.shape_cast %46 : vector<1x288x288xbf16> to vector<288x288xbf16>
    %cst_39 = arith.constant dense<0.000000e+00> : vector<34x288xf32>
    %48 = tpu.matmul %45, %47, %cst_39 {dimension_numbers = #tpu.dot_dimension_numbers<[1], [0], [0], [1], [0, 0, 1, 1], [], []>} : vector<34x288xbf16>, vector<288x288xbf16>, vector<34x288xf32> -> vector<34x288xf32>
    %49 = arith.addf %44, %48 : vector<34x288xf32>
    %c2_40 = arith.constant 2 : index
    %c0_41 = arith.constant 0 : index
    %50 = vector.load %arg5[%c2_40, %c0_41] : memref<36x288xbf16, #tpu.memory_space<vmem>>, vector<34x288xbf16>
    %c23 = arith.constant 23 : index
    %c0_42 = arith.constant 0 : index
    %c0_43 = arith.constant 0 : index
    %51 = vector.load %arg2[%c23, %c0_42, %c0_43] : memref<24x288x288xbf16, #tpu.memory_space<vmem>>, vector<1x288x288xbf16>
    %52 = vector.shape_cast %51 : vector<1x288x288xbf16> to vector<288x288xbf16>
    %cst_44 = arith.constant dense<0.000000e+00> : vector<34x288xf32>
    %53 = tpu.matmul %50, %52, %cst_44 {dimension_numbers = #tpu.dot_dimension_numbers<[1], [0], [0], [1], [0, 0, 1, 1], [], []>} : vector<34x288xbf16>, vector<288x288xbf16>, vector<34x288xf32> -> vector<34x288xf32>
    %54 = arith.addf %49, %53 : vector<34x288xf32>
    %c7 = arith.constant 7 : index
    %c0_45 = arith.constant 0 : index
    %c0_46 = arith.constant 0 : index
    %55 = vector.load %arg3[%c7, %c0_45, %c0_46] : memref<8x1x288xf32, #tpu.memory_space<vmem>>, vector<1x1x288xf32>
    %56 = vector.shape_cast %55 : vector<1x1x288xf32> to vector<1x288xf32>
    %57 = vector.broadcast %56 : vector<1x288xf32> to vector<34x288xf32>
    %58 = arith.addf %54, %57 : vector<34x288xf32>
    %cst_47 = arith.constant 0.000000e+00 : f32
    %59 = vector.broadcast %cst_47 : f32 to vector<34x288xf32>
    %60 = arith.maximumf %58, %59 : vector<34x288xf32>
    %61 = vector.broadcast %11 : vector<34x1xf32> to vector<34x288xf32>
    %62 = arith.mulf %60, %61 : vector<34x288xf32>
    %c0_48 = arith.constant 0 : index
    %c0_49 = arith.constant 0 : index
    %c0_50 = arith.constant 0 : index
    %63 = vector.load %arg4[%c0_48, %c0_49, %c0_50] : memref<1x34x288xf32, #tpu.memory_space<vmem>>, vector<1x34x288xf32>
    %64 = vector.shape_cast %63 : vector<1x34x288xf32> to vector<34x288xf32>
    %65 = vector.shape_cast %62 : vector<34x288xf32> to vector<1x34x288xf32>
    tpu.vector_store %arg4[%c0_48, %c0_49, %c0_50], %65 {strides = array<i32>} : memref<1x34x288xf32, #tpu.memory_space<vmem>>, vector<1x34x288xf32>,
    return
  }
  func.func @transform_0(%arg0: i32) -> (i32, i32, i32) {
    %c0_i32 = arith.constant 0 : i32
    %c0_i32_0 = arith.constant 0 : i32
    %c0_i32_1 = arith.constant 0 : i32
    return %arg0, %c0_i32, %c0_i32_0 : i32, i32, i32
  }
  func.func @transform_1(%arg0: i32) -> (i32, i32, i32) {
    %c0_i32 = arith.constant 0 : i32
    %c0_i32_0 = arith.constant 0 : i32
    %c0_i32_1 = arith.constant 0 : i32
    %c0_i32_2 = arith.constant 0 : i32
    return %c0_i32, %c0_i32_0, %c0_i32_1 : i32, i32, i32
  }
  func.func @transform_2(%arg0: i32) -> (i32, i32, i32) {
    %c0_i32 = arith.constant 0 : i32
    %c0_i32_0 = arith.constant 0 : i32
    %c0_i32_1 = arith.constant 0 : i32
    %c0_i32_2 = arith.constant 0 : i32
    return %c0_i32, %c0_i32_0, %c0_i32_1 : i32, i32, i32
  }
  func.func @transform_3(%arg0: i32) -> (i32, i32, i32) {
    %c0_i32 = arith.constant 0 : i32
    %c0_i32_0 = arith.constant 0 : i32
    %c0_i32_1 = arith.constant 0 : i32
    return %arg0, %c0_i32, %c0_i32_0 : i32, i32, i32
  }
}

</mosaic_0001>

<bundles_post_ra>
// kernel: tpu_custom_call.1
= control target key start
LH: loop header
LB: loop body
LE: loop exit
PB: predicated region body
PF: predicated region fallthrough
CT: control target
= control target key end

     0   :  { %8 = vsyncpa [#allocation4], 0  ;;  %s16343_s0 = inlined_call_operand.vmem [shape: bf16[2,36,288], index: 0, kind: input, shape index: {}]   ;;  %s16344_s1 = inlined_call_operand.hbm [shape: bf16[24,288,288], index: 1, kind: input, shape index: {}]   ;;  %s16345_s2 = inlined_call_operand.hbm [shape: f32[8,1,288], index: 2, kind: input, shape index: {}]   ;;  %s16346_s3 = inlined_call_operand.vmem [shape: f32[2,34,288], index: 3, kind: output, shape index: {}]  }
   0x1   :  { %9 = vsyncpa [#allocation6], 0  ;;  %s13067_s12 = smov 0  }
   0x2 LB: > { %s125_s15 = sshll.u32 %s16344_s1, 4  ;;  %s13076_s16 = sadd.s32 4294967295, %s12974_s12   ;;  %s12974_s12 = sphi %s13067_s12, %s15_s12   ;;  %s126_s15 = int_to_ptr.hbm [resolvable:$true] %s125_s15 }
   0x3   : > { %p8770_p0 = scmp.ge.s32.totalorder %s12974_s12, 1  ;;  %p114_p1 = scmp.lt.s32.totalorder %s12974_s12, 3 }
   0x4   : > { %p12688_p2 = scmp.eq.s32.totalorder %s13076_s16, 0  ;;  %s13040_s18 = smov [#allocation3]  }
   0x5   : > { %p13081_p3 = pnand %p8770_p0, %p114_p1  ;;  %s127_s19 = sshll.u32 %s13040_s18, 4  ;;  %s128_s19 = int_to_ptr.vmem [resolvable:$true] %s127_s19 }
   0x6   : > { %s139_s22 = sshll.u32 %s16345_s2, 4  ;;  %s13041_s23 = smov [#allocation5]   ;;  %s140_s22 = int_to_ptr.hbm [resolvable:$true] %s139_s22 }
   0x7   : > { %p12681_p4 = pneg %p13081_p3  ;;  %s141_s24 = sshll.u32 %s13041_s23, 4  ;;  %s142_s24 = int_to_ptr.vmem [resolvable:$true] %s141_s24 }
   0x8   : > { %s13042_s25 = smov 192   ;;  %s13043_s26 = smov 12  }
   0x9   : > { %p12682_p5 = pnand %p12688_p2, %p12681_p4  ;;  %s13044_s27 = smov 48  }
   0xa   : > { %s13045_s28 = smov 3   ;;  %165 = sbr.rel (%p13081_p3) target bundleno = 2007 (0x7d7), region = 32 }
   0xb   : > { %12684 = dma.hbm_to_vmem [thread:$0]  (!%p12682_p5), %s126_s15, 165888, %s128_s19, [#allocation4], %s13042_s25, %s13042_s25, %s13043_s26  }
   0xc   : > { %12687 = dma.hbm_to_vmem [thread:$0]  (!%p12682_p5), %s140_s22, 384, %s142_s24, [#allocation6], %s13044_s27, %s13044_s27, %s13045_s28  }
   0xf   : > { %12965 = dma.done.wait (%p12688_p2), [#allocation4], 165888  }
  0x10   : > { %12967 = vsyncadd (%p12688_p2), [#allocation4], 4294801408 }
  0x11   : > { %12969 = dma.done.wait (%p12688_p2), [#allocation6], 384  }
  0x12   : > { %12971 = vsyncadd (%p12688_p2), [#allocation6], 4294966912  ;;  %vm206_vm0 = vcmask 1040384   ;;  %vm207_vm1 = vsmask.f32 256  ;;  %vm209_vm2 = vcmask 1044484  }
  0x13   : > { %vm13103_vm3 = vmand %vm206_vm0, %vm207_vm1  ;;  %vm210_vm4 = vsmask.f32 4352  ;;  %vm216_vm5 = vcmask 253952   ;;  %vm221_vm7 = vcmask 1041409   ;;  %vm222_vm8 = vsmask.f32 7942 }
  0x14   : > { %vm13107_vm6 = vmand %vm209_vm2, %vm210_vm4  ;;  %p195_p6 = scmp.lt.s32.totalorder %s13076_s16, 1  ;;  %vm224_vm10 = vcmask 1045509   ;;  %vm225_vm11 = vsmask.f32 7958  ;;  %vm231_vm14 = vcmask 254977   ;;  %s13676_s10 = smov 0  }
  0x15   : > { %vm212_vm9 = vmor %vm13107_vm6, %vm13103_vm3  ;;  %v213_v3 = vld [vmem:[#allocation2] sm:$0x11]  ;;  %v218_v4 = vld [vmem:[#allocation2 + $0x8] sm:$0x1]  ;;  %vm817_vm3 = vcmask 261120  }
  0x16   : > { %vm13117_vm12 = vmand %vm216_vm5, %vm207_vm1  ;;  %s16465_s16 = smov (!%p195_p6, %s13076_s16), 1  ;;  %v214_v5 = vsel %vm212_vm9, 0, %v213_v3  ;;  %v228_v7 = vld [vmem:[#allocation2 + $0x30] sm:$0x22]  ;;  %v233_v8 = vld [vmem:[#allocation2 + $0x38] sm:$0x2] }
  0x17   : > { %vm223_vm13 = vmand %vm221_vm7, %vm222_vm8  ;;  %s12671_s29 = smul.u32 60, %s16465_s16  ;;  %v219_v6 = vsel %vm13117_vm12, 0, %v218_v4  ;;  %215 = vst [vmem:[#allocation2] sm:$0x11] %v214_v5  ;;  %v8877_v11 = vld [vmem:[#allocation3 + $0x258] sm:$0xf] }
  0x18   : > { %vm226_vm15 = vmand %vm224_vm10, %vm225_vm11  ;;  %s12672_s30 = smul.u32 120, %s16465_s16  ;;  %220 = vst [vmem:[#allocation2 + $0x8] sm:$0x1] %v219_v6  ;;  %v12062_v12 = vld [vmem:[#allocation3 + $0x260] sm:$0xf0]  ;;  %vm1633_vm5 = vcmask 1046528  }
  0x19   : > { %vm227_vm0 = vmor %vm226_vm15, %vm223_vm13  ;;  %v8973_v13 = vld [vmem:[#allocation3 + $0x318] sm:$0xf]  ;;  %v8878_v14 = vor.u32 %v12062_v12, %v8877_v11  ;;  %v12086_v15 = vld [vmem:[#allocation3 + $0x320] sm:$0xf0]  ;;  %s13140_s9 = scalar_lea.vmem %s16343_s0, %s12671_s29  ;;  %vm453_vm4 = vsmask.f32 7424 }
  0x1a   : > { %vm232_vm2 = vmand %vm231_vm14, %vm222_vm8  ;;  %v229_v9 = vsel %vm227_vm0, 0, %v228_v7  ;;  %s13133_s6 = scalar_lea.vmem %s16346_s3, %s12672_s30  ;;  %v8997_v16 = vld [vmem:[#allocation3 + $0x348] sm:$0xf]  ;;  %v8974_v17 = vor.u32 %v12086_v15, %v8973_v13  ;;  %v12092_v18 = vld [vmem:[#allocation3 + $0x350] sm:$0xf0] }
  0x1b   : > { %v234_v10 = vsel %vm232_vm2, 0, %v233_v8  ;;  %230 = vst [vmem:[#allocation2 + $0x30] sm:$0x22] %v229_v9  ;;  %v8865_v19 = vld [vmem:[#allocation3 + $0x240] sm:$0xf]  ;;  %827 = vmatpush.bf16.msra.mxu0 %v8878_v14  ;;  %12643 = vmatpush.bf16.msra.mxu3 %v8878_v14  ;;  %v8998_v20 = vor.u32 %v12092_v18, %v8997_v16  ;;  %v262_v60 = vld [vmem:[%s13140_s9] sm:$0xff] }
  0x1c   : > { %235 = vst [vmem:[#allocation2 + $0x38] sm:$0x2] %v234_v10  ;;  %v12059_v21 = vld [vmem:[#allocation3 + $0x248] sm:$0xf0]  ;;  %v8961_v22 = vld [vmem:[#allocation3 + $0x300] sm:$0xf]  ;;  %850 = vmatpush.bf16.msra.mxu1 %v8974_v17  ;;  %v429_v1 = vunpack.c.l.b16 %v262_v60  ;;  %v430_v2 = vunpack.c.h.b16 %v262_v60 }
  0x1d   : > { %v12083_v23 = vld [vmem:[#allocation3 + $0x308] sm:$0xf0]  ;;  %v8866_v24 = vor.u32 %v12059_v21, %v8865_v19  ;;  %v8985_v26 = vld [vmem:[#allocation3 + $0x330] sm:$0xf]  ;;  %v12089_v27 = vld [vmem:[#allocation3 + $0x338] sm:$0xf0]  ;;  %879 = vmatpush.bf16.msra.mxu2 %v8998_v20 }
  0x1e   : > { %v8962_v25 = vor.u32 %v12083_v23, %v8961_v22  ;;  %v8853_v28 = vld [vmem:[#allocation3 + $0x228] sm:$0xf]  ;;  %v8986_v29 = vor.u32 %v12089_v27, %v8985_v26  ;;  %v12056_v30 = vld [vmem:[#allocation3 + $0x230] sm:$0xf0]  ;;  %v263_v33 = vld [vmem:[%s13140_s9 + $0x8] sm:$0xf] }
  0x1f   : > { %v8949_v31 = vld [vmem:[#allocation3 + $0x2e8] sm:$0xf]  ;;  %v12080_v32 = vld [vmem:[#allocation3 + $0x2f0] sm:$0xf0]  ;;  %v13144_v34 = vld [vmem:[%s13140_s9 + $0x14] sm:$0xf]  ;;  %828 = vmatpush.bf16.msra.mxu0 %v8866_v24  ;;  %12644 = vmatpush.bf16.msra.mxu3 %v8866_v24  ;;  %v8854_v36 = vor.u32 %v12056_v30, %v8853_v28  ;;  %v431_v38 = vunpack.c.l.b16 %v263_v33 }
  0x20   : > { %v8789_v35 = vld [vmem:[%s13140_s9 + $0x20] sm:$0xf]  ;;  %v11985_v37 = vld [vmem:[%s13140_s9 + $0x28] sm:$0xf0]  ;;  %v434_v39 = vunpack.c.l.b16 %v13144_v34  ;;  %851 = vmatpush.bf16.msra.mxu1 %v8962_v25  ;;  %v8950_v40 = vor.u32 %v12080_v32, %v8949_v31  ;;  %v12053_v43 = vld [vmem:[#allocation3 + $0x218] sm:$0xf0] }
  0x21   : > { %v13149_v41 = vor.u32 %v11985_v37, %v8789_v35  ;;  %v8841_v42 = vld [vmem:[#allocation3 + $0x210] sm:$0xf]  ;;  %v12085_v44 = vld [vmem:[#allocation3 + $0x31c] sm:$0xf]  ;;  %880 = vmatpush.bf16.msra.mxu2 %v8986_v29  ;;  %v8975_v48 = vld [vmem:[#allocation3 + $0x324] sm:$0xf0] }
  0x22   : > { %v13153_v45 = vpack.c.b16 %v434_v39, %v431_v38  ;;  %v8937_v46 = vld [vmem:[#allocation3 + $0x2d0] sm:$0xf]  ;;  %v12077_v47 = vld [vmem:[#allocation3 + $0x2d8] sm:$0xf0]  ;;  %v8978_v50 = vor.u32 %v12085_v44, %v8975_v48  ;;  %v8842_v53 = vor.u32 %v12053_v43, %v8841_v42  ;;  %v8829_v54 = vld [vmem:[#allocation3 + $0x1f8] sm:$0xf] }
  0x23   : > { %v486_v49 = vshll.u32 %v13149_v41, 16  ;;  %829 = vmatpush.bf16.msra.mxu0 %v8854_v36  ;;  %12645 = vmatpush.bf16.msra.mxu3 %v8854_v36  ;;  %v12050_v55 = vld [vmem:[#allocation3 + $0x200] sm:$0xf0]  ;;  %v8938_v57 = vor.u32 %v12077_v47, %v8937_v46  ;;  %v8925_v58 = vld [vmem:[#allocation3 + $0x2b8] sm:$0xf]  ;;  %v13162_v0 = vld [vmem:[%s13140_s9 + $0xc] sm:$0xff] }
  0x24   : > { %v479_v51 = vshrl.u32 %v13153_v45, 16  ;;  %v481_v52 = vshll.u32 %v13153_v45, 16  ;;  %852 = vmatpush.bf16.msra.mxu1 %v8950_v40  ;;  %v12074_v59 = vld [vmem:[#allocation3 + $0x2c0] sm:$0xf0]  ;;  %v8963_v63 = vld [vmem:[#allocation3 + $0x30c] sm:$0xf0]  ;;  %v432_v5 = vunpack.c.l.b16 %v13162_v0  ;;  %v433_v6 = vunpack.c.h.b16 %v13162_v0 }
  0x25   : > { %v13158_v56 = vrot.slane %v486_v49, 1  ;;  %919 = vmatpush.bf16.msrb.mxu2 %v8978_v50  ;;  %v12082_v62 = vld [vmem:[#allocation3 + $0x304] sm:$0xf]  ;;  %v8817_v3 = vld [vmem:[#allocation3 + $0x1e0] sm:$0xf]  ;;  %v8830_v8 = vor.u32 %v12050_v55, %v8829_v54  ;;  %v8926_v12 = vor.u32 %v12074_v59, %v8925_v58  ;;  %v506_v40 = vshrl.u32 %v13149_v41, 16 }
  0x26   : > { %v483_v61 = vrot.slane %v481_v52, 1  ;;  %v8966_v4 = vor.u32 %v12082_v62, %v8963_v63  ;;  %v12047_v9 = vld [vmem:[#allocation3 + $0x1e8] sm:$0xf0]  ;;  %v345_v10 = vld [vmem:[%s13140_s9 + $0x38] sm:$0x3]  ;;  %v13169_v17 = vpack.c.b16 %v432_v5, %v429_v1  ;;  %v13173_v18 = vpack.c.b16 %v433_v6, %v430_v2 }
  0x27   : > { %830 = vmatpush.bf16.msra.mxu0 %v8842_v53  ;;  %12646 = vmatpush.bf16.msra.mxu3 %v8842_v53  ;;  %v12079_v11 = vld [vmem:[#allocation3 + $0x2ec] sm:$0xf]  ;;  %v8913_v13 = vld [vmem:[#allocation3 + $0x2a0] sm:$0xf]  ;;  %v443_v15 = vunpack.c.l.b16 %v345_v10  ;;  %v8951_v16 = vld [vmem:[#allocation3 + $0x2f4] sm:$0xf0]  ;;  %v8818_v25 = vor.u32 %v12047_v9, %v8817_v3 }
  0x28   : > { %v484_v7 = vor.u32 %v483_v61, %v479_v51  ;;  %853 = vmatpush.bf16.msra.mxu1 %v8938_v57  ;;  %v12071_v14 = vld [vmem:[#allocation3 + $0x2a8] sm:$0xf0]  ;;  %v8805_v20 = vld [vmem:[#allocation3 + $0x1c8] sm:$0xf]  ;;  %v12044_v21 = vld [vmem:[#allocation3 + $0x1d0] sm:$0xf0]  ;;  %v8954_v23 = vor.u32 %v12079_v11, %v8951_v16 }
  0x29   : > { %920 = vmatpush.bf16.msrb.mxu2 %v8966_v4  ;;  %v13179_v22 = vld [vmem:[#allocation3 + $0x288] sm:$0xf]  ;;  %v8781_v24 = vld [vmem:[%s13140_s9 + $0x18] sm:$0xf]  ;;  %v12068_v26 = vld [vmem:[#allocation3 + $0x290] sm:$0xf0]  ;;  %v13188_v29 = vpack.c.b16 %v443_v15, %v443_v15  ;;  %v8914_v36 = vor.u32 %v12071_v14, %v8913_v13  ;;  %v8806_v49 = vor.u32 %v12044_v21, %v8805_v20 }
  0x2a   : > { %v13177_v19 = vsel %vm453_vm4, %v484_v7, %v13158_v56  ;;  %v11984_v27 = vld [vmem:[%s13140_s9 + $0x20] sm:$0xf0]  ;;  %v13186_v28 = vld [vmem:[%s13140_s9 + $0x30] sm:$0x33]  ;;  %v457_v31 = vshll.u32 %v13169_v17, 16  ;;  %v469_v38 = vshll.u32 %v13173_v18, 16  ;;  %v8902_v50 = vor.u32 %v12068_v26, %v13179_v22 }
  0x2b   : > { %9007 = vmatmul.msk.bf16.vlgmr.msra.gmra.mxu2 %vm817_vm3, %v13177_v19  ;;  %831 = vmatpush.bf16.msra.mxu0 %v8830_v8  ;;  %v13190_v30 = vor.u32 %v11984_v27, %v8781_v24  ;;  %v441_v32 = vunpack.c.l.b16 %v13186_v28  ;;  %v11983_v33 = vld [vmem:[%s13140_s9 + $0x1c] sm:$0xf]  ;;  %v8783_v35 = vld [vmem:[%s13140_s9 + $0x24] sm:$0xf0]  ;;  %v8793_v42 = vld [vmem:[#allocation3 + $0x1b0] sm:$0xf] }
  0x2c   : > { %12647 = vmatpush.bf16.msra.mxu3 %v8830_v8  ;;  %854 = vmatpush.bf16.msra.mxu1 %v8926_v12  ;;  %v13196_v37 = vor.u32 %v11983_v33, %v8783_v35  ;;  %v12041_v43 = vld [vmem:[#allocation3 + $0x1b8] sm:$0xf0]  ;;  %v8889_v44 = vld [vmem:[#allocation3 + $0x270] sm:$0xf]  ;;  %v12076_v48 = vld [vmem:[#allocation3 + $0x2d4] sm:$0xf]  ;;  %v508_v8 = vor.u32 %v506_v40, %v13158_v56 }
  0x2d   : > { %921 = vmatpush.bf16.msrb.mxu2 %v8954_v23  ;;  %v462_v46 = vshll.u32 %v13190_v30, 16  ;;  %v13201_v47 = vpack.c.b16 %v441_v32, %v441_v32  ;;  %v12065_v51 = vld [vmem:[#allocation3 + $0x278] sm:$0xf0]  ;;  %v455_v52 = vshrl.u32 %v13169_v17, 16  ;;  %v467_v53 = vshrl.u32 %v13173_v18, 16 }
  0x2e   : > { %v8939_v54 = vld [vmem:[#allocation3 + $0x2dc] sm:$0xf0]  ;;  %v510_v55 = vshll.u32 %v13188_v29, 16  ;;  %v459_v57 = vrot.slane %v457_v31, 1  ;;  %v490_v58 = vshrl.u32 %v13190_v30, 16  ;;  %v471_v63 = vrot.slane %v469_v38, 1 }
  0x2f   : > { %832 = vmatpush.bf16.msra.mxu0 %v8818_v25  ;;  %v12061_v59 = vld [vmem:[#allocation3 + $0x25c] sm:$0xf]  ;;  %v8942_v60 = vor.u32 %v12076_v48, %v8939_v54  ;;  %v464_v61 = vrot.slane %v462_v46, 1  ;;  %v494_v62 = vshll.u32 %v13201_v47, 16  ;;  %v474_v1 = vshll.u32 %v13196_v37, 16 }
  0x30   : > { %12648 = vmatpush.bf16.msra.mxu3 %v8818_v25  ;;  %855 = vmatpush.bf16.msra.mxu1 %v8914_v36  ;;  %v8879_v2 = vld [vmem:[#allocation3 + $0x264] sm:$0xf0]  ;;  %v12091_v3 = vld [vmem:[#allocation3 + $0x34c] sm:$0xf]  ;;  %v8999_v4 = vld [vmem:[#allocation3 + $0x354] sm:$0xf0]  ;;  %v8794_v9 = vor.u32 %v12041_v43, %v8793_v42  ;;  %v8890_v10 = vor.u32 %v12065_v51, %v8889_v44  ;;  %v460_v15 = vor.u32 %v459_v57, %v455_v52  ;;  %v442_v51 = vunpack.c.h.b16 %v13186_v28 }
  0x31   : > { %922 = vmatpush.bf16.msrb.mxu2 %v8942_v60  ;;  %v12073_v7 = vld [vmem:[#allocation3 + $0x2bc] sm:$0xf]  ;;  %v8885_v11 = vld [vmem:[#allocation3 + $0x260] sm:$0xf]  ;;  %v12063_v12 = vld [vmem:[#allocation3 + $0x268] sm:$0xf0]  ;;  %v8882_v16 = vor.u32 %v12061_v59, %v8879_v2  ;;  %v492_v21 = vor.u32 %v490_v58, %v464_v61  ;;  %v472_v23 = vor.u32 %v471_v63, %v467_v53  ;;  %v9002_v26 = vor.u32 %v12091_v3, %v8999_v4 }
  0x32   : > { %v8927_v13 = vld [vmem:[#allocation3 + $0x2c4] sm:$0xf0]  ;;  %v13211_v14 = vrot.slane %v510_v55, 1  ;;  %v13213_v22 = vrot.slane %v494_v62, 1  ;;  %v13215_v24 = vrot.slane %v474_v1, 1  ;;  %v8886_v27 = vor.u32 %v12063_v12, %v8885_v11 }
  0x33   : > { %833 = vmatpush.bf16.msra.mxu0 %v8806_v49  ;;  %v8930_v20 = vor.u32 %v12073_v7, %v8927_v13  ;;  %v12058_v56 = vld [vmem:[#allocation3 + $0x244] sm:$0xf]  ;;  %v8867_v25 = vld [vmem:[#allocation3 + $0x24c] sm:$0xf0]  ;;  %v8873_v31 = vld [vmem:[#allocation3 + $0x248] sm:$0xf]  ;;  %v13222_v42 = vsel %vm453_vm4, %v460_v15, %v464_v61  ;;  %v13238_v1 = vpack.c.b16 %v442_v51, %v442_v51 }
  0x34   : > { %12649 = vmatpush.bf16.msra.mxu3 %v8806_v49  ;;  %856 = vmatpush.bf16.msra.mxu1 %v8902_v50  ;;  %v12070_v32 = vld [vmem:[#allocation3 + $0x2a4] sm:$0xf]  ;;  %v8915_v33 = vld [vmem:[#allocation3 + $0x2ac] sm:$0xf0]  ;;  %v12060_v35 = vld [vmem:[#allocation3 + $0x250] sm:$0xf0]  ;;  %v13219_v40 = vsel %vm453_vm4, %v508_v8, %v13211_v14  ;;  %v8870_v43 = vor.u32 %v12058_v56, %v8867_v25  ;;  %v13226_v44 = vsel %vm453_vm4, %v492_v21, %v13213_v22 }
  0x35   : > { %923 = vmatpush.bf16.msrb.mxu2 %v8930_v20  ;;  %v12088_v36 = vld [vmem:[#allocation3 + $0x334] sm:$0xf]  ;;  %v8987_v38 = vld [vmem:[#allocation3 + $0x33c] sm:$0xf0]  ;;  %v13230_v46 = vsel %vm453_vm4, %v472_v23, %v13215_v24  ;;  %v12055_v48 = vld [vmem:[#allocation3 + $0x22c] sm:$0xf]  ;;  %v8918_v50 = vor.u32 %v12070_v32, %v8915_v33  ;;  %v8874_v53 = vor.u32 %v12060_v35, %v8873_v31 }
  0x36   : > { %v8855_v49 = vld [vmem:[#allocation3 + $0x234] sm:$0xf0]  ;;  %v12067_v52 = vld [vmem:[#allocation3 + $0x28c] sm:$0xf]  ;;  %v8990_v54 = vor.u32 %v12088_v36, %v8987_v38  ;;  %v9102_v57 = vld [vmem:[#allocation3 + $0xa8] sm:$0xf] }
  0x37   : > { %834 = vmatpush.bf16.msra.mxu0 %v8794_v9  ;;  %v8903_v55 = vld [vmem:[#allocation3 + $0x294] sm:$0xf0]  ;;  %v12008_v58 = vld [vmem:[#allocation3 + $0xb0] sm:$0xf0]  ;;  %v8861_v59 = vld [vmem:[#allocation3 + $0x230] sm:$0xf]  ;;  %v8858_v62 = vor.u32 %v12055_v48, %v8855_v49 }
  0x38   : > { %12650 = vmatpush.bf16.msra.mxu3 %v8794_v9  ;;  %857 = vmatpush.bf16.msra.mxu1 %v8890_v10  ;;  %v12057_v60 = vld [vmem:[#allocation3 + $0x238] sm:$0xf0]  ;;  %v9103_v61 = vor.u32 %v12008_v58, %v9102_v57  ;;  %v12052_v28 = vld [vmem:[#allocation3 + $0x214] sm:$0xf]  ;;  %v8843_v63 = vld [vmem:[#allocation3 + $0x21c] sm:$0xf0]  ;;  %v8906_v2 = vor.u32 %v12067_v52, %v8903_v55 }
  0x39   : > { %924 = vmatpush.bf16.msrb.mxu2 %v8918_v50  ;;  %v9090_v3 = vld [vmem:[#allocation3 + $0x90] sm:$0xf]  ;;  %v12005_v4 = vld [vmem:[#allocation3 + $0x98] sm:$0xf0]  ;;  %v8862_v7 = vor.u32 %v12057_v60, %v8861_v59  ;;  %v12064_v8 = vld [vmem:[#allocation3 + $0x274] sm:$0xf]  ;;  %v8846_v20 = vor.u32 %v12052_v28, %v8843_v63 }
  0x3a   : > { %835 = vmatmul.bf16.vlgmr.msra.gmra.mxu0 %v13222_v42  ;;  %v8891_v9 = vld [vmem:[#allocation3 + $0x27c] sm:$0xf0]  ;;  %v8849_v10 = vld [vmem:[#allocation3 + $0x218] sm:$0xf]  ;;  %v12054_v11 = vld [vmem:[#allocation3 + $0x220] sm:$0xf0]  ;;  %v9091_v12 = vor.u32 %v12005_v4, %v9090_v3 }
  0x3b   : > { %948 = vmatpush.bf16.msrb.mxu0 %v9002_v26  ;;  %9008 = vmatmul.msk.bf16.gmra.mxu2 %vm817_vm3, %v13219_v40  ;;  %v9005_v13 = vld [vmem:[#allocation3 + $0x350] sm:$0xf]  ;;  %v12093_v15 = vld [vmem:[#allocation3 + $0x358] sm:$0xf0]  ;;  %v498_v21 = vshrl.u32 %v13196_v37, 16  ;;  %v502_v23 = vshll.u32 %v13238_v1, 16  ;;  %v8894_v56 = vor.u32 %v12064_v8, %v8891_v9  ;;  %v8850_v31 = vor.u32 %v12054_v11, %v8849_v10 }
  0x3c   : > { %896 = vmatpush.bf16.msrb.mxu3 %v8882_v16  ;;  %965 = vmatpush.bf16.msrb.mxu1 %v8886_v27  ;;  %v9078_v16 = vld [vmem:[#allocation3 + $0x78] sm:$0xf]  ;;  %v12002_v25 = vld [vmem:[#allocation3 + $0x80] sm:$0xf0]  ;;  %v12049_v26 = vld [vmem:[#allocation3 + $0x1fc] sm:$0xf]  ;;  %v9006_v32 = vor.u32 %v12093_v15, %v9005_v13 }
  0x3d   : > { %840 = vmatmul.bf16.vlgmr.msra.gmra.mxu3 %v13226_v44  ;;  %858 = vmatmul.bf16.vlgmr.msra.gmra.mxu1 %v13230_v46  ;;  %v8831_v27 = vld [vmem:[#allocation3 + $0x204] sm:$0xf0]  ;;  %v520_v33 = vshrl.u32 %v13188_v29, 16  ;;  %v8837_v35 = vld [vmem:[#allocation3 + $0x200] sm:$0xf]  ;;  %v9079_v38 = vor.u32 %v12002_v25, %v9078_v16  ;;  %v500_v48 = vor.u32 %v498_v21, %v13215_v24  ;;  %v13245_v49 = vrot.slane %v502_v23, 1 }
  0x3e   : > { %925 = vmatpush.bf16.msrb.mxu2 %v8906_v2  ;;  %v12051_v36 = vld [vmem:[#allocation3 + $0x208] sm:$0xf0]  ;;  %v8834_v50 = vor.u32 %v12049_v26, %v8831_v27  ;;  %v12046_v51 = vld [vmem:[#allocation3 + $0x1e4] sm:$0xf]  ;;  %v8819_v52 = vld [vmem:[#allocation3 + $0x1ec] sm:$0xf0] }
  0x3f   : > { %949 = vmatpush.bf16.msrb.mxu0 %v8990_v54  ;;  %v9066_v54 = vld [vmem:[#allocation3 + $0x60] sm:$0xf]  ;;  %v11999_v55 = vld [vmem:[#allocation3 + $0x68] sm:$0xf0]  ;;  %v13248_v57 = vor.u32 %v520_v33, %v13211_v14  ;;  %v8825_v58 = vld [vmem:[#allocation3 + $0x1e8] sm:$0xf]  ;;  %v13255_v24 = vsel %vm453_vm4, %v500_v48, %v13245_v49 }
  0x40   : > { %897 = vmatpush.bf16.msrb.mxu3 %v8870_v43  ;;  %966 = vmatpush.bf16.msrb.mxu1 %v8874_v53  ;;  %v514_v43 = vshrl.u32 %v13201_v47, 16  ;;  %v8838_v53 = vor.u32 %v12051_v36, %v8837_v35  ;;  %v12048_v59 = vld [vmem:[#allocation3 + $0x1f0] sm:$0xf0]  ;;  %v9067_v28 = vor.u32 %v11999_v55, %v9066_v54  ;;  %v8807_v63 = vld [vmem:[#allocation3 + $0x1d4] sm:$0xf0] }
  0x41   : > { %v8826_v2 = vor.u32 %v12048_v59, %v8825_v58  ;;  %v8813_v14 = vld [vmem:[#allocation3 + $0x1d0] sm:$0xf]  ;;  %v12040_v3 = vld [vmem:[#allocation3 + $0x1b4] sm:$0xf]  ;;  %v9054_v4 = vld [vmem:[#allocation3 + $0x48] sm:$0xf] }
  0x42   : > { %926 = vmatpush.bf16.msrb.mxu2 %v8894_v56  ;;  %v13251_v60 = vor.u32 %v514_v43, %v13213_v22  ;;  %v12045_v22 = vld [vmem:[#allocation3 + $0x1d8] sm:$0xf0]  ;;  %v8795_v9 = vld [vmem:[#allocation3 + $0x1bc] sm:$0xf0]  ;;  %v12087_v11 = vld [vmem:[#allocation3 + $0x328] sm:$0xf0] }
  0x43   : > { %1343 = vmatpush.bf16.msra.mxu0 %v9103_v61  ;;  %v8822_v61 = vor.u32 %v12046_v51, %v8819_v52  ;;  %v8981_v10 = vld [vmem:[#allocation3 + $0x320] sm:$0xf]  ;;  %v8814_v13 = vor.u32 %v12045_v22, %v8813_v14  ;;  %v8801_v15 = vld [vmem:[#allocation3 + $0x1b8] sm:$0xf]  ;;  %v9042_v16 = vld [vmem:[#allocation3 + $0x30] sm:$0xf] }
  0x44   : > { %898 = vmatpush.bf16.msrb.mxu3 %v8858_v62  ;;  %967 = vmatpush.bf16.msrb.mxu1 %v8862_v7  ;;  %v12043_v62 = vld [vmem:[#allocation3 + $0x1cc] sm:$0xf]  ;;  %v11996_v7 = vld [vmem:[#allocation3 + $0x50] sm:$0xf0]  ;;  %v12042_v21 = vld [vmem:[#allocation3 + $0x1c0] sm:$0xf0]  ;;  %v8982_v33 = vor.u32 %v12087_v11, %v8981_v10 }
  0x45   : > { %v8810_v8 = vor.u32 %v12043_v62, %v8807_v63  ;;  %v8993_v23 = vld [vmem:[#allocation3 + $0x338] sm:$0xf]  ;;  %v12090_v56 = vld [vmem:[#allocation3 + $0x340] sm:$0xf0]  ;;  %v9198_v25 = vld [vmem:[#allocation3 + $0x168] sm:$0xf]  ;;  %v8802_v35 = vor.u32 %v12042_v21, %v8801_v15 }
  0x46   : > { %1017 = vmatpush.bf16.msra.mxu2 %v9006_v32  ;;  %v12032_v26 = vld [vmem:[#allocation3 + $0x170] sm:$0xf0]  ;;  %v8994_v27 = vor.u32 %v12090_v56, %v8993_v23  ;;  %v9030_v36 = vld [vmem:[#allocation3 + $0x18] sm:$0xf]  ;;  %v8969_v43 = vld [vmem:[#allocation3 + $0x308] sm:$0xf] }
  0x47   : > { %1344 = vmatpush.bf16.msra.mxu0 %v9091_v12  ;;  %v9055_v12 = vor.u32 %v11996_v7, %v9054_v4  ;;  %v12084_v48 = vld [vmem:[#allocation3 + $0x310] sm:$0xf0]  ;;  %v517_v51 = vshrl.u32 %v13238_v1, 16  ;;  %v8957_v54 = vld [vmem:[#allocation3 + $0x2f0] sm:$0xf] }
  0x48   : > { %899 = vmatpush.bf16.msrb.mxu3 %v8846_v20  ;;  %968 = vmatpush.bf16.msrb.mxu1 %v8850_v31  ;;  %v11993_v20 = vld [vmem:[#allocation3 + $0x38] sm:$0xf0]  ;;  %v8798_v31 = vor.u32 %v12040_v3, %v8795_v9  ;;  %v9186_v62 = vld [vmem:[#allocation3 + $0x150] sm:$0xf]  ;;  %v9174_v3 = vld [vmem:[#allocation3 + $0x138] sm:$0xf] }
  0x49   : > { %v9043_v32 = vor.u32 %v11993_v20, %v9042_v16  ;;  %v12081_v55 = vld [vmem:[#allocation3 + $0x2f8] sm:$0xf0]  ;;  %v13265_v58 = vor.u32 %v517_v51, %v13245_v49  ;;  %v11987_v49 = vld [vmem:[#allocation3 + $0x8] sm:$0xf0]  ;;  %v12026_v4 = vld [vmem:[#allocation3 + $0x140] sm:$0xf0] }
  0x4a   : > { %9010 = vmatmul.msk.bf16.vlgmr.msrb.gmra.mxu0 %vm817_vm3, %v13177_v19  ;;  %1018 = vmatpush.bf16.msra.mxu2 %v8994_v27  ;;  %v8958_v59 = vor.u32 %v12081_v55, %v8957_v54  ;;  %v12029_v63 = vld [vmem:[#allocation3 + $0x158] sm:$0xf0]  ;;  %v9175_v9 = vor.u32 %v12026_v4, %v9174_v3  ;;  %v12031_v10 = vld [vmem:[#allocation3 + $0x16c] sm:$0xf]  ;;  %v9200_v11 = vld [vmem:[#allocation3 + $0x174] sm:$0xf0] }
  0x4b   : > { %1345 = vmatpush.bf16.msra.mxu0 %v9079_v38  ;;  %9009 = vmatmul.msk.bf16.gmra.mxu2 %vm817_vm3, %v13248_v57  ;;  %v11990_v38 = vld [vmem:[#allocation3 + $0x20] sm:$0xf0]  ;;  %v9187_v14 = vor.u32 %v12029_v63, %v9186_v62  ;;  %v9162_v15 = vld [vmem:[#allocation3 + $0x120] sm:$0xf]  ;;  %v12023_v16 = vld [vmem:[#allocation3 + $0x128] sm:$0xf0] }
  0x4c   : > { %900 = vmatpush.bf16.msrb.mxu3 %v8834_v50  ;;  %969 = vmatpush.bf16.msrb.mxu1 %v8838_v53  ;;  %v9199_v50 = vor.u32 %v12032_v26, %v9198_v25  ;;  %v9031_v52 = vor.u32 %v11990_v38, %v9030_v36  ;;  %v8970_v53 = vor.u32 %v12084_v48, %v8969_v43  ;;  %v8921_v23 = vld [vmem:[#allocation3 + $0x2a8] sm:$0xf]  ;;  %v12072_v56 = vld [vmem:[#allocation3 + $0x2b0] sm:$0xf0]  ;;  %v8909_v26 = vld [vmem:[#allocation3 + $0x290] sm:$0xf] }
  0x4d   : > { %845 = vmatmul.bf16.gmra.mxu3 %v13251_v60  ;;  %863 = vmatmul.bf16.gmra.mxu1 %v13255_v24  ;;  %v9163_v21 = vor.u32 %v12023_v16, %v9162_v15  ;;  %v8922_v25 = vor.u32 %v12072_v56, %v8921_v23  ;;  %v12069_v27 = vld [vmem:[#allocation3 + $0x298] sm:$0xf0]  ;;  %v9188_v36 = vld [vmem:[#allocation3 + $0x15c] sm:$0xf0]  ;;  %v9150_v38 = vld [vmem:[#allocation3 + $0x108] sm:$0xf] }
  0x4e   : > { %v12020_v48 = vld [vmem:[#allocation3 + $0x110] sm:$0xf0]  ;;  %v9104_v51 = vld [vmem:[#allocation3 + $0xb4] sm:$0xf0]  ;;  %v12038_v55 = vld [vmem:[#allocation3 + $0x1a0] sm:$0xf0] }
  0x4f   : > { %1346 = vmatpush.bf16.msra.mxu0 %v9067_v28  ;;  %v12078_v28 = vld [vmem:[#allocation3 + $0x2e0] sm:$0xf0]  ;;  %v9222_v54 = vld [vmem:[#allocation3 + $0x198] sm:$0xf]  ;;  %v9138_v62 = vld [vmem:[#allocation3 + $0xf0] sm:$0xf] }
  0x50   : > { %901 = vmatpush.bf16.msrb.mxu3 %v8822_v61  ;;  %970 = vmatpush.bf16.msrb.mxu1 %v8826_v2  ;;  %v8945_v61 = vld [vmem:[#allocation3 + $0x2d8] sm:$0xf]  ;;  %v9018_v2 = vld [vmem:[#allocation3] sm:$0xf]  ;;  %v12017_v63 = vld [vmem:[#allocation3 + $0xf8] sm:$0xf0] }
  0x51   : > { %v9019_v22 = vor.u32 %v11987_v49, %v9018_v2  ;;  %v8946_v7 = vor.u32 %v12078_v28, %v8945_v61  ;;  %v9176_v28 = vld [vmem:[#allocation3 + $0x144] sm:$0xf0]  ;;  %v9223_v2 = vor.u32 %v12038_v55, %v9222_v54  ;;  %v12004_v49 = vld [vmem:[#allocation3 + $0x94] sm:$0xf]  ;;  %v12022_v3 = vld [vmem:[#allocation3 + $0x124] sm:$0xf] }
  0x52   : > { %v9114_v15 = vld [vmem:[#allocation3 + $0xc0] sm:$0xf]  ;;  %v9152_v23 = vld [vmem:[#allocation3 + $0x114] sm:$0xf0]  ;;  %v9128_v54 = vld [vmem:[#allocation3 + $0xe4] sm:$0xf0] }
  0x53   : > { %1347 = vmatpush.bf16.msra.mxu0 %v9055_v12  ;;  %v12075_v12 = vld [vmem:[#allocation3 + $0x2c8] sm:$0xf0]  ;;  %v9437_v0 = vld [vmem:[#allocation3 + $0x4ec] sm:$0xf0] }
  0x54   : > { %902 = vmatpush.bf16.msrb.mxu3 %v8810_v8  ;;  %971 = vmatpush.bf16.msrb.mxu1 %v8814_v13  ;;  %v8933_v8 = vld [vmem:[#allocation3 + $0x2c0] sm:$0xf]  ;;  %v9203_v13 = vor.u32 %v12031_v10, %v9200_v11 }
  0x55   : > { %v8934_v20 = vor.u32 %v12075_v12, %v8933_v8  ;;  %v9126_v8 = vld [vmem:[#allocation3 + $0xd8] sm:$0xf]  ;;  %v12001_v12 = vld [vmem:[#allocation3 + $0x7c] sm:$0xf] }
  0x57   : > { %1348 = vmatpush.bf16.msra.mxu0 %v9043_v32  ;;  %v8897_v32 = vld [vmem:[#allocation3 + $0x278] sm:$0xf] }
  0x58   : > { %903 = vmatpush.bf16.msrb.mxu3 %v8798_v31  ;;  %972 = vmatpush.bf16.msrb.mxu1 %v8802_v35  ;;  %v8910_v31 = vor.u32 %v12069_v27, %v8909_v26  ;;  %v12028_v35 = vld [vmem:[#allocation3 + $0x154] sm:$0xf]  ;;  %v11998_v26 = vld [vmem:[#allocation3 + $0x64] sm:$0xf]  ;;  %v9068_v27 = vld [vmem:[#allocation3 + $0x6c] sm:$0xf0] }
  0x59   : > { %v9191_v43 = vor.u32 %v12028_v35, %v9188_v36  ;;  %v12037_v35 = vld [vmem:[#allocation3 + $0x19c] sm:$0xf] }
  0x5a   : > { %9011 = vmatmul.msk.bf16.gmra.mxu0 %vm817_vm3, %v13219_v40 }
  0x5b   : > { %1349 = vmatpush.bf16.msra.mxu0 %v9031_v52  ;;  %927 = vmatmul.bf16.vlgmr.msrb.gmra.mxu2 %v13230_v46  ;;  %v9151_v52 = vor.u32 %v12020_v48, %v9150_v38  ;;  %v9224_v38 = vld [vmem:[#allocation3 + $0x1a4] sm:$0xf0]  ;;  %v9056_v48 = vld [vmem:[#allocation3 + $0x54] sm:$0xf0] }
  0x5c   : > { %988 = vmatpush.bf16.msra.mxu3 %v8982_v33  ;;  %1366 = vmatpush.bf16.msra.mxu1 %v9199_v50  ;;  %v12066_v33 = vld [vmem:[#allocation3 + $0x280] sm:$0xf0]  ;;  %v12007_v50 = vld [vmem:[#allocation3 + $0xac] sm:$0xf] }
  0x5d   : > { %868 = vmatmul.bf16.gmra.mxu1 %v13265_v58  ;;  %904 = vmatmul.bf16.vlgmr.msrb.gmra.mxu3 %v13222_v42  ;;  %v8898_v61 = vor.u32 %v12066_v33, %v8897_v32  ;;  %v12016_v32 = vld [vmem:[#allocation3 + $0xf4] sm:$0xf]  ;;  %v9140_v33 = vld [vmem:[#allocation3 + $0xfc] sm:$0xf0] }
  0x5e   : > { %v9143_v36 = vor.u32 %v12016_v32, %v9140_v33  ;;  %v12003_v33 = vld [vmem:[#allocation3 + $0x88] sm:$0xf0] }
  0x5f   : > { %1350 = vmatpush.bf16.msra.mxu0 %v9019_v22  ;;  %v9092_v22 = vld [vmem:[#allocation3 + $0x9c] sm:$0xf0] }
  0x60   : > { %989 = vmatpush.bf16.msra.mxu3 %v8970_v53  ;;  %1367 = vmatpush.bf16.msra.mxu1 %v9187_v14  ;;  %v9107_v53 = vor.u32 %v12007_v50, %v9104_v51  ;;  %v9095_v4 = vor.u32 %v12004_v49, %v9092_v22  ;;  %v9210_v50 = vld [vmem:[#allocation3 + $0x180] sm:$0xf]  ;;  %v12035_v51 = vld [vmem:[#allocation3 + $0x188] sm:$0xf0]  ;;  %v9032_v49 = vld [vmem:[#allocation3 + $0x24] sm:$0xf0] }
  0x61   : > { %v13287_v22 = vld [vmem:[%s13140_s9 + $0x30] sm:$0x11] }
  0x62   : > { %1412 = vmatpush.bf16.msrb.mxu2 %v9107_v53  ;;  %v9211_v53 = vor.u32 %v12035_v51, %v9210_v50  ;;  %v9074_v50 = vld [vmem:[#allocation3 + $0x68] sm:$0xf]  ;;  %v12000_v51 = vld [vmem:[#allocation3 + $0x70] sm:$0xf0] }
  0x63   : > { %1435 = vmatpush.bf16.msrb.mxu0 %v9203_v13  ;;  %v9080_v13 = vld [vmem:[#allocation3 + $0x84] sm:$0xf0] }
  0x64   : > { %990 = vmatpush.bf16.msra.mxu3 %v8958_v59  ;;  %1368 = vmatpush.bf16.msra.mxu1 %v9175_v9  ;;  %v12025_v59 = vld [vmem:[#allocation3 + $0x13c] sm:$0xf]  ;;  %v12014_v9 = vld [vmem:[#allocation3 + $0xe0] sm:$0xf0]  ;;  %v9083_v16 = vor.u32 %v12001_v12, %v9080_v13  ;;  %v9110_v13 = vld [vmem:[#allocation3 + $0xb0] sm:$0xf] }
  0x65   : > { %v9179_v14 = vor.u32 %v12025_v59, %v9176_v28  ;;  %v9127_v11 = vor.u32 %v12014_v9, %v9126_v8  ;;  %v9116_v28 = vld [vmem:[#allocation3 + $0xcc] sm:$0xf0]  ;;  %v12033_v12 = vld [vmem:[#allocation3 + $0x178] sm:$0xf0] }
  0x66   : > { %1413 = vmatpush.bf16.msrb.mxu2 %v9095_v4  ;;  %v11986_v4 = vld [vmem:[#allocation3 + $0x4] sm:$0xf]  ;;  %v9212_v9 = vld [vmem:[#allocation3 + $0x18c] sm:$0xf0] }
  0x67   : > { %1436 = vmatpush.bf16.msrb.mxu0 %v9191_v43  ;;  %v11995_v43 = vld [vmem:[#allocation3 + $0x4c] sm:$0xf] }
  0x68   : > { %991 = vmatpush.bf16.msra.mxu3 %v8946_v7  ;;  %1369 = vmatpush.bf16.msra.mxu1 %v9163_v21  ;;  %v9164_v7 = vld [vmem:[#allocation3 + $0x12c] sm:$0xf0]  ;;  %v12019_v21 = vld [vmem:[#allocation3 + $0x10c] sm:$0xf]  ;;  %v9059_v55 = vor.u32 %v11995_v43, %v9056_v48  ;;  %v12024_v43 = vld [vmem:[#allocation3 + $0x130] sm:$0xf0] }
  0x69   : > { %v9167_v10 = vor.u32 %v12022_v3, %v9164_v7  ;;  %v1036_v3 = vunpack.c.l.b16 %v13287_v22  ;;  %v9020_v7 = vld [vmem:[#allocation3 + $0xc] sm:$0xf0]  ;;  %v9327_v48 = vld [vmem:[#allocation3 + $0x408] sm:$0xf] }
  0x6a   : > { %9012 = vmatmul.msk.bf16.gmra.mxu0 %vm817_vm3, %v13248_v57  ;;  %1414 = vmatpush.bf16.msrb.mxu2 %v9083_v16 }
  0x6b   : > { %932 = vmatmul.bf16.gmra.mxu2 %v13255_v24  ;;  %1437 = vmatpush.bf16.msrb.mxu0 %v9179_v14  ;;  %v13290_v8 = vpack.c.b16 %v1036_v3, %v1036_v3 }
  0x6c   : > { %992 = vmatpush.bf16.msra.mxu3 %v8934_v20  ;;  %1370 = vmatpush.bf16.msra.mxu1 %v9151_v52  ;;  %v12011_v20 = vld [vmem:[#allocation3 + $0xc8] sm:$0xf0]  ;;  %v12013_v52 = vld [vmem:[#allocation3 + $0xdc] sm:$0xf] }
  0x6d   : > { %909 = vmatmul.bf16.gmra.mxu3 %v13226_v44  ;;  %973 = vmatmul.bf16.vlgmr.msrb.gmra.mxu1 %v13222_v42  ;;  %v9139_v42 = vor.u32 %v12017_v63, %v9138_v62  ;;  %v9115_v56 = vor.u32 %v12011_v20, %v9114_v15  ;;  %v9131_v59 = vor.u32 %v12013_v52, %v9128_v54  ;;  %v11992_v63 = vld [vmem:[#allocation3 + $0x34] sm:$0xf]  ;;  %v12009_v15 = vld [vmem:[#allocation3 + $0xb8] sm:$0xf0] }
  0x6e   : > { %v9111_v20 = vor.u32 %v12009_v15, %v9110_v13  ;;  %v12113_v54 = vld [vmem:[#allocation3 + $0x3f8] sm:$0xf0]  ;;  %v12018_v13 = vld [vmem:[#allocation3 + $0x100] sm:$0xf0] }
  0x6f   : > { %1438 = vmatpush.bf16.msrb.mxu0 %v9167_v10  ;;  %v9206_v10 = vld [vmem:[#allocation3 + $0x170] sm:$0xf] }
  0x70   : > { %993 = vmatpush.bf16.msra.mxu3 %v8922_v25  ;;  %1371 = vmatpush.bf16.msra.mxu1 %v9139_v42  ;;  %v9155_v25 = vor.u32 %v12019_v21, %v9152_v23  ;;  %v11989_v42 = vld [vmem:[#allocation3 + $0x1c] sm:$0xf]  ;;  %v9207_v16 = vor.u32 %v12033_v12, %v9206_v10  ;;  %v12030_v21 = vld [vmem:[#allocation3 + $0x160] sm:$0xf0]  ;;  %v9098_v23 = vld [vmem:[#allocation3 + $0x98] sm:$0xf] }
  0x71   : > { %v9146_v12 = vld [vmem:[#allocation3 + $0xf8] sm:$0xf] }
  0x73   : > { %1439 = vmatpush.bf16.msrb.mxu0 %v9155_v25 }
  0x74   : > { %994 = vmatpush.bf16.msra.mxu3 %v8910_v31  ;;  %1372 = vmatpush.bf16.msra.mxu1 %v9127_v11  ;;  %v9071_v31 = vor.u32 %v11998_v26, %v9068_v27  ;;  %v9182_v26 = vld [vmem:[#allocation3 + $0x140] sm:$0xf]  ;;  %v12027_v27 = vld [vmem:[#allocation3 + $0x148] sm:$0xf0] }
  0x75   : > { %v9183_v32 = vor.u32 %v12027_v27, %v9182_v26  ;;  %v9134_v27 = vld [vmem:[#allocation3 + $0xe0] sm:$0xf] }
  0x76   : > { %1415 = vmatpush.bf16.msrb.mxu2 %v9071_v31  ;;  %v9086_v31 = vld [vmem:[#allocation3 + $0x80] sm:$0xf] }
  0x77   : > { %1440 = vmatpush.bf16.msrb.mxu0 %v9143_v36 }
  0x78   : > { %995 = vmatpush.bf16.msra.mxu3 %v8898_v61  ;;  %1373 = vmatpush.bf16.msra.mxu1 %v9115_v56  ;;  %v12010_v61 = vld [vmem:[#allocation3 + $0xc4] sm:$0xf] }
  0x79   : > { %v9119_v62 = vor.u32 %v12010_v61, %v9116_v28  ;;  %v9158_v28 = vld [vmem:[#allocation3 + $0x110] sm:$0xf] }
  0x7a   : > { %1351 = vmatmul.bf16.vlgmr.msra.gmra.mxu0 %v13169_v17  ;;  %1416 = vmatpush.bf16.msrb.mxu2 %v9059_v55  ;;  %v1037_v55 = vunpack.c.h.b16 %v13287_v22  ;;  %v9291_v22 = vld [vmem:[#allocation3 + $0x3c0] sm:$0xf] }
  0x7b   : > { %937 = vmatmul.bf16.gmra.mxu2 %v13265_v58  ;;  %1441 = vmatpush.bf16.msrb.mxu0 %v9131_v59 }
  0x7c   : > { %1395 = vmatpush.bf16.msrb.mxu3 %v9223_v2  ;;  %v9044_v2 = vld [vmem:[#allocation3 + $0x3c] sm:$0xf0]  ;;  %v13303_v3 = vpack.c.b16 %v1037_v55, %v1037_v55 }
  0x7d   : > { %914 = vmatmul.bf16.gmra.mxu3 %v13251_v60  ;;  %978 = vmatmul.bf16.gmra.mxu1 %v13226_v44  ;;  %v9227_v44 = vor.u32 %v12037_v35, %v9224_v38  ;;  %v9047_v14 = vor.u32 %v11992_v63, %v9044_v2  ;;  %v9087_v35 = vor.u32 %v12003_v33, %v9086_v31  ;;  %v9170_v38 = vld [vmem:[#allocation3 + $0x128] sm:$0xf]  ;;  %v9062_v63 = vld [vmem:[#allocation3 + $0x50] sm:$0xf]  ;;  %v12015_v31 = vld [vmem:[#allocation3 + $0xe8] sm:$0xf0] }
  0x7f   : > { %12651 = vmatpush.bf16.msrb.mxu1 %v9227_v44  ;;  %1442 = vmatpush.bf16.msrb.mxu0 %v9119_v62  ;;  %v12021_v62 = vld [vmem:[#allocation3 + $0x118] sm:$0xf0] }
  0x80   : > { %1396 = vmatpush.bf16.msrb.mxu3 %v9211_v53  ;;  %1417 = vmatpush.bf16.msrb.mxu2 %v9047_v14  ;;  %v9075_v53 = vor.u32 %v12000_v51, %v9074_v50  ;;  %v9159_v2 = vor.u32 %v12021_v62, %v9158_v28  ;;  %v11997_v14 = vld [vmem:[#allocation3 + $0x58] sm:$0xf0]  ;;  %v9122_v51 = vld [vmem:[#allocation3 + $0xc8] sm:$0xf] }
  0x83   : > { %1464 = vmatpush.bf16.msra.mxu0 %v9227_v44  ;;  %v9171_v44 = vor.u32 %v12024_v43, %v9170_v38 }
  0x8a   : > { %1356 = vmatmul.bf16.gmra.mxu0 %v13190_v30 }
  0x8b   : > { %9013 = vmatmul.msk.bf16.vlgmr.msra.gmra.mxu2 %vm817_vm3, %v13177_v19  ;;  %v9035_v19 = vor.u32 %v11989_v42, %v9032_v49  ;;  %v9303_v42 = vld [vmem:[#allocation3 + $0x3d8] sm:$0xf]  ;;  %v12110_v49 = vld [vmem:[#allocation3 + $0x3e0] sm:$0xf0] }
  0x8d   : > { %983 = vmatmul.bf16.gmra.mxu1 %v13251_v60  ;;  %996 = vmatmul.bf16.vlgmr.msra.gmra.mxu3 %v13230_v46  ;;  %v9023_v60 = vor.u32 %v11986_v4, %v9020_v7  ;;  %v12034_v46 = vld [vmem:[#allocation3 + $0x184] sm:$0xf]  ;;  %v9063_v4 = vor.u32 %v11997_v14, %v9062_v63  ;;  %v9304_v7 = vor.u32 %v12110_v49, %v9303_v42  ;;  %v11988_v14 = vld [vmem:[#allocation3 + $0x10] sm:$0xf0] }
  0x8e   : > { %1418 = vmatpush.bf16.msrb.mxu2 %v9035_v19  ;;  %v9215_v11 = vor.u32 %v12034_v46, %v9212_v9  ;;  %1481 = vmatpush.bf16.msra.mxu3 %v9111_v20  ;;  %v12107_v9 = vld [vmem:[#allocation3 + $0x3c8] sm:$0xf0]  ;;  %v9050_v20 = vld [vmem:[#allocation3 + $0x38] sm:$0xf]  ;;  %v12098_v63 = vld [vmem:[#allocation3 + $0x380] sm:$0xf0] }
  0x8f   : > { %v9292_v10 = vor.u32 %v12107_v9, %v9291_v22  ;;  %v12095_v9 = vld [vmem:[#allocation3 + $0x368] sm:$0xf0] }
  0x90   : > { %12652 = vmatpush.bf16.msrb.mxu1 %v9215_v11  ;;  %1465 = vmatpush.bf16.msra.mxu0 %v9215_v11 }
  0x92   : > { %1419 = vmatpush.bf16.msrb.mxu2 %v9023_v60 }
  0x96   : > { %1504 = vmatpush.bf16.msra.mxu2 %v9207_v16  ;;  %v9147_v16 = vor.u32 %v12018_v13, %v9146_v12 }
  0x9a   : > { %1361 = vmatmul.bf16.gmra.mxu0 %v13290_v8 }
  0x9b   : > { %9014 = vmatmul.msk.bf16.gmra.mxu2 %vm817_vm3, %v13219_v40  ;;  %v9194_v40 = vld [vmem:[#allocation3 + $0x158] sm:$0xf] }
  0x9c   : > { %v9195_v56 = vor.u32 %v12030_v21, %v9194_v40  ;;  %v11994_v40 = vld [vmem:[#allocation3 + $0x40] sm:$0xf0]  ;;  %v9279_v21 = vld [vmem:[#allocation3 + $0x3a8] sm:$0xf] }
  0x9d   : > { %1001 = vmatmul.bf16.gmra.mxu3 %v13255_v24  ;;  %1374 = vmatmul.bf16.vlgmr.msra.gmra.mxu1 %v13173_v18  ;;  %v12006_v24 = vld [vmem:[#allocation3 + $0xa0] sm:$0xf0] }
  0x9e   : > { %v9099_v25 = vor.u32 %v12006_v24, %v9098_v23  ;;  %1505 = vmatpush.bf16.msra.mxu2 %v9195_v56  ;;  %v9051_v56 = vor.u32 %v11994_v40, %v9050_v20  ;;  %v12104_v24 = vld [vmem:[#allocation3 + $0x3b0] sm:$0xf0]  ;;  %v12146_v20 = vld [vmem:[#allocation3 + $0x500] sm:$0xf0] }
  0x9f   : > { %v9280_v26 = vor.u32 %v12104_v24, %v9279_v21 }
  0xa0   : > { %1482 = vmatpush.bf16.msra.mxu3 %v9099_v25 }
  0xa2   : > { %1506 = vmatpush.bf16.msra.mxu2 %v9183_v32  ;;  %v9038_v32 = vld [vmem:[#allocation3 + $0x20] sm:$0xf] }
  0xa4   : > { %1483 = vmatpush.bf16.msra.mxu3 %v9087_v35  ;;  %v9135_v35 = vor.u32 %v12015_v31, %v9134_v27  ;;  %v271_v27 = vld [vmem:[%s13140_s9 + $0x38] sm:$0x1] }
  0xa6   : > { %1507 = vmatpush.bf16.msra.mxu2 %v9171_v44  ;;  %v12101_v44 = vld [vmem:[#allocation3 + $0x398] sm:$0xf0] }
  0xa8   : > { %1484 = vmatpush.bf16.msra.mxu3 %v9075_v53 }
  0xaa   : > { %1443 = vmatmul.bf16.vlgmr.msrb.gmra.mxu0 %v13173_v18  ;;  %1508 = vmatpush.bf16.msra.mxu2 %v9159_v2  ;;  %v9026_v2 = vld [vmem:[#allocation3 + $0x8] sm:$0xf] }
  0xab   : > { %9015 = vmatmul.msk.bf16.gmra.mxu2 %vm817_vm3, %v13248_v57  ;;  %v12116_v57 = vld [vmem:[#allocation3 + $0x410] sm:$0xf0] }
  0xac   : > { %v9328_v52 = vor.u32 %v12116_v57, %v9327_v48  ;;  %1485 = vmatpush.bf16.msra.mxu3 %v9063_v4  ;;  %v9267_v48 = vld [vmem:[#allocation3 + $0x390] sm:$0xf] }
  0xad   : > { %1006 = vmatmul.bf16.gmra.mxu3 %v13265_v58  ;;  %1379 = vmatmul.bf16.gmra.mxu1 %v13196_v37  ;;  %v9315_v58 = vld [vmem:[#allocation3 + $0x3f0] sm:$0xf]  ;;  %v9268_v57 = vor.u32 %v12101_v44, %v9267_v48  ;;  %v12137_v48 = vld [vmem:[#allocation3 + $0x4b8] sm:$0xf0]  ;;  %v12139_v44 = vld [vmem:[#allocation3 + $0x4cc] sm:$0xf] }
  0xae   : > { %v882_v36 = vpop.f32.mrf.mxu2  ;;  %1952 = vmatpush.bf16.msra.mxu1 %v9328_v52  ;;  %v9316_v59 = vor.u32 %v12113_v54, %v9315_v58  ;;  %1509 = vmatpush.bf16.msra.mxu2 %v9147_v16  ;;  %v12012_v52 = vld [vmem:[#allocation3 + $0xd0] sm:$0xf0]  ;;  %v9230_v58 = vld [vmem:[#allocation3 + $0x1a0] sm:$0xf]  ;;  %v12039_v54 = vld [vmem:[#allocation3 + $0x1a8] sm:$0xf0] }
  0xaf   : > { %v9123_v55 = vor.u32 %v12012_v52, %v9122_v51  ;;  %v9231_v62 = vor.u32 %v12039_v54, %v9230_v58  ;;  %v9447_v16 = vld [vmem:[#allocation3 + $0x4f8] sm:$0xf] }
  0xb0   : > { %1486 = vmatpush.bf16.msra.mxu3 %v9051_v56  ;;  %v9448_v21 = vor.u32 %v12146_v20, %v9447_v16  ;;  %v12140_v56 = vld [vmem:[#allocation3 + $0x4d0] sm:$0xf0]  ;;  %v9387_v20 = vld [vmem:[#allocation3 + $0x480] sm:$0xf] }
  0xb1   : > { %1533 = vmatpush.bf16.msrb.mxu0 %v9231_v62  ;;  %v12112_v62 = vld [vmem:[#allocation3 + $0x3f4] sm:$0xf] }
  0xb2   : > { %1953 = vmatpush.bf16.msra.mxu1 %v9316_v59  ;;  %1510 = vmatpush.bf16.msra.mxu2 %v9135_v35  ;;  %v9255_v59 = vld [vmem:[#allocation3 + $0x378] sm:$0xf]  ;;  %v12115_v35 = vld [vmem:[#allocation3 + $0x40c] sm:$0xf] }
  0xb3   : > { %v9256_v49 = vor.u32 %v12098_v63, %v9255_v59  ;;  %v9317_v63 = vld [vmem:[#allocation3 + $0x3fc] sm:$0xf0] }
  0xb6   : > { %v884_v61 = vpop.f32.mrf.mxu2  ;;  %1954 = vmatpush.bf16.msra.mxu1 %v9304_v7  ;;  %1511 = vmatpush.bf16.msra.mxu2 %v9123_v55  ;;  %v9218_v7 = vld [vmem:[#allocation3 + $0x188] sm:$0xf] }
  0xb7   : > { %v836_v19 = vpop.f32.mrf.mxu0 }
  0xba   : > { %v859_v60 = vpop.f32.mrf.mxu1  ;;  %1448 = vmatmul.bf16.gmra.mxu0 %v13196_v37  ;;  %1955 = vmatpush.bf16.msra.mxu1 %v9292_v10 }
  0xbb   : > { %v860_v46 = vadd.f32 %v859_v60, %v836_v19  ;;  %1420 = vmatmul.bf16.vlgmr.msrb.gmra.mxu2 %v13169_v17  ;;  %v12036_v60 = vld [vmem:[#allocation3 + $0x190] sm:$0xf0] }
  0xbc   : > { %v9219_v22 = vor.u32 %v12036_v60, %v9218_v7  ;;  %2004 = vmatpush.bf16.msrb.mxu2 %v9448_v21  ;;  %v9320_v7 = vor.u32 %v12112_v62, %v9317_v63  ;;  %v12133_v21 = vld [vmem:[#allocation3 + $0x49c] sm:$0xf]  ;;  %v12130_v63 = vld [vmem:[#allocation3 + $0x484] sm:$0xf] }
  0xbd   : > { %1384 = vmatmul.bf16.gmra.mxu1 %v13303_v3  ;;  %9232 = vmatmul.msk.bf16.vlgmr.msrb.gmra.mxu3 %vm817_vm3, %v13153_v45  ;;  %v13310_v11 = vadd.f32 %v882_v36, %v860_v46  ;;  %v11991_v36 = vld [vmem:[#allocation3 + $0x28] sm:$0xf0]  ;;  %v9243_v46 = vld [vmem:[#allocation3 + $0x360] sm:$0xf] }
  0xbe   : > { %v887_v15 = vpop.f32.mrf.mxu2  ;;  %1956 = vmatpush.bf16.msra.mxu1 %v9280_v26  ;;  %v9039_v43 = vor.u32 %v11991_v36, %v9038_v32  ;;  %v9244_v12 = vor.u32 %v12095_v9, %v9243_v46  ;;  %1534 = vmatpush.bf16.msrb.mxu0 %v9219_v22  ;;  %v9329_v36 = vld [vmem:[#allocation3 + $0x414] sm:$0xf0]  ;;  %v12109_v9 = vld [vmem:[#allocation3 + $0x3dc] sm:$0xf] }
  0xbf   : > { %v838_v25 = vpop.f32.mrf.mxu0  ;;  %v9332_v59 = vor.u32 %v12115_v35, %v9329_v36  ;;  %v1635_v36 = vrot.slane %v13190_v30, 1 }
  0xc0   : > { %v841_v23 = vpop.f32.mrf.mxu3  ;;  %1487 = vmatpush.bf16.msra.mxu3 %v9039_v43 }
  0xc2   : > { %v861_v33 = vpop.f32.mrf.mxu1  ;;  %1957 = vmatpush.bf16.msra.mxu1 %v9268_v57  ;;  %v9425_v57 = vld [vmem:[#allocation3 + $0x4d4] sm:$0xf0] }
  0xc3   : > { %v862_v38 = vadd.f32 %v861_v33, %v838_v25  ;;  %v9428_v54 = vor.u32 %v12139_v44, %v9425_v57  ;;  %v12106_v44 = vld [vmem:[#allocation3 + $0x3c4] sm:$0xf] }
  0xc5   : > { %v13312_v50 = vadd.f32 %v884_v61, %v862_v38  ;;  %v9027_v61 = vor.u32 %v11988_v14, %v9026_v2  ;;  %v9411_v38 = vld [vmem:[#allocation3 + $0x4b0] sm:$0xf]  ;;  %v9399_v2 = vld [vmem:[#allocation3 + $0x498] sm:$0xf]  ;;  %v12134_v14 = vld [vmem:[#allocation3 + $0x4a0] sm:$0xf0] }
  0xc6   : > { %v889_v53 = vpop.f32.mrf.mxu2  ;;  %1958 = vmatpush.bf16.msra.mxu1 %v9256_v49  ;;  %v9412_v58 = vor.u32 %v12137_v48, %v9411_v38  ;;  %v12136_v49 = vld [vmem:[#allocation3 + $0x4b4] sm:$0xf]  ;;  %v9400_v60 = vor.u32 %v12134_v14, %v9399_v2  ;;  %v12143_v48 = vld [vmem:[#allocation3 + $0x4e8] sm:$0xf0]  ;;  %v9389_v2 = vld [vmem:[#allocation3 + $0x48c] sm:$0xf0] }
  0xc7   : > { %v13314_v42 = vpop.f32.mrf.mxu0  ;;  %1488 = vmatpush.bf16.msra.mxu3 %v9027_v61  ;;  %v9413_v61 = vld [vmem:[#allocation3 + $0x4bc] sm:$0xf0] }
  0xc8   : > { %v843_v28 = vpop.f32.mrf.mxu3  ;;  %v9416_v46 = vor.u32 %v12136_v49, %v9413_v61  ;;  %v9392_v61 = vor.u32 %v12130_v63, %v9389_v2 }
  0xca   : > { %v864_v19 = vpop.f32.mrf.mxu1  ;;  %1453 = vmatmul.bf16.gmra.mxu0 %v13303_v3  ;;  %1959 = vmatpush.bf16.msra.mxu1 %v9244_v12  ;;  %v9305_v12 = vld [vmem:[#allocation3 + $0x3e4] sm:$0xf0] }
  0xcb   : > { %v865_v4 = vadd.f32 %v864_v19, %v841_v23  ;;  %1425 = vmatmul.bf16.gmra.mxu2 %v13190_v30  ;;  %v9423_v23 = vld [vmem:[#allocation3 + $0x4c8] sm:$0xf] }
  0xcc   : > { %v9424_v25 = vor.u32 %v12140_v56, %v9423_v23 }
  0xcd   : > { %9233 = vmatmul.msk.bf16.gmra.mxu3 %vm817_vm3, %v13149_v41  ;;  %9236 = vmatmul.msk.bf16.vlgmr.msrb.gmra.mxu1 %vm817_vm3, %v13149_v41  ;;  %v13322_v10 = vadd.f32 %v887_v15, %v865_v4  ;;  %v1038_v15 = vunpack.c.l.b16 %v271_v27 }
  0xce   : > { %v892_v13 = vpop.f32.mrf.mxu2  ;;  %1975 = vmatpush.bf16.msrb.mxu3 %v9424_v25  ;;  %2044 = vmatpush.bf16.msrb.mxu1 %v9428_v54  ;;  %v9401_v25 = vld [vmem:[#allocation3 + $0x4a4] sm:$0xf0] }
  0xcf   : > { %v13324_v24 = vpop.f32.mrf.mxu0  ;;  %v13331_v52 = vpack.c.b16 %v1038_v15, %v1038_v15  ;;  %v9404_v15 = vor.u32 %v12133_v21, %v9401_v25  ;;  %v9375_v54 = vld [vmem:[#allocation3 + $0x468] sm:$0xf]  ;;  %v9351_v25 = vld [vmem:[#allocation3 + $0x438] sm:$0xf] }
  0xd0   : > { %v846_v40 = vpop.f32.mrf.mxu3 }
  0xd2   : > { %v866_v26 = vpop.f32.mrf.mxu1  ;;  %1976 = vmatpush.bf16.msrb.mxu3 %v9412_v58  ;;  %2045 = vmatpush.bf16.msrb.mxu1 %v9416_v46  ;;  %v9281_v46 = vld [vmem:[#allocation3 + $0x3b4] sm:$0xf0] }
  0xd3   : > { %v867_v31 = vadd.f32 %v866_v26, %v843_v28 }
  0xd5   : > { %v13327_v32 = vadd.f32 %v889_v53, %v867_v31  ;;  %v13334_v53 = vld [vmem:[%s13140_s9] sm:$0xee]  ;;  %v9308_v31 = vor.u32 %v12109_v9, %v9305_v12 }
  0xd6   : > { %v894_v33 = vpop.f32.mrf.mxu2  ;;  %v1627_v4 = vunpack.c.l.b16 %v13334_v53  ;;  %1977 = vmatpush.bf16.msrb.mxu3 %v9400_v60  ;;  %2046 = vmatpush.bf16.msrb.mxu1 %v9404_v15  ;;  %v12103_v60 = vld [vmem:[#allocation3 + $0x3ac] sm:$0xf]  ;;  %v9365_v15 = vld [vmem:[#allocation3 + $0x45c] sm:$0xf0] }
  0xd7   : > { %v13329_v51 = vpop.f32.mrf.mxu0  ;;  %v9284_v12 = vor.u32 %v12103_v60, %v9281_v46 }
  0xd8   : > { %v848_v43 = vpop.f32.mrf.mxu3  ;;  %v1630_v27 = vpack.c.b16 %v432_v5, %v1627_v4  ;;  %v9293_v5 = vld [vmem:[#allocation3 + $0x3cc] sm:$0xf0] }
  0xd9   : > { %v9435_v43 = vld [vmem:[#allocation3 + $0x4e0] sm:$0xf] }
  0xda   : > { %v869_v55 = vpop.f32.mrf.mxu1  ;;  %9235 = vmatmul.msk.bf16.vlgmr.msra.gmra.mxu0 %vm817_vm3, %v13153_v45  ;;  %v1634_v35 = vrot.slane %v1630_v27, 1  ;;  %v9436_v58 = vor.u32 %v12143_v48, %v9435_v43  ;;  %2047 = vmatpush.bf16.msrb.mxu1 %v9392_v61  ;;  %v12122_v27 = vld [vmem:[#allocation3 + $0x440] sm:$0xf0]  ;;  %v13377_v48 = vrot.slane %v13201_v47, 1 }
  0xdb   : > { %v870_v28 = vadd.f32 %v869_v55, %v846_v40  ;;  %1430 = vmatmul.bf16.gmra.mxu2 %v13290_v8  ;;  %2021 = vmatpush.bf16.msra.mxu0 %v9332_v59  ;;  %v12131_v40 = vld [vmem:[#allocation3 + $0x488] sm:$0xf0]  ;;  %v12128_v55 = vld [vmem:[#allocation3 + $0x470] sm:$0xf0] }
  0xdc   : > { %v9376_v62 = vor.u32 %v12128_v55, %v9375_v54  ;;  %v13361_v49 = vsel %vm1633_vm5, %v1634_v35, %v1635_v36  ;;  %2005 = vmatpush.bf16.msrb.mxu2 %v9436_v58  ;;  %v9352_v35 = vor.u32 %v12122_v27, %v9351_v25  ;;  %v9257_v58 = vld [vmem:[#allocation3 + $0x384] sm:$0xf0]  ;;  %v13388_v60 = vsel %vm1633_vm5, %v1635_v36, %v13377_v48 }
  0xdd   : > { %9234 = vmatmul.msk.bf16.gmra.mxu3 %vm817_vm3, %v13331_v52  ;;  %9237 = vmatmul.msk.bf16.gmra.mxu1 %vm817_vm3, %v13331_v52  ;;  %v13343_v19 = vadd.f32 %v892_v13, %v870_v28  ;;  %v9388_v13 = vor.u32 %v12131_v40, %v9387_v20  ;;  %v12127_v20 = vld [vmem:[#allocation3 + $0x46c] sm:$0xf] }
  0xde   : > { %v928_v22 = vpop.f32.mrf.mxu2 }
  0xdf   : > { %v13346_v56 = vpop.f32.mrf.mxu0  ;;  %2022 = vmatpush.bf16.msra.mxu0 %v9320_v7  ;;  %1978 = vmatpush.bf16.msrb.mxu3 %v9388_v13  ;;  %v12100_v13 = vld [vmem:[#allocation3 + $0x394] sm:$0xf] }
  0xe0   : > { %v905_v16 = vpop.f32.mrf.mxu3 }
  0xe1   : > { %v929_v23 = vadd.f32 %v928_v22, %v905_v16  ;;  %v9363_v22 = vld [vmem:[#allocation3 + $0x450] sm:$0xf]  ;;  %v12125_v16 = vld [vmem:[#allocation3 + $0x458] sm:$0xf0] }
  0xe2   : > { %v871_v26 = vpop.f32.mrf.mxu1 }
  0xe3   : > { %v13351_v33 = vadd.f32 %v13314_v42, %v929_v23  ;;  %2023 = vmatpush.bf16.msra.mxu0 %v9308_v31  ;;  %v9296_v42 = vor.u32 %v12106_v44, %v9293_v5  ;;  %1979 = vmatpush.bf16.msrb.mxu3 %v9376_v62  ;;  %v12124_v31 = vld [vmem:[#allocation3 + $0x454] sm:$0xf]  ;;  %v12121_v5 = vld [vmem:[#allocation3 + $0x43c] sm:$0xf]  ;;  %v12119_v62 = vld [vmem:[#allocation3 + $0x428] sm:$0xf0] }
  0xe6   : > { %v930_v38 = vpop.f32.mrf.mxu2 }
  0xe7   : > { %v13354_v28 = vpop.f32.mrf.mxu0  ;;  %2024 = vmatpush.bf16.msra.mxu0 %v9296_v42  ;;  %v9339_v42 = vld [vmem:[#allocation3 + $0x420] sm:$0xf] }
  0xe8   : > { %v907_v57 = vpop.f32.mrf.mxu3 }
  0xe9   : > { %v931_v59 = vadd.f32 %v930_v38, %v907_v57  ;;  %v9368_v38 = vor.u32 %v12124_v31, %v9365_v15  ;;  %v12097_v57 = vld [vmem:[#allocation3 + $0x37c] sm:$0xf]  ;;  %v9323_v15 = vld [vmem:[#allocation3 + $0x3f8] sm:$0xf] }
  0xea   : > { %v13356_v14 = vpop.f32.mrf.mxu1  ;;  %9238 = vmatmul.msk.bf16.vlgmr.msrb.gmra.mxu0 %vm817_vm3, %v13153_v45  ;;  %v9269_v45 = vld [vmem:[#allocation3 + $0x39c] sm:$0xf0]  ;;  %v9260_v55 = vor.u32 %v12097_v57, %v9257_v58  ;;  %v12141_v58 = vld [vmem:[#allocation3 + $0x4d8] sm:$0xf0] }
  0xeb   : > { %v13364_v4 = vadd.f32 %v13324_v24, %v931_v59  ;;  %1512 = vmatmul.bf16.vlgmr.msra.gmra.mxu2 %v13173_v18  ;;  %v9377_v24 = vld [vmem:[#allocation3 + $0x474] sm:$0xf0]  ;;  %v9364_v18 = vor.u32 %v12125_v16, %v9363_v22  ;;  %2025 = vmatpush.bf16.msra.mxu0 %v9284_v12  ;;  %v9272_v26 = vor.u32 %v12100_v13, %v9269_v45  ;;  %v9353_v59 = vld [vmem:[#allocation3 + $0x444] sm:$0xf0]  ;;  %v12094_v22 = vld [vmem:[#allocation3 + $0x364] sm:$0xf] }
  0xec   : > { %v9380_v23 = vor.u32 %v12127_v20, %v9377_v24  ;;  %v9356_v61 = vor.u32 %v12121_v5, %v9353_v59  ;;  %v9341_v12 = vld [vmem:[#allocation3 + $0x42c] sm:$0xf0]  ;;  %v9455_v5 = vld [vmem:[#allocation3 + $0x500] sm:$0xf] }
  0xed   : > { %1489 = vmatmul.bf16.vlgmr.msra.gmra.mxu3 %v13169_v17  ;;  %1960 = vmatmul.bf16.vlgmr.msra.gmra.mxu1 %v13361_v49  ;;  %v9335_v24 = vld [vmem:[#allocation3 + $0x410] sm:$0xf] }
  0xee   : > { %v933_v7 = vpop.f32.mrf.mxu2  ;;  %1980 = vmatpush.bf16.msrb.mxu3 %v9364_v18  ;;  %2048 = vmatpush.bf16.msrb.mxu1 %v9380_v23  ;;  %v12145_v18 = vld [vmem:[#allocation3 + $0x4fc] sm:$0xf]  ;;  %v9449_v23 = vld [vmem:[#allocation3 + $0x504] sm:$0xf0] }
  0xef   : > { %v963_v21 = vpop.f32.mrf.mxu0  ;;  %2026 = vmatpush.bf16.msra.mxu0 %v9272_v26  ;;  %v9452_v25 = vor.u32 %v12145_v18, %v9449_v23 }
  0xf0   : > { %v910_v9 = vpop.f32.mrf.mxu3 }
  0xf1   : > { %v934_v40 = vadd.f32 %v933_v7, %v910_v9  ;;  %v12118_v9 = vld [vmem:[#allocation3 + $0x424] sm:$0xf] }
  0xf2   : > { %v13371_v17 = vpop.f32.mrf.mxu1  ;;  %1981 = vmatpush.bf16.msrb.mxu3 %v9352_v35  ;;  %2049 = vmatpush.bf16.msrb.mxu1 %v9368_v38  ;;  %v9344_v16 = vor.u32 %v12118_v9, %v9341_v12  ;;  %v12114_v35 = vld [vmem:[#allocation3 + $0x400] sm:$0xf0]  ;;  %v9431_v38 = vld [vmem:[#allocation3 + $0x4d0] sm:$0xf]  ;;  %v9299_v12 = vld [vmem:[#allocation3 + $0x3c8] sm:$0xf] }
  0xf3   : > { %v13374_v43 = vadd.f32 %v13329_v51, %v934_v40  ;;  %v9340_v51 = vor.u32 %v12119_v62, %v9339_v42  ;;  %2027 = vmatpush.bf16.msra.mxu0 %v9260_v55  ;;  %v9324_v57 = vor.u32 %v12114_v35, %v9323_v15  ;;  %v9432_v59 = vor.u32 %v12141_v58, %v9431_v38  ;;  %v12105_v15 = vld [vmem:[#allocation3 + $0x3b8] sm:$0xf0]  ;;  %v9395_v35 = vld [vmem:[#allocation3 + $0x488] sm:$0xf] }
  0xf6   : > { %v935_v44 = vpop.f32.mrf.mxu2  ;;  %2050 = vmatpush.bf16.msrb.mxu1 %v9356_v61  ;;  %1982 = vmatpush.bf16.msrb.mxu3 %v9340_v51  ;;  %v9419_v61 = vld [vmem:[#allocation3 + $0x4b8] sm:$0xf] }
  0xf7   : > { %v1352_v2 = vpop.f32.mrf.mxu0 }
  0xf8   : > { %v912_v54 = vpop.f32.mrf.mxu3  ;;  %v13382_v47 = vadd.f32 %v1352_v2, %v13310_v11  ;;  %v9245_v11 = vld [vmem:[#allocation3 + $0x36c] sm:$0xf0]  ;;  %v12111_v2 = vld [vmem:[#allocation3 + $0x3e8] sm:$0xf0] }
  0xf9   : > { %v936_v63 = vadd.f32 %v935_v44, %v912_v54  ;;  %v9248_v36 = vor.u32 %v12094_v22, %v9245_v11  ;;  %v12147_v54 = vld [vmem:[#allocation3 + $0x508] sm:$0xf0]  ;;  %v1628_v11 = vunpack.c.h.b16 %v13334_v53 }
  0xfa   : > { %v13379_v7 = vpop.f32.mrf.mxu1  ;;  %9239 = vmatmul.msk.bf16.gmra.mxu0 %vm817_vm3, %v13149_v41  ;;  %2051 = vmatpush.bf16.msrb.mxu1 %v9344_v16  ;;  %v9456_v42 = vor.u32 %v12147_v54, %v9455_v5 }
  0xfb   : > { %v13391_v46 = vadd.f32 %v13346_v56, %v936_v63  ;;  %1517 = vmatmul.bf16.gmra.mxu2 %v13196_v37  ;;  %2028 = vmatpush.bf16.msra.mxu0 %v9248_v36  ;;  %v12117_v56 = vld [vmem:[#allocation3 + $0x418] sm:$0xf0]  ;;  %v1551_v63 = vld [vmem:[%s13140_s9 + $0x8] sm:$0xe]  ;;  %v1631_v23 = vpack.c.b16 %v433_v6, %v1628_v11  ;;  %v9443_v11 = vld [vmem:[#allocation3 + $0x4e8] sm:$0xf] }
  0xfc   : > { %v9336_v21 = vor.u32 %v12117_v56, %v9335_v24  ;;  %2073 = vmatpush.bf16.msra.mxu3 %v9452_v25  ;;  %v1629_v51 = vunpack.c.l.b16 %v1551_v63  ;;  %v12135_v24 = vld [vmem:[#allocation3 + $0x4a8] sm:$0xf0]  ;;  %v1641_v25 = vrot.slane %v13149_v41, 1  ;;  %v9347_v41 = vld [vmem:[#allocation3 + $0x428] sm:$0xf] }
  0xfd   : > { %1494 = vmatmul.bf16.gmra.mxu3 %v13190_v30  ;;  %1965 = vmatmul.bf16.gmra.mxu1 %v13388_v60 }
  0xfe   : > { %v938_v20 = vpop.f32.mrf.mxu2  ;;  %2090 = vmatpush.bf16.msra.mxu2 %v9336_v21  ;;  %2142 = vmatpush.bf16.msra.mxu1 %v9456_v42 }
  0xff   : > { %v1354_v45 = vpop.f32.mrf.mxu0  ;;  %2113 = vmatpush.bf16.msrb.mxu0 %v9432_v59 }
 0x100   : > { %v915_v40 = vpop.f32.mrf.mxu3  ;;  %v13401_v30 = vadd.f32 %v1354_v45, %v13312_v50 }
 0x101   : > { %v939_v13 = vadd.f32 %v938_v20, %v915_v40  ;;  %v9407_v20 = vld [vmem:[#allocation3 + $0x4a0] sm:$0xf]  ;;  %v1632_v40 = vpack.c.b16 %v434_v39, %v1629_v51  ;;  %v9287_v39 = vld [vmem:[#allocation3 + $0x3b0] sm:$0xf] }
 0x102   : > { %v13398_v26 = vpop.f32.mrf.mxu1  ;;  %2091 = vmatpush.bf16.msra.mxu2 %v9324_v57  ;;  %v9408_v21 = vor.u32 %v12135_v24, %v9407_v20  ;;  %v12142_v57 = vld [vmem:[#allocation3 + $0x4e4] sm:$0xf] }
 0x103   : > { %v13404_v27 = vadd.f32 %v13354_v28, %v939_v13  ;;  %v9311_v28 = vld [vmem:[#allocation3 + $0x3e0] sm:$0xf]  ;;  %v1640_v45 = vrot.slane %v1632_v40, 1  ;;  %v12126_v40 = vld [vmem:[#allocation3 + $0x460] sm:$0xf0] }
 0x104   : > { %v9312_v22 = vor.u32 %v12111_v2, %v9311_v28 }
 0x105   : > { %v13433_v6 = vsel %vm1633_vm5, %v1640_v45, %v1641_v25  ;;  %v13462_v45 = vrot.slane %v13238_v1, 1 }
 0x106   : > { %v940_v31 = vpop.f32.mrf.mxu2  ;;  %2092 = vmatpush.bf16.msra.mxu2 %v9312_v22 }
 0x107   : > { %v1357_v55 = vpop.f32.mrf.mxu0  ;;  %v1638_v31 = vrot.slane %v13196_v37, 1 }
 0x108   : > { %v917_v44 = vpop.f32.mrf.mxu3  ;;  %v13409_v62 = vadd.f32 %v1357_v55, %v13322_v10  ;;  %v12138_v10 = vld [vmem:[#allocation3 + $0x4c0] sm:$0xf0]  ;;  %v9440_v55 = vor.u32 %v12142_v57, %v9437_v0 }
 0x109   : > { %v9420_v9 = vor.u32 %v12138_v10, %v9419_v61  ;;  %v12132_v44 = vld [vmem:[#allocation3 + $0x490] sm:$0xf0]  ;;  %v12129_v10 = vld [vmem:[#allocation3 + $0x478] sm:$0xf0]  ;;  %v13475_v0 = vsel %vm1633_vm5, %v1638_v31, %v13462_v45 }
 0x10a   : > { %v13406_v50 = vpop.f32.mrf.mxu1  ;;  %9240 = vmatmul.msk.bf16.gmra.mxu0 %vm817_vm3, %v13331_v52  ;;  %v9396_v54 = vor.u32 %v12132_v44, %v9395_v35  ;;  %2074 = vmatpush.bf16.msra.mxu3 %v9440_v55 }
 0x10b   : > { %1522 = vmatmul.bf16.gmra.mxu2 %v13303_v3  ;;  %v12108_v3 = vld [vmem:[#allocation3 + $0x3d0] sm:$0xf0]  ;;  %2114 = vmatpush.bf16.msrb.mxu0 %v9420_v9 }
 0x10c   : > { %v9300_v52 = vor.u32 %v12108_v3, %v9299_v12  ;;  %v12144_v3 = vld [vmem:[#allocation3 + $0x4f0] sm:$0xf0] }
 0x10d   : > { %1499 = vmatmul.bf16.gmra.mxu3 %v13290_v8  ;;  %1970 = vmatmul.bf16.gmra.mxu1 %v13377_v48  ;;  %v9444_v24 = vor.u32 %v12144_v3, %v9443_v11 }
 0x10e   : > { %v1020_v36 = vpop.f32.mrf.mxu2  ;;  %2093 = vmatpush.bf16.msra.mxu2 %v9300_v52  ;;  %v12099_v52 = vld [vmem:[#allocation3 + $0x388] sm:$0xf0] }
 0x10f   : > { %v1359_v8 = vpop.f32.mrf.mxu0  ;;  %2115 = vmatpush.bf16.msrb.mxu0 %v9408_v21  ;;  %2143 = vmatpush.bf16.msra.mxu1 %v9444_v24 }
 0x110   : > { %v997_v16 = vpop.f32.mrf.mxu3  ;;  %v13422_v53 = vadd.f32 %v1359_v8, %v13327_v32  ;;  %v9288_v32 = vor.u32 %v12105_v15, %v9287_v39  ;;  %v9371_v8 = vld [vmem:[#allocation3 + $0x458] sm:$0xf] }
 0x111   : > { %v998_v56 = vadd.f32 %v997_v16, %v13356_v14  ;;  %v1637_v14 = vrot.slane %v1631_v23, 1  ;;  %v9263_v16 = vld [vmem:[#allocation3 + $0x380] sm:$0xf] }
 0x112   : > { %v986_v18 = vpop.f32.mrf.mxu1  ;;  %2094 = vmatpush.bf16.msra.mxu2 %v9288_v32 }
 0x113   : > { %v13426_v13 = vadd.f32 %v1020_v36, %v998_v56  ;;  %v13442_v63 = vsel %vm1633_vm5, %v1637_v14, %v1638_v31  ;;  %2116 = vmatpush.bf16.msrb.mxu0 %v9396_v54  ;;  %v9264_v56 = vor.u32 %v12099_v52, %v9263_v16  ;;  %v9372_v18 = vor.u32 %v12126_v40, %v9371_v8  ;;  %v9251_v14 = vld [vmem:[#allocation3 + $0x368] sm:$0xf] }
 0x116   : > { %v1022_v34 = vpop.f32.mrf.mxu2 }
 0x117   : > { %v1362_v5 = vpop.f32.mrf.mxu0 }
 0x118   : > { %v999_v38 = vpop.f32.mrf.mxu3  ;;  %v13437_v59 = vadd.f32 %v1362_v5, %v13343_v19  ;;  %v9275_v19 = vld [vmem:[#allocation3 + $0x398] sm:$0xf] }
 0x119   : > { %v1000_v58 = vadd.f32 %v999_v38, %v13371_v17  ;;  %v12102_v17 = vld [vmem:[#allocation3 + $0x3a0] sm:$0xf0]  ;;  %v9359_v38 = vld [vmem:[#allocation3 + $0x440] sm:$0xf] }
 0x11a   : > { %v1375_v42 = vpop.f32.mrf.mxu1  ;;  %2029 = vmatmul.bf16.vlgmr.msra.gmra.mxu0 %v13361_v49  ;;  %v9276_v51 = vor.u32 %v12102_v17, %v9275_v19 }
 0x11b   : > { %v13445_v28 = vadd.f32 %v1375_v42, %v13382_v47  ;;  %v13447_v2 = vadd.f32 %v1022_v34, %v1000_v58  ;;  %9457 = vmatmul.msk.bf16.vlgmr.msrb.gmra.mxu2 %vm817_vm3, %v13433_v6  ;;  %v9383_v47 = vld [vmem:[#allocation3 + $0x470] sm:$0xf]  ;;  %v12096_v34 = vld [vmem:[#allocation3 + $0x370] sm:$0xf0] }
 0x11c   : > { %2095 = vmatpush.bf16.msra.mxu2 %v9276_v51  ;;  %v9384_v12 = vor.u32 %v12129_v10, %v9383_v47  ;;  %v9252_v15 = vor.u32 %v12096_v34, %v9251_v14 }
 0x11d   : > { %1983 = vmatmul.bf16.vlgmr.msrb.gmra.mxu3 %v13442_v63  ;;  %2052 = vmatmul.bf16.vlgmr.msrb.gmra.mxu1 %v13442_v63 }
 0x11e   : > { %v1025_v61 = vpop.f32.mrf.mxu2  ;;  %2117 = vmatpush.bf16.msrb.mxu0 %v9384_v12 }
 0x11f   : > { %v1364_v36 = vpop.f32.mrf.mxu0 }
 0x120   : > { %v1002_v22 = vpop.f32.mrf.mxu3  ;;  %2096 = vmatpush.bf16.msra.mxu2 %v9264_v56 }
 0x121   : > { %v1003_v9 = vadd.f32 %v1002_v22, %v13379_v7  ;;  %v13459_v7 = vrot.slane %v13188_v29, 1 }
 0x122   : > { %v1377_v20 = vpop.f32.mrf.mxu1  ;;  %2118 = vmatpush.bf16.msrb.mxu0 %v9372_v18 }
 0x123   : > { %v1378_v21 = vadd.f32 %v1377_v20, %v13401_v30  ;;  %v13456_v23 = vadd.f32 %v1025_v61, %v1003_v9  ;;  %v12123_v30 = vld [vmem:[#allocation3 + $0x448] sm:$0xf0]  ;;  %v13468_v32 = vsel %vm1633_vm5, %v1641_v25, %v13459_v7 }
 0x124   : > { %2097 = vmatpush.bf16.msra.mxu2 %v9252_v15  ;;  %v9360_v1 = vor.u32 %v12123_v30, %v9359_v38 }
 0x126   : > { %v1027_v39 = vpop.f32.mrf.mxu2  ;;  %2119 = vmatpush.bf16.msrb.mxu0 %v9360_v1 }
 0x127   : > { %v1444_v44 = vpop.f32.mrf.mxu0 }
 0x128   : > { %v1004_v35 = vpop.f32.mrf.mxu3 }
 0x129   : > { %v1005_v29 = vadd.f32 %v1004_v35, %v13398_v26  ;;  %v12120_v26 = vld [vmem:[#allocation3 + $0x430] sm:$0xf0] }
 0x12a   : > { %v1380_v57 = vpop.f32.mrf.mxu1  ;;  %2034 = vmatmul.bf16.gmra.mxu0 %v13388_v60  ;;  %v9348_v37 = vor.u32 %v12120_v26, %v9347_v41 }
 0x12b   : > { %v1381_v58 = vadd.f32 %v1380_v57, %v13409_v62  ;;  %v13478_v5 = vadd.f32 %v1027_v39, %v1005_v29  ;;  %9458 = vmatmul.msk.bf16.gmra.mxu2 %vm817_vm3, %v13468_v32 }
 0x12c   : > { %2120 = vmatpush.bf16.msrb.mxu0 %v9348_v37 }
 0x12d   : > { %1988 = vmatmul.bf16.gmra.mxu3 %v13475_v0  ;;  %2057 = vmatmul.bf16.gmra.mxu1 %v13475_v0 }
 0x12e   : > { %v1030_v25 = vpop.f32.mrf.mxu2 }
 0x12f   : > { %v1446_v54 = vpop.f32.mrf.mxu0 }
 0x130   : > { %v1007_v31 = vpop.f32.mrf.mxu3 }
 0x131   : > { %v1008_v62 = vadd.f32 %v1007_v31, %v13406_v50 }
 0x132   : > { %v1382_v55 = vpop.f32.mrf.mxu1 }
 0x133   : > { %v1383_v42 = vadd.f32 %v1382_v55, %v13422_v53  ;;  %v13487_v19 = vadd.f32 %v1030_v25, %v1008_v62 }
 0x136   : > { %v1032_v17 = vpop.f32.mrf.mxu2 }
 0x137   : > { %v1449_v51 = vpop.f32.mrf.mxu0 }
 0x138   : > { %v1009_v61 = vpop.f32.mrf.mxu3 }
 0x13a   : > { %v1385_v22 = vpop.f32.mrf.mxu1  ;;  %2039 = vmatmul.bf16.gmra.mxu0 %v13377_v48 }
 0x13b   : > { %v1386_v47 = vadd.f32 %v1385_v22, %v13437_v59  ;;  %9459 = vmatmul.msk.bf16.gmra.mxu2 %vm817_vm3, %v13459_v7 }
 0x13d   : > { %1993 = vmatmul.bf16.gmra.mxu3 %v13462_v45  ;;  %2062 = vmatmul.bf16.gmra.mxu1 %v13462_v45 }
 0x13e   : > { %v1421_v50 = vpop.f32.mrf.mxu2 }
 0x13f   : > { %v1422_v53 = vadd.f32 %v1421_v50, %v13351_v33  ;;  %v1451_v9 = vpop.f32.mrf.mxu0 }
 0x140   : > { %v1398_v10 = vpop.f32.mrf.mxu3 }
 0x141   : > { %v13497_v11 = vadd.f32 %v1398_v10, %v13445_v28  ;;  %v1445_v12 = vadd.f32 %v1444_v44, %v1422_v53 }
 0x142   : > { %v1387_v36 = vpop.f32.mrf.mxu1 }
 0x146   : > { %v1423_v59 = vpop.f32.mrf.mxu2 }
 0x147   : > { %v1424_v3 = vadd.f32 %v1423_v59, %v13364_v4  ;;  %v1454_v20 = vpop.f32.mrf.mxu0 }
 0x148   : > { %v1400_v16 = vpop.f32.mrf.mxu3 }
 0x149   : > { %v13500_v52 = vadd.f32 %v1400_v16, %v1378_v21  ;;  %v1447_v56 = vadd.f32 %v1446_v54, %v1424_v3 }
 0x14a   : > { %v1472_v24 = vpop.f32.mrf.mxu1  ;;  %2121 = vmatmul.bf16.vlgmr.msrb.gmra.mxu0 %v13442_v63 }
 0x14b   : > { %2098 = vmatmul.bf16.vlgmr.msra.gmra.mxu2 %v13361_v49 }
 0x14d   : > { %9460 = vmatmul.msk.bf16.vlgmr.msra.gmra.mxu3 %vm817_vm3, %v13433_v6  ;;  %9463 = vmatmul.msk.bf16.vlgmr.msra.gmra.mxu1 %vm817_vm3, %v13433_v6 }
 0x14e   : > { %v1426_v33 = vpop.f32.mrf.mxu2 }
 0x14f   : > { %v1427_v28 = vadd.f32 %v1426_v33, %v13374_v43  ;;  %v1456_v40 = vpop.f32.mrf.mxu0 }
 0x150   : > { %v1403_v4 = vpop.f32.mrf.mxu3 }
 0x151   : > { %v13509_v8 = vadd.f32 %v1403_v4, %v1381_v58  ;;  %v1450_v21 = vadd.f32 %v1449_v51, %v1427_v28 }
 0x152   : > { %v1474_v18 = vpop.f32.mrf.mxu1 }
 0x153   : > { %v13511_v14 = vadd.f32 %v1472_v24, %v1450_v21 }
 0x156   : > { %v1428_v49 = vpop.f32.mrf.mxu2 }
 0x157   : > { %v1429_v63 = vadd.f32 %v1428_v49, %v13391_v46  ;;  %v1467_v15 = vpop.f32.mrf.mxu0 }
 0x158   : > { %v1405_v34 = vpop.f32.mrf.mxu3  ;;  %v13516_v6 = vadd.f32 %v1467_v15, %v1445_v12 }
 0x159   : > { %v13514_v39 = vadd.f32 %v1405_v34, %v1383_v42  ;;  %v1452_v35 = vadd.f32 %v1451_v9, %v1429_v63 }
 0x15a   : > { %v1477_v38 = vpop.f32.mrf.mxu1  ;;  %2126 = vmatmul.bf16.gmra.mxu0 %v13475_v0 }
 0x15b   : > { %v13518_v43 = vadd.f32 %v1474_v18, %v1452_v35  ;;  %2103 = vmatmul.bf16.gmra.mxu2 %v13388_v60 }
 0x15d   : > { %9461 = vmatmul.msk.bf16.gmra.mxu3 %vm817_vm3, %v13468_v32  ;;  %9464 = vmatmul.msk.bf16.gmra.mxu1 %vm817_vm3, %v13468_v32 }
 0x15e   : > { %v1431_v46 = vpop.f32.mrf.mxu2 }
 0x15f   : > { %v1432_v30 = vadd.f32 %v1431_v46, %v13404_v27  ;;  %v1469_v1 = vpop.f32.mrf.mxu0 }
 0x160   : > { %v1408_v29 = vpop.f32.mrf.mxu3  ;;  %v13529_v58 = vadd.f32 %v1469_v1, %v1447_v56 }
 0x161   : > { %v13527_v44 = vadd.f32 %v1408_v29, %v1386_v47  ;;  %v1455_v57 = vadd.f32 %v1454_v20, %v1432_v30 }
 0x162   : > { %v1479_v41 = vpop.f32.mrf.mxu1 }
 0x163   : > { %v13531_v60 = vadd.f32 %v1477_v38, %v1455_v57  ;;  %v13560_v38 = vld [vmem:[#allocation5] sm:$0x7] }
 0x166   : > { %v1433_v0 = vpop.f32.mrf.mxu2 }
 0x167   : > { %v1536_v37 = vpop.f32.mrf.mxu0  ;;  %v236_v0 = vlaneseq }
 0x168   : > { %v1410_v26 = vpop.f32.mrf.mxu3 }
 0x16a   : > { %v1961_v25 = vpop.f32.mrf.mxu1  ;;  %2131 = vmatmul.bf16.gmra.mxu0 %v13462_v45 }
 0x16b   : > { %2108 = vmatmul.bf16.gmra.mxu2 %v13377_v48 }
 0x16d   : > { %9462 = vmatmul.msk.bf16.gmra.mxu3 %vm817_vm3, %v13459_v7  ;;  %9465 = vmatmul.msk.bf16.gmra.mxu1 %vm817_vm3, %v13459_v7 }
 0x16e   : > { %v1513_v27 = vpop.f32.mrf.mxu2 }
 0x16f   : > { %v1538_v62 = vpop.f32.mrf.mxu0 }
 0x170   : > { %v1490_v32 = vpop.f32.mrf.mxu3 }
 0x171   : > { %v1491_v31 = vadd.f32 %v1490_v32, %v13426_v13 }
 0x172   : > { %v1963_v54 = vpop.f32.mrf.mxu1 }
 0x173   : > { %v1514_v55 = vadd.f32 %v1513_v27, %v1491_v31 }
 0x175   : > { %v13540_v42 = vadd.f32 %v1536_v37, %v1514_v55 }
 0x176   : > { %v1515_v17 = vpop.f32.mrf.mxu2 }
 0x177   : > { %v1541_v45 = vpop.f32.mrf.mxu0 }
 0x178   : > { %v1492_v61 = vpop.f32.mrf.mxu3 }
 0x179   : > { %v1493_v48 = vadd.f32 %v1492_v61, %v13447_v2 }
 0x17a   : > { %v1966_v51 = vpop.f32.mrf.mxu1 }
 0x17b   : > { %v1516_v22 = vadd.f32 %v1515_v17, %v1493_v48 }
 0x17d   : > { %v13543_v47 = vadd.f32 %v1538_v62, %v1516_v22 }
 0x17e   : > { %v1518_v50 = vpop.f32.mrf.mxu2 }
 0x17f   : > { %v1543_v10 = vpop.f32.mrf.mxu0 }
 0x180   : > { %v1495_v7 = vpop.f32.mrf.mxu3 }
 0x181   : > { %v1496_v53 = vadd.f32 %v1495_v7, %v13456_v23 }
 0x182   : > { %v13546_v13 = vpop.f32.mrf.mxu1 }
 0x183   : > { %v1519_v9 = vadd.f32 %v1518_v50, %v1496_v53 }
 0x185   : > { %v13548_v36 = vadd.f32 %v1541_v45, %v1519_v9 }
 0x186   : > { %v1520_v12 = vpop.f32.mrf.mxu2 }
 0x187   : > { %v1546_v2 = vpop.f32.mrf.mxu0 }
 0x188   : > { %v1497_v59 = vpop.f32.mrf.mxu3 }
 0x189   : > { %v1498_v3 = vadd.f32 %v1497_v59, %v13478_v5 }
 0x18a   : > { %v13551_v16 = vpop.f32.mrf.mxu1 }
 0x18b   : > { %v1521_v20 = vadd.f32 %v1520_v12, %v1498_v3  ;;  %v13046_v3 = vmov 1.0  }
 0x18d   : > { %v13553_v24 = vadd.f32 %v1543_v10, %v1521_v20 }
 0x18e   : > { %v1523_v56 = vpop.f32.mrf.mxu2 }
 0x18f   : > { %v1548_v28 = vpop.f32.mrf.mxu0 }
 0x190   : > { %v1500_v33 = vpop.f32.mrf.mxu3 }
 0x191   : > { %v1501_v23 = vadd.f32 %v1500_v33, %v13487_v19  ;;  %v2176_v19 = vperm.slane %v13560_v38, 0 }
 0x192   : > { %v1973_v4 = vpop.f32.mrf.mxu1 }
 0x193   : > { %v1524_v40 = vadd.f32 %v1523_v56, %v1501_v23 }
 0x195   : > { %v13556_v21 = vadd.f32 %v1546_v2, %v1524_v40 }
 0x196   : > { %v1525_v18 = vpop.f32.mrf.mxu2 }
 0x197   : > { %v2030_v63 = vpop.f32.mrf.mxu0 }
 0x198   : > { %v1502_v49 = vpop.f32.mrf.mxu3 }
 0x19a   : > { %v2053_v34 = vpop.f32.mrf.mxu1 }
 0x19b   : > { %v13558_v5 = vadd.f32 %v2053_v34, %v2030_v63 }
 0x19e   : > { %v2007_v15 = vpop.f32.mrf.mxu2 }
 0x19f   : > { %v2032_v30 = vpop.f32.mrf.mxu0 }
 0x1a0   : > { %v1984_v35 = vpop.f32.mrf.mxu3 }
 0x1a1   : > { %v1985_v46 = vadd.f32 %v1984_v35, %v1961_v25  ;;  %v237_v25 = vshrl.u32 %v236_v0, 7 }
 0x1a2   : > { %v2055_v29 = vpop.f32.mrf.mxu1 }
 0x1a3   : > { %v2008_v1 = vadd.f32 %v2007_v15, %v1985_v46  ;;  %v13563_v57 = vadd.f32 %v2055_v29, %v2032_v30  ;;  %v239_v45 = vadd.s32 16, %v237_v25 }
 0x1a5   : > { %v2159_v41 = vadd.f32 %v2008_v1, %v13497_v11  ;;  %vm244_vm6 = vcmp.eq.s32.totalorder %v239_v45, 16  ;;  %vm249_vm7 = vcmp.eq.s32.totalorder %v239_v45, 17 }
 0x1a6   : > { %v2009_v37 = vpop.f32.mrf.mxu2  ;;  %vm254_vm8 = vmor %vm244_vm6, %vm249_vm7 }
 0x1a7   : > { %v13566_v26 = vadd.f32 %v2176_v19, %v2159_v41  ;;  %v2035_v62 = vpop.f32.mrf.mxu0  ;;  %v13580_v2 = vsel %vm254_vm8, 0.0, %v13046_v3 }
 0x1a8   : > { %v1986_v27 = vpop.f32.mrf.mxu3 }
 0x1a9   : > { %v2197_v32 = vmax.f32 %v13566_v26, 0.0   ;;  %v1987_v31 = vadd.f32 %v1986_v27, %v1963_v54 }
 0x1aa   : > { %v2058_v55 = vpop.f32.mrf.mxu1 }
 0x1ab   : > { %v2010_v17 = vadd.f32 %v2009_v37, %v1987_v31  ;;  %v13569_v61 = vadd.f32 %v2058_v55, %v2035_v62 }
 0x1ad   : > { %v2162_v48 = vadd.f32 %v2010_v17, %v13500_v52 }
 0x1ae   : > { %v2012_v11 = vpop.f32.mrf.mxu2 }
 0x1af   : > { %v13572_v22 = vadd.f32 %v2176_v19, %v2162_v48  ;;  %v13575_v10 = vpop.f32.mrf.mxu0 }
 0x1b0   : > { %v1989_v50 = vpop.f32.mrf.mxu3 }
 0x1b1   : > { %v2200_v7 = vmax.f32 %v13572_v22, 0.0   ;;  %v1990_v53 = vadd.f32 %v1989_v50, %v1966_v51 }
 0x1b2   : > { %v13577_v54 = vpop.f32.mrf.mxu1 }
 0x1b3   : > { %v2013_v9 = vadd.f32 %v2012_v11, %v1990_v53 }
 0x1b5   : > { %v2165_v12 = vadd.f32 %v2013_v9, %v13509_v8 }
 0x1b6   : > { %v2014_v52 = vpop.f32.mrf.mxu2 }
 0x1b7   : > { %v2188_v59 = vadd.f32 %v2176_v19, %v2165_v12  ;;  %v13583_v51 = vpop.f32.mrf.mxu0 }
 0x1b8   : > { %v1991_v20 = vpop.f32.mrf.mxu3 }
 0x1b9   : > { %v2203_v56 = vmax.f32 %v2188_v59, 0.0  ;;  %v1992_v33 = vadd.f32 %v1991_v20, %v13546_v13 }
 0x1ba   : > { %v13585_v23 = vpop.f32.mrf.mxu1 }
 0x1bb   : > { %v13588_v28 = vmul.f32 %v2203_v56, %v13580_v2   ;;  %v2015_v4 = vadd.f32 %v2014_v52, %v1992_v33 }
 0x1bd   : > { %v2168_v40 = vadd.f32 %v2015_v4, %v13514_v39 }
 0x1be   : > { %v2017_v18 = vpop.f32.mrf.mxu2 }
 0x1bf   : > { %v13591_v8 = vadd.f32 %v2176_v19, %v2168_v40  ;;  %v2042_v15 = vpop.f32.mrf.mxu0 }
 0x1c0   : > { %v1994_v49 = vpop.f32.mrf.mxu3 }
 0x1c1   : > { %v2206_v63 = vmax.f32 %v13591_v8, 0.0   ;;  %v1995_v34 = vadd.f32 %v1994_v49, %v13551_v16  ;;  %v13601_v16 = vperm.slane %v13560_v38, 1 }
 0x1c2   : > { %v2065_v13 = vpop.f32.mrf.mxu1 }
 0x1c3   : > { %v2018_v35 = vadd.f32 %v2017_v18, %v1995_v34 }
 0x1c5   : > { %v2171_v46 = vadd.f32 %v2018_v35, %v13527_v44  ;;  %v2178_v44 = vperm.slane %v13560_v38, 2 }
 0x1c6   : > { %v2019_v29 = vpop.f32.mrf.mxu2 }
 0x1c7   : > { %v13596_v30 = vadd.f32 %v2176_v19, %v2171_v46  ;;  %v2122_v39 = vpop.f32.mrf.mxu0  ;;  %v2061_v29 = vadd.f32 %v13577_v54, %v13575_v10  ;;  %v2064_v54 = vadd.f32 %v13585_v23, %v13583_v51 }
 0x1c8   : > { %v1996_v1 = vpop.f32.mrf.mxu3 }
 0x1c9   : > { %v2209_v41 = vmax.f32 %v13596_v30, 0.0  }
 0x1ca   : > { %v2145_v0 = vpop.f32.mrf.mxu1 }
 0x1ce   : > { %v2099_v37 = vpop.f32.mrf.mxu2 }
 0x1cf   : > { %v2123_v27 = vadd.f32 %v2122_v39, %v2099_v37  ;;  %v2124_v55 = vpop.f32.mrf.mxu0 }
 0x1d0   : > { %v2076_v31 = vpop.f32.mrf.mxu3 }
 0x1d1   : > { %v2077_v62 = vadd.f32 %v2076_v31, %v13558_v5  ;;  %v2146_v25 = vadd.f32 %v2145_v0, %v2123_v27 }
 0x1d2   : > { %v2147_v19 = vpop.f32.mrf.mxu1 }
 0x1d3   : > { %v2160_v17 = vadd.f32 %v2077_v62, %v13516_v6  ;;  %v2161_v48 = vadd.f32 %v2146_v25, %v13540_v42 }
 0x1d5   : > { %v13607_v45 = vadd.f32 %v13601_v16, %v2160_v17  ;;  %v13609_v11 = vadd.f32 %v2178_v44, %v2161_v48 }
 0x1d6   : > { %v2101_v5 = vpop.f32.mrf.mxu2 }
 0x1d7   : > { %v2198_v50 = vmax.f32 %v13607_v45, 0.0   ;;  %v2199_v53 = vmax.f32 %v13609_v11, 0.0   ;;  %v2125_v9 = vadd.f32 %v2124_v55, %v2101_v5  ;;  %v2127_v38 = vpop.f32.mrf.mxu0 }
 0x1d8   : > { %v2078_v12 = vpop.f32.mrf.mxu3 }
 0x1d9   : > { %v2079_v59 = vadd.f32 %v2078_v12, %v13563_v57  ;;  %v2148_v52 = vadd.f32 %v2147_v19, %v2125_v9 }
 0x1da   : > { %v2150_v3 = vpop.f32.mrf.mxu1 }
 0x1db   : > { %v2163_v6 = vadd.f32 %v2079_v59, %v13529_v58  ;;  %v2164_v42 = vadd.f32 %v2148_v52, %v13543_v47 }
 0x1dd   : > { %v2186_v20 = vadd.f32 %v13601_v16, %v2163_v6  ;;  %v2187_v56 = vadd.f32 %v2178_v44, %v2164_v42 }
 0x1de   : > { %v2104_v4 = vpop.f32.mrf.mxu2 }
 0x1df   : > { %v2201_v33 = vmax.f32 %v2186_v20, 0.0   ;;  %v2202_v40 = vmax.f32 %v2187_v56, 0.0   ;;  %v2128_v18 = vadd.f32 %v2127_v38, %v2104_v4  ;;  %v2129_v15 = vpop.f32.mrf.mxu0 }
 0x1e0   : > { %v2081_v49 = vpop.f32.mrf.mxu3 }
 0x1e1   : > { %v2082_v34 = vadd.f32 %v2081_v49, %v13569_v61  ;;  %v2151_v13 = vadd.f32 %v2150_v3, %v2128_v18 }
 0x1e2   : > { %v2152_v57 = vpop.f32.mrf.mxu1 }
 0x1e3   : > { %v2166_v35 = vadd.f32 %v2082_v34, %v13511_v14  ;;  %v2167_v46 = vadd.f32 %v2151_v13, %v13548_v36 }
 0x1e5   : > { %v2189_v58 = vadd.f32 %v13601_v16, %v2166_v35  ;;  %v2190_v47 = vadd.f32 %v2178_v44, %v2167_v46 }
 0x1e6   : > { %v2106_v39 = vpop.f32.mrf.mxu2 }
 0x1e7   : > { %v2204_v1 = vmax.f32 %v2189_v58, 0.0  ;;  %v2205_v0 = vmax.f32 %v2190_v47, 0.0  ;;  %v2130_v37 = vadd.f32 %v2129_v15, %v2106_v39  ;;  %v2132_v62 = vpop.f32.mrf.mxu0 }
 0x1e8   : > { %v2083_v27 = vpop.f32.mrf.mxu3 }
 0x1e9   : > { %v2219_v61 = vmul.f32 %v2204_v1, %v13580_v2   ;;  %v2084_v31 = vadd.f32 %v2083_v27, %v2061_v29  ;;  %v2220_v55 = vmul.f32 %v2205_v0, %v13580_v2   ;;  %v2153_v14 = vadd.f32 %v2152_v57, %v2130_v37 }
 0x1ea   : > { %v2155_v25 = vpop.f32.mrf.mxu1 }
 0x1eb   : > { %v2169_v36 = vadd.f32 %v2084_v31, %v13518_v43  ;;  %v2170_v19 = vadd.f32 %v2153_v14, %v13553_v24 }
 0x1ed   : > { %v2192_v17 = vadd.f32 %v13601_v16, %v2169_v36  ;;  %v2193_v10 = vadd.f32 %v2178_v44, %v2170_v19 }
 0x1ee   : > { %v2109_v5 = vpop.f32.mrf.mxu2 }
 0x1ef   : > { %v2207_v48 = vmax.f32 %v2192_v17, 0.0   ;;  %v2208_v9 = vmax.f32 %v2193_v10, 0.0   ;;  %v2133_v12 = vadd.f32 %v2132_v62, %v2109_v5  ;;  %v2134_v52 = vpop.f32.mrf.mxu0 }
 0x1f0   : > { %v2086_v59 = vpop.f32.mrf.mxu3 }
 0x1f1   : > { %v2087_v38 = vadd.f32 %v2086_v59, %v2064_v54  ;;  %v2156_v3 = vadd.f32 %v2155_v25, %v2133_v12 }
 0x1f2   : > { %v2157_v6 = vpop.f32.mrf.mxu1 }
 0x1f3   : > { %v2172_v42 = vadd.f32 %v2087_v38, %v13531_v60  ;;  %v2173_v43 = vadd.f32 %v2156_v3, %v13556_v21 }
 0x1f5   : > { %v2195_v24 = vadd.f32 %v13601_v16, %v2172_v42  ;;  %v2196_v20 = vadd.f32 %v2178_v44, %v2173_v43 }
 0x1f6   : > { %v2111_v4 = vpop.f32.mrf.mxu2 }
 0x1f7   : > { %v2210_v56 = vmax.f32 %v2195_v24, 0.0   ;;  %v2211_v18 = vmax.f32 %v2196_v20, 0.0  }
 0x1f8   : > { %v2088_v51 = vpop.f32.mrf.mxu3 }
 0x1f9 LB: >> { %16374 = vst [vmem:[#allocation9_spill] sm:$0xff] %v12978_v18  ;;  %s9467_s11 = smul.u32 2592, %s13038_s10  ;;  %v13729_v60 = vpack.c.bf16 %v13026_v53, %v13026_v53  ;;  %v13733_v21 = vpack.c.bf16 %v13014_v40, %v13014_v40  ;;  %v13737_v26 = vpack.c.bf16 %v13002_v55, %v13002_v55  ;;  %vm2258_vm9 = vsmask.f32 4368  ;;  %s13038_s10 = sphi %s13676_s10, %s2232_s10   ;;  %v13034_v32 = vphi %v2197_v32, %v16461_v32   ;;  %v13030_v50 = vphi %v2198_v50, %v16460_v50   ;;  %v13026_v53 = vphi %v2199_v53, %v16459_v53   ;;  %v13022_v7 = vphi %v2200_v7, %v16458_v7   ;;  %v13018_v33 = vphi %v2201_v33, %v16457_v33   ;;  %v13014_v40 = vphi %v2202_v40, %v16456_v40   ;;  %v13010_v28 = vphi %v13588_v28, %v16455_v28   ;;  %v13006_v61 = vphi %v2219_v61, %v16454_v61   ;;  %v13002_v55 = vphi %v2220_v55, %v16453_v55   ;;  %v12998_v63 = vphi %v2206_v63, %v16452_v63   ;;  %v12994_v48 = vphi %v2207_v48, %v16451_v48   ;;  %v12990_v9 = vphi %v2208_v9, %v16450_v9   ;;  %v12986_v41 = vphi %v2209_v41, %v16449_v41   ;;  %v12982_v56 = vphi %v2210_v56, %v16448_v56   ;;  %v12978_v18 = vphi %v2211_v18, %v16447_v18  }
 0x1fa   : >> { %16375 = vst [vmem:[#allocation10_spill] sm:$0xff] %v12982_v56  ;;  %vm2357_vm10 = vsmask.f32 7938  ;;  %vm2366_vm11 = vcmask 257024   ;;  %v13750_v11 = vpack.c.bf16 %v12990_v9, %v12990_v9  ;;  %v13780_v38 = vpack.c.bf16 %v13030_v50, %v13034_v32  ;;  %vm13813_vm13 = vmor %vm207_vm1, %vm2258_vm9  ;;  %s10378_s14 = smul.u32 6, %s13038_s10  ;;  %s2232_s10 = sadd.s32 1, %s13038_s10  }
 0x1fb   : >> { %16376 = vst [vmem:[#allocation11_spill] sm:$0xff] %v12986_v41  ;;  %v2268_v22 = vshrl.u32 %v13729_v60, 16  ;;  %v2271_v23 = vshll.u32 %v13729_v60, 16  ;;  %v2285_v8 = vshrl.u32 %v13733_v21, 16  ;;  %v2288_v30 = vshll.u32 %v13733_v21, 16  ;;  %s13743_s13 = scalar_lea.vmem [#allocation3], %s9467_s11  ;;  %vm13823_vm14 = vmand %vm2366_vm11, %vm2357_vm10 }
 0x1fc   : >> { %16377 = vst [vmem:[#allocation12_spill] sm:$0xff] %v12990_v9  ;;  %v9713_v16 = vld [vmem:[%s13743_s13 + $0x768] sm:$0xf]  ;;  %v12227_v44 = vld [vmem:[%s13743_s13 + $0x770] sm:$0xf0]  ;;  %v13784_v52 = vpack.c.bf16 %v13018_v33, %v13022_v7  ;;  %v13795_v24 = vpack.c.bf16 %v13006_v61, %v13010_v28  ;;  %vm2356_vm12 = vcmask 1043456  }
 0x1fd   : >> { %16378 = vst [vmem:[#allocation13_spill] sm:$0xff] %v12994_v48  ;;  %v12226_v45 = vld [vmem:[%s13743_s13 + $0x76c] sm:$0xf]  ;;  %v9714_v49 = vor.u32 %v12227_v44, %v9713_v16  ;;  %v9715_v34 = vld [vmem:[%s13743_s13 + $0x774] sm:$0xf0]  ;;  %vm2359_vm15 = vcmask 1047556   ;;  %vm13881_vm0 = vmand %vm2356_vm12, %vm2357_vm10 }
 0x1fe   : >> { %16379 = vst [vmem:[#allocation14_spill] sm:$0xff] %v12998_v63  ;;  %v9701_v15 = vld [vmem:[%s13743_s13 + $0x750] sm:$0xf]  ;;  %v12224_v13 = vld [vmem:[%s13743_s13 + $0x758] sm:$0xf0]  ;;  %v9718_v57 = vor.u32 %v12226_v45, %v9715_v34  ;;  %vm2378_vm7 = vcmask 1041408  }
 0x1ff   : >> { %16380 = vst [vmem:[#allocation15_spill] sm:$0xff] %v13002_v55  ;;  %v9702_v35 = vor.u32 %v12224_v13, %v9701_v15  ;;  %v12223_v46 = vld [vmem:[%s13743_s13 + $0x754] sm:$0xf]  ;;  %v9703_v58 = vld [vmem:[%s13743_s13 + $0x75c] sm:$0xf0]  ;;  %2965 = vmatpush.bf16.msra.mxu0 %v9714_v49  ;;  %12653 = vmatpush.bf16.msra.mxu1 %v9714_v49  ;;  %v13806_v49 = vpack.c.bf16 %v12994_v48, %v12998_v63  ;;  %v2270_v13 = vrot.slane %v2268_v22, 7 }
 0x200   : >> { %16381 = vst [vmem:[#allocation16_spill] sm:$0xff] %v13006_v61  ;;  %v9689_v47 = vld [vmem:[%s13743_s13 + $0x738] sm:$0xf]  ;;  %v12221_v29 = vld [vmem:[%s13743_s13 + $0x740] sm:$0xf0]  ;;  %3034 = vmatpush.bf16.msra.mxu3 %v9718_v57  ;;  %v9706_v0 = vor.u32 %v12223_v46, %v9703_v58  ;;  %v2287_v57 = vrot.slane %v2285_v8, 7 }
 0x201   : >> { %16382 = vst [vmem:[#allocation17_spill] sm:$0xff] %v13010_v28  ;;  %v12220_v1 = vld [vmem:[%s13743_s13 + $0x73c] sm:$0xf]  ;;  %v9691_v39 = vld [vmem:[%s13743_s13 + $0x744] sm:$0xf0]  ;;  %v9690_v37 = vor.u32 %v12221_v29, %v9689_v47  ;;  %v2306_v46 = vshll.u32 %v13737_v26, 16  ;;  %v2273_v8 = vor.u32 %v2271_v23, %v2270_v13 }
 0x202   : >> { %16383 = vst [vmem:[#allocation18_spill] sm:$0xff] %v13014_v40  ;;  %v9677_v27 = vld [vmem:[%s13743_s13 + $0x720] sm:$0xf]  ;;  %v12218_v31 = vld [vmem:[%s13743_s13 + $0x728] sm:$0xf0]  ;;  %v9694_v14 = vor.u32 %v12220_v1, %v9691_v39  ;;  %v2321_v58 = vshrl.u32 %v13750_v11, 16  ;;  %v2290_v39 = vor.u32 %v2288_v30, %v2287_v57  ;;  %v13853_v30 = vpack.c.bf16 %v12982_v56, %v12986_v41 }
 0x203   : >> { %16384 = vst [vmem:[#allocation19_spill] sm:$0xff] %v13018_v33  ;;  %v13764_v62 = vld [vmem:[%s13743_s13 + $0x724] sm:$0xf]  ;;  %v9678_v25 = vor.u32 %v12218_v31, %v9677_v27  ;;  %v13767_v36 = vld [vmem:[%s13743_s13 + $0x72c] sm:$0xf0]  ;;  %2966 = vmatpush.bf16.msra.mxu0 %v9702_v35  ;;  %12654 = vmatpush.bf16.msra.mxu1 %v9702_v35  ;;  %v2303_v35 = vshrl.u32 %v13737_v26, 16 }
 0x204   : >> { %16385 = vst [vmem:[#allocation20_spill] sm:$0xff] %v13022_v7  ;;  %v9833_v19 = vld [vmem:[%s13743_s13 + $0x858] sm:$0xf]  ;;  %v12257_v17 = vld [vmem:[%s13743_s13 + $0x860] sm:$0xf0]  ;;  %v9682_v10 = vor.u32 %v13764_v62, %v13767_v36  ;;  %3035 = vmatpush.bf16.msra.mxu3 %v9706_v0  ;;  %v2324_v47 = vshll.u32 %v13750_v11, 16 }
 0x205   : >> { %16386 = vst [vmem:[#allocation21_spill] sm:$0xff] %v13026_v53  ;;  %v9834_v54 = vor.u32 %v12257_v17, %v9833_v19  ;;  %v9665_v5 = vld [vmem:[%s13743_s13 + $0x708] sm:$0xf]  ;;  %v12215_v12 = vld [vmem:[%s13743_s13 + $0x710] sm:$0xf0]  ;;  %v16391_v29 = vmov 0 }
 0x206   : >> { %16387 = vst [vmem:[#allocation22_spill] sm:$0xff] %v13030_v50  ;;  %v13776_v59 = vld [vmem:[%s13743_s13 + $0x70c] sm:$0xf]  ;;  %v13786_v3 = vor.u32 %v12215_v12, %v9665_v5  ;;  %v13789_v6 = vld [vmem:[%s13743_s13 + $0x714] sm:$0xf0]  ;;  %v16392_v29 = vsel %vm13823_vm14, 4294967295, %v16391_v29 }
 0x207   : >> { %16388 = vst [vmem:[#allocation23_spill] sm:$0xff] %v13034_v32  ;;  %v9821_v42 = vld [vmem:[%s13743_s13 + $0x840] sm:$0xf]  ;;  %v12254_v43 = vld [vmem:[%s13743_s13 + $0x848] sm:$0xf0]  ;;  %3017 = vmatpush.bf16.msra.mxu2 %v9834_v54  ;;  %v9670_v20 = vor.u32 %v13776_v59, %v13789_v6  ;;  %2967 = vmatpush.bf16.msra.mxu0 %v9690_v37  ;;  %v2283_v26 = vrot.slane %v2270_v13, 4 }
 0x208   : >> { %v9822_v4 = vor.u32 %v12254_v43, %v9821_v42  ;;  %v9653_v51 = vld [vmem:[%s13743_s13 + $0x6f0] sm:$0xf]  ;;  %v12212_v16 = vld [vmem:[%s13743_s13 + $0x6f8] sm:$0xf0]  ;;  %v13802_v44 = vld [vmem:[%s13743_s13 + $0x6f4] sm:$0xf]  ;;  %12655 = vmatpush.bf16.msra.mxu1 %v9690_v37  ;;  %3036 = vmatpush.bf16.msra.mxu3 %v9694_v14 }
 0x209   : >> { %v2368_v45 = vld [vmem:[#allocation2 + $0x8] sm:$0xf]  ;;  %v13809_v34 = vld [vmem:[%s13743_s13 + $0x6fc] sm:$0xf0]  ;;  %16393 = vst [vmem:[#allocation24_spill] sm:$0xff] %v16392_v29  ;;  %v13828_v22 = vor.u32 %v12212_v16, %v9653_v51  ;;  %v2301_v31 = vrot.slane %v2287_v57, 4  ;;  %v2291_v60 = vsel %vm13813_vm13, %v2283_v26, %v2290_v39 }
 0x20a   : >> { %v9641_v1 = vld [vmem:[%s13743_s13 + $0x6d8] sm:$0xf]  ;;  %v12209_v11 = vld [vmem:[%s13743_s13 + $0x6e0] sm:$0xf0]  ;;  %v13836_v0 = vld [vmem:[%s13743_s13 + $0x6dc] sm:$0xf]  ;;  %v9658_v27 = vor.u32 %v13802_v44, %v13809_v34  ;;  %v2369_v21 = vsel %vm13823_vm14, %v2273_v8, %v2368_v45 }
 0x20b   : >> { %3018 = vmatpush.bf16.msra.mxu2 %v9822_v4  ;;  %v2305_v19 = vrot.slane %v2303_v35, 7  ;;  %v13840_v37 = vrot.slane %v2321_v58, 7  ;;  %v13843_v17 = vld [vmem:[%s13743_s13 + $0x6e4] sm:$0xf0]  ;;  %v13849_v23 = vor.u32 %v12209_v11, %v9641_v1  ;;  %2370 = vst [vmem:[#allocation2 + $0x8] sm:$0xf] %v2369_v21  ;;  %2968 = vmatpush.bf16.msra.mxu0 %v9678_v25 }
 0x20c   : >> { %v9646_v12 = vor.u32 %v13836_v0, %v13843_v17  ;;  %12656 = vmatpush.bf16.msra.mxu1 %v9678_v25  ;;  %2373 = vst.msk [vmem:[#allocation2 + $0x14] sm:$0xf] %vm2366_vm11, %v2291_v60  ;;  %v2261_v42 = vshrl.u32 %v13780_v38, 16  ;;  %v2264_v43 = vshll.u32 %v13780_v38, 16  ;;  %v2276_v4 = vshrl.u32 %v13784_v52, 16  ;;  %3037 = vmatpush.bf16.msra.mxu3 %v9682_v10  ;;  %s14708_s15 = scalar_lea.vmem [#allocation5], %s10378_s14 }
 0x20d   : >> { %v2308_v14 = vor.u32 %v2306_v46, %v2305_v19  ;;  %v2319_v54 = vrot.slane %v2305_v19, 4  ;;  %v2326_v5 = vor.u32 %v2324_v47, %v13840_v37  ;;  %v2279_v25 = vshll.u32 %v13784_v52, 16  ;;  %v9629_v39 = vld [vmem:[%s13743_s13 + $0x6c0] sm:$0xf]  ;;  %v12206_v11 = vld [vmem:[%s13743_s13 + $0x6c8] sm:$0xf0] }
 0x20e   : >> { %v2294_v45 = vshrl.u32 %v13795_v24, 16  ;;  %v2263_v13 = vrot.slane %v2261_v42, 7  ;;  %v2278_v38 = vrot.slane %v2276_v4, 7  ;;  %v2297_v57 = vshll.u32 %v13795_v24, 16  ;;  %v13899_v60 = vld [vmem:[%s13743_s13 + $0x6c4] sm:$0xf] }
 0x20f   : >> { %v2309_v51 = vsel %vm13813_vm13, %v2301_v31, %v2308_v14  ;;  %v2327_v16 = vsel %vm13813_vm13, %v2319_v54, %v2326_v5  ;;  %v2312_v35 = vshrl.u32 %v13806_v49, 16  ;;  %v2315_v36 = vshll.u32 %v13806_v49, 16  ;;  %2969 = vmatpush.bf16.msra.mxu0 %v13786_v3  ;;  %v13902_v21 = vld [vmem:[%s13743_s13 + $0x6cc] sm:$0xf0]  ;;  %v12276_v55 = vld [vmem:[%s13743_s13 + $0x8f8] sm:$0xf0] }
 0x210   : >> { %2375 = vst.msk [vmem:[#allocation2 + $0x20] sm:$0xf] %vm2366_vm11, %v2309_v51  ;;  %v2296_v62 = vrot.slane %v2294_v45, 7  ;;  %v2330_v10 = vshrl.u32 %v13853_v30, 16  ;;  %12657 = vmatpush.bf16.msra.mxu1 %v13786_v3  ;;  %v2266_v24 = vor.u32 %v2264_v43, %v2263_v13  ;;  %v2274_v46 = vrot.slane %v2263_v13, 4  ;;  %3038 = vmatpush.bf16.msra.mxu3 %v9670_v20  ;;  %v2363_v3 = vld [vmem:[#allocation2] sm:$0xff] }
 0x211   : >> { %2377 = vst.msk [vmem:[#allocation2 + $0x2c] sm:$0xf] %vm2366_vm11, %v2327_v16  ;;  %v2281_v58 = vor.u32 %v2279_v25, %v2278_v38  ;;  %v2292_v47 = vrot.slane %v2278_v38, 4  ;;  %v2314_v8 = vrot.slane %v2312_v35, 7  ;;  %vm2360_vm2 = vsmask.f32 7954 }
 0x212   : >> { %v2299_v49 = vor.u32 %v2297_v57, %v2296_v62  ;;  %v2310_v1 = vrot.slane %v2296_v62, 4  ;;  %v2396_v26 = vld [vmem:[#allocation2 + $0x8] sm:$0xf]  ;;  %vm2361_vm6 = vmand %vm2359_vm15, %vm2360_vm2  ;;  %v2332_v19 = vrot.slane %v2330_v10, 7  ;;  %v2333_v59 = vshll.u32 %v13853_v30, 16  ;;  %p15658_p7 = scmp.ge.s32.totalorder %s2232_s10, 3  }
 0x213   : >> { %v13892_v31 = vsel %vm13813_vm13, %v2274_v46, %v2281_v58  ;;  %v13896_v6 = vld [vmem:[#allocation2 + $0x14] sm:$0xf]  ;;  %v2571_v20 = vunpack.c.l.b16 %v2396_v26  ;;  %v2317_v54 = vor.u32 %v2315_v36, %v2314_v8  ;;  %vm13908_vm8 = vmor %vm2361_vm6, %vm13881_vm0  ;;  %2970 = vmatpush.bf16.msra.mxu0 %v13828_v22  ;;  %v2328_v4 = vrot.slane %v2314_v8, 4  ;;  %v9809_v25 = vld [vmem:[%s13743_s13 + $0x828] sm:$0xf] }
 0x214   : >> { %v2300_v14 = vsel %vm13813_vm13, %v2292_v47, %v2299_v49  ;;  %v16348_v30 = vunpack.c.l.b16 %v13892_v31  ;;  %12658 = vmatpush.bf16.msra.mxu1 %v13828_v22  ;;  %v16347_v42 = vunpack.c.l.b16 %v13896_v6  ;;  %v13918_v43 = vsel %vm13908_vm8, %v2266_v24, %v2363_v3  ;;  %v2385_v16 = vld [vmem:[#allocation2 + $0x30] sm:$0x33]  ;;  %3039 = vmatpush.bf16.msra.mxu3 %v9658_v27  ;;  %v12248_v58 = vld [vmem:[%s13743_s13 + $0x818] sm:$0xf0]  ;;  %v12250_v49 = vld [vmem:[%s13743_s13 + $0x82c] sm:$0xf] }
 0x215   : >> { %2374 = vst [vmem:[#allocation2 + $0x18] sm:$0xff] %v2300_v14  ;;  %v2335_v51 = vor.u32 %v2333_v59, %v2332_v19  ;;  %v12251_v45 = vld [vmem:[%s13743_s13 + $0x830] sm:$0xf0]  ;;  %v2318_v22 = vsel %vm13813_vm13, %v2310_v1, %v2317_v54  ;;  %v2569_v38 = vunpack.c.l.b16 %v13918_v43  ;;  %vm2379_vm9 = vsmask.f32 1280 }
 0x216   : >> { %2365 = vst [vmem:[#allocation2] sm:$0xff] %v13918_v43  ;;  %vm2381_vm10 = vcmask 1045508   ;;  %v13931_v35 = vpack.c.b16 %v16347_v42, %v2571_v20  ;;  %vm2380_vm12 = vmand %vm2378_vm7, %vm2379_vm9  ;;  %vm2382_vm15 = vsmask.f32 5376  ;;  %v9630_v27 = vor.u32 %v12206_v11, %v9629_v39  ;;  %v9797_v46 = vld [vmem:[%s13743_s13 + $0x810] sm:$0xf] }
 0x217   : >> { %v9625_v13 = vld [vmem:[#allocation2 + $0x20] sm:$0xf]  ;;  %2376 = vst [vmem:[#allocation2 + $0x24] sm:$0xff] %v2318_v22  ;;  %v2336_v44 = vsel %vm13813_vm13, %v2328_v4, %v2335_v51  ;;  %v13941_v62 = vpack.c.b16 %v16348_v30, %v2569_v38  ;;  %vm2383_vm0 = vmand %vm2381_vm10, %vm2382_vm15  ;;  %2971 = vmatpush.bf16.msra.mxu0 %v13849_v23  ;;  %v9634_v52 = vor.u32 %v13899_v60, %v13902_v21  ;;  %v9811_v1 = vld [vmem:[%s13743_s13 + $0x834] sm:$0xf0]  ;;  %v2337_v59 = vrot.slane %v13840_v37, 4 }
 0x218   : >> { %v12150_v57 = vld [vmem:[#allocation2 + $0x28] sm:$0xf0]  ;;  %v2618_v36 = vshrl.u32 %v13931_v35, 16  ;;  %v2620_v10 = vshll.u32 %v13931_v35, 16  ;;  %12659 = vmatpush.bf16.msra.mxu1 %v13849_v23  ;;  %vm13949_vm2 = vmor %vm2383_vm0, %vm2380_vm12  ;;  %v2257_v47 = vpack.c.bf16 %v12978_v18, %v12978_v18  ;;  %3040 = vmatpush.bf16.msra.mxu3 %v9646_v12  ;;  %v9810_v26 = vor.u32 %v12251_v45, %v9809_v25  ;;  %v12256_v39 = vld [vmem:[%s13743_s13 + $0x85c] sm:$0xf] }
 0x219   : >> { %v13937_v34 = vor.u32 %v12150_v57, %v9625_v13  ;;  %v2596_v23 = vshll.u32 %v13941_v62, 16  ;;  %v2386_v3 = vsel %vm13949_vm2, %v2336_v44, %v2385_v16  ;;  %v9835_v11 = vld [vmem:[%s13743_s13 + $0x864] sm:$0xf0]  ;;  %v2594_v17 = vshrl.u32 %v13941_v62, 16  ;;  %v2390_v4 = vld [vmem:[#allocation2 + $0x38] sm:$0x3] }
 0x21a   : >> { %v2622_v19 = vrot.slane %v2620_v10, 1  ;;  %2387 = vst [vmem:[#allocation2 + $0x30] sm:$0x33] %v2386_v3  ;;  %v2339_v20 = vshrl.u32 %v2257_v47, 16  ;;  %v2342_v60 = vshll.u32 %v2257_v47, 16  ;;  %vm2388_vm6 = vcmask 254976  }
 0x21b   : >> { %v2625_v8 = vshll.u32 %v13937_v34, 16  ;;  %v2598_v12 = vrot.slane %v2596_v23, 1  ;;  %2972 = vmatpush.bf16.msra.mxu0 %v9630_v27  ;;  %v9785_v37 = vld [vmem:[%s13743_s13 + $0x7f8] sm:$0xf]  ;;  %v9814_v51 = vor.u32 %v12250_v49, %v9811_v1  ;;  %v9838_v16 = vor.u32 %v12256_v39, %v9835_v11  ;;  %v12247_v25 = vld [vmem:[%s13743_s13 + $0x814] sm:$0xf]  ;;  %vm13985_vm7 = vmand %vm2388_vm6, %vm2379_vm9 }
 0x21c   : >> { %v9617_v0 = vld [vmem:[#allocation2 + $0x18] sm:$0xf]  ;;  %v2623_v14 = vor.u32 %v2622_v19, %v2618_v36  ;;  %12660 = vmatpush.bf16.msra.mxu1 %v9630_v27  ;;  %v2341_v54 = vrot.slane %v2339_v20, 7  ;;  %v9799_v45 = vld [vmem:[%s13743_s13 + $0x81c] sm:$0xf0]  ;;  %3041 = vmatpush.bf16.msra.mxu3 %v9634_v52  ;;  %v9798_v22 = vor.u32 %v12248_v58, %v9797_v46  ;;  %v16400_v10 = vmov 0 }
 0x21d   : >> { %v13969_v21 = vrot.slane %v2625_v8, 1  ;;  %v12253_v38 = vld [vmem:[%s13743_s13 + $0x844] sm:$0xf]  ;;  %v9823_v57 = vld [vmem:[%s13743_s13 + $0x84c] sm:$0xf0]  ;;  %v16401_v10 = vsel %vm13985_vm7, 4294967295, %v16400_v10  ;;  %3057 = vmatpush.bf16.msrb.mxu2 %v9814_v51  ;;  %v9802_v58 = vor.u32 %v12247_v25, %v9799_v45  ;;  %v2599_v23 = vor.u32 %v2598_v12, %v2594_v17 }
 0x21e   : >> { %v12149_v13 = vld [vmem:[#allocation2 + $0x20] sm:$0xf0]  ;;  %v2344_v36 = vor.u32 %v2342_v60, %v2341_v54  ;;  %16402 = vst [vmem:[#allocation25_spill] sm:$0xff] %v16401_v10  ;;  %v12244_v46 = vld [vmem:[%s13743_s13 + $0x7fc] sm:$0xf]  ;;  %v9826_v47 = vor.u32 %v12253_v38, %v9823_v57 }
 0x21f   : >> { %v13979_v44 = vsel %vm453_vm4, %v2623_v14, %v13969_v21  ;;  %v13981_v27 = vor.u32 %v12149_v13, %v9617_v0  ;;  %v12245_v52 = vld [vmem:[%s13743_s13 + $0x800] sm:$0xf0]  ;;  %3086 = vmatpush.bf16.msrb.mxu0 %v9838_v16  ;;  %v9787_v49 = vld [vmem:[%s13743_s13 + $0x804] sm:$0xf0]  ;;  %v9817_v1 = vld [vmem:[%s13743_s13 + $0x830] sm:$0xf] }
 0x220   : >> { %2988 = vmatpush.bf16.msrb.mxu1 %v9810_v26  ;;  %9843 = vmatmul.msk.bf16.vlgmr.msra.gmra.mxu2 %vm817_vm3, %v13979_v44  ;;  %v12252_v8 = vld [vmem:[%s13743_s13 + $0x838] sm:$0xf0]  ;;  %v2345_v26 = vsel %vm13813_vm13, %v2337_v59, %v2344_v36  ;;  %v9786_v19 = vor.u32 %v12245_v52, %v9785_v37  ;;  %v9773_v20 = vld [vmem:[%s13743_s13 + $0x7e0] sm:$0xf]  ;;  %v12242_v60 = vld [vmem:[%s13743_s13 + $0x7e8] sm:$0xf0]  ;;  %v9790_v59 = vor.u32 %v12244_v46, %v9787_v49 }
 0x221   : >> { %v2601_v3 = vshll.u32 %v13981_v27, 16  ;;  %v13999_v39 = vld [vmem:[#allocation2 + $0x30] sm:$0x33]  ;;  %v2391_v11 = vsel %vm13985_vm7, %v2345_v26, %v2390_v4  ;;  %v9818_v0 = vor.u32 %v12252_v8, %v9817_v1  ;;  %v2629_v14 = vshrl.u32 %v13981_v27, 16  ;;  %3058 = vmatpush.bf16.msrb.mxu2 %v9802_v58  ;;  %v9805_v54 = vld [vmem:[%s13743_s13 + $0x818] sm:$0xf] }
 0x222   : >> { %v2581_v12 = vunpack.c.l.b16 %v13999_v39  ;;  %2392 = vst [vmem:[#allocation2 + $0x38] sm:$0x3] %v2391_v11  ;;  %v12241_v4 = vld [vmem:[%s13743_s13 + $0x7e4] sm:$0xf]  ;;  %v9775_v51 = vld [vmem:[%s13743_s13 + $0x7ec] sm:$0xf0]  ;;  %v9774_v36 = vor.u32 %v12242_v60, %v9773_v20 }
 0x223   : >> { %v2603_v17 = vrot.slane %v2601_v3, 1  ;;  %3087 = vmatpush.bf16.msrb.mxu0 %v9826_v47  ;;  %3126 = vmatpush.bf16.msrb.mxu3 %v9818_v0  ;;  %v12249_v37 = vld [vmem:[%s13743_s13 + $0x820] sm:$0xf0]  ;;  %v9793_v13 = vld [vmem:[%s13743_s13 + $0x800] sm:$0xf]  ;;  %v9778_v46 = vor.u32 %v12241_v4, %v9775_v51  ;;  %v2645_v11 = vshrl.u32 %v13937_v34, 16 }
 0x224   : >> { %2989 = vmatpush.bf16.msrb.mxu1 %v9798_v22  ;;  %v14014_v25 = vpack.c.b16 %v2581_v12, %v2581_v12  ;;  %v9806_v45 = vor.u32 %v12249_v37, %v9805_v54  ;;  %v12246_v22 = vld [vmem:[%s13743_s13 + $0x808] sm:$0xf0]  ;;  %v9761_v52 = vld [vmem:[%s13743_s13 + $0x7c8] sm:$0xf]  ;;  %v12239_v58 = vld [vmem:[%s13743_s13 + $0x7d0] sm:$0xf0] }
 0x225   : >> { %v14012_v16 = vsel %vm453_vm4, %v2599_v23, %v2603_v17  ;;  %v2631_v38 = vor.u32 %v2629_v14, %v2603_v17  ;;  %3059 = vmatpush.bf16.msrb.mxu2 %v9790_v59  ;;  %v12238_v47 = vld [vmem:[%s13743_s13 + $0x7cc] sm:$0xf]  ;;  %v9763_v49 = vld [vmem:[%s13743_s13 + $0x7d4] sm:$0xf0]  ;;  %v9794_v1 = vor.u32 %v12246_v22, %v9793_v13  ;;  %v9781_v23 = vld [vmem:[%s13743_s13 + $0x7e8] sm:$0xf]  ;;  %v9762_v60 = vor.u32 %v12239_v58, %v9761_v52 }
 0x226   : >> { %2973 = vmatmul.bf16.vlgmr.msra.gmra.mxu0 %v14012_v16  ;;  %3042 = vmatmul.bf16.vlgmr.msra.gmra.mxu3 %v14012_v16  ;;  %v2633_v57 = vshll.u32 %v14014_v25, 16  ;;  %v12243_v3 = vld [vmem:[%s13743_s13 + $0x7f0] sm:$0xf0]  ;;  %v9749_v0 = vld [vmem:[%s13743_s13 + $0x7b0] sm:$0xf]  ;;  %v9766_v12 = vor.u32 %v12238_v47, %v9763_v49 }
 0x227   : >> { %3127 = vmatpush.bf16.msrb.mxu3 %v9806_v45  ;;  %v12236_v17 = vld [vmem:[%s13743_s13 + $0x7b8] sm:$0xf0]  ;;  %v12235_v14 = vld [vmem:[%s13743_s13 + $0x7b4] sm:$0xf]  ;;  %v9751_v59 = vld [vmem:[%s13743_s13 + $0x7bc] sm:$0xf0]  ;;  %v9782_v54 = vor.u32 %v12243_v3, %v9781_v23 }
 0x228   : >> { %2990 = vmatpush.bf16.msrb.mxu1 %v9786_v19  ;;  %v14025_v8 = vrot.slane %v2633_v57, 1  ;;  %v9769_v4 = vld [vmem:[%s13743_s13 + $0x7d0] sm:$0xf]  ;;  %v12240_v37 = vld [vmem:[%s13743_s13 + $0x7d8] sm:$0xf0]  ;;  %v2647_v57 = vor.u32 %v2645_v11, %v13969_v21  ;;  %v9750_v52 = vor.u32 %v12236_v17, %v9749_v0  ;;  %v9754_v58 = vor.u32 %v12235_v14, %v9751_v59 }
 0x229   : >> { %v2482_v26 = vld [vmem:[#allocation2 + $0x38] sm:$0x3]  ;;  %3060 = vmatpush.bf16.msrb.mxu2 %v9778_v46  ;;  %v12173_v13 = vld [vmem:[%s13743_s13 + $0x5c0] sm:$0xf0]  ;;  %v9926_v47 = vld [vmem:[%s13743_s13 + $0x5a0] sm:$0xf]  ;;  %v9770_v23 = vor.u32 %v12240_v37, %v9769_v4 }
 0x22a   : >> { %v14032_v19 = vsel %vm453_vm4, %v2631_v38, %v14025_v8  ;;  %v2583_v20 = vunpack.c.l.b16 %v2482_v26  ;;  %v9938_v45 = vld [vmem:[%s13743_s13 + $0x5b8] sm:$0xf]  ;;  %v12233_v46 = vld [vmem:[%s13743_s13 + $0x7a0] sm:$0xf0]  ;;  %v12232_v49 = vld [vmem:[%s13743_s13 + $0x79c] sm:$0xf] }
 0x22b   : >> { %2978 = vmatmul.bf16.vlgmr.msra.gmra.mxu1 %v14032_v19  ;;  %3128 = vmatpush.bf16.msrb.mxu3 %v9794_v1  ;;  %v9737_v22 = vld [vmem:[%s13743_s13 + $0x798] sm:$0xf]  ;;  %v9939_v38 = vor.u32 %v12173_v13, %v9938_v45  ;;  %v9739_v1 = vld [vmem:[%s13743_s13 + $0x7a4] sm:$0xf0]  ;;  %v12170_v3 = vld [vmem:[%s13743_s13 + $0x5a8] sm:$0xf0] }
 0x22c   : >> { %2991 = vmatpush.bf16.msrb.mxu1 %v9774_v36  ;;  %v14040_v51 = vpack.c.b16 %v2583_v20, %v2583_v20  ;;  %v9757_v26 = vld [vmem:[%s13743_s13 + $0x7b8] sm:$0xf]  ;;  %v12237_v11 = vld [vmem:[%s13743_s13 + $0x7c0] sm:$0xf0]  ;;  %v9927_v20 = vor.u32 %v12170_v3, %v9926_v47  ;;  %v2653_v17 = vshrl.u32 %v14014_v25, 16  ;;  %v9742_v59 = vor.u32 %v12232_v49, %v9739_v1 }
 0x22d   : >> { %3061 = vmatpush.bf16.msrb.mxu2 %v9766_v12  ;;  %3481 = vmatpush.bf16.msra.mxu0 %v9939_v38  ;;  %v9738_v12 = vor.u32 %v12233_v46, %v9737_v22  ;;  %v12230_v14 = vld [vmem:[%s13743_s13 + $0x788] sm:$0xf0]  ;;  %v12229_v4 = vld [vmem:[%s13743_s13 + $0x784] sm:$0xf]  ;;  %v9727_v37 = vld [vmem:[%s13743_s13 + $0x78c] sm:$0xf0]  ;;  %v9758_v45 = vor.u32 %v12237_v11, %v9757_v26  ;;  %v2570_v38 = vunpack.c.h.b16 %v13918_v43  ;;  %v16349_v22 = vunpack.c.h.b16 %v13892_v31 }
 0x22e   : >> { %v2649_v36 = vshll.u32 %v14040_v51, 16  ;;  %v12167_v13 = vld [vmem:[%s13743_s13 + $0x590] sm:$0xf0]  ;;  %v9902_v47 = vld [vmem:[%s13743_s13 + $0x570] sm:$0xf]  ;;  %v9730_v1 = vor.u32 %v12229_v4, %v9727_v37  ;;  %v2659_v4 = vshrl.u32 %v14040_v51, 16 }
 0x22f   : >> { %3129 = vmatpush.bf16.msrb.mxu3 %v9782_v54  ;;  %v9914_v54 = vld [vmem:[%s13743_s13 + $0x588] sm:$0xf]  ;;  %v12164_v49 = vld [vmem:[%s13743_s13 + $0x578] sm:$0xf0]  ;;  %v14086_v11 = vpack.c.b16 %v16349_v22, %v2570_v38  ;;  %v10322_v30 = vld [vmem:[%s13743_s13 + $0x9c0] sm:$0xf] }
 0x230   : >> { %2992 = vmatpush.bf16.msrb.mxu1 %v9762_v60  ;;  %v14053_v21 = vrot.slane %v2649_v36, 1  ;;  %v9725_v60 = vld [vmem:[%s13743_s13 + $0x780] sm:$0xf]  ;;  %v9915_v46 = vor.u32 %v12167_v13, %v9914_v54  ;;  %v12148_v26 = vld [vmem:[#allocation2 + $0x1c] sm:$0xf]  ;;  %v9903_v13 = vor.u32 %v12164_v49, %v9902_v47 }
 0x231   : >> { %3062 = vmatpush.bf16.msrb.mxu2 %v9754_v58  ;;  %3482 = vmatpush.bf16.msra.mxu0 %v9927_v20  ;;  %v9745_v36 = vld [vmem:[%s13743_s13 + $0x7a0] sm:$0xf]  ;;  %v12228_v58 = vld [vmem:[%s13743_s13 + $0x778] sm:$0xf0]  ;;  %v9726_v43 = vor.u32 %v12230_v14, %v9725_v60  ;;  %v9733_v54 = vld [vmem:[%s13743_s13 + $0x788] sm:$0xf] }
 0x232   : >> { %v14060_v0 = vsel %vm453_vm4, %v2647_v57, %v14053_v21  ;;  %v9721_v57 = vld [vmem:[%s13743_s13 + $0x770] sm:$0xf]  ;;  %v9619_v60 = vld [vmem:[#allocation2 + $0x24] sm:$0xf0]  ;;  %v9709_v14 = vld [vmem:[%s13743_s13 + $0x758] sm:$0xf]  ;;  %v14104_v49 = vor.u32 %v2659_v4, %v14053_v21 }
 0x233   : >> { %9844 = vmatmul.msk.bf16.gmra.mxu2 %vm817_vm3, %v14060_v0  ;;  %3130 = vmatpush.bf16.msrb.mxu3 %v9770_v23  ;;  %v14082_v23 = vor.u32 %v2653_v17, %v14025_v8  ;;  %v9722_v20 = vor.u32 %v12228_v58, %v9721_v57  ;;  %v9890_v8 = vld [vmem:[%s13743_s13 + $0x558] sm:$0xf]  ;;  %v12161_v17 = vld [vmem:[%s13743_s13 + $0x560] sm:$0xf0]  ;;  %v2608_v38 = vshll.u32 %v14086_v11, 16 }
 0x234   : >> { %2993 = vmatpush.bf16.msrb.mxu1 %v9750_v52  ;;  %v12234_v52 = vld [vmem:[%s13743_s13 + $0x7a8] sm:$0xf0]  ;;  %v9878_v58 = vld [vmem:[%s13743_s13 + $0x540] sm:$0xf]  ;;  %v12216_v4 = vld [vmem:[%s13743_s13 + $0x718] sm:$0xf0] }
 0x235   : >> { %3063 = vmatpush.bf16.msrb.mxu2 %v9742_v59  ;;  %v9746_v3 = vor.u32 %v12234_v52, %v9745_v36  ;;  %3483 = vmatpush.bf16.msra.mxu0 %v9915_v46  ;;  %v12225_v59 = vld [vmem:[%s13743_s13 + $0x760] sm:$0xf0]  ;;  %v9697_v36 = vld [vmem:[%s13743_s13 + $0x740] sm:$0xf]  ;;  %v9891_v52 = vor.u32 %v12161_v17, %v9890_v8  ;;  %v12222_v46 = vld [vmem:[%s13743_s13 + $0x748] sm:$0xf0] }
 0x236   : >> { %3047 = vmatmul.bf16.gmra.mxu3 %v14032_v19  ;;  %9846 = vmatmul.msk.bf16.vlgmr.msrb.gmra.mxu0 %vm817_vm3, %v13979_v44  ;;  %v9710_v57 = vor.u32 %v12225_v59, %v9709_v14  ;;  %v12158_v47 = vld [vmem:[%s13743_s13 + $0x548] sm:$0xf0]  ;;  %v9673_v8 = vld [vmem:[%s13743_s13 + $0x710] sm:$0xf]  ;;  %v10294_v56 = vld [vmem:[%s13743_s13 + $0x980] sm:$0xf] }
 0x237   : >> { %3131 = vmatpush.bf16.msrb.mxu3 %v9758_v45  ;;  %v14096_v45 = vor.u32 %v12148_v26, %v9619_v60  ;;  %v9698_v26 = vor.u32 %v12222_v46, %v9697_v36  ;;  %v12155_v60 = vld [vmem:[%s13743_s13 + $0x530] sm:$0xf0]  ;;  %v2582_v36 = vunpack.c.h.b16 %v13999_v39  ;;  %v12302_v22 = vld [vmem:[%s13743_s13 + $0x9c8] sm:$0xf0]  ;;  %v10723_v63 = vld [vmem:[%s13743_s13 + $0xd38] sm:$0xf] }
 0x238   : >> { %2994 = vmatpush.bf16.msrb.mxu1 %v9738_v12  ;;  %v12231_v12 = vld [vmem:[%s13743_s13 + $0x790] sm:$0xf0]  ;;  %v12416_v28 = vld [vmem:[%s13743_s13 + $0xd40] sm:$0xf0] }
 0x239   : >> { %3064 = vmatpush.bf16.msrb.mxu2 %v9730_v1  ;;  %v9734_v37 = vor.u32 %v12231_v12, %v9733_v54  ;;  %3484 = vmatpush.bf16.msra.mxu0 %v9903_v13  ;;  %v2610_v1 = vrot.slane %v2608_v38, 1  ;;  %v9685_v54 = vld [vmem:[%s13743_s13 + $0x728] sm:$0xf]  ;;  %v12219_v12 = vld [vmem:[%s13743_s13 + $0x730] sm:$0xf0]  ;;  %v2637_v39 = vshrl.u32 %v14096_v45, 16  ;;  %v10724_v7 = vor.u32 %v12416_v28, %v10723_v63 }
 0x23a   : >> { %v9866_v13 = vld [vmem:[%s13743_s13 + $0x528] sm:$0xf]  ;;  %v9686_v59 = vor.u32 %v12219_v12, %v9685_v54  ;;  %v12152_v38 = vld [vmem:[%s13743_s13 + $0x518] sm:$0xf0]  ;;  %v9841_v12 = vld [vmem:[%s13743_s13 + $0x860] sm:$0xf] }
 0x23b   : >> { %2983 = vmatmul.bf16.gmra.mxu1 %v14082_v23  ;;  %3132 = vmatpush.bf16.msrb.mxu3 %v9746_v3  ;;  %v2613_v3 = vshll.u32 %v14096_v45, 16  ;;  %v9867_v17 = vor.u32 %v12155_v60, %v9866_v13  ;;  %v12258_v13 = vld [vmem:[%s13743_s13 + $0x868] sm:$0xf0]  ;;  %v9637_v60 = vld [vmem:[%s13743_s13 + $0x6c8] sm:$0xf] }
 0x23c   : >> { %2995 = vmatpush.bf16.msrb.mxu1 %v9726_v43  ;;  %v2606_v43 = vshrl.u32 %v14086_v11, 16  ;;  %v12413_v63 = vld [vmem:[%s13743_s13 + $0xd28] sm:$0xf0] }
 0x23d   : >> { %3485 = vmatpush.bf16.msra.mxu0 %v9891_v52  ;;  %v2615_v14 = vrot.slane %v2613_v3, 1  ;;  %v9674_v52 = vor.u32 %v12216_v4, %v9673_v8  ;;  %v9649_v3 = vld [vmem:[%s13743_s13 + $0x6e0] sm:$0xf]  ;;  %v9842_v8 = vor.u32 %v12258_v13, %v9841_v12  ;;  %v12191_v12 = vld [vmem:[%s13743_s13 + $0x650] sm:$0xf0] }
 0x23e   : >> { %v2611_v21 = vor.u32 %v2610_v1, %v2606_v43  ;;  %v14125_v43 = vpack.c.b16 %v2582_v36, %v2582_v36  ;;  %v9829_v36 = vld [vmem:[%s13743_s13 + $0x848] sm:$0xf]  ;;  %v10046_v13 = vld [vmem:[%s13743_s13 + $0x690] sm:$0xf] }
 0x23f   : >> { %3133 = vmatpush.bf16.msrb.mxu3 %v9734_v37  ;;  %v9854_v37 = vld [vmem:[%s13743_s13 + $0x510] sm:$0xf]  ;;  %3155 = vmatpush.bf16.msra.mxu2 %v9842_v8 }
 0x240   : >> { %3103 = vmatpush.bf16.msra.mxu1 %v9722_v20  ;;  %v9879_v20 = vor.u32 %v12158_v47, %v9878_v58  ;;  %v9855_v46 = vor.u32 %v12152_v38, %v9854_v37  ;;  %v9661_v58 = vld [vmem:[%s13743_s13 + $0x6f8] sm:$0xf]  ;;  %v12213_v47 = vld [vmem:[%s13743_s13 + $0x700] sm:$0xf0] }
 0x241   : >> { %v9662_v1 = vor.u32 %v12213_v47, %v9661_v58  ;;  %v12197_v38 = vld [vmem:[%s13743_s13 + $0x680] sm:$0xf0]  ;;  %v10022_v58 = vld [vmem:[%s13743_s13 + $0x660] sm:$0xf]  ;;  %v12194_v47 = vld [vmem:[%s13743_s13 + $0x668] sm:$0xf0] }
 0x242   : >> { %3486 = vmatpush.bf16.msra.mxu0 %v9879_v20  ;;  %v2641_v20 = vshll.u32 %v14125_v43, 16 }
 0x243   : >> { %9845 = vmatmul.msk.bf16.gmra.mxu2 %vm817_vm3, %v14104_v49 }
 0x244   : >> { %3104 = vmatpush.bf16.msra.mxu1 %v9710_v57  ;;  %v2616_v57 = vsel %vm453_vm4, %v2611_v21, %v2615_v14  ;;  %v2639_v21 = vor.u32 %v2637_v39, %v2615_v14  ;;  %v10034_v14 = vld [vmem:[%s13743_s13 + $0x678] sm:$0xf]  ;;  %v12203_v39 = vld [vmem:[%s13743_s13 + $0x6b0] sm:$0xf0] }
 0x246   : >> { %3052 = vmatmul.bf16.gmra.mxu3 %v14082_v23  ;;  %9847 = vmatmul.msk.bf16.gmra.mxu0 %vm817_vm3, %v14060_v0 }
 0x247   : >> { %3487 = vmatpush.bf16.msra.mxu0 %v9867_v17  ;;  %v12207_v17 = vld [vmem:[%s13743_s13 + $0x6d0] sm:$0xf0] }
 0x248   : >> { %3105 = vmatpush.bf16.msra.mxu1 %v9698_v26  ;;  %v12210_v26 = vld [vmem:[%s13743_s13 + $0x6e8] sm:$0xf0]  ;;  %v9638_v4 = vor.u32 %v12207_v17, %v9637_v60 }
 0x249   : >> { %v9650_v54 = vor.u32 %v12210_v26, %v9649_v3  ;;  %v2656_v3 = vshrl.u32 %v14125_v43, 16  ;;  %v10058_v26 = vld [vmem:[%s13743_s13 + $0x6a8] sm:$0xf] }
 0x24b   : >> { %2996 = vmatmul.bf16.vlgmr.msrb.gmra.mxu1 %v2616_v57  ;;  %3488 = vmatpush.bf16.msra.mxu0 %v9855_v46  ;;  %v12255_v46 = vld [vmem:[%s13743_s13 + $0x850] sm:$0xf0] }
 0x24c   : >> { %3106 = vmatpush.bf16.msra.mxu1 %v9686_v59  ;;  %v2643_v59 = vrot.slane %v2641_v20, 1  ;;  %v10059_v20 = vor.u32 %v12203_v39, %v10058_v26 }
 0x24e   : >> { %v2644_v37 = vsel %vm453_vm4, %v2639_v21, %v2643_v59  ;;  %v12200_v21 = vld [vmem:[%s13743_s13 + $0x698] sm:$0xf0]  ;;  %3533 = vmatpush.bf16.msra.mxu3 %v10059_v20  ;;  %v2658_v17 = vor.u32 %v2656_v3, %v2643_v59  ;;  %v12182_v3 = vld [vmem:[%s13743_s13 + $0x608] sm:$0xf0]  ;;  %v14163_v20 = vld [vmem:[#allocation2 + $0x30] sm:$0x11] }
 0x24f   : >> { %v10047_v8 = vor.u32 %v12200_v21, %v10046_v13  ;;  %v12196_v13 = vld [vmem:[%s13743_s13 + $0x67c] sm:$0xf]  ;;  %v10036_v21 = vld [vmem:[%s13743_s13 + $0x684] sm:$0xf0] }
 0x250   : >> { %3107 = vmatpush.bf16.msra.mxu1 %v9674_v52  ;;  %v10035_v52 = vor.u32 %v12197_v38, %v10034_v14  ;;  %v12188_v14 = vld [vmem:[%s13743_s13 + $0x638] sm:$0xf0] }
 0x252   : >> { %3534 = vmatpush.bf16.msra.mxu3 %v10047_v8  ;;  %v9946_v8 = vld [vmem:[%s13743_s13 + $0x5c0] sm:$0xf] }
 0x253   : >> { %3065 = vmatmul.bf16.vlgmr.msrb.gmra.mxu2 %v2616_v57 }
 0x254   : >> { %3108 = vmatpush.bf16.msra.mxu1 %v9662_v1  ;;  %v10023_v1 = vor.u32 %v12194_v47, %v10022_v58  ;;  %v12185_v58 = vld [vmem:[%s13743_s13 + $0x620] sm:$0xf0] }
 0x255   : >> { %v12169_v47 = vld [vmem:[%s13743_s13 + $0x5a4] sm:$0xf] }
 0x256   : >> { %9848 = vmatmul.msk.bf16.gmra.mxu0 %vm817_vm3, %v14104_v49  ;;  %3134 = vmatmul.bf16.vlgmr.msrb.gmra.mxu3 %v2616_v57  ;;  %v9830_v57 = vor.u32 %v12255_v46, %v9829_v36  ;;  %v12172_v36 = vld [vmem:[%s13743_s13 + $0x5bc] sm:$0xf]  ;;  %v9986_v46 = vld [vmem:[%s13743_s13 + $0x618] sm:$0xf] }
 0x257   : >> { %v9987_v59 = vor.u32 %v12185_v58, %v9986_v46  ;;  %v9904_v46 = vld [vmem:[%s13743_s13 + $0x57c] sm:$0xf0]  ;;  %v12193_v58 = vld [vmem:[%s13743_s13 + $0x664] sm:$0xf] }
 0x258   : >> { %3109 = vmatpush.bf16.msra.mxu1 %v9650_v54  ;;  %3156 = vmatpush.bf16.msra.mxu2 %v9830_v57  ;;  %v10010_v54 = vld [vmem:[%s13743_s13 + $0x648] sm:$0xf]  ;;  %v9928_v57 = vld [vmem:[%s13743_s13 + $0x5ac] sm:$0xf0] }
 0x259   : >> { %v10011_v60 = vor.u32 %v12191_v12, %v10010_v54  ;;  %v9931_v26 = vor.u32 %v12169_v47, %v9928_v57  ;;  %v12166_v54 = vld [vmem:[%s13743_s13 + $0x58c] sm:$0xf]  ;;  %v9916_v12 = vld [vmem:[%s13743_s13 + $0x594] sm:$0xf0]  ;;  %v10024_v47 = vld [vmem:[%s13743_s13 + $0x66c] sm:$0xf0] }
 0x25a   : >> { %v10027_v57 = vor.u32 %v12193_v58, %v10024_v47  ;;  %v12187_v58 = vld [vmem:[%s13743_s13 + $0x634] sm:$0xf]  ;;  %v10000_v47 = vld [vmem:[%s13743_s13 + $0x63c] sm:$0xf0] }
 0x25b   : >> { %3001 = vmatmul.bf16.gmra.mxu1 %v2644_v37 }
 0x25c   : >> { %3110 = vmatpush.bf16.msra.mxu1 %v9638_v4  ;;  %v9998_v4 = vld [vmem:[%s13743_s13 + $0x630] sm:$0xf] }
 0x25d   : >> { %v9999_v38 = vor.u32 %v12188_v14, %v9998_v4  ;;  %v10039_v4 = vor.u32 %v12196_v13, %v10036_v21  ;;  %v12190_v13 = vld [vmem:[%s13743_s13 + $0x64c] sm:$0xf]  ;;  %v10012_v21 = vld [vmem:[%s13743_s13 + $0x654] sm:$0xf0] }
 0x25f   : >> { %3573 = vmatpush.bf16.msrb.mxu0 %v10039_v4  ;;  %v10015_v4 = vor.u32 %v12190_v13, %v10012_v21  ;;  %v9988_v13 = vld [vmem:[%s13743_s13 + $0x624] sm:$0xf0]  ;;  %v12162_v21 = vld [vmem:[%s13743_s13 + $0x568] sm:$0xf0] }
 0x260   : >> { %3504 = vmatpush.bf16.msrb.mxu1 %v10035_v52 }
 0x263   : >> { %3070 = vmatmul.bf16.gmra.mxu2 %v2644_v37  ;;  %3574 = vmatpush.bf16.msrb.mxu0 %v10027_v57  ;;  %v12165_v57 = vld [vmem:[%s13743_s13 + $0x580] sm:$0xf0] }
 0x264   : >> { %3505 = vmatpush.bf16.msrb.mxu1 %v10023_v1  ;;  %v9974_v1 = vld [vmem:[%s13743_s13 + $0x600] sm:$0xf] }
 0x265   : >> { %v9975_v39 = vor.u32 %v12182_v3, %v9974_v1  ;;  %v9934_v1 = vld [vmem:[%s13743_s13 + $0x5a8] sm:$0xf]  ;;  %v12171_v3 = vld [vmem:[%s13743_s13 + $0x5b0] sm:$0xf0] }
 0x266   : >> { %3139 = vmatmul.bf16.gmra.mxu3 %v2644_v37  ;;  %3489 = vmatmul.bf16.vlgmr.msra.gmra.mxu0 %v13941_v62  ;;  %v9940_v37 = vld [vmem:[%s13743_s13 + $0x5c4] sm:$0xf0] }
 0x267   : >> { %v9943_v52 = vor.u32 %v12172_v36, %v9940_v37  ;;  %v12179_v36 = vld [vmem:[%s13743_s13 + $0x5f0] sm:$0xf0]  ;;  %3575 = vmatpush.bf16.msrb.mxu0 %v10015_v4  ;;  %v10060_v4 = vld [vmem:[%s13743_s13 + $0x6b4] sm:$0xf0] }
 0x268   : >> { %3506 = vmatpush.bf16.msrb.mxu1 %v10011_v60  ;;  %v9919_v60 = vor.u32 %v12166_v54, %v9916_v12  ;;  %v12163_v37 = vld [vmem:[%s13743_s13 + $0x574] sm:$0xf]  ;;  %v12160_v54 = vld [vmem:[%s13743_s13 + $0x55c] sm:$0xf]  ;;  %v9892_v12 = vld [vmem:[%s13743_s13 + $0x564] sm:$0xf0] }
 0x269   : >> { %3550 = vmatpush.bf16.msrb.mxu2 %v9943_v52 }
 0x26b   : >> { %3006 = vmatmul.bf16.gmra.mxu1 %v2658_v17 }
 0x26c   : >> { %3507 = vmatpush.bf16.msrb.mxu1 %v9999_v38  ;;  %v9962_v38 = vld [vmem:[%s13743_s13 + $0x5e8] sm:$0xf] }
 0x26d   : >> { %3551 = vmatpush.bf16.msrb.mxu2 %v9931_v26  ;;  %v9963_v52 = vor.u32 %v12179_v36, %v9962_v38  ;;  %v9935_v26 = vor.u32 %v12171_v3, %v9934_v1  ;;  %v9950_v38 = vld [vmem:[%s13743_s13 + $0x5d0] sm:$0xf]  ;;  %v12176_v36 = vld [vmem:[%s13743_s13 + $0x5d8] sm:$0xf0]  ;;  %v12154_v3 = vld [vmem:[%s13743_s13 + $0x52c] sm:$0xf] }
 0x270   : >> { %3508 = vmatpush.bf16.msrb.mxu1 %v9987_v59  ;;  %v3174_v59 = vunpack.c.l.b16 %v14163_v20 }
 0x271   : >> { %3552 = vmatpush.bf16.msrb.mxu2 %v9919_v60  ;;  %v9895_v60 = vor.u32 %v12160_v54, %v9892_v12  ;;  %v12184_v54 = vld [vmem:[%s13743_s13 + $0x61c] sm:$0xf] }
 0x273   : >> { %3075 = vmatmul.bf16.gmra.mxu2 %v2658_v17 }
 0x274   : >> { %3509 = vmatpush.bf16.msrb.mxu1 %v9975_v39  ;;  %v14181_v39 = vpack.c.b16 %v3174_v59, %v3174_v59  ;;  %v10003_v59 = vor.u32 %v12187_v58, %v10000_v47 }
 0x276   : >> { %3144 = vmatmul.bf16.gmra.mxu3 %v2658_v17  ;;  %3494 = vmatmul.bf16.gmra.mxu0 %v13981_v27  ;;  %v12174_v17 = vld [vmem:[%s13743_s13 + $0x5c8] sm:$0xf0] }
 0x277   : >> { %v9947_v14 = vor.u32 %v12174_v17, %v9946_v8  ;;  %v9922_v8 = vld [vmem:[%s13743_s13 + $0x590] sm:$0xf]  ;;  %v12168_v17 = vld [vmem:[%s13743_s13 + $0x598] sm:$0xf0]  ;;  %3576 = vmatpush.bf16.msrb.mxu0 %v10003_v59 }
 0x278   : >> { %3510 = vmatpush.bf16.msrb.mxu1 %v9963_v52  ;;  %v9951_v52 = vor.u32 %v12176_v36, %v9950_v38  ;;  %v12151_v38 = vld [vmem:[%s13743_s13 + $0x514] sm:$0xf] }
 0x279   : >> { %3619 = vmatpush.bf16.msrb.mxu3 %v9947_v14  ;;  %v9923_v14 = vor.u32 %v12168_v17, %v9922_v8  ;;  %v9991_v8 = vor.u32 %v12184_v54, %v9988_v13  ;;  %v12202_v17 = vld [vmem:[%s13743_s13 + $0x6ac] sm:$0xf]  ;;  %v9952_v13 = vld [vmem:[%s13743_s13 + $0x5dc] sm:$0xf0] }
 0x27a   : >> { %v10063_v36 = vor.u32 %v12202_v17, %v10060_v4  ;;  %v2404_v4 = vld [vmem:[#allocation2 + $0x38] sm:$0x1] }
 0x27b   : >> { %3111 = vmatmul.bf16.vlgmr.msra.gmra.mxu1 %v14012_v16  ;;  %v9907_v16 = vor.u32 %v12163_v37, %v9904_v46  ;;  %v12157_v37 = vld [vmem:[%s13743_s13 + $0x544] sm:$0xf]  ;;  %v9880_v46 = vld [vmem:[%s13743_s13 + $0x54c] sm:$0xf0]  ;;  %3577 = vmatpush.bf16.msrb.mxu0 %v9991_v8 }
 0x27c   : >> { %3511 = vmatpush.bf16.msrb.mxu1 %v9951_v52  ;;  %v12181_v52 = vld [vmem:[%s13743_s13 + $0x604] sm:$0xf] }
 0x27d   : >> { %3553 = vmatpush.bf16.msrb.mxu2 %v9907_v16  ;;  %3620 = vmatpush.bf16.msrb.mxu3 %v9935_v26  ;;  %v9910_v16 = vld [vmem:[%s13743_s13 + $0x578] sm:$0xf]  ;;  %v12153_v8 = vld [vmem:[%s13743_s13 + $0x520] sm:$0xf0] }
 0x27e   : >> { %v9911_v1 = vor.u32 %v12165_v57, %v9910_v16  ;;  %v9868_v26 = vld [vmem:[%s13743_s13 + $0x534] sm:$0xf0]  ;;  %v12178_v16 = vld [vmem:[%s13743_s13 + $0x5ec] sm:$0xf] }
 0x27f   : >> { %v9871_v12 = vor.u32 %v12154_v3, %v9868_v26  ;;  %v9964_v57 = vld [vmem:[%s13743_s13 + $0x5f4] sm:$0xf0]  ;;  %v9874_v3 = vld [vmem:[%s13743_s13 + $0x530] sm:$0xf]  ;;  %v12156_v26 = vld [vmem:[%s13743_s13 + $0x538] sm:$0xf0] }
 0x280   : >> { %3602 = vmatpush.bf16.msra.mxu1 %v10063_v36  ;;  %v9875_v54 = vor.u32 %v12156_v26, %v9874_v3  ;;  %v12198_v36 = vld [vmem:[%s13743_s13 + $0x688] sm:$0xf0] }
 0x281   : >> { %3554 = vmatpush.bf16.msrb.mxu2 %v9895_v60  ;;  %3621 = vmatpush.bf16.msrb.mxu3 %v9923_v14  ;;  %v9898_v60 = vld [vmem:[%s13743_s13 + $0x560] sm:$0xf] }
 0x282   : >> { %v9899_v14 = vor.u32 %v12162_v21, %v9898_v60  ;;  %v9862_v21 = vld [vmem:[%s13743_s13 + $0x518] sm:$0xf] }
 0x283   : >> { %9849 = vmatmul.msk.bf16.vlgmr.msra.gmra.mxu2 %vm817_vm3, %v13979_v44  ;;  %v9883_v44 = vor.u32 %v12157_v37, %v9880_v46  ;;  %v9856_v37 = vld [vmem:[%s13743_s13 + $0x51c] sm:$0xf0]  ;;  %v9976_v46 = vld [vmem:[%s13743_s13 + $0x60c] sm:$0xf0]  ;;  %v9863_v17 = vor.u32 %v12153_v8, %v9862_v21 }
 0x284   : >> { %v9859_v58 = vor.u32 %v12151_v38, %v9856_v37  ;;  %v9979_v47 = vor.u32 %v12181_v52, %v9976_v46  ;;  %v10042_v38 = vld [vmem:[%s13743_s13 + $0x680] sm:$0xf] }
 0x285   : >> { %3555 = vmatpush.bf16.msrb.mxu2 %v9883_v44  ;;  %3622 = vmatpush.bf16.msrb.mxu3 %v9911_v1  ;;  %v12159_v44 = vld [vmem:[%s13743_s13 + $0x550] sm:$0xf0]  ;;  %v9967_v1 = vor.u32 %v12178_v16, %v9964_v57  ;;  %v10043_v46 = vor.u32 %v12198_v36, %v10042_v38  ;;  %v9982_v36 = vld [vmem:[%s13743_s13 + $0x608] sm:$0xf] }
 0x286   : >> { %3499 = vmatmul.bf16.gmra.mxu0 %v14181_v39  ;;  %10068 = vmatmul.msk.bf16.vlgmr.msra.gmra.mxu3 %vm817_vm3, %v13931_v35 }
 0x287   : >> { %3578 = vmatpush.bf16.msrb.mxu0 %v9979_v47 }
 0x289   : >> { %3556 = vmatpush.bf16.msrb.mxu2 %v9871_v12  ;;  %3623 = vmatpush.bf16.msrb.mxu3 %v9899_v14  ;;  %v12175_v12 = vld [vmem:[%s13743_s13 + $0x5d4] sm:$0xf] }
 0x28a   : >> { %v9955_v60 = vor.u32 %v12175_v12, %v9952_v13  ;;  %v10006_v12 = vld [vmem:[%s13743_s13 + $0x638] sm:$0xf]  ;;  %v12189_v13 = vld [vmem:[%s13743_s13 + $0x640] sm:$0xf0] }
 0x28b   : >> { %3116 = vmatmul.bf16.gmra.mxu1 %v14032_v19  ;;  %v9886_v19 = vld [vmem:[%s13743_s13 + $0x548] sm:$0xf]  ;;  %3579 = vmatpush.bf16.msrb.mxu0 %v9967_v1  ;;  %v12192_v1 = vld [vmem:[%s13743_s13 + $0x658] sm:$0xf0] }
 0x28c   : >> { %v9887_v59 = vor.u32 %v12159_v44, %v9886_v19  ;;  %v10030_v19 = vld [vmem:[%s13743_s13 + $0x668] sm:$0xf]  ;;  %v12195_v44 = vld [vmem:[%s13743_s13 + $0x670] sm:$0xf0] }
 0x28d   : >> { %3557 = vmatpush.bf16.msrb.mxu2 %v9859_v58  ;;  %v10048_v58 = vld [vmem:[%s13743_s13 + $0x69c] sm:$0xf0] }
 0x28e   : >> { %3624 = vmatpush.bf16.msrb.mxu3 %v9887_v59  ;;  %v10031_v59 = vor.u32 %v12195_v44, %v10030_v19 }
 0x28f   : >> { %3580 = vmatpush.bf16.msrb.mxu0 %v9955_v60  ;;  %v10007_v60 = vor.u32 %v12189_v13, %v10006_v12  ;;  %v12180_v12 = vld [vmem:[%s13743_s13 + $0x5f8] sm:$0xf0] }
 0x291   : >> { %3642 = vmatpush.bf16.msra.mxu2 %v10043_v46  ;;  %v12183_v46 = vld [vmem:[%s13743_s13 + $0x610] sm:$0xf0] }
 0x292   : >> { %3625 = vmatpush.bf16.msrb.mxu3 %v9875_v54 }
 0x293   : >> { %9850 = vmatmul.msk.bf16.gmra.mxu2 %vm817_vm3, %v14060_v0  ;;  %v3176_v0 = vunpack.c.l.b16 %v2404_v4  ;;  %v12186_v4 = vld [vmem:[%s13743_s13 + $0x628] sm:$0xf0] }
 0x295   : >> { %v14231_v14 = vpack.c.b16 %v3176_v0, %v3176_v0  ;;  %3643 = vmatpush.bf16.msra.mxu2 %v10031_v59  ;;  %v10066_v59 = vld [vmem:[%s13743_s13 + $0x6b0] sm:$0xf] }
 0x296   : >> { %10069 = vmatmul.msk.bf16.gmra.mxu3 %vm817_vm3, %v13937_v34  ;;  %3581 = vmatmul.bf16.vlgmr.msrb.gmra.mxu0 %v14086_v11 }
 0x297   : >> { %3626 = vmatpush.bf16.msrb.mxu3 %v9863_v17  ;;  %v9994_v17 = vld [vmem:[%s13743_s13 + $0x620] sm:$0xf] }
 0x298   : >> { %v9995_v38 = vor.u32 %v12186_v4, %v9994_v17  ;;  %v12281_v17 = vld [vmem:[%s13743_s13 + $0x920] sm:$0xf0] }
 0x29b   : >> { %3121 = vmatmul.bf16.gmra.mxu1 %v14082_v23  ;;  %v12199_v23 = vld [vmem:[%s13743_s13 + $0x694] sm:$0xf] }
 0x29c   : >> { %v10051_v47 = vor.u32 %v12199_v23, %v10048_v58  ;;  %v9983_v58 = vor.u32 %v12183_v46, %v9982_v36  ;;  %v12177_v36 = vld [vmem:[%s13743_s13 + $0x5e0] sm:$0xf0] }
 0x29e   : >> { %3603 = vmatpush.bf16.msra.mxu1 %v10051_v47  ;;  %v3175_v47 = vunpack.c.h.b16 %v14163_v20 }
 0x2a0   : >> { %v14287_v13 = vpack.c.b16 %v3175_v47, %v3175_v47 }
 0x2a3   : >> { %v14235_v37 = vpop.f32.mrf.mxu2  ;;  %v14237_v52 = vpop.f32.mrf.mxu0  ;;  %9851 = vmatmul.msk.bf16.gmra.mxu2 %vm817_vm3, %v14104_v49  ;;  %v10018_v49 = vld [vmem:[%s13743_s13 + $0x650] sm:$0xf] }
 0x2a4   : >> { %v10019_v26 = vor.u32 %v12192_v1, %v10018_v49  ;;  %v12204_v49 = vld [vmem:[%s13743_s13 + $0x6b8] sm:$0xf0]  ;;  %v9970_v1 = vld [vmem:[%s13743_s13 + $0x5f0] sm:$0xf] }
 0x2a5   : >> { %v9971_v20 = vor.u32 %v12180_v12, %v9970_v1  ;;  %v12278_v1 = vld [vmem:[%s13743_s13 + $0x908] sm:$0xf0] }
 0x2a6   : >> { %10070 = vmatmul.msk.bf16.gmra.mxu3 %vm817_vm3, %v14231_v14  ;;  %3644 = vmatpush.bf16.msra.mxu2 %v10019_v26  ;;  %v10067_v26 = vor.u32 %v12204_v49, %v10066_v59  ;;  %v10226_v49 = vld [vmem:[%s13743_s13 + $0x900] sm:$0xf] }
 0x2a7   : >> { %3586 = vmatmul.bf16.gmra.mxu0 %v14096_v45  ;;  %v10227_v12 = vor.u32 %v12278_v1, %v10226_v49  ;;  %v12275_v49 = vld [vmem:[%s13743_s13 + $0x8f0] sm:$0xf0] }
 0x2a8   : >> { %v14247_v16 = vpop.f32.mrf.mxu1  ;;  %3671 = vmatpush.bf16.msra.mxu0 %v10067_v26 }
 0x2a9   : >> { %v14249_v57 = vpop.f32.mrf.mxu3 }
 0x2aa   : >> { %3645 = vmatpush.bf16.msra.mxu2 %v10007_v60  ;;  %v10238_v60 = vld [vmem:[%s13743_s13 + $0x918] sm:$0xf] }
 0x2ab   : >> { %v14253_v3 = vpop.f32.mrf.mxu0  ;;  %3512 = vmatmul.bf16.vlgmr.msrb.gmra.mxu1 %v14086_v11  ;;  %v14256_v54 = vpop.f32.mrf.mxu2  ;;  %v10239_v4 = vor.u32 %v12281_v17, %v10238_v60  ;;  %v12305_v60 = vld [vmem:[%s13743_s13 + $0x9e0] sm:$0xf0] }
 0x2ad   : >> { %4092 = vmatpush.bf16.msrb.mxu1 %v10239_v4  ;;  %v10054_v4 = vld [vmem:[%s13743_s13 + $0x698] sm:$0xf] }
 0x2ae   : >> { %3646 = vmatpush.bf16.msra.mxu2 %v9995_v38  ;;  %v9958_v38 = vld [vmem:[%s13743_s13 + $0x5d8] sm:$0xf] }
 0x2b0   : >> { %v14261_v21 = vpop.f32.mrf.mxu1 }
 0x2b1   : >> { %v14263_v8 = vpop.f32.mrf.mxu3  ;;  %4093 = vmatpush.bf16.msrb.mxu1 %v10227_v12 }
 0x2b2   : >> { %3647 = vmatpush.bf16.msra.mxu2 %v9983_v58  ;;  %v9959_v58 = vor.u32 %v12177_v36, %v9958_v38  ;;  %v12201_v38 = vld [vmem:[%s13743_s13 + $0x6a0] sm:$0xf0] }
 0x2b3   : >> { %v14267_v0 = vpop.f32.mrf.mxu0  ;;  %3558 = vmatmul.bf16.vlgmr.msrb.gmra.mxu2 %v13941_v62 }
 0x2b6   : >> { %3627 = vmatmul.bf16.vlgmr.msrb.gmra.mxu3 %v13941_v62  ;;  %v14273_v23 = vpop.f32.mrf.mxu2  ;;  %3648 = vmatpush.bf16.msra.mxu2 %v9971_v20  ;;  %v10334_v20 = vld [vmem:[%s13743_s13 + $0x9d8] sm:$0xf] }
 0x2b7   : >> { %3591 = vmatmul.bf16.gmra.mxu0 %v14287_v13  ;;  %v10335_v17 = vor.u32 %v12305_v60, %v10334_v20  ;;  %v10323_v60 = vor.u32 %v12302_v22, %v10322_v30  ;;  %v10202_v30 = vld [vmem:[%s13743_s13 + $0x8d0] sm:$0xf]  ;;  %v12272_v22 = vld [vmem:[%s13743_s13 + $0x8d8] sm:$0xf0] }
 0x2b8   : >> { %v14276_v19 = vpop.f32.mrf.mxu1 }
 0x2b9   : >> { %v14278_v44 = vpop.f32.mrf.mxu3  ;;  %4115 = vmatpush.bf16.msra.mxu3 %v10335_v17 }
 0x2ba   : >> { %3649 = vmatpush.bf16.msra.mxu2 %v9959_v58  ;;  %v10055_v58 = vor.u32 %v12201_v38, %v10054_v4  ;;  %v10310_v4 = vld [vmem:[%s13743_s13 + $0x9a8] sm:$0xf]  ;;  %v12299_v38 = vld [vmem:[%s13743_s13 + $0x9b0] sm:$0xf0] }
 0x2bb   : >> { %v14283_v62 = vpop.f32.mrf.mxu0  ;;  %3517 = vmatmul.bf16.gmra.mxu1 %v14096_v45 }
 0x2bc   : >> { %3672 = vmatpush.bf16.msra.mxu0 %v10055_v58  ;;  %v10311_v58 = vor.u32 %v12299_v38, %v10310_v4  ;;  %v10190_v38 = vld [vmem:[%s13743_s13 + $0x8b8] sm:$0xf] }
 0x2bd   : >> { %4116 = vmatpush.bf16.msra.mxu3 %v10323_v60 }
 0x2be   : >> { %v14294_v46 = vpop.f32.mrf.mxu2 }
 0x2c0   : >> { %v2986_v47 = vpop.f32.mrf.mxu1 }
 0x2c1   : >> { %v14296_v59 = vpop.f32.mrf.mxu3  ;;  %v10214_v47 = vld [vmem:[%s13743_s13 + $0x8e8] sm:$0xf]  ;;  %4117 = vmatpush.bf16.msra.mxu3 %v10311_v58  ;;  %v12269_v58 = vld [vmem:[%s13743_s13 + $0x8c0] sm:$0xf0] }
 0x2c2   : >> { %v10215_v12 = vor.u32 %v12275_v49, %v10214_v47 }
 0x2c3   : >> { %v14300_v26 = vpop.f32.mrf.mxu0  ;;  %3563 = vmatmul.bf16.gmra.mxu2 %v13981_v27 }
 0x2c4   : >> { %4094 = vmatpush.bf16.msrb.mxu1 %v10215_v12  ;;  %v12296_v12 = vld [vmem:[%s13743_s13 + $0x998] sm:$0xf0] }
 0x2c6   : >> { %3632 = vmatmul.bf16.gmra.mxu3 %v13981_v27  ;;  %v14308_v36 = vpop.f32.mrf.mxu2 }
 0x2c7   : >> { %10074 = vmatmul.msk.bf16.vlgmr.msra.gmra.mxu0 %vm817_vm3, %v13931_v35 }
 0x2c8   : >> { %v2997_v1 = vpop.f32.mrf.mxu1 }
 0x2c9   : >> { %v14312_v42 = vpop.f32.mrf.mxu3  ;;  %v2998_v20 = vadd.f32 %v2997_v1, %v14237_v52  ;;  %v10203_v1 = vor.u32 %v12272_v22, %v10202_v30  ;;  %v10286_v30 = vld [vmem:[%s13743_s13 + $0x978] sm:$0xf]  ;;  %v12293_v22 = vld [vmem:[%s13743_s13 + $0x980] sm:$0xf0] }
 0x2cb   : >> { %v14317_v18 = vpop.f32.mrf.mxu0  ;;  %3522 = vmatmul.bf16.gmra.mxu1 %v14287_v13  ;;  %v14321_v17 = vadd.f32 %v14235_v37, %v2998_v20  ;;  %v10298_v37 = vld [vmem:[%s13743_s13 + $0x990] sm:$0xf] }
 0x2cc   : >> { %v10299_v60 = vor.u32 %v12296_v12, %v10298_v37  ;;  %4095 = vmatpush.bf16.msrb.mxu1 %v10203_v1  ;;  %v10274_v37 = vld [vmem:[%s13743_s13 + $0x960] sm:$0xf]  ;;  %v12290_v12 = vld [vmem:[%s13743_s13 + $0x968] sm:$0xf0] }
 0x2ce   : >> { %v3032_v47 = vpop.f32.mrf.mxu2  ;;  %4118 = vmatpush.bf16.msra.mxu3 %v10299_v60  ;;  %v10178_v60 = vld [vmem:[%s13743_s13 + $0x8a0] sm:$0xf] }
 0x2cf   : >> { %v10191_v47 = vor.u32 %v12269_v58, %v10190_v38  ;;  %v12266_v38 = vld [vmem:[%s13743_s13 + $0x8a8] sm:$0xf0] }
 0x2d0   : >> { %v2999_v52 = vpop.f32.mrf.mxu1 }
 0x2d1   : >> { %v3055_v49 = vpop.f32.mrf.mxu3  ;;  %v3000_v20 = vadd.f32 %v2999_v52, %v14253_v3  ;;  %v10287_v3 = vor.u32 %v12293_v22, %v10286_v30  ;;  %4096 = vmatpush.bf16.msrb.mxu1 %v10191_v47  ;;  %v12287_v22 = vld [vmem:[%s13743_s13 + $0x950] sm:$0xf0] }
 0x2d3   : >> { %v14332_v9 = vpop.f32.mrf.mxu0  ;;  %3568 = vmatmul.bf16.gmra.mxu2 %v14181_v39  ;;  %v14336_v4 = vadd.f32 %v14256_v54, %v3000_v20  ;;  %4119 = vmatpush.bf16.msra.mxu3 %v10287_v3 }
 0x2d6   : >> { %3637 = vmatmul.bf16.gmra.mxu3 %v14181_v39  ;;  %v3066_v52 = vpop.f32.mrf.mxu2  ;;  %v10275_v39 = vor.u32 %v12290_v12, %v10274_v37 }
 0x2d7   : >> { %v3067_v49 = vadd.f32 %v3066_v52, %v14249_v57  ;;  %v10179_v57 = vor.u32 %v12266_v38, %v10178_v60  ;;  %10075 = vmatmul.msk.bf16.gmra.mxu0 %vm817_vm3, %v13937_v34  ;;  %v10166_v52 = vld [vmem:[%s13743_s13 + $0x888] sm:$0xf]  ;;  %v10250_v60 = vld [vmem:[%s13743_s13 + $0x930] sm:$0xf]  ;;  %v12284_v38 = vld [vmem:[%s13743_s13 + $0x938] sm:$0xf0] }
 0x2d8   : >> { %v3002_v54 = vpop.f32.mrf.mxu1  ;;  %4120 = vmatpush.bf16.msra.mxu3 %v10275_v39 }
 0x2d9   : >> { %v14344_v1 = vpop.f32.mrf.mxu3  ;;  %v3003_v20 = vadd.f32 %v3002_v54, %v14247_v16  ;;  %v14352_v58 = vadd.f32 %v14267_v0, %v3067_v49  ;;  %4097 = vmatpush.bf16.msrb.mxu1 %v10179_v57  ;;  %v10262_v16 = vld [vmem:[%s13743_s13 + $0x948] sm:$0xf]  ;;  %v12263_v49 = vld [vmem:[%s13743_s13 + $0x890] sm:$0xf0]  ;;  %v14365_v54 = vld [vmem:[#allocation2] sm:$0xee]  ;;  %v16403_v57 = vunpack.c.h.b16 %v13892_v31 }
 0x2da   : >> { %v10263_v3 = vor.u32 %v12287_v22, %v10262_v16  ;;  %v3769_v37 = vunpack.c.h.b16 %v14365_v54 }
 0x2db   : >> { %v3101_v47 = vpop.f32.mrf.mxu0  ;;  %10071 = vmatmul.msk.bf16.vlgmr.msra.gmra.mxu1 %vm817_vm3, %v13931_v35  ;;  %v14357_v30 = vadd.f32 %v14273_v23, %v3003_v20  ;;  %v10167_v23 = vor.u32 %v12263_v49, %v10166_v52  ;;  %v12311_v52 = vld [vmem:[%s13743_s13 + $0xa10] sm:$0xf0]  ;;  %v3778_v49 = vrot.slane %v14096_v45, 1 }
 0x2dc   : >> { %4121 = vmatpush.bf16.msra.mxu3 %v10263_v3  ;;  %v10251_v47 = vor.u32 %v12284_v38, %v10250_v60 }
 0x2dd   : >> { %4098 = vmatpush.bf16.msrb.mxu1 %v10167_v23 }
 0x2de   : >> { %v3068_v0 = vpop.f32.mrf.mxu2 }
 0x2df   : >> { %v14368_v35 = vadd.f32 %v3068_v0, %v14263_v8  ;;  %v3772_v8 = vpack.c.b16 %v16403_v57, %v3769_v37  ;;  %v10358_v0 = vld [vmem:[%s13743_s13 + $0xa08] sm:$0xf]  ;;  %v12280_v57 = vld [vmem:[%s13743_s13 + $0x91c] sm:$0xf] }
 0x2e0   : >> { %v3004_v12 = vpop.f32.mrf.mxu1  ;;  %4122 = vmatpush.bf16.msra.mxu3 %v10251_v47  ;;  %v10359_v23 = vor.u32 %v12311_v52, %v10358_v0 }
 0x2e1   : >> { %v14371_v20 = vpop.f32.mrf.mxu3  ;;  %v3005_v39 = vadd.f32 %v3004_v12, %v14261_v21  ;;  %v3777_v21 = vrot.slane %v3772_v8, 1  ;;  %v10240_v8 = vld [vmem:[%s13743_s13 + $0x924] sm:$0xf0] }
 0x2e2   : >> { %4144 = vmatpush.bf16.msrb.mxu2 %v10359_v23  ;;  %v10243_v52 = vor.u32 %v12280_v57, %v10240_v8  ;;  %v10336_v23 = vld [vmem:[%s13743_s13 + $0x9e4] sm:$0xf0]  ;;  %v12301_v8 = vld [vmem:[%s13743_s13 + $0x9c4] sm:$0xf] }
 0x2e3   : >> { %v3490_v16 = vpop.f32.mrf.mxu0  ;;  %3650 = vmatmul.bf16.vlgmr.msra.gmra.mxu2 %v14086_v11  ;;  %v14383_v3 = vadd.f32 %v14294_v46, %v3005_v39  ;;  %v14389_v37 = vsel %vm1633_vm5, %v3777_v21, %v3778_v49  ;;  %v10154_v11 = vld [vmem:[%s13743_s13 + $0x870] sm:$0xf]  ;;  %v12304_v21 = vld [vmem:[%s13743_s13 + $0x9dc] sm:$0xf] }
 0x2e4   : >> { %v14380_v22 = vadd.f32 %v3490_v16, %v14321_v17  ;;  %v12260_v17 = vld [vmem:[%s13743_s13 + $0x878] sm:$0xf0]  ;;  %4161 = vmatpush.bf16.msrb.mxu0 %v10243_v52  ;;  %v10324_v52 = vld [vmem:[%s13743_s13 + $0x9cc] sm:$0xf0] }
 0x2e5   : >> { %v10155_v60 = vor.u32 %v12260_v17, %v10154_v11 }
 0x2e6   : >> { %v3071_v12 = vpop.f32.mrf.mxu2  ;;  %4123 = vmatmul.bf16.vlgmr.msra.gmra.mxu3 %v14389_v37 }
 0x2e7   : >> { %v3072_v46 = vadd.f32 %v3071_v12, %v14278_v44  ;;  %4099 = vmatpush.bf16.msrb.mxu1 %v10155_v60  ;;  %10076 = vmatmul.msk.bf16.gmra.mxu0 %vm817_vm3, %v14231_v14  ;;  %v12308_v12 = vld [vmem:[%s13743_s13 + $0x9f8] sm:$0xf0]  ;;  %v12277_v60 = vld [vmem:[%s13743_s13 + $0x904] sm:$0xf] }
 0x2e8   : >> { %v3007_v38 = vpop.f32.mrf.mxu1 }
 0x2e9   : >> { %v14395_v39 = vpop.f32.mrf.mxu3  ;;  %v3008_v47 = vadd.f32 %v3007_v38, %v14276_v19  ;;  %v14401_v16 = vadd.f32 %v14300_v26, %v3072_v46  ;;  %v10339_v19 = vor.u32 %v12304_v21, %v10336_v23  ;;  %v10346_v26 = vld [vmem:[%s13743_s13 + $0x9f0] sm:$0xf]  ;;  %v10327_v23 = vor.u32 %v12301_v8, %v10324_v52 }
 0x2ea   : >> { %v10347_v17 = vor.u32 %v12308_v12, %v10346_v26 }
 0x2eb   : >> { %v14403_v0 = vpop.f32.mrf.mxu0  ;;  %10072 = vmatmul.msk.bf16.gmra.mxu1 %vm817_vm3, %v13937_v34  ;;  %v14408_v44 = vadd.f32 %v14308_v36, %v3008_v47  ;;  %v10228_v36 = vld [vmem:[%s13743_s13 + $0x90c] sm:$0xf0] }
 0x2ec   : >> { %4184 = vmatpush.bf16.msra.mxu1 %v10339_v19  ;;  %4145 = vmatpush.bf16.msrb.mxu2 %v10347_v17  ;;  %v10231_v57 = vor.u32 %v12277_v60, %v10228_v36  ;;  %v14430_v19 = vrot.slane %v14125_v43, 1  ;;  %v12274_v17 = vld [vmem:[%s13743_s13 + $0x8ec] sm:$0xf] }
 0x2ed   : >> { %v12298_v60 = vld [vmem:[%s13743_s13 + $0x9ac] sm:$0xf] }
 0x2ee   : >> { %v3073_v11 = vpop.f32.mrf.mxu2  ;;  %4162 = vmatpush.bf16.msrb.mxu0 %v10231_v57  ;;  %v14434_v26 = vsel %vm1633_vm5, %v3778_v49, %v14430_v19 }
 0x2ef   : >> { %v14417_v46 = vadd.f32 %v3073_v11, %v14296_v59 }
 0x2f0   : >> { %v3009_v38 = vpop.f32.mrf.mxu1  ;;  %4185 = vmatpush.bf16.msra.mxu1 %v10327_v23  ;;  %v3768_v23 = vunpack.c.l.b16 %v14365_v54 }
 0x2f1   : >> { %v14421_v47 = vpop.f32.mrf.mxu3  ;;  %v10312_v38 = vld [vmem:[%s13743_s13 + $0x9b4] sm:$0xf0] }
 0x2f2   : >> { %v10315_v57 = vor.u32 %v12298_v60, %v10312_v38  ;;  %v16404_v60 = vunpack.c.l.b16 %v13892_v31  ;;  %v12268_v38 = vld [vmem:[%s13743_s13 + $0x8bc] sm:$0xf]  ;;  %v10288_v31 = vld [vmem:[%s13743_s13 + $0x984] sm:$0xf0] }
 0x2f3   : >> { %v3495_v21 = vpop.f32.mrf.mxu0  ;;  %3655 = vmatmul.bf16.gmra.mxu2 %v14096_v45  ;;  %v10216_v45 = vld [vmem:[%s13743_s13 + $0x8f4] sm:$0xf0] }
 0x2f4   : >> { %v14427_v59 = vadd.f32 %v3495_v21, %v14357_v30  ;;  %v10219_v43 = vor.u32 %v12274_v17, %v10216_v45  ;;  %v10204_v21 = vld [vmem:[%s13743_s13 + $0x8dc] sm:$0xf0]  ;;  %4186 = vmatpush.bf16.msra.mxu1 %v10315_v57  ;;  %v3689_v57 = vld [vmem:[#allocation2 + $0x8] sm:$0xe] }
 0x2f6   : >> { %v3076_v12 = vpop.f32.mrf.mxu2  ;;  %4128 = vmatmul.bf16.gmra.mxu3 %v14434_v26  ;;  %4163 = vmatpush.bf16.msrb.mxu0 %v10219_v43 }
 0x2f7   : >> { %v3077_v11 = vadd.f32 %v3076_v12, %v14312_v42  ;;  %v12271_v42 = vld [vmem:[%s13743_s13 + $0x8d4] sm:$0xf] }
 0x2f8   : >> { %v3112_v30 = vpop.f32.mrf.mxu1  ;;  %v10207_v12 = vor.u32 %v12271_v42, %v10204_v21 }
 0x2f9   : >> { %v14441_v36 = vpop.f32.mrf.mxu3  ;;  %v3136_v49 = vadd.f32 %v14344_v1, %v3112_v30  ;;  %v14446_v8 = vadd.f32 %v14332_v9, %v3077_v11  ;;  %v12295_v1 = vld [vmem:[%s13743_s13 + $0x994] sm:$0xf]  ;;  %v10300_v9 = vld [vmem:[%s13743_s13 + $0x99c] sm:$0xf0]  ;;  %v3771_v30 = vpack.c.b16 %v16404_v60, %v3768_v23 }
 0x2fa   : >> { %4164 = vmatpush.bf16.msrb.mxu0 %v10207_v12  ;;  %v10303_v43 = vor.u32 %v12295_v1, %v10300_v9  ;;  %v3775_v1 = vrot.slane %v13981_v27, 1  ;;  %v3770_v9 = vunpack.c.l.b16 %v3689_v57  ;;  %v12279_v27 = vld [vmem:[%s13743_s13 + $0x910] sm:$0xf0] }
 0x2fb   : >> { %v14448_v52 = vpop.f32.mrf.mxu0  ;;  %10073 = vmatmul.msk.bf16.gmra.mxu1 %vm817_vm3, %v14231_v14  ;;  %v10192_v14 = vld [vmem:[%s13743_s13 + $0x8c4] sm:$0xf0]  ;;  %v3774_v23 = vrot.slane %v3771_v30, 1 }
 0x2fc   : >> { %v10195_v42 = vor.u32 %v12268_v38, %v10192_v14  ;;  %4187 = vmatpush.bf16.msra.mxu1 %v10303_v43  ;;  %v16405_v14 = vunpack.c.l.b16 %v13896_v6 }
 0x2fd   : >> { %v14477_v30 = vsel %vm1633_vm5, %v3774_v23, %v3775_v1  ;;  %v10276_v23 = vld [vmem:[%s13743_s13 + $0x96c] sm:$0xf0] }
 0x2fe   : >> { %v3078_v17 = vpop.f32.mrf.mxu2  ;;  %4165 = vmatpush.bf16.msrb.mxu0 %v10195_v42  ;;  %v3773_v57 = vpack.c.b16 %v16405_v14, %v3770_v9  ;;  %v12262_v42 = vld [vmem:[%s13743_s13 + $0x88c] sm:$0xf]  ;;  %v12259_v9 = vld [vmem:[%s13743_s13 + $0x874] sm:$0xf] }
 0x2ff   : >> { %v12292_v17 = vld [vmem:[%s13743_s13 + $0x97c] sm:$0xf] }
 0x300   : >> { %v3114_v11 = vpop.f32.mrf.mxu1 }
 0x301   : >> { %v3147_v45 = vpop.f32.mrf.mxu3  ;;  %v3138_v54 = vadd.f32 %v14371_v20, %v3114_v11  ;;  %v12265_v20 = vld [vmem:[%s13743_s13 + $0x8a4] sm:$0xf]  ;;  %v10180_v11 = vld [vmem:[%s13743_s13 + $0x8ac] sm:$0xf0] }
 0x302   : >> { %v10291_v45 = vor.u32 %v12292_v17, %v10288_v31  ;;  %v10183_v60 = vor.u32 %v12265_v20, %v10180_v11  ;;  %v3780_v20 = vrot.slane %v3773_v57, 1  ;;  %v3781_v11 = vrot.slane %v13937_v34, 1  ;;  %v10264_v57 = vld [vmem:[%s13743_s13 + $0x954] sm:$0xf0] }
 0x303   : >> { %v3500_v21 = vpop.f32.mrf.mxu0  ;;  %3660 = vmatmul.bf16.gmra.mxu2 %v14287_v13 }
 0x304   : >> { %v14464_v12 = vadd.f32 %v3500_v21, %v14408_v44  ;;  %4188 = vmatpush.bf16.msra.mxu1 %v10291_v45  ;;  %4166 = vmatpush.bf16.msrb.mxu0 %v10183_v60  ;;  %v10168_v21 = vld [vmem:[%s13743_s13 + $0x894] sm:$0xf0]  ;;  %v12289_v45 = vld [vmem:[%s13743_s13 + $0x964] sm:$0xf]  ;;  %v10156_v60 = vld [vmem:[%s13743_s13 + $0x87c] sm:$0xf0]  ;;  %v14499_v34 = vsel %vm1633_vm5, %v3780_v20, %v3781_v11 }
 0x305   : >> { %v10171_v17 = vor.u32 %v12262_v42, %v10168_v21  ;;  %v10279_v6 = vor.u32 %v12289_v45, %v10276_v23  ;;  %v12286_v42 = vld [vmem:[%s13743_s13 + $0x94c] sm:$0xf] }
 0x306   : >> { %v3158_v43 = vpop.f32.mrf.mxu2  ;;  %4133 = vmatmul.bf16.gmra.mxu3 %v14430_v19  ;;  %v10267_v23 = vor.u32 %v12286_v42, %v10264_v57  ;;  %v10252_v42 = vld [vmem:[%s13743_s13 + $0x93c] sm:$0xf0] }
 0x307   : >> { %v14472_v13 = vadd.f32 %v3158_v43, %v3136_v49  ;;  %v10159_v43 = vor.u32 %v12259_v9, %v10156_v60  ;;  %v10348_v9 = vld [vmem:[%s13743_s13 + $0x9fc] sm:$0xf0] }
 0x308   : >> { %v3117_v44 = vpop.f32.mrf.mxu1  ;;  %4167 = vmatpush.bf16.msrb.mxu0 %v10171_v17  ;;  %4189 = vmatpush.bf16.msra.mxu1 %v10279_v6  ;;  %v10246_v60 = vld [vmem:[%s13743_s13 + $0x920] sm:$0xf] }
 0x309   : >> { %v14479_v38 = vpop.f32.mrf.mxu3  ;;  %v3141_v49 = vadd.f32 %v14395_v39, %v3117_v44  ;;  %v12310_v39 = vld [vmem:[%s13743_s13 + $0xa0c] sm:$0xf]  ;;  %v10360_v44 = vld [vmem:[%s13743_s13 + $0xa14] sm:$0xf0] }
 0x30b   : >> { %v3502_v31 = vpop.f32.mrf.mxu0  ;;  %4100 = vmatmul.bf16.vlgmr.msrb.gmra.mxu1 %v14477_v30 }
 0x30c   : >> { %v10363_v31 = vor.u32 %v12310_v39, %v10360_v44  ;;  %4168 = vmatpush.bf16.msrb.mxu0 %v10159_v43  ;;  %4190 = vmatpush.bf16.msra.mxu1 %v10267_v23  ;;  %v12282_v43 = vld [vmem:[%s13743_s13 + $0x928] sm:$0xf0]  ;;  %v12283_v44 = vld [vmem:[%s13743_s13 + $0x934] sm:$0xf] }
 0x30d   : >> { %v10247_v39 = vor.u32 %v12282_v43, %v10246_v60  ;;  %v10255_v57 = vor.u32 %v12283_v44, %v10252_v42  ;;  %v10234_v60 = vld [vmem:[%s13743_s13 + $0x908] sm:$0xf] }
 0x30e   : >> { %v3160_v14 = vpop.f32.mrf.mxu2  ;;  %4213 = vmatpush.bf16.msrb.mxu3 %v10363_v31  ;;  %v10235_v43 = vor.u32 %v12279_v27, %v10234_v60  ;;  %v10222_v27 = vld [vmem:[%s13743_s13 + $0x8f0] sm:$0xf] }
 0x30f   : >> { %v14495_v21 = vadd.f32 %v3160_v14, %v3138_v54  ;;  %4169 = vmatmul.bf16.vlgmr.msrb.gmra.mxu0 %v14477_v30  ;;  %v12307_v54 = vld [vmem:[%s13743_s13 + $0x9f4] sm:$0xf]  ;;  %v14512_v14 = vrot.slane %v14014_v25, 1  ;;  %4230 = vmatpush.bf16.msra.mxu2 %v10247_v39  ;;  %v10366_v39 = vld [vmem:[%s13743_s13 + $0xa10] sm:$0xf] }
 0x310   : >> { %v3119_v17 = vpop.f32.mrf.mxu1  ;;  %v10351_v20 = vor.u32 %v12307_v54, %v10348_v9  ;;  %4191 = vmatpush.bf16.msra.mxu1 %v10255_v57 }
 0x311   : >> { %v14501_v45 = vpop.f32.mrf.mxu3  ;;  %v3143_v6 = vadd.f32 %v14421_v47, %v3119_v17  ;;  %v14522_v25 = vsel %vm1633_vm5, %v3775_v1, %v14512_v14  ;;  %v10342_v1 = vld [vmem:[%s13743_s13 + $0x9e0] sm:$0xf] }
 0x312   : >> { %4214 = vmatpush.bf16.msrb.mxu3 %v10351_v20  ;;  %v12306_v20 = vld [vmem:[%s13743_s13 + $0x9e8] sm:$0xf0] }
 0x313   : >> { %10368 = vmatmul.msk.bf16.vlgmr.msrb.gmra.mxu2 %vm817_vm3, %v14499_v34  ;;  %v14532_v9 = vpop.f32.mrf.mxu0 }
 0x314   : >> { %4231 = vmatpush.bf16.msra.mxu2 %v10235_v43  ;;  %v12303_v43 = vld [vmem:[%s13743_s13 + $0x9d0] sm:$0xf0] }
 0x316   : >> { %v3163_v47 = vpop.f32.mrf.mxu2  ;;  %10371 = vmatmul.msk.bf16.vlgmr.msrb.gmra.mxu3 %vm817_vm3, %v14499_v34 }
 0x317   : >> { %v14516_v31 = vadd.f32 %v3163_v47, %v3141_v49  ;;  %v14530_v49 = vrot.slane %v14040_v51, 1  ;;  %v12312_v47 = vld [vmem:[%s13743_s13 + $0xa18] sm:$0xf0] }
 0x318   : >> { %v3122_v17 = vpop.f32.mrf.mxu1  ;;  %v10367_v44 = vor.u32 %v12312_v47, %v10366_v39  ;;  %v10210_v47 = vld [vmem:[%s13743_s13 + $0x8d8] sm:$0xf] }
 0x319   : >> { %v14524_v23 = vpop.f32.mrf.mxu3  ;;  %v3146_v54 = vadd.f32 %v14441_v36, %v3122_v17  ;;  %v10343_v36 = vor.u32 %v12306_v20, %v10342_v1  ;;  %v14545_v17 = vsel %vm1633_vm5, %v3781_v11, %v14530_v49  ;;  %v10330_v1 = vld [vmem:[%s13743_s13 + $0x9c8] sm:$0xf] }
 0x31a   : >> { %4282 = vmatpush.bf16.msrb.mxu1 %v10367_v44  ;;  %v10331_v39 = vor.u32 %v12303_v43, %v10330_v1  ;;  %v12270_v43 = vld [vmem:[%s13743_s13 + $0x8c8] sm:$0xf0] }
 0x31b   : >> { %4105 = vmatmul.bf16.gmra.mxu1 %v14522_v25  ;;  %4253 = vmatpush.bf16.msra.mxu0 %v10343_v36  ;;  %v14552_v20 = vpop.f32.mrf.mxu0  ;;  %v12273_v36 = vld [vmem:[%s13743_s13 + $0x8e0] sm:$0xf0] }
 0x31e   : >> { %v3165_v42 = vpop.f32.mrf.mxu2 }
 0x31f   : >> { %v14541_v51 = vadd.f32 %v3165_v42, %v3143_v6  ;;  %v10223_v6 = vor.u32 %v12276_v55, %v10222_v27  ;;  %4174 = vmatmul.bf16.gmra.mxu0 %v14522_v25  ;;  %v10211_v42 = vor.u32 %v12273_v36, %v10210_v47  ;;  %v12300_v55 = vld [vmem:[%s13743_s13 + $0x9b8] sm:$0xf0]  ;;  %v10306_v47 = vld [vmem:[%s13743_s13 + $0x998] sm:$0xf]  ;;  %v12297_v36 = vld [vmem:[%s13743_s13 + $0x9a0] sm:$0xf0] }
 0x320   : >> { %v3124_v57 = vpop.f32.mrf.mxu1  ;;  %4254 = vmatpush.bf16.msra.mxu0 %v10331_v39 }
 0x321   : >> { %16406 = vst [vmem:[#allocation26_spill] sm:$0xff] %v14541_v51  ;;  %v14547_v60 = vpop.f32.mrf.mxu3  ;;  %4232 = vmatpush.bf16.msra.mxu2 %v10223_v6  ;;  %v10318_v57 = vld [vmem:[%s13743_s13 + $0x9b0] sm:$0xf]  ;;  %v10198_v6 = vld [vmem:[%s13743_s13 + $0x8c0] sm:$0xf] }
 0x322   : >> { %v10319_v53 = vor.u32 %v12300_v55, %v10318_v57  ;;  %v10307_v57 = vor.u32 %v12297_v36, %v10306_v47  ;;  %v10354_v47 = vld [vmem:[%s13743_s13 + $0x9f8] sm:$0xf]  ;;  %v12309_v36 = vld [vmem:[%s13743_s13 + $0xa00] sm:$0xf0] }
 0x323   : >> { %10369 = vmatmul.msk.bf16.gmra.mxu2 %vm817_vm3, %v14545_v17 }
 0x324   : >> { %4255 = vmatpush.bf16.msra.mxu0 %v10319_v53 }
 0x325   : >> { %4233 = vmatpush.bf16.msra.mxu2 %v10211_v42  ;;  %v12267_v42 = vld [vmem:[%s13743_s13 + $0x8b0] sm:$0xf0] }
 0x326   : >> { %v3168_v11 = vpop.f32.mrf.mxu2  ;;  %10372 = vmatmul.msk.bf16.gmra.mxu3 %vm817_vm3, %v14545_v17 }
 0x327   : >> { %v14560_v44 = vadd.f32 %v3168_v11, %v3146_v54  ;;  %v14569_v54 = vpop.f32.mrf.mxu0  ;;  %v10199_v11 = vor.u32 %v12270_v43, %v10198_v6  ;;  %v12294_v6 = vld [vmem:[%s13743_s13 + $0x988] sm:$0xf0] }
 0x328   : >> { %v3513_v27 = vpop.f32.mrf.mxu1  ;;  %4256 = vmatpush.bf16.msra.mxu0 %v10307_v57  ;;  %v10174_v57 = vld [vmem:[%s13743_s13 + $0x890] sm:$0xf] }
 0x329   : >> { %v14564_v40 = vpop.f32.mrf.mxu3  ;;  %v3514_v1 = vadd.f32 %v3513_v27, %v14380_v22  ;;  %4234 = vmatpush.bf16.msra.mxu2 %v10199_v11  ;;  %v10186_v22 = vld [vmem:[%s13743_s13 + $0x8a8] sm:$0xf]  ;;  %v10295_v11 = vor.u32 %v12294_v6, %v10294_v56 }
 0x32a   : >> { %v10187_v55 = vor.u32 %v12267_v42, %v10186_v22  ;;  %v10282_v56 = vld [vmem:[%s13743_s13 + $0x968] sm:$0xf]  ;;  %v12291_v42 = vld [vmem:[%s13743_s13 + $0x970] sm:$0xf0] }
 0x32b   : >> { %v14574_v39 = vadd.f32 %v14479_v38, %v3514_v1  ;;  %4110 = vmatmul.bf16.gmra.mxu1 %v14512_v14  ;;  %v3493_v38 = vadd.f32 %v14403_v0, %v14336_v4  ;;  %v10355_v4 = vor.u32 %v12309_v36, %v10354_v47  ;;  %v12264_v0 = vld [vmem:[%s13743_s13 + $0x898] sm:$0xf0] }
 0x32c   : >> { %4257 = vmatpush.bf16.msra.mxu0 %v10295_v11  ;;  %v10175_v22 = vor.u32 %v12264_v0, %v10174_v57  ;;  %v10270_v11 = vld [vmem:[%s13743_s13 + $0x950] sm:$0xf]  ;;  %v12288_v57 = vld [vmem:[%s13743_s13 + $0x958] sm:$0xf0] }
 0x32d   : >> { %4235 = vmatpush.bf16.msra.mxu2 %v10187_v55  ;;  %4283 = vmatpush.bf16.msrb.mxu1 %v10355_v4 }
 0x32e   : >> { %v3170_v53 = vpop.f32.mrf.mxu2 }
 0x32f   : >> { %v14590_v53 = vpop.f32.mrf.mxu0  ;;  %4179 = vmatmul.bf16.gmra.mxu0 %v14512_v14 }
 0x330   : >> { %v3515_v27 = vpop.f32.mrf.mxu1 }
 0x331   : >> { %v3548_v1 = vpop.f32.mrf.mxu3  ;;  %v14585_v43 = vadd.f32 %v3515_v27, %v3493_v38  ;;  %4236 = vmatpush.bf16.msra.mxu2 %v10175_v22  ;;  %v10283_v38 = vor.u32 %v12291_v42, %v10282_v56  ;;  %v10162_v27 = vld [vmem:[%s13743_s13 + $0x878] sm:$0xf]  ;;  %v10271_v56 = vor.u32 %v12288_v57, %v10270_v11 }
 0x332   : >> { %v12261_v1 = vld [vmem:[%s13743_s13 + $0x880] sm:$0xf0] }
 0x333   : >> { %10370 = vmatmul.msk.bf16.gmra.mxu2 %vm817_vm3, %v14530_v49  ;;  %4258 = vmatpush.bf16.msra.mxu0 %v10283_v38  ;;  %v10163_v47 = vor.u32 %v12261_v1, %v10162_v27  ;;  %v10258_v38 = vld [vmem:[%s13743_s13 + $0x938] sm:$0xf] }
 0x335   : >> { %4237 = vmatpush.bf16.msra.mxu2 %v10163_v47 }
 0x336   : >> { %v3559_v55 = vpop.f32.mrf.mxu2  ;;  %10373 = vmatmul.msk.bf16.gmra.mxu3 %vm817_vm3, %v14530_v49 }
 0x337   : >> { %v3560_v6 = vadd.f32 %v3559_v55, %v14352_v58  ;;  %v3592_v58 = vpop.f32.mrf.mxu0  ;;  %4259 = vmatpush.bf16.msra.mxu0 %v10271_v56  ;;  %v12285_v55 = vld [vmem:[%s13743_s13 + $0x940] sm:$0xf0] }
 0x338   : >> { %v3518_v36 = vpop.f32.mrf.mxu1  ;;  %v10259_v27 = vor.u32 %v12285_v55, %v10258_v38 }
 0x339   : >> { %v3628_v48 = vpop.f32.mrf.mxu3  ;;  %v3583_v4 = vadd.f32 %v14532_v9, %v3560_v6  ;;  %v3519_v0 = vadd.f32 %v3518_v36, %v14427_v59  ;;  %v3498_v9 = vadd.f32 %v14448_v52, %v14383_v3  ;;  %5085 = vmatpush.bf16.msrb.mxu2 %v10724_v7 }
 0x33a   : >> { %v3629_v22 = vadd.f32 %v3628_v48, %v14472_v13 }
 0x33b   : >> { %v14609_v42 = vadd.f32 %v14524_v23, %v3519_v0  ;;  %4192 = vmatmul.bf16.vlgmr.msra.gmra.mxu1 %v14389_v37  ;;  %4260 = vmatpush.bf16.msra.mxu0 %v10259_v27 }
 0x33e   : >> { %v14614_v1 = vpop.f32.mrf.mxu2 }
 0x33f   : >> { %v3594_v6 = vpop.f32.mrf.mxu0  ;;  %4261 = vmatmul.bf16.vlgmr.msra.gmra.mxu0 %v14389_v37 }
 0x340   : >> { %v3520_v59 = vpop.f32.mrf.mxu1 }
 0x341   : >> { %v14618_v48 = vpop.f32.mrf.mxu3  ;;  %v14620_v13 = vadd.f32 %v3520_v59, %v3498_v9 }
 0x343   : >> { %4238 = vmatmul.bf16.vlgmr.msra.gmra.mxu2 %v14477_v30 }
 0x346   : >> { %v3564_v23 = vpop.f32.mrf.mxu2 }
 0x347   : >> { %v3565_v47 = vadd.f32 %v3564_v23, %v14401_v16  ;;  %v3674_v0 = vpop.f32.mrf.mxu0 }
 0x348   : >> { %v3523_v36 = vpop.f32.mrf.mxu1 }
 0x349   : >> { %v3633_v11 = vpop.f32.mrf.mxu3  ;;  %v3588_v57 = vadd.f32 %v14569_v54, %v3565_v47  ;;  %v3524_v3 = vadd.f32 %v3523_v36, %v14464_v12 }
 0x34a   : >> { %v3634_v52 = vadd.f32 %v3633_v11, %v14516_v31 }
 0x34b   : >> { %v14629_v56 = vadd.f32 %v14564_v40, %v3524_v3  ;;  %4197 = vmatmul.bf16.gmra.mxu1 %v14434_v26 }
 0x34e   : >> { %v14632_v37 = vpop.f32.mrf.mxu2 }
 0x34f   : >> { %v14636_v16 = vpop.f32.mrf.mxu0  ;;  %4266 = vmatmul.bf16.gmra.mxu0 %v14434_v26 }
 0x350   : >> { %v3525_v30 = vpop.f32.mrf.mxu1 }
 0x351   : >> { %v14634_v38 = vpop.f32.mrf.mxu3 }
 0x352   : >> { %16407 = vst [vmem:[#allocation27_spill] sm:$0xff] %v14634_v38 }
 0x353   : >> { %4243 = vmatmul.bf16.gmra.mxu2 %v14522_v25 }
 0x356   : >> { %v3569_v12 = vpop.f32.mrf.mxu2 }
 0x357   : >> { %v3570_v31 = vadd.f32 %v3569_v12, %v14446_v8  ;;  %v3679_v59 = vpop.f32.mrf.mxu0 }
 0x358   : >> { %v3605_v54 = vpop.f32.mrf.mxu1 }
 0x359   : >> { %v3638_v55 = vpop.f32.mrf.mxu3  ;;  %v3593_v40 = vadd.f32 %v3592_v58, %v3570_v31  ;;  %v14641_v27 = vadd.f32 %v3605_v54, %v3583_v4 }
 0x35a   : >> { %v3639_v9 = vadd.f32 %v3638_v55, %v14560_v44 }
 0x35b   : >> { %4202 = vmatmul.bf16.gmra.mxu1 %v14430_v19 }
 0x35e   : >> { %v3571_v6 = vpop.f32.mrf.mxu2 }
 0x35f   : >> { %v14647_v26 = vpop.f32.mrf.mxu0  ;;  %4271 = vmatmul.bf16.gmra.mxu0 %v14430_v19 }
 0x360   : >> { %v14645_v23 = vpop.f32.mrf.mxu1  ;;  %16408 = vst [vmem:[#allocation28_spill] sm:$0xff] %v14647_v26  ;;  %v10615_v26 = vld [vmem:[%s13743_s13 + $0xc60] sm:$0xf] }
 0x361   : >> { %v3640_v47 = vpop.f32.mrf.mxu3 }
 0x363   : >> { %4248 = vmatmul.bf16.gmra.mxu2 %v14512_v14 }
 0x366   : >> { %v3651_v8 = vpop.f32.mrf.mxu2 }
 0x367   : >> { %v3652_v25 = vadd.f32 %v3651_v8, %v3629_v22  ;;  %v3684_v11 = vpop.f32.mrf.mxu0 }
 0x368   : >> { %v3610_v58 = vpop.f32.mrf.mxu1 }
 0x369   : >> { %v14651_v4 = vadd.f32 %v3674_v0, %v3652_v25  ;;  %v14653_v36 = vadd.f32 %v3610_v58, %v3588_v57  ;;  %v4124_v44 = vpop.f32.mrf.mxu3 }
 0x36b   : >> { %10374 = vmatmul.msk.bf16.vlgmr.msrb.gmra.mxu1 %vm817_vm3, %v14499_v34 }
 0x36e   : >> { %v14657_v3 = vpop.f32.mrf.mxu2 }
 0x36f   : >> { %v3686_v19 = vpop.f32.mrf.mxu0 }
 0x370   : >> { %v14659_v30 = vpop.f32.mrf.mxu1 }
 0x371   : >> { %v14661_v12 = vpop.f32.mrf.mxu3 }
 0x376   : >> { %v3656_v14 = vpop.f32.mrf.mxu2 }
 0x377   : >> { %v3657_v31 = vadd.f32 %v3656_v14, %v3634_v52 }
 0x378   : >> { %v3615_v22 = vpop.f32.mrf.mxu1 }
 0x379   : >> { %v14663_v54 = vadd.f32 %v3679_v59, %v3657_v31  ;;  %v14665_v0 = vadd.f32 %v3615_v22, %v3593_v40  ;;  %v4129_v57 = vpop.f32.mrf.mxu3 }
 0x37b   : >> { %16409 = vst [vmem:[#allocation29_spill] sm:$0xff] %v14663_v54  ;;  %10375 = vmatmul.msk.bf16.gmra.mxu1 %vm817_vm3, %v14545_v17 }
 0x37e   : >> { %v14669_v55 = vpop.f32.mrf.mxu2 }
 0x37f   : >> { %16410 = vst [vmem:[#allocation30_spill] sm:$0xff] %v14669_v55 }
 0x380   : >> { %v3617_v34 = vpop.f32.mrf.mxu1 }
 0x381   : >> { %v14671_v6 = vpop.f32.mrf.mxu3 }
 0x386   : >> { %v3661_v47 = vpop.f32.mrf.mxu2 }
 0x387   : >> { %v3662_v8 = vadd.f32 %v3661_v47, %v3639_v9 }
 0x388   : >> { %v4101_v25 = vpop.f32.mrf.mxu1 }
 0x389   : >> { %v14673_v58 = vadd.f32 %v3684_v11, %v3662_v8  ;;  %v4134_v52 = vpop.f32.mrf.mxu3  ;;  %v4125_v31 = vadd.f32 %v4124_v44, %v4101_v25 }
 0x38b   : >> { %16411 = vst [vmem:[#allocation31_spill] sm:$0xff] %v14673_v58  ;;  %10376 = vmatmul.msk.bf16.gmra.mxu1 %vm817_vm3, %v14530_v49 }
 0x38c   : >> { %v4170_v59 = vpop.f32.mrf.mxu0 }
 0x38e   : >> { %v3663_v40 = vpop.f32.mrf.mxu2 }
 0x390   : >> { %v4103_v19 = vpop.f32.mrf.mxu1 }
 0x391   : >> { %v4136_v14 = vpop.f32.mrf.mxu3 }
 0x394   : >> { %v14677_v34 = vpop.f32.mrf.mxu0 }
 0x396   : >> { %v4147_v17 = vpop.f32.mrf.mxu2 }
 0x397   : >> { %v4148_v22 = vadd.f32 %v4147_v17, %v4125_v31 }
 0x398   : >> { %v4106_v61 = vpop.f32.mrf.mxu1 }
 0x399   : >> { %v14680_v9 = vadd.f32 %v4148_v22, %v14574_v39  ;;  %v4216_v11 = vpop.f32.mrf.mxu3  ;;  %v4130_v44 = vadd.f32 %v4129_v57, %v4106_v61  ;;  %v10627_v61 = vld [vmem:[%s13743_s13 + $0xc78] sm:$0xf]  ;;  %v12392_v57 = vld [vmem:[%s13743_s13 + $0xc80] sm:$0xf0] }
 0x39c   : >> { %v14682_v8 = vpop.f32.mrf.mxu0 }
 0x39e   : >> { %v4149_v47 = vpop.f32.mrf.mxu2 }
 0x3a0   : >> { %v14684_v49 = vpop.f32.mrf.mxu1 }
 0x3a1   : >> { %v14686_v40 = vpop.f32.mrf.mxu3 }
 0x3a4   : >> { %v14688_v31 = vpop.f32.mrf.mxu0 }
 0x3a6   : >> { %v4152_v25 = vpop.f32.mrf.mxu2 }
 0x3a7   : >> { %v4153_v14 = vadd.f32 %v4152_v25, %v4130_v44  ;;  %v10628_v25 = vor.u32 %v12392_v57, %v10627_v61  ;;  %v12389_v61 = vld [vmem:[%s13743_s13 + $0xc68] sm:$0xf0]  ;;  %v10711_v57 = vld [vmem:[%s13743_s13 + $0xd20] sm:$0xf] }
 0x3a8   : >> { %v4111_v39 = vpop.f32.mrf.mxu1  ;;  %v10616_v28 = vor.u32 %v12389_v61, %v10615_v26  ;;  %v10712_v38 = vor.u32 %v12413_v63, %v10711_v57  ;;  %v4127_v26 = vadd.f32 %v14661_v12, %v4103_v19  ;;  %v3539_v19 = vadd.f32 %v14501_v45, %v14585_v43  ;;  %v12383_v63 = vld [vmem:[%s13743_s13 + $0xc38] sm:$0xf0] }
 0x3a9   : >> { %v14691_v17 = vadd.f32 %v4153_v14, %v14609_v42  ;;  %v14693_v22 = vpop.f32.mrf.mxu3  ;;  %v12391_v42 = vld [vmem:[%s13743_s13 + $0xc7c] sm:$0xf]  ;;  %v10629_v14 = vld [vmem:[%s13743_s13 + $0xc84] sm:$0xf0]  ;;  %v4135_v10 = vadd.f32 %v4134_v52, %v4111_v39  ;;  %5062 = vmatpush.bf16.msra.mxu3 %v10628_v25  ;;  %v3092_v25 = vadd.f32 %v14283_v62, %v14368_v35 }
 0x3aa   : >> { %v10632_v32 = vor.u32 %v12391_v42, %v10629_v14  ;;  %v12388_v42 = vld [vmem:[%s13743_s13 + $0xc64] sm:$0xf]  ;;  %v10617_v14 = vld [vmem:[%s13743_s13 + $0xc6c] sm:$0xf0]  ;;  %5086 = vmatpush.bf16.msrb.mxu2 %v10712_v38  ;;  %v10699_v39 = vld [vmem:[%s13743_s13 + $0xd08] sm:$0xf] }
 0x3ab   : >> { %v10620_v51 = vor.u32 %v12388_v42, %v10617_v14  ;;  %v3562_v38 = vadd.f32 %v14614_v1, %v3092_v25  ;;  %v10687_v42 = vld [vmem:[%s13743_s13 + $0xcf0] sm:$0xf] }
 0x3ac   : >> { %v14698_v50 = vpop.f32.mrf.mxu0  ;;  %5131 = vmatpush.bf16.msra.mxu1 %v10632_v32 }
 0x3ad   : >> { %5063 = vmatpush.bf16.msra.mxu3 %v10616_v28  ;;  %v4150_v28 = vadd.f32 %v4149_v47, %v4127_v26  ;;  %v10591_v47 = vld [vmem:[%s13743_s13 + $0xc30] sm:$0xf]  ;;  %v10593_v26 = vld [vmem:[%s13743_s13 + $0xc3c] sm:$0xf0] }
 0x3ae   : >> { %v14696_v33 = vpop.f32.mrf.mxu2  ;;  %v10592_v1 = vor.u32 %v12383_v63, %v10591_v47 }
 0x3b0   : >> { %v4113_v41 = vpop.f32.mrf.mxu1  ;;  %5132 = vmatpush.bf16.msra.mxu1 %v10620_v51 }
 0x3b1   : >> { %v14703_v44 = vpop.f32.mrf.mxu3  ;;  %v14711_v41 = vld [vmem:[%s14708_s15 + $0x3] sm:$0x7] }
 0x3b2   : >> { %v14720_v52 = vperm.slane %v14711_v41, 0 }
 0x3b4   : >> { %v4182_v55 = vpop.f32.mrf.mxu0  ;;  %v4323_v62 = vadd.f32 %v14720_v52, %v14680_v9  ;;  %v12407_v9 = vld [vmem:[%s13743_s13 + $0xcf8] sm:$0xf0] }
 0x3b5   : >> { %v10603_v55 = vld [vmem:[%s13743_s13 + $0xc48] sm:$0xf]  ;;  %v10688_v45 = vor.u32 %v12407_v9, %v10687_v42 }
 0x3b6   : >> { %v4157_v58 = vpop.f32.mrf.mxu2  ;;  %v4338_v25 = vmax.f32 %v4323_v62, 0.0  ;;  %v10581_v62 = vld [vmem:[%s13743_s13 + $0xc24] sm:$0xf0] }
 0x3b7   : >> { %v4158_v54 = vadd.f32 %v4157_v58, %v4135_v10  ;;  %v14726_v10 = vperm.slane %v14711_v41, 1  ;;  %v12386_v58 = vld [vmem:[%s13743_s13 + $0xc50] sm:$0xf0] }
 0x3b8   : >> { %v4193_v29 = vpop.f32.mrf.mxu1 }
 0x3b9   : >> { %v14723_v32 = vadd.f32 %v4158_v54, %v14629_v56  ;;  %v4194_v7 = vadd.f32 %v4193_v29, %v4170_v59  ;;  %v14734_v57 = vpop.f32.mrf.mxu3  ;;  %v10604_v56 = vor.u32 %v12386_v58, %v10603_v55  ;;  %v12410_v29 = vld [vmem:[%s13743_s13 + $0xd10] sm:$0xf0]  ;;  %v12385_v54 = vld [vmem:[%s13743_s13 + $0xc4c] sm:$0xf]  ;;  %v10605_v59 = vld [vmem:[%s13743_s13 + $0xc54] sm:$0xf0]  ;;  %v4302_v55 = vadd.f32 %v4150_v28, %v3539_v19 }
 0x3ba   : >> { %v10700_v12 = vor.u32 %v12410_v29, %v10699_v39  ;;  %v10608_v51 = vor.u32 %v12385_v54, %v10605_v59  ;;  %v3585_v39 = vadd.f32 %v14552_v20, %v3562_v38  ;;  %v10579_v29 = vld [vmem:[%s13743_s13 + $0xc18] sm:$0xf]  ;;  %v12380_v54 = vld [vmem:[%s13743_s13 + $0xc20] sm:$0xf0]  ;;  %v12379_v38 = vld [vmem:[%s13743_s13 + $0xc1c] sm:$0xf] }
 0x3bb   : >> { %v4217_v61 = vadd.f32 %v4216_v11, %v4194_v7  ;;  %5064 = vmatpush.bf16.msra.mxu3 %v10604_v56  ;;  %v10675_v59 = vld [vmem:[%s13743_s13 + $0xcd8] sm:$0xf]  ;;  %v12404_v20 = vld [vmem:[%s13743_s13 + $0xce0] sm:$0xf0]  ;;  %v10584_v47 = vor.u32 %v12379_v38, %v10581_v62 }
 0x3bc   : >> { %5087 = vmatpush.bf16.msrb.mxu2 %v10700_v12  ;;  %5133 = vmatpush.bf16.msra.mxu1 %v10608_v51  ;;  %v14749_v7 = vpop.f32.mrf.mxu0  ;;  %v3608_v28 = vadd.f32 %v14645_v23, %v3585_v39  ;;  %v4132_v39 = vadd.f32 %v14671_v6, %v14684_v49  ;;  %v3097_v6 = vadd.f32 %v14317_v18, %v14417_v46  ;;  %v12835_v38 = vld [vmem:[#allocation2] sm:$0xff] }
 0x3bd   : >> { %v4300_v35 = vadd.f32 %v4217_v61, %v14641_v27  ;;  %v12382_v27 = vld [vmem:[%s13743_s13 + $0xc34] sm:$0xf] }
 0x3be   : >> { %v4159_v11 = vpop.f32.mrf.mxu2  ;;  %v10596_v43 = vor.u32 %v12382_v27, %v10593_v26  ;;  %v4155_v49 = vadd.f32 %v14696_v33, %v4132_v39  ;;  %v3544_v33 = vadd.f32 %v14547_v60, %v14620_v13  ;;  %v3567_v18 = vadd.f32 %v14632_v37, %v3097_v6  ;;  %v10543_v60 = vld [vmem:[%s13743_s13 + $0xbd0] sm:$0xf]  ;;  %v12371_v13 = vld [vmem:[%s13743_s13 + $0xbd8] sm:$0xf0]  ;;  %v12370_v39 = vld [vmem:[%s13743_s13 + $0xbd4] sm:$0xf] }
 0x3bf   : >> { %v4324_v14 = vadd.f32 %v14726_v10, %v4300_v35  ;;  %5065 = vmatpush.bf16.msra.mxu3 %v10592_v1  ;;  %v10580_v35 = vor.u32 %v12380_v54, %v10579_v29  ;;  %v10676_v11 = vor.u32 %v12404_v20, %v10675_v59  ;;  %v10663_v1 = vld [vmem:[%s13743_s13 + $0xcc0] sm:$0xf]  ;;  %v4329_v29 = vadd.f32 %v14720_v52, %v14691_v17  ;;  %v12374_v17 = vld [vmem:[%s13743_s13 + $0xbf0] sm:$0xf0]  ;;  %v10651_v20 = vld [vmem:[%s13743_s13 + $0xca8] sm:$0xf] }
 0x3c0   : >> { %v4195_v58 = vpop.f32.mrf.mxu1  ;;  %5088 = vmatpush.bf16.msrb.mxu2 %v10688_v45  ;;  %5134 = vmatpush.bf16.msra.mxu1 %v10596_v43  ;;  %v12376_v45 = vld [vmem:[%s13743_s13 + $0xc04] sm:$0xf]  ;;  %v10639_v37 = vld [vmem:[%s13743_s13 + $0xc90] sm:$0xf] }
 0x3c1   : >> { %v4339_v61 = vmax.f32 %v4324_v14, 0.0  ;;  %v4196_v56 = vadd.f32 %v4195_v58, %v14677_v34  ;;  %v4228_v19 = vpop.f32.mrf.mxu3  ;;  %v4326_v34 = vadd.f32 %v14720_v52, %v4302_v55  ;;  %v12377_v14 = vld [vmem:[%s13743_s13 + $0xc08] sm:$0xf0] }
 0x3c2   : >> { %v12401_v58 = vld [vmem:[%s13743_s13 + $0xcc8] sm:$0xf0] }
 0x3c3   : >> { %v4368_v12 = vpack.c.bf16 %v4339_v61, %v4338_v25  ;;  %v4219_v51 = vadd.f32 %v14686_v40, %v4196_v56  ;;  %5066 = vmatpush.bf16.msra.mxu3 %v10580_v35  ;;  %v10567_v40 = vld [vmem:[%s13743_s13 + $0xc00] sm:$0xf]  ;;  %v4341_v43 = vmax.f32 %v4326_v34, 0.0  ;;  %v10664_v61 = vor.u32 %v12401_v58, %v10663_v1  ;;  %v10569_v56 = vld [vmem:[%s13743_s13 + $0xc0c] sm:$0xf0] }
 0x3c4   : >> { %5089 = vmatpush.bf16.msrb.mxu2 %v10676_v11  ;;  %5135 = vmatpush.bf16.msra.mxu1 %v10584_v47  ;;  %v10568_v55 = vor.u32 %v12377_v14, %v10567_v40  ;;  %v10555_v35 = vld [vmem:[%s13743_s13 + $0xbe8] sm:$0xf]  ;;  %v12398_v11 = vld [vmem:[%s13743_s13 + $0xcb0] sm:$0xf0]  ;;  %v12373_v47 = vld [vmem:[%s13743_s13 + $0xbec] sm:$0xf]  ;;  %v4308_v1 = vadd.f32 %v4155_v49, %v3544_v33 }
 0x3c5   : >> { %v4379_v63 = vshrl.u32 %v4368_v12, 16  ;;  %v4303_v42 = vadd.f32 %v4219_v51, %v3608_v28  ;;  %v4382_v27 = vshll.u32 %v4368_v12, 16  ;;  %v14782_v12 = vpop.f32.mrf.mxu0  ;;  %v10572_v51 = vor.u32 %v12376_v45, %v10569_v56  ;;  %v10545_v56 = vld [vmem:[%s13743_s13 + $0xbdc] sm:$0xf0] }
 0x3c6   : >> { %v14765_v23 = vpop.f32.mrf.mxu2  ;;  %v10556_v34 = vor.u32 %v12374_v17, %v10555_v35  ;;  %v10652_v46 = vor.u32 %v12398_v11, %v10651_v20  ;;  %v10544_v45 = vor.u32 %v12371_v13, %v10543_v60  ;;  %v4332_v35 = vadd.f32 %v14720_v52, %v4308_v1 }
 0x3c7   : >> { %v14770_v9 = vrot.slane %v4379_v63, 7  ;;  %v4327_v26 = vadd.f32 %v14726_v10, %v4303_v42  ;;  %5067 = vmatpush.bf16.msra.mxu3 %v10568_v55  ;;  %v10557_v63 = vld [vmem:[%s13743_s13 + $0xbf4] sm:$0xf0]  ;;  %v4344_v42 = vmax.f32 %v4329_v29, 0.0 }
 0x3c8   : >> { %v4198_v25 = vpop.f32.mrf.mxu1  ;;  %5090 = vmatpush.bf16.msrb.mxu2 %v10664_v61  ;;  %5136 = vmatpush.bf16.msra.mxu1 %v10572_v51  ;;  %v10560_v14 = vor.u32 %v12373_v47, %v10557_v63  ;;  %v10548_v51 = vor.u32 %v12370_v39, %v10545_v56  ;;  %v10747_v56 = vld [vmem:[%s13743_s13 + $0xd68] sm:$0xf] }
 0x3c9   : >> { %v4384_v54 = vor.u32 %v4382_v27, %v14770_v9  ;;  %v4342_v59 = vmax.f32 %v4327_v26, 0.0  ;;  %v4199_v28 = vadd.f32 %v4198_v25, %v14682_v8  ;;  %v3590_v25 = vadd.f32 %v14590_v53, %v3567_v18 }
 0x3ca   : >> { %v4392_v29 = vrot.slane %v14770_v9, 4  ;;  %v4359_v49 = vmul.f32 %v4344_v42, %v13580_v2 }
 0x3cb   : >> { %v4474_v62 = vsel %vm13908_vm8, %v4384_v54, %v12835_v38  ;;  %v4370_v8 = vpack.c.bf16 %v4342_v59, %v4341_v43  ;;  %v4222_v19 = vadd.f32 %v14693_v22, %v4199_v28  ;;  %5068 = vmatpush.bf16.msra.mxu3 %v10556_v34  ;;  %v12395_v43 = vld [vmem:[%s13743_s13 + $0xc98] sm:$0xf0]  ;;  %v3613_v6 = vadd.f32 %v14659_v30, %v3590_v25 }
 0x3cc   : >> { %4475 = vst [vmem:[#allocation2] sm:$0xff] %v4474_v62  ;;  %5091 = vmatpush.bf16.msrb.mxu2 %v10652_v46  ;;  %5137 = vmatpush.bf16.msra.mxu1 %v10560_v14  ;;  %v10640_v61 = vor.u32 %v12395_v43, %v10639_v37  ;;  %v4667_v38 = vunpack.c.h.b16 %v4474_v62  ;;  %v4347_v46 = vmax.f32 %v4332_v35, 0.0  ;;  %v4335_v37 = vadd.f32 %v14720_v52, %v14723_v32 }
 0x3cd   : >> { %v4394_v40 = vshrl.u32 %v4370_v8, 16  ;;  %v4306_v22 = vadd.f32 %v4222_v19, %v14653_v36  ;;  %v4397_v55 = vshll.u32 %v4370_v8, 16  ;;  %v14821_v20 = vpop.f32.mrf.mxu0 }
 0x3ce   : >> { %v14800_v27 = vpop.f32.mrf.mxu2  ;;  %v4350_v32 = vmax.f32 %v4335_v37, 0.0  ;;  %v3631_v37 = vadd.f32 %v14618_v48, %v14495_v21 }
 0x3cf   : >> { %v4396_v26 = vrot.slane %v4394_v40, 7  ;;  %v4330_v58 = vadd.f32 %v14726_v10, %v4306_v22  ;;  %5069 = vmatpush.bf16.msra.mxu3 %v10544_v45 }
 0x3d0   : >> { %v4200_v36 = vpop.f32.mrf.mxu1  ;;  %5092 = vmatpush.bf16.msrb.mxu2 %v10640_v61  ;;  %5138 = vmatpush.bf16.msra.mxu1 %v10548_v51  ;;  %v12417_v51 = vld [vmem:[%s13743_s13 + $0xd48] sm:$0xf0] }
 0x3d1   : >> { %v4399_v54 = vor.u32 %v4397_v55, %v4396_v26  ;;  %v4345_v59 = vmax.f32 %v4330_v58, 0.0  ;;  %v4201_v28 = vadd.f32 %v4200_v36, %v14688_v31  ;;  %v4666_v31 = vunpack.c.l.b16 %v4474_v62 }
 0x3d2   : >> { %v4410_v14 = vrot.slane %v4396_v26, 4 }
 0x3d3   : >> { %v14817_v53 = vsel %vm13813_vm13, %v4392_v29, %v4399_v54  ;;  %v4360_v17 = vmul.f32 %v4345_v59, %v13580_v2  ;;  %v4224_v9 = vadd.f32 %v14703_v44, %v4201_v28  ;;  %v12415_v28 = vld [vmem:[%s13743_s13 + $0xd3c] sm:$0xf] }
 0x3d4   : >> { %v4669_v30 = vunpack.c.l.b16 %v14817_v53  ;;  %v4670_v8 = vunpack.c.h.b16 %v14817_v53  ;;  %v12465_v53 = vld [vmem:[%s13743_s13 + $0xec8] sm:$0xf0] }
 0x3d5   : >> { %v4372_v19 = vpack.c.bf16 %v4360_v17, %v4359_v49  ;;  %v4309_v34 = vadd.f32 %v4224_v9, %v3613_v6  ;;  %v14843_v43 = vpop.f32.mrf.mxu0  ;;  %v10725_v6 = vld [vmem:[%s13743_s13 + $0xd44] sm:$0xf0]  ;;  %v10731_v49 = vld [vmem:[%s13743_s13 + $0xd40] sm:$0xf]  ;;  %v4263_v17 = vadd.f32 %v14749_v7, %v14765_v23  ;;  %v14867_v7 = vperm.slane %v14711_v41, 2 }
 0x3d6   : >> { %v14825_v11 = vpop.f32.mrf.mxu2  ;;  %v14829_v47 = vpack.c.b16 %v4669_v30, %v4666_v31  ;;  %v14833_v44 = vpack.c.b16 %v4670_v8, %v4667_v38  ;;  %v10732_v31 = vor.u32 %v12417_v51, %v10731_v49  ;;  %v4265_v51 = vadd.f32 %v14782_v12, %v14800_v27 }
 0x3d7   : >> { %v4412_v33 = vshrl.u32 %v4372_v19, 16  ;;  %v4333_v18 = vadd.f32 %v14726_v10, %v4309_v34  ;;  %v4415_v42 = vshll.u32 %v4372_v19, 16 }
 0x3d8   : >> { %v4203_v63 = vpop.f32.mrf.mxu1  ;;  %v4693_v38 = vshll.u32 %v14829_v47, 16  ;;  %v4705_v19 = vshll.u32 %v14833_v44, 16  ;;  %5223 = vmatpush.bf16.msrb.mxu1 %v10732_v31  ;;  %v12406_v31 = vld [vmem:[%s13743_s13 + $0xcf4] sm:$0xf] }
 0x3d9   : >> { %v4414_v62 = vrot.slane %v4412_v33, 7  ;;  %v4348_v40 = vmax.f32 %v4333_v18, 0.0  ;;  %v4204_v22 = vadd.f32 %v4203_v63, %v14698_v50  ;;  %v10713_v63 = vld [vmem:[%s13743_s13 + $0xd2c] sm:$0xf0] }
 0x3da   : >> { %v4707_v41 = vrot.slane %v4705_v19, 1 }
 0x3db   : >> { %v4417_v1 = vor.u32 %v4415_v42, %v4414_v62  ;;  %v4374_v60 = vpack.c.bf16 %v4348_v40, %v4347_v46  ;;  %v4227_v13 = vadd.f32 %v14734_v57, %v4204_v22  ;;  %v4428_v25 = vrot.slane %v4414_v62, 4  ;;  %v12412_v46 = vld [vmem:[%s13743_s13 + $0xd24] sm:$0xf]  ;;  %v10719_v42 = vld [vmem:[%s13743_s13 + $0xd28] sm:$0xf] }
 0x3dc   : >> { %v10716_v23 = vor.u32 %v12412_v46, %v10713_v63  ;;  %v12414_v40 = vld [vmem:[%s13743_s13 + $0xd30] sm:$0xf0] }
 0x3dd   : >> { %v4418_v55 = vsel %vm13813_vm13, %v4410_v14, %v4417_v1  ;;  %v4430_v58 = vshrl.u32 %v4374_v60, 16  ;;  %v4312_v45 = vadd.f32 %v4227_v13, %v14665_v0  ;;  %v4433_v26 = vshll.u32 %v4374_v60, 16  ;;  %v12422_v0 = vld [vmem:[%s13743_s13 + $0xd70] sm:$0xf0]  ;;  %v14858_v9 = vpop.f32.mrf.mxu0 }
 0x3de   : >> { %4481 = vst [vmem:[#allocation2 + $0x18] sm:$0xff] %v4418_v55  ;;  %v14845_v50 = vpop.f32.mrf.mxu2  ;;  %v10748_v59 = vor.u32 %v12422_v0, %v10747_v56  ;;  %v4485_v1 = vld [vmem:[#allocation2 + $0x30] sm:$0x33]  ;;  %v10720_v13 = vor.u32 %v12414_v40, %v10719_v42  ;;  %v12411_v0 = vld [vmem:[%s13743_s13 + $0xd18] sm:$0xf0] }
 0x3df   : >> { %v4432_v57 = vrot.slane %v4430_v58, 7  ;;  %v4336_v39 = vadd.f32 %v14726_v10, %v4312_v45  ;;  %v10728_v10 = vor.u32 %v12415_v28, %v10725_v6  ;;  %v4695_v58 = vrot.slane %v4693_v38, 1  ;;  %v10707_v56 = vld [vmem:[%s13743_s13 + $0xd10] sm:$0xf]  ;;  %v10689_v38 = vld [vmem:[%s13743_s13 + $0xcfc] sm:$0xf0] }
 0x3e0   : >> { %v4205_v52 = vpop.f32.mrf.mxu1  ;;  %5114 = vmatpush.bf16.msrb.mxu0 %v10748_v59  ;;  %5224 = vmatpush.bf16.msrb.mxu1 %v10720_v13  ;;  %v4703_v6 = vshrl.u32 %v14833_v44, 16  ;;  %v10692_v63 = vor.u32 %v12406_v31, %v10689_v38  ;;  %v16415_v38 = vld [vmem:[#allocation30_spill] sm:$0xff] }
 0x3e1   : >> { %v4435_v36 = vor.u32 %v4433_v26, %v4432_v57  ;;  %v4351_v61 = vmax.f32 %v4336_v39, 0.0  ;;  %5154 = vmatpush.bf16.msrb.mxu3 %v10728_v10  ;;  %v4446_v22 = vrot.slane %v4432_v57, 4 }
 0x3e3   : >> { %v4436_v29 = vsel %vm13813_vm13, %v4428_v25, %v4435_v36  ;;  %v4376_v54 = vpack.c.bf16 %v4351_v61, %v4350_v32  ;;  %v12409_v32 = vld [vmem:[%s13743_s13 + $0xd0c] sm:$0xf]  ;;  %v3654_v25 = vadd.f32 %v14657_v3, %v3631_v37  ;;  %v10701_v61 = vld [vmem:[%s13743_s13 + $0xd14] sm:$0xf0]  ;;  %v10708_v3 = vor.u32 %v12411_v0, %v10707_v56  ;;  %v10677_v37 = vld [vmem:[%s13743_s13 + $0xce4] sm:$0xf0] }
 0x3e4   : >> { %4483 = vst [vmem:[#allocation2 + $0x24] sm:$0xff] %v4436_v29  ;;  %v4691_v29 = vshrl.u32 %v14829_v47, 16  ;;  %v10704_v59 = vor.u32 %v12409_v32, %v10701_v61  ;;  %v12400_v56 = vld [vmem:[%s13743_s13 + $0xcc4] sm:$0xf]  ;;  %v10665_v0 = vld [vmem:[%s13743_s13 + $0xccc] sm:$0xf0] }
 0x3e5   : >> { %v4448_v35 = vshrl.u32 %v4376_v54, 16  ;;  %v4451_v18 = vshll.u32 %v4376_v54, 16  ;;  %v10531_v55 = vld [vmem:[#allocation2 + $0x18] sm:$0xf]  ;;  %v12313_v45 = vld [vmem:[#allocation2 + $0x1c] sm:$0xf]  ;;  %5155 = vmatpush.bf16.msrb.mxu3 %v10716_v23  ;;  %v4274_v54 = vpop.f32.mrf.mxu0  ;;  %5225 = vmatpush.bf16.msrb.mxu1 %v10708_v3  ;;  %v3677_v42 = vadd.f32 %v14636_v16, %v3654_v25 }
 0x3e6   : >> { %v14862_v34 = vpop.f32.mrf.mxu2  ;;  %v12408_v23 = vld [vmem:[%s13743_s13 + $0xd00] sm:$0xf0]  ;;  %v12403_v16 = vld [vmem:[%s13743_s13 + $0xcdc] sm:$0xf]  ;;  %v4476_v25 = vld [vmem:[#allocation2 + $0x8] sm:$0xf] }
 0x3e7   : >> { %v4450_v33 = vrot.slane %v4448_v35, 7 }
 0x3e8   : >> { %v4285_v62 = vpop.f32.mrf.mxu1 }
 0x3e9   : >> { %v4453_v14 = vor.u32 %v4451_v18, %v4450_v33  ;;  %v4286_v60 = vadd.f32 %v4285_v62, %v4263_v17  ;;  %v4696_v17 = vor.u32 %v4695_v58, %v4691_v29  ;;  %5156 = vmatpush.bf16.msrb.mxu3 %v10704_v59  ;;  %v4708_v18 = vor.u32 %v4707_v41, %v4703_v6  ;;  %v10695_v62 = vld [vmem:[%s13743_s13 + $0xcf8] sm:$0xf]  ;;  %v10683_v41 = vld [vmem:[%s13743_s13 + $0xce0] sm:$0xf]  ;;  %v16413_v29 = vld [vmem:[#allocation27_spill] sm:$0xff] }
 0x3ea   : >> { %v10696_v40 = vor.u32 %v12408_v23, %v10695_v62  ;;  %v10671_v6 = vld [vmem:[%s13743_s13 + $0xcc8] sm:$0xf]  ;;  %v16416_v23 = vld [vmem:[#allocation29_spill] sm:$0xff] }
 0x3eb   : >> { %v4454_v26 = vsel %vm13813_vm13, %v4446_v22, %v4453_v14  ;;  %v4301_v57 = vadd.f32 %v4286_v60, %v14651_v4  ;;  %v12314_v39 = vld [vmem:[#allocation2 + $0x20] sm:$0xf0]  ;;  %v10533_v52 = vld [vmem:[#allocation2 + $0x24] sm:$0xf0] }
 0x3ec   : >> { %v4486_v21 = vsel %vm13949_vm2, %v4454_v26, %v4485_v1  ;;  %v14880_v48 = vor.u32 %v12314_v39, %v10531_v55  ;;  %v14882_v36 = vor.u32 %v12313_v45, %v10533_v52  ;;  %v4268_v55 = vadd.f32 %v14821_v20, %v14825_v11  ;;  %v12405_v26 = vld [vmem:[%s13743_s13 + $0xce8] sm:$0xf0]  ;;  %5226 = vmatpush.bf16.msrb.mxu1 %v10696_v40  ;;  %v10735_v40 = vld [vmem:[%s13743_s13 + $0xd50] sm:$0xf] }
 0x3ed   : >> { %4487 = vst [vmem:[#allocation2 + $0x30] sm:$0x33] %v4486_v21  ;;  %v4325_v4 = vadd.f32 %v14867_v7, %v4301_v57  ;;  %5157 = vmatpush.bf16.msrb.mxu3 %v10692_v63  ;;  %v10680_v45 = vor.u32 %v12403_v16, %v10677_v37  ;;  %v10684_v20 = vor.u32 %v12405_v26, %v10683_v41  ;;  %v12421_v16 = vld [vmem:[%s13743_s13 + $0xd6c] sm:$0xf]  ;;  %v10749_v41 = vld [vmem:[%s13743_s13 + $0xd74] sm:$0xf0] }
 0x3ee   : >> { %v4698_v28 = vshll.u32 %v14880_v48, 16  ;;  %v4710_v49 = vshll.u32 %v14882_v36, 16  ;;  %v4251_v10 = vpop.f32.mrf.mxu2  ;;  %v12397_v26 = vld [vmem:[%s13743_s13 + $0xcac] sm:$0xf] }
 0x3ef   : >> { %v4340_v35 = vmax.f32 %v4325_v4, 0.0  ;;  %v16412_v4 = vld [vmem:[#allocation26_spill] sm:$0xff]  ;;  %v12418_v10 = vld [vmem:[%s13743_s13 + $0xd54] sm:$0xf] }
 0x3f0   : >> { %v4287_v19 = vpop.f32.mrf.mxu1  ;;  %v14896_v33 = vrot.slane %v4698_v28, 1  ;;  %v14898_v46 = vrot.slane %v4710_v49, 1  ;;  %v3636_v54 = vadd.f32 %v16413_v29, %v16412_v4  ;;  %v10668_v28 = vor.u32 %v12400_v56, %v10665_v0  ;;  %v12402_v49 = vld [vmem:[%s13743_s13 + $0xcd0] sm:$0xf0]  ;;  %5227 = vmatpush.bf16.msrb.mxu1 %v10684_v20  ;;  %v10653_v20 = vld [vmem:[%s13743_s13 + $0xcb4] sm:$0xf0] }
 0x3f1   : >> { %v4369_v12 = vpack.c.bf16 %v4340_v35, %v4340_v35  ;;  %v4288_v27 = vadd.f32 %v4287_v19, %v4265_v51  ;;  %5158 = vmatpush.bf16.msrb.mxu3 %v10680_v45  ;;  %v10672_v63 = vor.u32 %v12402_v49, %v10671_v6  ;;  %v10656_v29 = vor.u32 %v12397_v26, %v10653_v20 }
 0x3f2   : >> { %v14905_v22 = vsel %vm453_vm4, %v4696_v17, %v14896_v33  ;;  %v14909_v14 = vsel %vm453_vm4, %v4708_v18, %v14898_v46  ;;  %v3659_v19 = vadd.f32 %v16415_v38, %v3636_v54  ;;  %v12394_v54 = vld [vmem:[%s13743_s13 + $0xc94] sm:$0xf] }
 0x3f3   : >> { %v4386_v1 = vshrl.u32 %v4369_v12, 16  ;;  %v4389_v60 = vshll.u32 %v4369_v12, 16  ;;  %v4304_v13 = vadd.f32 %v4288_v27, %v3677_v42  ;;  %5070 = vmatmul.bf16.vlgmr.msra.gmra.mxu3 %v14905_v22  ;;  %5093 = vmatmul.bf16.vlgmr.msrb.gmra.mxu2 %v14909_v14  ;;  %v4726_v12 = vshrl.u32 %v14880_v48, 16 }
 0x3f4   : >> { %5139 = vmatmul.bf16.vlgmr.msra.gmra.mxu1 %v14905_v22  ;;  %v4578_v58 = vld [vmem:[#allocation2 + $0x30] sm:$0x33]  ;;  %v4734_v27 = vshrl.u32 %v14882_v36, 16 }
 0x3f5   : >> { %v14920_v57 = vrot.slane %v4386_v1, 7  ;;  %v4328_v39 = vadd.f32 %v14867_v7, %v4304_v13  ;;  %v4678_v52 = vunpack.c.l.b16 %v4578_v58  ;;  %v4679_v32 = vunpack.c.h.b16 %v4578_v58  ;;  %v12419_v13 = vld [vmem:[%s13743_s13 + $0xd58] sm:$0xf0]  ;;  %5159 = vmatpush.bf16.msrb.mxu3 %v10668_v28  ;;  %5228 = vmatpush.bf16.msrb.mxu1 %v10672_v63 }
 0x3f6   : >> { %v10736_v45 = vor.u32 %v12419_v13, %v10735_v40  ;;  %v12390_v40 = vld [vmem:[%s13743_s13 + $0xc70] sm:$0xf0] }
 0x3f7   : >> { %v4391_v11 = vor.u32 %v4389_v60, %v14920_v57  ;;  %v4343_v21 = vmax.f32 %v4328_v39, 0.0  ;;  %v14924_v61 = vpack.c.b16 %v4678_v52, %v4678_v52  ;;  %v14930_v3 = vpack.c.b16 %v4679_v32, %v4679_v32  ;;  %v16417_v39 = vld [vmem:[#allocation28_spill] sm:$0xff] }
 0x3f8   : >> { %v4290_v59 = vpop.f32.mrf.mxu1  ;;  %v3682_v52 = vadd.f32 %v16417_v39, %v3659_v19  ;;  %v4270_v32 = vadd.f32 %v14843_v43, %v14845_v50  ;;  %v4401_v56 = vrot.slane %v14920_v57, 4  ;;  %5115 = vmatpush.bf16.msrb.mxu0 %v10736_v45  ;;  %v4728_v43 = vor.u32 %v4726_v12, %v14896_v33  ;;  %v10737_v57 = vld [vmem:[%s13743_s13 + $0xd5c] sm:$0xf0]  ;;  %v12396_v19 = vld [vmem:[%s13743_s13 + $0xca0] sm:$0xf0] }
 0x3f9   : >> { %v4477_v51 = vsel %vm13823_vm14, %v4391_v11, %v4476_v25  ;;  %v4371_v35 = vpack.c.bf16 %v4343_v21, %v4343_v21  ;;  %v4291_v17 = vadd.f32 %v4290_v59, %v4268_v55  ;;  %v4730_v31 = vshll.u32 %v14924_v61, 16  ;;  %v10659_v11 = vld [vmem:[%s13743_s13 + $0xcb0] sm:$0xf]  ;;  %v12399_v21 = vld [vmem:[%s13743_s13 + $0xcb8] sm:$0xf0]  ;;  %5160 = vmatpush.bf16.msrb.mxu3 %v10656_v29 }
 0x3fa   : >> { %4478 = vst [vmem:[#allocation2 + $0x8] sm:$0xf] %v4477_v51  ;;  %v4738_v18 = vshll.u32 %v14930_v3, 16  ;;  %v10752_v25 = vor.u32 %v12421_v16, %v10749_v41  ;;  %v10641_v59 = vld [vmem:[%s13743_s13 + $0xc9c] sm:$0xf0]  ;;  %v4736_v50 = vor.u32 %v4734_v27, %v14898_v46  ;;  %v10660_v6 = vor.u32 %v12399_v21, %v10659_v11 }
 0x3fb   : >> { %v4403_v62 = vshrl.u32 %v4371_v35, 16  ;;  %v4307_v42 = vadd.f32 %v4291_v17, %v16416_v23  ;;  %v4406_v1 = vshll.u32 %v4371_v35, 16  ;;  %v14943_v60 = vrot.slane %v4730_v31, 1  ;;  %v10647_v51 = vld [vmem:[%s13743_s13 + $0xc98] sm:$0xf] }
 0x3fc   : >> { %v14950_v58 = vrot.slane %v4738_v18, 1  ;;  %5183 = vmatpush.bf16.msra.mxu2 %v10752_v25  ;;  %v10644_v49 = vor.u32 %v12394_v54, %v10641_v59  ;;  %v10740_v38 = vor.u32 %v12418_v10, %v10737_v57  ;;  %v10635_v33 = vld [vmem:[%s13743_s13 + $0xc80] sm:$0xf]  ;;  %5229 = vmatpush.bf16.msrb.mxu1 %v10660_v6  ;;  %v10648_v63 = vor.u32 %v12396_v19, %v10647_v51  ;;  %v10623_v27 = vld [vmem:[%s13743_s13 + $0xc68] sm:$0xf] }
 0x3fd   : >> { %v14947_v37 = vrot.slane %v4403_v62, 7  ;;  %v4331_v55 = vadd.f32 %v14867_v7, %v4307_v42  ;;  %v14977_v46 = vsel %vm453_vm4, %v4728_v43, %v14943_v60  ;;  %v12393_v62 = vld [vmem:[%s13743_s13 + $0xc88] sm:$0xf0]  ;;  %v4273_v16 = vadd.f32 %v14858_v9, %v14862_v34  ;;  %v10611_v45 = vld [vmem:[%s13743_s13 + $0xc50] sm:$0xf] }
 0x3fe   : >> { %v14981_v18 = vsel %vm453_vm4, %v4736_v50, %v14950_v58  ;;  %v10636_v12 = vor.u32 %v12393_v62, %v10635_v33  ;;  %5161 = vmatpush.bf16.msrb.mxu3 %v10644_v49  ;;  %v12387_v41 = vld [vmem:[%s13743_s13 + $0xc58] sm:$0xf0]  ;;  %v4750_v43 = vshrl.u32 %v14924_v61, 16  ;;  %v4753_v57 = vshrl.u32 %v14930_v3, 16  ;;  %v12338_v62 = vld [vmem:[%s13743_s13 + $0xad0] sm:$0xf0] }
 0x3ff   : >> { %v4408_v0 = vor.u32 %v4406_v1, %v14947_v37  ;;  %v4346_v4 = vmax.f32 %v4331_v55, 0.0  ;;  %v10624_v55 = vor.u32 %v12390_v40, %v10623_v27  ;;  %v10840_v40 = vld [vmem:[%s13743_s13 + $0xab0] sm:$0xf] }
 0x400   : >> { %v4292_v28 = vpop.f32.mrf.mxu1  ;;  %5184 = vmatpush.bf16.msra.mxu2 %v10740_v38  ;;  %5200 = vmatpush.bf16.msra.mxu0 %v10636_v12  ;;  %v15011_v38 = vor.u32 %v4753_v57, %v14950_v58  ;;  %v10852_v58 = vld [vmem:[%s13743_s13 + $0xac8] sm:$0xf] }
 0x401   : >> { %v4409_v35 = vsel %vm13813_vm13, %v4401_v56, %v4408_v0  ;;  %v4361_v17 = vmul.f32 %v4346_v4, %v13580_v2  ;;  %v4293_v31 = vadd.f32 %v4292_v28, %v4270_v32  ;;  %5230 = vmatpush.bf16.msrb.mxu1 %v10648_v63  ;;  %v4419_v32 = vrot.slane %v14947_v37, 4  ;;  %v16418_v0 = vld [vmem:[#allocation31_spill] sm:$0xff] }
 0x402   : >> { %4480 = vst.msk [vmem:[#allocation2 + $0x14] sm:$0xf] %vm2366_vm11, %v4409_v35  ;;  %v10612_v56 = vor.u32 %v12387_v41, %v10611_v45  ;;  %v4493_v28 = vld [vmem:[#allocation2 + $0x8] sm:$0xf]  ;;  %v12384_v63 = vld [vmem:[%s13743_s13 + $0xc40] sm:$0xf0]  ;;  %v10853_v27 = vor.u32 %v12338_v62, %v10852_v58 }
 0x403   : >> { %v4373_v23 = vpack.c.bf16 %v4361_v17, %v4361_v17  ;;  %v4310_v42 = vadd.f32 %v4293_v31, %v3682_v52  ;;  %5075 = vmatmul.bf16.gmra.mxu3 %v14977_v46  ;;  %5098 = vmatmul.bf16.gmra.mxu2 %v14981_v18  ;;  %v4668_v35 = vunpack.c.l.b16 %v4493_v28  ;;  %v15008_v31 = vor.u32 %v4750_v43, %v14943_v60  ;;  %v10599_v60 = vld [vmem:[%s13743_s13 + $0xc38] sm:$0xf]  ;;  %v10563_v58 = vld [vmem:[%s13743_s13 + $0xbf0] sm:$0xf]  ;;  %v12375_v62 = vld [vmem:[%s13743_s13 + $0xbf8] sm:$0xf0] }
 0x404   : >> { %5144 = vmatmul.bf16.gmra.mxu1 %v14977_v46  ;;  %5201 = vmatpush.bf16.msra.mxu0 %v10624_v55  ;;  %v10600_v12 = vor.u32 %v12384_v63, %v10599_v60  ;;  %v12381_v55 = vld [vmem:[%s13743_s13 + $0xc28] sm:$0xf0]  ;;  %v12326_v60 = vld [vmem:[%s13743_s13 + $0xa70] sm:$0xf0] }
 0x405   : >> { %v4421_v1 = vshrl.u32 %v4373_v23, 16  ;;  %v4334_v13 = vadd.f32 %v14867_v7, %v4310_v42  ;;  %v4424_v39 = vshll.u32 %v4373_v23, 16  ;;  %5578 = vmatpush.bf16.msrb.mxu2 %v10853_v27  ;;  %v12323_v27 = vld [vmem:[%s13743_s13 + $0xa58] sm:$0xf0] }
 0x407   : >> { %v4423_v26 = vrot.slane %v4421_v1, 7  ;;  %v4349_v52 = vmax.f32 %v4334_v13, 0.0  ;;  %v12335_v1 = vld [vmem:[%s13743_s13 + $0xab8] sm:$0xf0] }
 0x408   : >> { %v4295_v25 = vpop.f32.mrf.mxu1  ;;  %5202 = vmatpush.bf16.msra.mxu0 %v10612_v56 }
 0x409   : >> { %v4426_v20 = vor.u32 %v4424_v39, %v4423_v26  ;;  %v4375_v11 = vpack.c.bf16 %v4349_v52, %v4349_v52  ;;  %v4296_v21 = vadd.f32 %v4295_v25, %v4273_v16  ;;  %v14998_v29 = vld [vmem:[#allocation2 + $0x14] sm:$0xf]  ;;  %v4437_v6 = vrot.slane %v4423_v26, 4  ;;  %v10587_v16 = vld [vmem:[%s13743_s13 + $0xc20] sm:$0xf] }
 0x40a   : >> { %v4671_v50 = vunpack.c.l.b16 %v14998_v29  ;;  %v4488_v26 = vld [vmem:[#allocation2 + $0x38] sm:$0x3]  ;;  %v10841_v39 = vor.u32 %v12335_v1, %v10840_v40  ;;  %v10588_v52 = vor.u32 %v12381_v55, %v10587_v16  ;;  %v12332_v25 = vld [vmem:[%s13743_s13 + $0xaa0] sm:$0xf0]  ;;  %v10755_v40 = vld [vmem:[%s13743_s13 + $0xd70] sm:$0xf] }
 0x40b   : >> { %v4427_v9 = vsel %vm13813_vm13, %v4419_v32, %v4426_v20  ;;  %v4439_v34 = vshrl.u32 %v4375_v11, 16  ;;  %v4313_v4 = vadd.f32 %v4296_v21, %v16418_v0  ;;  %v4442_v59 = vshll.u32 %v4375_v11, 16  ;;  %v10828_v32 = vld [vmem:[%s13743_s13 + $0xa98] sm:$0xf]  ;;  %v10575_v20 = vld [vmem:[%s13743_s13 + $0xc08] sm:$0xf] }
 0x40c   : >> { %4482 = vst.msk [vmem:[#allocation2 + $0x20] sm:$0xf] %vm2366_vm11, %v4427_v9  ;;  %v15016_v19 = vpack.c.b16 %v4671_v50, %v4668_v35  ;;  %5203 = vmatpush.bf16.msra.mxu0 %v10600_v12  ;;  %v12378_v11 = vld [vmem:[%s13743_s13 + $0xc10] sm:$0xf0]  ;;  %5579 = vmatpush.bf16.msrb.mxu2 %v10841_v39  ;;  %v10564_v12 = vor.u32 %v12375_v62, %v10563_v58  ;;  %v12423_v1 = vld [vmem:[%s13743_s13 + $0xd78] sm:$0xf0] }
 0x40d   : >> { %v4441_v54 = vrot.slane %v4439_v34, 7  ;;  %v4337_v37 = vadd.f32 %v14867_v7, %v4313_v4  ;;  %v10551_v16 = vld [vmem:[%s13743_s13 + $0xbd8] sm:$0xf]  ;;  %v12368_v39 = vld [vmem:[%s13743_s13 + $0xbc0] sm:$0xf0] }
 0x40e   : >> { %v4717_v13 = vshll.u32 %v15016_v19, 16  ;;  %v4715_v28 = vshrl.u32 %v15016_v19, 16 }
 0x40f   : >> { %v4444_v49 = vor.u32 %v4442_v59, %v4441_v54  ;;  %v4352_v10 = vmax.f32 %v4337_v37, 0.0  ;;  %v4455_v45 = vrot.slane %v4441_v54, 4  ;;  %v10829_v59 = vor.u32 %v12332_v25, %v10828_v32  ;;  %v12420_v32 = vld [vmem:[%s13743_s13 + $0xd60] sm:$0xf0]  ;;  %v10780_v25 = vld [vmem:[%s13743_s13 + $0xa38] sm:$0xf] }
 0x410   : >> { %v4297_v51 = vpop.f32.mrf.mxu1  ;;  %v4719_v54 = vrot.slane %v4717_v13, 1  ;;  %5204 = vmatpush.bf16.msra.mxu0 %v10588_v52  ;;  %v10576_v37 = vor.u32 %v12378_v11, %v10575_v20  ;;  %v10756_v13 = vor.u32 %v12423_v1, %v10755_v40  ;;  %v10743_v52 = vld [vmem:[%s13743_s13 + $0xd58] sm:$0xf]  ;;  %v12320_v20 = vld [vmem:[%s13743_s13 + $0xa40] sm:$0xf0] }
 0x411   : >> { %v4445_v7 = vsel %vm13813_vm13, %v4437_v6, %v4444_v49  ;;  %v4377_v17 = vpack.c.bf16 %v4352_v10, %v4352_v10  ;;  %v10816_v6 = vld [vmem:[%s13743_s13 + $0xa80] sm:$0xf]  ;;  %v12329_v49 = vld [vmem:[%s13743_s13 + $0xa88] sm:$0xf0]  ;;  %5580 = vmatpush.bf16.msrb.mxu2 %v10829_v59  ;;  %v10781_v59 = vor.u32 %v12320_v20, %v10780_v25  ;;  %v10854_v1 = vld [vmem:[%s13743_s13 + $0xad4] sm:$0xf0] }
 0x412   : >> { %4484 = vst.msk [vmem:[#allocation2 + $0x2c] sm:$0xf] %vm2366_vm11, %v4445_v7  ;;  %v4720_v10 = vor.u32 %v4719_v54, %v4715_v28  ;;  %v10817_v35 = vor.u32 %v12329_v49, %v10816_v6  ;;  %5252 = vmatpush.bf16.msra.mxu3 %v10756_v13  ;;  %v12317_v28 = vld [vmem:[%s13743_s13 + $0xa28] sm:$0xf0] }
 0x413   : >> { %v4457_v33 = vshrl.u32 %v4377_v17, 16  ;;  %5080 = vmatmul.bf16.gmra.mxu3 %v15008_v31  ;;  %5103 = vmatmul.bf16.gmra.mxu2 %v15011_v38  ;;  %v4460_v42 = vshll.u32 %v4377_v17, 16  ;;  %v10539_v56 = vld [vmem:[#allocation2 + $0x20] sm:$0xf]  ;;  %v12361_v13 = vld [vmem:[%s13743_s13 + $0xb8c] sm:$0xf] }
 0x414   : >> { %5149 = vmatmul.bf16.gmra.mxu1 %v15008_v31  ;;  %5205 = vmatpush.bf16.msra.mxu0 %v10576_v37  ;;  %v10768_v37 = vld [vmem:[%s13743_s13 + $0xa20] sm:$0xf] }
 0x415   : >> { %v4459_v23 = vrot.slane %v4457_v33, 7  ;;  %v10804_v33 = vld [vmem:[%s13743_s13 + $0xa68] sm:$0xf]  ;;  %5581 = vmatpush.bf16.msrb.mxu2 %v10817_v35  ;;  %v10769_v49 = vor.u32 %v12317_v28, %v10768_v37  ;;  %v12362_v35 = vld [vmem:[%s13743_s13 + $0xb90] sm:$0xf0] }
 0x416   : >> { %v10805_v63 = vor.u32 %v12326_v60, %v10804_v33  ;;  %v10924_v60 = vld [vmem:[%s13743_s13 + $0xb58] sm:$0xf]  ;;  %v12355_v37 = vld [vmem:[%s13743_s13 + $0xb5c] sm:$0xf]  ;;  %v10926_v28 = vld [vmem:[%s13743_s13 + $0xb64] sm:$0xf0] }
 0x417   : >> { %v4462_v41 = vor.u32 %v4460_v42, %v4459_v23  ;;  %v10792_v23 = vld [vmem:[%s13743_s13 + $0xa50] sm:$0xf] }
 0x418   : >> { %5206 = vmatpush.bf16.msra.mxu0 %v10564_v12  ;;  %v12353_v12 = vld [vmem:[%s13743_s13 + $0xb48] sm:$0xf0] }
 0x419   : >> { %v4463_v21 = vsel %vm13813_vm13, %v4455_v45, %v4462_v41  ;;  %v12315_v9 = vld [vmem:[#allocation2 + $0x28] sm:$0xf0]  ;;  %v10972_v41 = vld [vmem:[%s13743_s13 + $0xbb8] sm:$0xf]  ;;  %5582 = vmatpush.bf16.msrb.mxu2 %v10805_v63  ;;  %v12356_v63 = vld [vmem:[%s13743_s13 + $0xb60] sm:$0xf0] }
 0x41a   : >> { %v4489_v0 = vsel %vm13985_vm7, %v4463_v21, %v4488_v26  ;;  %v15038_v4 = vor.u32 %v12315_v9, %v10539_v56  ;;  %v10793_v26 = vor.u32 %v12323_v27, %v10792_v23  ;;  %v10973_v11 = vor.u32 %v12368_v39, %v10972_v41  ;;  %v10960_v56 = vld [vmem:[%s13743_s13 + $0xba0] sm:$0xf]  ;;  %v12365_v9 = vld [vmem:[%s13743_s13 + $0xba8] sm:$0xf0]  ;;  %v12339_v41 = vld [vmem:[%s13743_s13 + $0xad8] sm:$0xf0] }
 0x41b   : >> { %4490 = vst [vmem:[#allocation2 + $0x38] sm:$0x3] %v4489_v0  ;;  %v10744_v21 = vor.u32 %v12420_v32, %v10743_v52  ;;  %v10961_v34 = vor.u32 %v12365_v9, %v10960_v56  ;;  %v10925_v58 = vor.u32 %v12356_v63, %v10924_v60  ;;  %v10912_v23 = vld [vmem:[%s13743_s13 + $0xb40] sm:$0xf]  ;;  %v12337_v27 = vld [vmem:[%s13743_s13 + $0xacc] sm:$0xf] }
 0x41c   : >> { %v4722_v43 = vshll.u32 %v15038_v4, 16  ;;  %5630 = vmatpush.bf16.msra.mxu1 %v10973_v11  ;;  %v4742_v0 = vshrl.u32 %v15038_v4, 16  ;;  %v10913_v40 = vor.u32 %v12353_v12, %v10912_v23  ;;  %v10842_v52 = vld [vmem:[%s13743_s13 + $0xabc] sm:$0xf0]  ;;  %v10848_v11 = vld [vmem:[%s13743_s13 + $0xab8] sm:$0xf] }
 0x41d   : >> { %5583 = vmatpush.bf16.msrb.mxu2 %v10793_v26  ;;  %5253 = vmatpush.bf16.msra.mxu3 %v10744_v21  ;;  %v12334_v26 = vld [vmem:[%s13743_s13 + $0xab4] sm:$0xf]  ;;  %v10938_v32 = vld [vmem:[%s13743_s13 + $0xb7c] sm:$0xf0]  ;;  %v12336_v21 = vld [vmem:[%s13743_s13 + $0xac0] sm:$0xf0] }
 0x41e   : >> { %v4724_v57 = vrot.slane %v4722_v43, 1  ;;  %v10845_v25 = vor.u32 %v12334_v26, %v10842_v52  ;;  %v10900_v56 = vld [vmem:[%s13743_s13 + $0xb28] sm:$0xf]  ;;  %v10849_v9 = vor.u32 %v12336_v21, %v10848_v11  ;;  %v12328_v60 = vld [vmem:[%s13743_s13 + $0xa84] sm:$0xf] }
 0x41f   : >> { %v10818_v63 = vld [vmem:[%s13743_s13 + $0xa8c] sm:$0xf0]  ;;  %v10824_v12 = vld [vmem:[%s13743_s13 + $0xa88] sm:$0xf]  ;;  %v12344_v52 = vld [vmem:[%s13743_s13 + $0xb00] sm:$0xf0] }
 0x420   : >> { %v15045_v51 = vsel %vm453_vm4, %v4720_v10, %v4724_v57  ;;  %v4744_v43 = vor.u32 %v4742_v0, %v4724_v57  ;;  %5631 = vmatpush.bf16.msra.mxu1 %v10961_v34  ;;  %v10948_v10 = vld [vmem:[%s13743_s13 + $0xb88] sm:$0xf]  ;;  %v10936_v57 = vld [vmem:[%s13743_s13 + $0xb70] sm:$0xf]  ;;  %v12350_v34 = vld [vmem:[%s13743_s13 + $0xb30] sm:$0xf0] }
 0x421   : >> { %10757 = vmatmul.msk.bf16.vlgmr.msrb.gmra.mxu0 %vm817_vm3, %v15045_v51  ;;  %5584 = vmatpush.bf16.msrb.mxu2 %v10781_v59  ;;  %v12331_v0 = vld [vmem:[%s13743_s13 + $0xa9c] sm:$0xf]  ;;  %v10901_v59 = vor.u32 %v12350_v34, %v10900_v56  ;;  %v10914_v23 = vld [vmem:[%s13743_s13 + $0xb4c] sm:$0xf0]  ;;  %v10890_v21 = vld [vmem:[%s13743_s13 + $0xb1c] sm:$0xf0] }
 0x422   : >> { %v4579_v7 = vld [vmem:[#allocation2 + $0x38] sm:$0x3] }
 0x423   : >> { %5162 = vmatmul.bf16.vlgmr.msrb.gmra.mxu3 %v14909_v14  ;;  %10760 = vmatmul.msk.bf16.vlgmr.msra.gmra.mxu2 %vm817_vm3, %v15045_v51  ;;  %v4680_v17 = vunpack.c.l.b16 %v4579_v7  ;;  %v10949_v7 = vor.u32 %v12362_v35, %v10948_v10  ;;  %v10888_v10 = vld [vmem:[%s13743_s13 + $0xb10] sm:$0xf]  ;;  %v12347_v35 = vld [vmem:[%s13743_s13 + $0xb18] sm:$0xf0]  ;;  %v10800_v56 = vld [vmem:[%s13743_s13 + $0xa58] sm:$0xf] }
 0x424   : >> { %5231 = vmatmul.bf16.vlgmr.msrb.gmra.mxu1 %v14909_v14  ;;  %v12372_v14 = vld [vmem:[%s13743_s13 + $0xbe0] sm:$0xf0] }
 0x425   : >> { %v15058_v42 = vpack.c.b16 %v4680_v17, %v4680_v17  ;;  %v10552_v45 = vor.u32 %v12372_v14, %v10551_v16  ;;  %5585 = vmatpush.bf16.msrb.mxu2 %v10769_v49  ;;  %v12359_v17 = vld [vmem:[%s13743_s13 + $0xb78] sm:$0xf0]  ;;  %v10950_v16 = vld [vmem:[%s13743_s13 + $0xb94] sm:$0xf0]  ;;  %v10857_v14 = vor.u32 %v12337_v27, %v10854_v1  ;;  %v12333_v49 = vld [vmem:[%s13743_s13 + $0xaa8] sm:$0xf0] }
 0x426   : >> { %v10937_v33 = vor.u32 %v12359_v17, %v10936_v57  ;;  %v10929_v57 = vor.u32 %v12355_v37, %v10926_v28  ;;  %v12330_v27 = vld [vmem:[%s13743_s13 + $0xa90] sm:$0xf0]  ;;  %v12319_v37 = vld [vmem:[%s13743_s13 + $0xa3c] sm:$0xf] }
 0x427   : >> { %v4746_v55 = vshll.u32 %v15058_v42, 16  ;;  %5207 = vmatpush.bf16.msra.mxu0 %v10552_v45  ;;  %v4756_v62 = vshrl.u32 %v15058_v42, 16  ;;  %v10860_v45 = vld [vmem:[%s13743_s13 + $0xad0] sm:$0xf]  ;;  %5647 = vmatpush.bf16.msrb.mxu3 %v10857_v14  ;;  %v10825_v1 = vor.u32 %v12330_v27, %v10824_v12  ;;  %v12349_v14 = vld [vmem:[%s13743_s13 + $0xb2c] sm:$0xf] }
 0x428   : >> { %v10861_v39 = vor.u32 %v12339_v41, %v10860_v45  ;;  %v10812_v45 = vld [vmem:[%s13743_s13 + $0xa70] sm:$0xf]  ;;  %v12327_v41 = vld [vmem:[%s13743_s13 + $0xa78] sm:$0xf0]  ;;  %v10776_v12 = vld [vmem:[%s13743_s13 + $0xa28] sm:$0xf] }
 0x429   : >> { %v4748_v54 = vrot.slane %v4746_v55, 1  ;;  %v10953_v55 = vor.u32 %v12361_v13, %v10950_v16  ;;  %v12325_v13 = vld [vmem:[%s13743_s13 + $0xa6c] sm:$0xf]  ;;  %v10806_v16 = vld [vmem:[%s13743_s13 + $0xa74] sm:$0xf0]  ;;  %v10813_v26 = vor.u32 %v12327_v41, %v10812_v45 }
 0x42a   : >> { %5716 = vmatpush.bf16.msrb.mxu1 %v10861_v39  ;;  %v10876_v39 = vld [vmem:[%s13743_s13 + $0xaf8] sm:$0xf]  ;;  %v12318_v27 = vld [vmem:[%s13743_s13 + $0xa30] sm:$0xf0] }
 0x42b   : >> { %v15078_v6 = vsel %vm453_vm4, %v4744_v43, %v4748_v54  ;;  %5601 = vmatpush.bf16.msrb.mxu0 %v10949_v7  ;;  %5670 = vmatpush.bf16.msra.mxu2 %v10953_v55  ;;  %v10836_v43 = vld [vmem:[%s13743_s13 + $0xaa0] sm:$0xf]  ;;  %v10902_v55 = vld [vmem:[%s13743_s13 + $0xb34] sm:$0xf0] }
 0x42c   : >> { %5648 = vmatpush.bf16.msrb.mxu3 %v10845_v25  ;;  %v10837_v17 = vor.u32 %v12333_v49, %v10836_v43  ;;  %v10794_v25 = vld [vmem:[%s13743_s13 + $0xa5c] sm:$0xf0]  ;;  %v10782_v43 = vld [vmem:[%s13743_s13 + $0xa44] sm:$0xf0]  ;;  %v12343_v49 = vld [vmem:[%s13743_s13 + $0xafc] sm:$0xf] }
 0x42e   : >> { %5717 = vmatpush.bf16.msrb.mxu1 %v10849_v9  ;;  %v12324_v9 = vld [vmem:[%s13743_s13 + $0xa60] sm:$0xf0] }
 0x42f   : >> { %5602 = vmatpush.bf16.msrb.mxu0 %v10937_v33  ;;  %v10889_v33 = vor.u32 %v12347_v35, %v10888_v10  ;;  %v10878_v10 = vld [vmem:[%s13743_s13 + $0xb04] sm:$0xf0]  ;;  %v10788_v35 = vld [vmem:[%s13743_s13 + $0xa40] sm:$0xf] }
 0x431   : >> { %10758 = vmatmul.msk.bf16.gmra.mxu0 %vm817_vm3, %v15078_v6 }
 0x432   : >> { %5718 = vmatpush.bf16.msrb.mxu1 %v10837_v17  ;;  %v10881_v17 = vor.u32 %v12343_v49, %v10878_v10  ;;  %v12357_v49 = vld [vmem:[%s13743_s13 + $0xb68] sm:$0xf0]  ;;  %v11224_v10 = vld [vmem:[%s13743_s13 + $0xeb8] sm:$0xf] }
 0x433   : >> { %5167 = vmatmul.bf16.gmra.mxu3 %v14981_v18  ;;  %10761 = vmatmul.msk.bf16.gmra.mxu2 %vm817_vm3, %v15078_v6 }
 0x434   : >> { %5236 = vmatmul.bf16.gmra.mxu1 %v14981_v18  ;;  %5603 = vmatpush.bf16.msrb.mxu0 %v10925_v58  ;;  %v15093_v18 = vor.u32 %v4756_v62, %v4748_v54  ;;  %v10830_v54 = vld [vmem:[%s13743_s13 + $0xaa4] sm:$0xf0]  ;;  %v12352_v58 = vld [vmem:[%s13743_s13 + $0xb44] sm:$0xf]  ;;  %v10821_v62 = vor.u32 %v12328_v60, %v10818_v63  ;;  %v10770_v63 = vld [vmem:[%s13743_s13 + $0xa2c] sm:$0xf0] }
 0x435   : >> { %v10833_v7 = vor.u32 %v12331_v0, %v10830_v54  ;;  %v10801_v0 = vor.u32 %v12324_v9, %v10800_v56  ;;  %v10864_v54 = vld [vmem:[%s13743_s13 + $0xae0] sm:$0xf]  ;;  %v12316_v60 = vld [vmem:[%s13743_s13 + $0xa24] sm:$0xf]  ;;  %v11236_v56 = vld [vmem:[%s13743_s13 + $0xed0] sm:$0xf] }
 0x436   : >> { %5719 = vmatpush.bf16.msrb.mxu1 %v10825_v1  ;;  %v12367_v1 = vld [vmem:[%s13743_s13 + $0xbbc] sm:$0xf] }
 0x437   : >> { %5649 = vmatpush.bf16.msrb.mxu3 %v10833_v7  ;;  %v12321_v7 = vld [vmem:[%s13743_s13 + $0xa48] sm:$0xf0] }
 0x438   : >> { %5604 = vmatpush.bf16.msrb.mxu0 %v10913_v40  ;;  %v10917_v40 = vor.u32 %v12352_v58, %v10914_v23  ;;  %v12340_v58 = vld [vmem:[%s13743_s13 + $0xae4] sm:$0xf]  ;;  %v10866_v23 = vld [vmem:[%s13743_s13 + $0xaec] sm:$0xf0] }
 0x43a   : >> { %5720 = vmatpush.bf16.msrb.mxu1 %v10813_v26  ;;  %v10956_v26 = vld [vmem:[%s13743_s13 + $0xb90] sm:$0xf] }
 0x43b   : >> { %5650 = vmatpush.bf16.msrb.mxu3 %v10821_v62  ;;  %v10773_v62 = vor.u32 %v12316_v60, %v10770_v63  ;;  %v10920_v63 = vld [vmem:[%s13743_s13 + $0xb48] sm:$0xf] }
 0x43c   : >> { %5605 = vmatpush.bf16.msrb.mxu0 %v10901_v59  ;;  %v12341_v59 = vld [vmem:[%s13743_s13 + $0xae8] sm:$0xf0] }
 0x43d   : >> { %v10865_v28 = vor.u32 %v12341_v59, %v10864_v54  ;;  %v12364_v59 = vld [vmem:[%s13743_s13 + $0xba4] sm:$0xf] }
 0x43e   : >> { %5721 = vmatpush.bf16.msrb.mxu1 %v10801_v0 }
 0x440   : >> { %5606 = vmatpush.bf16.msrb.mxu0 %v10889_v33  ;;  %v10789_v33 = vor.u32 %v12321_v7, %v10788_v35  ;;  %v12464_v35 = vld [vmem:[%s13743_s13 + $0xec0] sm:$0xf0] }
 0x441   : >> { %10759 = vmatmul.msk.bf16.gmra.mxu0 %vm817_vm3, %v15093_v18 }
 0x442   : >> { %5722 = vmatpush.bf16.msrb.mxu1 %v10789_v33 }
 0x443   : >> { %5172 = vmatmul.bf16.gmra.mxu3 %v15011_v38  ;;  %10762 = vmatmul.msk.bf16.gmra.mxu2 %vm817_vm3, %v15093_v18 }
 0x444   : >> { %5241 = vmatmul.bf16.gmra.mxu1 %v15011_v38  ;;  %v12358_v38 = vld [vmem:[%s13743_s13 + $0xb74] sm:$0xf] }
 0x445   : >> { %v10941_v20 = vor.u32 %v12358_v38, %v10938_v32  ;;  %v10877_v38 = vor.u32 %v12344_v52, %v10876_v39  ;;  %v12322_v32 = vld [vmem:[%s13743_s13 + $0xa54] sm:$0xf]  ;;  %v12363_v39 = vld [vmem:[%s13743_s13 + $0xb98] sm:$0xf0]  ;;  %v11248_v52 = vld [vmem:[%s13743_s13 + $0xee8] sm:$0xf] }
 0x446   : >> { %v10797_v11 = vor.u32 %v12322_v32, %v10794_v25 }
 0x447   : >> { %5671 = vmatpush.bf16.msra.mxu2 %v10941_v20  ;;  %v12346_v20 = vld [vmem:[%s13743_s13 + $0xb14] sm:$0xf]  ;;  %5607 = vmatpush.bf16.msrb.mxu0 %v10877_v38 }
 0x448   : >> { %v10893_v34 = vor.u32 %v12346_v20, %v10890_v21  ;;  %v12470_v38 = vld [vmem:[%s13743_s13 + $0xef0] sm:$0xf0]  ;;  %v12360_v21 = vld [vmem:[%s13743_s13 + $0xb80] sm:$0xf0] }
 0x449   : >> { %v11249_v32 = vor.u32 %v12470_v38, %v11248_v52  ;;  %v10896_v52 = vld [vmem:[%s13743_s13 + $0xb18] sm:$0xf]  ;;  %v11188_v38 = vld [vmem:[%s13743_s13 + $0xe70] sm:$0xf] }
 0x44b   : >> { %5672 = vmatpush.bf16.msra.mxu2 %v10929_v57  ;;  %5608 = vmatpush.bf16.msrb.mxu0 %v10865_v28  ;;  %v10785_v57 = vor.u32 %v12319_v37, %v10782_v43  ;;  %v10962_v37 = vld [vmem:[%s13743_s13 + $0xbac] sm:$0xf0]  ;;  %v10932_v28 = vld [vmem:[%s13743_s13 + $0xb60] sm:$0xf] }
 0x44c   : >> { %v10965_v43 = vor.u32 %v12364_v59, %v10962_v37  ;;  %v10933_v7 = vor.u32 %v12357_v49, %v10932_v28  ;;  %v12452_v59 = vld [vmem:[%s13743_s13 + $0xe60] sm:$0xf0] }
 0x44f   : >> { %5673 = vmatpush.bf16.msra.mxu2 %v10917_v40  ;;  %v10869_v40 = vor.u32 %v12340_v58, %v10866_v23  ;;  %v12354_v58 = vld [vmem:[%s13743_s13 + $0xb50] sm:$0xf0] }
 0x450   : >> { %v10921_v23 = vor.u32 %v12354_v58, %v10920_v63  ;;  %v11164_v63 = vld [vmem:[%s13743_s13 + $0xe40] sm:$0xf]  ;;  %v12449_v58 = vld [vmem:[%s13743_s13 + $0xe48] sm:$0xf0] }
 0x451   : >> { %5208 = vmatmul.bf16.vlgmr.msra.gmra.mxu0 %v14905_v22  ;;  %v10809_v22 = vor.u32 %v12325_v13, %v10806_v16  ;;  %v10974_v13 = vld [vmem:[%s13743_s13 + $0xbc4] sm:$0xf0]  ;;  %v10777_v16 = vor.u32 %v12318_v27, %v10776_v12  ;;  %v12461_v12 = vld [vmem:[%s13743_s13 + $0xea8] sm:$0xf0] }
 0x453   : >> { %10763 = vmatmul.msk.bf16.vlgmr.msra.gmra.mxu3 %vm817_vm3, %v15045_v51  ;;  %5586 = vmatmul.bf16.vlgmr.msrb.gmra.mxu2 %v14829_v47  ;;  %v10905_v51 = vor.u32 %v12349_v14, %v10902_v55  ;;  %v10977_v14 = vor.u32 %v12367_v1, %v10974_v13  ;;  %v10908_v1 = vld [vmem:[%s13743_s13 + $0xb30] sm:$0xf]  ;;  %v12351_v13 = vld [vmem:[%s13743_s13 + $0xb38] sm:$0xf0] }
 0x454   : >> { %10982 = vmatmul.msk.bf16.vlgmr.msra.gmra.mxu1 %vm817_vm3, %v15016_v19  ;;  %5651 = vmatpush.bf16.msrb.mxu3 %v10809_v22  ;;  %v4501_v22 = vld [vmem:[#allocation2 + $0x38] sm:$0x1] }
 0x455   : >> { %5674 = vmatpush.bf16.msra.mxu2 %v10905_v51  ;;  %5699 = vmatpush.bf16.msra.mxu0 %v10977_v14  ;;  %v5273_v45 = vunpack.c.l.b16 %v4501_v22  ;;  %v10909_v14 = vor.u32 %v12351_v13, %v10908_v1  ;;  %v12458_v22 = vld [vmem:[%s13743_s13 + $0xe90] sm:$0xf0] }
 0x456   : >> { %5723 = vmatpush.bf16.msrb.mxu1 %v10777_v16  ;;  %v11200_v16 = vld [vmem:[%s13743_s13 + $0xe88] sm:$0xf]  ;;  %v12446_v1 = vld [vmem:[%s13743_s13 + $0xe30] sm:$0xf0] }
 0x457   : >> { %v15181_v51 = vpack.c.b16 %v5273_v45, %v5273_v45 }
 0x458   : >> { %5652 = vmatpush.bf16.msrb.mxu3 %v10797_v11  ;;  %v10944_v11 = vld [vmem:[%s13743_s13 + $0xb78] sm:$0xf] }
 0x459   : >> { %5675 = vmatpush.bf16.msra.mxu2 %v10893_v34  ;;  %v10945_v9 = vor.u32 %v12360_v21, %v10944_v11  ;;  %v12467_v34 = vld [vmem:[%s13743_s13 + $0xed8] sm:$0xf0]  ;;  %5700 = vmatpush.bf16.msra.mxu0 %v10965_v43  ;;  %v10980_v11 = vld [vmem:[%s13743_s13 + $0xbc0] sm:$0xf]  ;;  %v12369_v21 = vld [vmem:[%s13743_s13 + $0xbc8] sm:$0xf0] }
 0x45a   : >> { %6212 = vmatpush.bf16.msra.mxu1 %v11249_v32  ;;  %v11237_v54 = vor.u32 %v12467_v34, %v11236_v56  ;;  %v10884_v56 = vld [vmem:[%s13743_s13 + $0xb00] sm:$0xf]  ;;  %v12345_v34 = vld [vmem:[%s13743_s13 + $0xb08] sm:$0xf0] }
 0x45b   : >> { %v10885_v37 = vor.u32 %v12345_v34, %v10884_v56 }
 0x45c   : >> { %5653 = vmatpush.bf16.msrb.mxu3 %v10785_v57  ;;  %v11225_v57 = vor.u32 %v12464_v35, %v11224_v10  ;;  %v10872_v35 = vld [vmem:[%s13743_s13 + $0xae8] sm:$0xf] }
 0x45d   : >> { %5676 = vmatpush.bf16.msra.mxu2 %v10881_v17 }
 0x45e   : >> { %6213 = vmatpush.bf16.msra.mxu1 %v11237_v54  ;;  %v11176_v54 = vld [vmem:[%s13743_s13 + $0xe58] sm:$0xf] }
 0x45f   : >> { %v11177_v28 = vor.u32 %v12452_v59, %v11176_v54  ;;  %v12437_v54 = vld [vmem:[%s13743_s13 + $0xde8] sm:$0xf0] }
 0x460   : >> { %5654 = vmatpush.bf16.msrb.mxu3 %v10773_v62  ;;  %v11212_v62 = vld [vmem:[%s13743_s13 + $0xea0] sm:$0xf] }
 0x461   : >> { %5213 = vmatmul.bf16.gmra.mxu0 %v14977_v46  ;;  %5677 = vmatpush.bf16.msra.mxu2 %v10869_v40  ;;  %v15173_v46 = vld [vmem:[#allocation2 + $0x30] sm:$0x11]  ;;  %v11213_v40 = vor.u32 %v12461_v12, %v11212_v62  ;;  %v11165_v12 = vor.u32 %v12449_v58, %v11164_v63 }
 0x462   : >> { %v5271_v55 = vunpack.c.l.b16 %v15173_v46  ;;  %6214 = vmatpush.bf16.msra.mxu1 %v11225_v57  ;;  %v10968_v57 = vld [vmem:[%s13743_s13 + $0xba8] sm:$0xf]  ;;  %v12442_v58 = vld [vmem:[%s13743_s13 + $0xe14] sm:$0xf] }
 0x463   : >> { %10764 = vmatmul.msk.bf16.gmra.mxu3 %vm817_vm3, %v15078_v6  ;;  %5591 = vmatmul.bf16.gmra.mxu2 %v14880_v48 }
 0x464   : >> { %10983 = vmatmul.msk.bf16.gmra.mxu1 %vm817_vm3, %v15038_v4  ;;  %v15179_v41 = vpack.c.b16 %v5271_v55, %v5271_v55  ;;  %v11201_v55 = vor.u32 %v12458_v22, %v11200_v16 }
 0x466   : >> { %6215 = vmatpush.bf16.msra.mxu1 %v11213_v40  ;;  %v11152_v40 = vld [vmem:[%s13743_s13 + $0xe28] sm:$0xf] }
 0x467   : >> { %v11153_v13 = vor.u32 %v12446_v1, %v11152_v40  ;;  %v12434_v1 = vld [vmem:[%s13743_s13 + $0xdd0] sm:$0xf0] }
 0x46a   : >> { %6216 = vmatpush.bf16.msra.mxu1 %v11201_v55 }
 0x471   : >> { %v15176_v6 = vpop.f32.mrf.mxu1  ;;  %5218 = vmatmul.bf16.gmra.mxu0 %v15008_v31  ;;  %v10957_v31 = vor.u32 %v12363_v39, %v10956_v26 }
 0x473   : >> { %10765 = vmatmul.msk.bf16.gmra.mxu3 %vm817_vm3, %v15093_v18  ;;  %5596 = vmatmul.bf16.gmra.mxu2 %v15179_v41 }
 0x474   : >> { %10984 = vmatmul.msk.bf16.gmra.mxu1 %vm817_vm3, %v15181_v51  ;;  %5739 = vmatpush.bf16.msra.mxu3 %v10957_v31  ;;  %v12348_v31 = vld [vmem:[%s13743_s13 + $0xb20] sm:$0xf0] }
 0x475   : >> { %v10897_v32 = vor.u32 %v12348_v31, %v10896_v52  ;;  %v11128_v52 = vld [vmem:[%s13743_s13 + $0xdf8] sm:$0xf] }
 0x476   : >> { %v5071_v25 = vpop.f32.mrf.mxu3  ;;  %v5094_v20 = vpop.f32.mrf.mxu2 }
 0x477   : >> { %v15192_v18 = vadd.f32 %v5094_v20, %v5071_v25 }
 0x478   : >> { %5740 = vmatpush.bf16.msra.mxu3 %v10945_v9  ;;  %v10981_v9 = vor.u32 %v12369_v21, %v10980_v11 }
 0x479   : >> { %v15198_v0 = vpop.f32.mrf.mxu1 }
 0x47a   : >> { %5768 = vmatpush.bf16.msrb.mxu2 %v10981_v9 }
 0x47c   : >> { %5741 = vmatpush.bf16.msra.mxu3 %v10933_v7  ;;  %v12342_v7 = vld [vmem:[%s13743_s13 + $0xaf0] sm:$0xf0] }
 0x47e   : >> { %v5073_v17 = vpop.f32.mrf.mxu3  ;;  %v5096_v33 = vpop.f32.mrf.mxu2 }
 0x47f   : >> { %v15206_v60 = vadd.f32 %v5096_v33, %v5073_v17  ;;  %v10873_v17 = vor.u32 %v12342_v7, %v10872_v35  ;;  %v12366_v33 = vld [vmem:[%s13743_s13 + $0xbb0] sm:$0xf0]  ;;  %v15274_v35 = vld [vmem:[#allocation2] sm:$0xee] }
 0x480   : >> { %5742 = vmatpush.bf16.msra.mxu3 %v10921_v23  ;;  %v10969_v23 = vor.u32 %v12366_v33, %v10968_v57  ;;  %v5866_v63 = vunpack.c.h.b16 %v15274_v35 }
 0x481   : >> { %v15212_v27 = vpop.f32.mrf.mxu1  ;;  %5609 = vmatmul.bf16.vlgmr.msrb.gmra.mxu0 %v14833_v44 }
 0x482   : >> { %5769 = vmatpush.bf16.msrb.mxu2 %v10969_v23  ;;  %6189 = vmatpush.bf16.msrb.mxu0 %v11153_v13  ;;  %v11142_v23 = vld [vmem:[%s13743_s13 + $0xe1c] sm:$0xf0]  ;;  %v12439_v13 = vld [vmem:[%s13743_s13 + $0xdfc] sm:$0xf] }
 0x483   : >> { %5655 = vmatmul.bf16.vlgmr.msrb.gmra.mxu3 %v14829_v47  ;;  %5678 = vmatmul.bf16.vlgmr.msra.gmra.mxu2 %v14833_v44  ;;  %v11145_v40 = vor.u32 %v12442_v58, %v11142_v23 }
 0x484   : >> { %5724 = vmatmul.bf16.vlgmr.msrb.gmra.mxu1 %v14829_v47  ;;  %5743 = vmatpush.bf16.msra.mxu3 %v10909_v14  ;;  %v12455_v47 = vld [vmem:[%s13743_s13 + $0xe78] sm:$0xf0] }
 0x485   : >> { %v11189_v20 = vor.u32 %v12455_v47, %v11188_v38  ;;  %v12440_v38 = vld [vmem:[%s13743_s13 + $0xe00] sm:$0xf0] }
 0x486   : >> { %v5076_v45 = vpop.f32.mrf.mxu3  ;;  %v5099_v26 = vpop.f32.mrf.mxu2  ;;  %v11129_v47 = vor.u32 %v12440_v38, %v11128_v52 }
 0x487   : >> { %v15222_v39 = vadd.f32 %v5099_v26, %v5076_v45  ;;  %6217 = vmatpush.bf16.msra.mxu1 %v11189_v20  ;;  %v11140_v45 = vld [vmem:[%s13743_s13 + $0xe10] sm:$0xf]  ;;  %v12443_v26 = vld [vmem:[%s13743_s13 + $0xe18] sm:$0xf0] }
 0x488   : >> { %5744 = vmatpush.bf16.msra.mxu3 %v10897_v32  ;;  %v11141_v31 = vor.u32 %v12443_v26, %v11140_v45  ;;  %v5272_v32 = vunpack.c.h.b16 %v15173_v46  ;;  %v11116_v46 = vld [vmem:[%s13743_s13 + $0xde0] sm:$0xf] }
 0x489   : >> { %v15228_v25 = vpop.f32.mrf.mxu1  ;;  %v11117_v59 = vor.u32 %v12437_v54, %v11116_v46  ;;  %v11118_v46 = vld [vmem:[%s13743_s13 + $0xdec] sm:$0xf0] }
 0x48a   : >> { %6190 = vmatpush.bf16.msrb.mxu0 %v11141_v31  ;;  %v15259_v56 = vpack.c.b16 %v5272_v32, %v5272_v32  ;;  %v5875_v31 = vrot.slane %v14882_v36, 1  ;;  %v11092_v32 = vld [vmem:[%s13743_s13 + $0xdb0] sm:$0xf] }
 0x48b   : >> { %6218 = vmatpush.bf16.msra.mxu1 %v11177_v28 }
 0x48c   : >> { %5745 = vmatpush.bf16.msra.mxu3 %v10885_v37  ;;  %v12445_v37 = vld [vmem:[%s13743_s13 + $0xe2c] sm:$0xf] }
 0x48e   : >> { %v5078_v43 = vpop.f32.mrf.mxu3  ;;  %v5101_v49 = vpop.f32.mrf.mxu2  ;;  %6191 = vmatpush.bf16.msrb.mxu0 %v11129_v47  ;;  %v12431_v47 = vld [vmem:[%s13743_s13 + $0xdb8] sm:$0xf0] }
 0x48f   : >> { %v15236_v10 = vadd.f32 %v5101_v49, %v5078_v43  ;;  %6219 = vmatpush.bf16.msra.mxu1 %v11165_v12  ;;  %v11104_v12 = vld [vmem:[%s13743_s13 + $0xdc8] sm:$0xf] }
 0x490   : >> { %5746 = vmatpush.bf16.msra.mxu3 %v10873_v17 }
 0x491   : >> { %v15244_v62 = vpop.f32.mrf.mxu1  ;;  %5614 = vmatmul.bf16.gmra.mxu0 %v14882_v36 }
 0x492   : >> { %6192 = vmatpush.bf16.msrb.mxu0 %v11117_v59  ;;  %v12433_v59 = vld [vmem:[%s13743_s13 + $0xdcc] sm:$0xf] }
 0x493   : >> { %5660 = vmatmul.bf16.gmra.mxu3 %v14880_v48  ;;  %5683 = vmatmul.bf16.gmra.mxu2 %v14882_v36 }
 0x494   : >> { %5729 = vmatmul.bf16.gmra.mxu1 %v14880_v48 }
 0x496   : >> { %v5081_v16 = vpop.f32.mrf.mxu3  ;;  %v5104_v14 = vpop.f32.mrf.mxu2 }
 0x497   : >> { %v15252_v22 = vadd.f32 %v5104_v14, %v5081_v16  ;;  %v11130_v16 = vld [vmem:[%s13743_s13 + $0xe04] sm:$0xf0] }
 0x498   : >> { %v11133_v14 = vor.u32 %v12439_v13, %v11130_v16  ;;  %v12476_v16 = vld [vmem:[%s13743_s13 + $0xf20] sm:$0xf0] }
 0x499   : >> { %v5152_v55 = vpop.f32.mrf.mxu1 }
 0x49e   : >> { %v5083_v20 = vpop.f32.mrf.mxu3  ;;  %v5106_v11 = vpop.f32.mrf.mxu2 }
 0x49f   : >> { %v5117_v21 = vpop.f32.mrf.mxu0  ;;  %v11093_v11 = vor.u32 %v12431_v47, %v11092_v32 }
 0x4a0   : >> { %v15262_v9 = vadd.f32 %v5117_v21, %v15192_v18  ;;  %v11154_v18 = vld [vmem:[%s13743_s13 + $0xe34] sm:$0xf0]  ;;  %v12436_v21 = vld [vmem:[%s13743_s13 + $0xde4] sm:$0xf] }
 0x4a1   : >> { %v15264_v34 = vpop.f32.mrf.mxu1  ;;  %5619 = vmatmul.bf16.gmra.mxu0 %v15259_v56  ;;  %v11157_v28 = vor.u32 %v12445_v37, %v11154_v18  ;;  %v11106_v37 = vld [vmem:[%s13743_s13 + $0xdd4] sm:$0xf0] }
 0x4a2   : >> { %v11080_v18 = vld [vmem:[%s13743_s13 + $0xd98] sm:$0xf] }
 0x4a3   : >> { %5665 = vmatmul.bf16.gmra.mxu3 %v15179_v41  ;;  %5688 = vmatmul.bf16.gmra.mxu2 %v15259_v56 }
 0x4a4   : >> { %5734 = vmatmul.bf16.gmra.mxu1 %v15179_v41  ;;  %6258 = vmatpush.bf16.msra.mxu2 %v11157_v28  ;;  %v11109_v28 = vor.u32 %v12433_v59, %v11106_v37 }
 0x4a6   : >> { %v5163_v43 = vpop.f32.mrf.mxu3  ;;  %v5186_v49 = vpop.f32.mrf.mxu2 }
 0x4a7   : >> { %v5119_v7 = vpop.f32.mrf.mxu0  ;;  %v5164_v57 = vadd.f32 %v5163_v43, %v15176_v6  ;;  %v11105_v6 = vor.u32 %v12434_v1, %v11104_v12  ;;  %v12430_v12 = vld [vmem:[%s13743_s13 + $0xdb4] sm:$0xf]  ;;  %v11272_v1 = vld [vmem:[%s13743_s13 + $0xf18] sm:$0xf] }
 0x4a8   : >> { %v15278_v41 = vadd.f32 %v5119_v7, %v15206_v60  ;;  %6259 = vmatpush.bf16.msra.mxu2 %v11145_v40  ;;  %v5869_v60 = vpack.c.b16 %v4670_v8, %v5866_v63  ;;  %v11094_v40 = vld [vmem:[%s13743_s13 + $0xdbc] sm:$0xf0] }
 0x4a9   : >> { %v15280_v17 = vadd.f32 %v5186_v49, %v5164_v57  ;;  %v15282_v33 = vpop.f32.mrf.mxu1  ;;  %6193 = vmatpush.bf16.msrb.mxu0 %v11105_v6  ;;  %v11097_v13 = vor.u32 %v12430_v12, %v11094_v40  ;;  %v11068_v6 = vld [vmem:[%s13743_s13 + $0xd80] sm:$0xf]  ;;  %v11250_v12 = vld [vmem:[%s13743_s13 + $0xef4] sm:$0xf0] }
 0x4ac   : >> { %6260 = vmatpush.bf16.msra.mxu2 %v11133_v14  ;;  %v12425_v14 = vld [vmem:[%s13743_s13 + $0xd88] sm:$0xf0] }
 0x4ad   : >> { %6194 = vmatpush.bf16.msrb.mxu0 %v11093_v11 }
 0x4ae   : >> { %v5165_v55 = vpop.f32.mrf.mxu3  ;;  %v5188_v45 = vpop.f32.mrf.mxu2 }
 0x4af   : >> { %v5122_v26 = vpop.f32.mrf.mxu0  ;;  %v5166_v52 = vadd.f32 %v5165_v55, %v15198_v0  ;;  %v5874_v0 = vrot.slane %v5869_v60, 1  ;;  %v11069_v60 = vor.u32 %v12425_v14, %v11068_v6  ;;  %v12427_v55 = vld [vmem:[%s13743_s13 + $0xd9c] sm:$0xf]  ;;  %v11238_v6 = vld [vmem:[%s13743_s13 + $0xedc] sm:$0xf0] }
 0x4b0   : >> { %v15296_v38 = vadd.f32 %v5122_v26, %v15222_v39  ;;  %v11121_v39 = vor.u32 %v12436_v21, %v11118_v46  ;;  %v11274_v26 = vld [vmem:[%s13743_s13 + $0xf24] sm:$0xf0]  ;;  %v15341_v46 = vrot.slane %v14930_v3, 1  ;;  %v11070_v3 = vld [vmem:[%s13743_s13 + $0xd8c] sm:$0xf0] }
 0x4b1   : >> { %v15300_v8 = vadd.f32 %v5188_v45, %v5166_v52  ;;  %v15302_v20 = vpop.f32.mrf.mxu1  ;;  %10985 = vmatmul.msk.bf16.vlgmr.msra.gmra.mxu0 %vm817_vm3, %v15016_v19  ;;  %v15314_v54 = vsel %vm1633_vm5, %v5874_v0, %v5875_v31  ;;  %v12475_v45 = vld [vmem:[%s13743_s13 + $0xf1c] sm:$0xf] }
 0x4b2   : >> { %6261 = vmatpush.bf16.msra.mxu2 %v11121_v39  ;;  %v11277_v32 = vor.u32 %v12475_v45, %v11274_v26 }
 0x4b3   : >> { %5747 = vmatmul.bf16.vlgmr.msra.gmra.mxu3 %v14833_v44  ;;  %10988 = vmatmul.msk.bf16.vlgmr.msrb.gmra.mxu2 %vm817_vm3, %v15016_v19  ;;  %v12428_v44 = vld [vmem:[%s13743_s13 + $0xda0] sm:$0xf0] }
 0x4b4   : >> { %6220 = vmatmul.bf16.vlgmr.msra.gmra.mxu1 %v15314_v54  ;;  %v11081_v49 = vor.u32 %v12428_v44, %v11080_v18  ;;  %v11260_v18 = vld [vmem:[%s13743_s13 + $0xf00] sm:$0xf] }
 0x4b5   : >> { %6310 = vmatpush.bf16.msrb.mxu1 %v11277_v32 }
 0x4b6   : >> { %v5168_v19 = vpop.f32.mrf.mxu3  ;;  %v5191_v43 = vpop.f32.mrf.mxu2  ;;  %6195 = vmatpush.bf16.msrb.mxu0 %v11081_v49  ;;  %6262 = vmatpush.bf16.msra.mxu2 %v11109_v28  ;;  %v12473_v28 = vld [vmem:[%s13743_s13 + $0xf08] sm:$0xf0] }
 0x4b7   : >> { %v5124_v7 = vpop.f32.mrf.mxu0  ;;  %v5169_v57 = vadd.f32 %v5168_v19, %v15212_v27  ;;  %v11273_v27 = vor.u32 %v12476_v16, %v11272_v1  ;;  %v11261_v44 = vor.u32 %v12473_v28, %v11260_v18  ;;  %v12472_v19 = vld [vmem:[%s13743_s13 + $0xf04] sm:$0xf]  ;;  %v12466_v16 = vld [vmem:[%s13743_s13 + $0xed4] sm:$0xf]  ;;  %v11160_v18 = vld [vmem:[%s13743_s13 + $0xe30] sm:$0xf] }
 0x4b8   : >> { %v15323_v63 = vadd.f32 %v5124_v7, %v15236_v10  ;;  %v11082_v10 = vld [vmem:[%s13743_s13 + $0xda4] sm:$0xf0]  ;;  %v12447_v28 = vld [vmem:[%s13743_s13 + $0xe38] sm:$0xf0] }
 0x4b9   : >> { %v15325_v58 = vadd.f32 %v5191_v43, %v5169_v57  ;;  %v15327_v23 = vpop.f32.mrf.mxu1  ;;  %6241 = vmatpush.bf16.msrb.mxu3 %v11273_v27  ;;  %v11085_v52 = vor.u32 %v12427_v55, %v11082_v10  ;;  %v11262_v43 = vld [vmem:[%s13743_s13 + $0xf0c] sm:$0xf0]  ;;  %v12469_v57 = vld [vmem:[%s13743_s13 + $0xeec] sm:$0xf]  ;;  %v12463_v55 = vld [vmem:[%s13743_s13 + $0xebc] sm:$0xf] }
 0x4ba   : >> { %6263 = vmatpush.bf16.msra.mxu2 %v11097_v13  ;;  %6196 = vmatpush.bf16.msrb.mxu0 %v11069_v60  ;;  %v11265_v7 = vor.u32 %v12472_v19, %v11262_v43  ;;  %v11253_v40 = vor.u32 %v12469_v57, %v11250_v12  ;;  %v11241_v60 = vor.u32 %v12466_v16, %v11238_v6  ;;  %v11226_v10 = vld [vmem:[%s13743_s13 + $0xec4] sm:$0xf0]  ;;  %v12468_v16 = vld [vmem:[%s13743_s13 + $0xee0] sm:$0xf0]  ;;  %v12457_v6 = vld [vmem:[%s13743_s13 + $0xe8c] sm:$0xf] }
 0x4bb   : >> { %v11229_v45 = vor.u32 %v12463_v55, %v11226_v10  ;;  %v5786_v57 = vld [vmem:[#allocation2 + $0x8] sm:$0xe]  ;;  %v11136_v10 = vld [vmem:[%s13743_s13 + $0xe00] sm:$0xf] }
 0x4bc   : >> { %6311 = vmatpush.bf16.msrb.mxu1 %v11265_v7 }
 0x4bd   : >> { %6242 = vmatpush.bf16.msrb.mxu3 %v11261_v44  ;;  %v12471_v44 = vld [vmem:[%s13743_s13 + $0xef8] sm:$0xf0] }
 0x4be   : >> { %v5170_v47 = vpop.f32.mrf.mxu3  ;;  %v5193_v0 = vpop.f32.mrf.mxu2  ;;  %6264 = vmatpush.bf16.msra.mxu2 %v11085_v52  ;;  %6281 = vmatpush.bf16.msra.mxu0 %v11253_v40  ;;  %v11148_v40 = vld [vmem:[%s13743_s13 + $0xe18] sm:$0xf] }
 0x4bf   : >> { %v5127_v11 = vpop.f32.mrf.mxu0  ;;  %v5171_v21 = vadd.f32 %v5170_v47, %v15228_v25  ;;  %v12424_v25 = vld [vmem:[%s13743_s13 + $0xd84] sm:$0xf] }
 0x4c0   : >> { %v15344_v39 = vadd.f32 %v5127_v11, %v15252_v22  ;;  %v15365_v22 = vsel %vm1633_vm5, %v5875_v31, %v15341_v46  ;;  %v11073_v49 = vor.u32 %v12424_v25, %v11070_v3  ;;  %v11214_v11 = vld [vmem:[%s13743_s13 + $0xeac] sm:$0xf0] }
 0x4c1   : >> { %v15346_v59 = vadd.f32 %v5193_v0, %v5171_v21  ;;  %v15348_v37 = vpop.f32.mrf.mxu1  ;;  %10986 = vmatmul.msk.bf16.gmra.mxu0 %vm817_vm3, %v15038_v4  ;;  %v12460_v0 = vld [vmem:[%s13743_s13 + $0xea4] sm:$0xf]  ;;  %v11256_v25 = vld [vmem:[%s13743_s13 + $0xef0] sm:$0xf] }
 0x4c2   : >> { %6265 = vmatpush.bf16.msra.mxu2 %v11073_v49  ;;  %6282 = vmatpush.bf16.msra.mxu0 %v11241_v60  ;;  %v11217_v21 = vor.u32 %v12460_v0, %v11214_v11 }
 0x4c3   : >> { %5752 = vmatmul.bf16.gmra.mxu3 %v14882_v36  ;;  %10989 = vmatmul.msk.bf16.gmra.mxu2 %vm817_vm3, %v15038_v4 }
 0x4c4   : >> { %6225 = vmatmul.bf16.gmra.mxu1 %v15365_v22 }
 0x4c6   : >> { %v5173_v1 = vpop.f32.mrf.mxu3  ;;  %v5196_v13 = vpop.f32.mrf.mxu2  ;;  %6283 = vmatpush.bf16.msra.mxu0 %v11229_v45  ;;  %v11232_v45 = vld [vmem:[%s13743_s13 + $0xec0] sm:$0xf] }
 0x4c7   : >> { %v5129_v36 = vpop.f32.mrf.mxu0  ;;  %v5174_v31 = vadd.f32 %v5173_v1, %v15244_v62  ;;  %v12444_v1 = vld [vmem:[%s13743_s13 + $0xe20] sm:$0xf0] }
 0x4c9   : >> { %v15373_v14 = vadd.f32 %v5196_v13, %v5174_v31  ;;  %v5244_v27 = vpop.f32.mrf.mxu1  ;;  %v11244_v13 = vld [vmem:[%s13743_s13 + $0xed8] sm:$0xf]  ;;  %v5867_v31 = vunpack.c.l.b16 %v5786_v57  ;;  %v12462_v57 = vld [vmem:[%s13743_s13 + $0xeb0] sm:$0xf0] }
 0x4ca   : >> { %6284 = vmatpush.bf16.msra.mxu0 %v11217_v21  ;;  %v11202_v27 = vld [vmem:[%s13743_s13 + $0xe94] sm:$0xf0]  ;;  %v11245_v60 = vor.u32 %v12468_v16, %v11244_v13  ;;  %v5878_v21 = vrot.slane %v15038_v4, 1  ;;  %v12435_v13 = vld [vmem:[%s13743_s13 + $0xdd8] sm:$0xf0] }
 0x4cb   : >> { %v11205_v55 = vor.u32 %v12457_v6, %v11202_v27  ;;  %v11178_v16 = vld [vmem:[%s13743_s13 + $0xe64] sm:$0xf0] }
 0x4ce   : >> { %v5175_v26 = vpop.f32.mrf.mxu3  ;;  %v5198_v52 = vpop.f32.mrf.mxu2  ;;  %6285 = vmatpush.bf16.msra.mxu0 %v11205_v55 }
 0x4cf   : >> { %v5209_v32 = vpop.f32.mrf.mxu0  ;;  %v5872_v26 = vrot.slane %v14880_v48, 1  ;;  %v5870_v52 = vpack.c.b16 %v4671_v50, %v5867_v31  ;;  %v12459_v31 = vld [vmem:[%s13743_s13 + $0xe98] sm:$0xf0] }
 0x4d0   : >> { %v5233_v62 = vadd.f32 %v15264_v34, %v5209_v32  ;;  %v11161_v34 = vor.u32 %v12447_v28, %v11160_v18 }
 0x4d1   : >> { %v15378_v47 = vpop.f32.mrf.mxu1  ;;  %10987 = vmatmul.msk.bf16.gmra.mxu0 %vm817_vm3, %v15181_v51 }
 0x4d2   : >> { %6327 = vmatpush.bf16.msra.mxu3 %v11161_v34  ;;  %v5877_v34 = vrot.slane %v5870_v52, 1 }
 0x4d3   : >> { %5757 = vmatmul.bf16.gmra.mxu3 %v15259_v56  ;;  %10990 = vmatmul.msk.bf16.gmra.mxu2 %vm817_vm3, %v15181_v51  ;;  %v5865_v56 = vunpack.c.l.b16 %v15274_v35  ;;  %v11257_v51 = vor.u32 %v12471_v44, %v11256_v25 }
 0x4d4   : >> { %6230 = vmatmul.bf16.gmra.mxu1 %v15341_v46 }
 0x4d5   : >> { %6350 = vmatpush.bf16.msrb.mxu2 %v11257_v51  ;;  %v5868_v36 = vpack.c.b16 %v4669_v30, %v5865_v56  ;;  %v11233_v30 = vor.u32 %v12465_v53, %v11232_v45  ;;  %v12438_v51 = vld [vmem:[%s13743_s13 + $0xdf0] sm:$0xf0] }
 0x4d6   : >> { %v5255_v3 = vpop.f32.mrf.mxu3  ;;  %v5587_v19 = vpop.f32.mrf.mxu2 }
 0x4d7   : >> { %v5211_v43 = vpop.f32.mrf.mxu0  ;;  %v15393_v49 = vadd.f32 %v5255_v3, %v5233_v62  ;;  %v15396_v7 = vadd.f32 %v5587_v19, %v15262_v9  ;;  %v11149_v9 = vor.u32 %v12444_v1, %v11148_v40  ;;  %v5871_v11 = vrot.slane %v5868_v36, 1  ;;  %v11190_v3 = vld [vmem:[%s13743_s13 + $0xe7c] sm:$0xf0]  ;;  %v11124_v19 = vld [vmem:[%s13743_s13 + $0xde8] sm:$0xf] }
 0x4d8   : >> { %v5235_v12 = vadd.f32 %v15282_v33, %v5211_v43  ;;  %v12441_v33 = vld [vmem:[%s13743_s13 + $0xe08] sm:$0xf0]  ;;  %v11220_v43 = vld [vmem:[%s13743_s13 + $0xea8] sm:$0xf]  ;;  %v11112_v1 = vld [vmem:[%s13743_s13 + $0xdd0] sm:$0xf] }
 0x4d9   : >> { %v15399_v35 = vpop.f32.mrf.mxu1  ;;  %6328 = vmatpush.bf16.msra.mxu3 %v11149_v9  ;;  %v11137_v32 = vor.u32 %v12441_v33, %v11136_v10  ;;  %6351 = vmatpush.bf16.msrb.mxu2 %v11245_v60  ;;  %v15426_v25 = vsel %vm1633_vm5, %v5871_v11, %v5872_v26  ;;  %v11221_v40 = vor.u32 %v12462_v57, %v11220_v43  ;;  %v11208_v36 = vld [vmem:[%s13743_s13 + $0xe90] sm:$0xf]  ;;  %v12451_v9 = vld [vmem:[%s13743_s13 + $0xe5c] sm:$0xf]  ;;  %v11196_v11 = vld [vmem:[%s13743_s13 + $0xe78] sm:$0xf] }
 0x4da   : >> { %v11113_v60 = vor.u32 %v12435_v13, %v11112_v1  ;;  %v11209_v55 = vor.u32 %v12459_v31, %v11208_v36  ;;  %v11181_v10 = vor.u32 %v12451_v9, %v11178_v16  ;;  %v15475_v57 = vrot.slane %v15058_v42, 1  ;;  %v11076_v16 = vld [vmem:[%s13743_s13 + $0xd88] sm:$0xf] }
 0x4dd   : >> { %6329 = vmatpush.bf16.msra.mxu3 %v11137_v32  ;;  %6352 = vmatpush.bf16.msrb.mxu2 %v11233_v30  ;;  %v15462_v30 = vrot.slane %v14924_v61, 1 }
 0x4de   : >> { %v5257_v62 = vpop.f32.mrf.mxu3  ;;  %v5589_v0 = vpop.f32.mrf.mxu2 }
 0x4df   : >> { %v5214_v18 = vpop.f32.mrf.mxu0  ;;  %v15417_v28 = vadd.f32 %v5257_v62, %v5235_v12  ;;  %v15420_v29 = vadd.f32 %v5589_v0, %v15278_v41  ;;  %v15434_v41 = vsel %vm1633_vm5, %v5877_v34, %v5878_v21  ;;  %v11125_v12 = vor.u32 %v12438_v51, %v11124_v19  ;;  %v11100_v62 = vld [vmem:[%s13743_s13 + $0xdb8] sm:$0xf]  ;;  %v12432_v0 = vld [vmem:[%s13743_s13 + $0xdc0] sm:$0xf0]  ;;  %v11166_v34 = vld [vmem:[%s13743_s13 + $0xe4c] sm:$0xf0] }
 0x4e0   : >> { %v5238_v50 = vadd.f32 %v15302_v20, %v5214_v18  ;;  %v12454_v20 = vld [vmem:[%s13743_s13 + $0xe74] sm:$0xf]  ;;  %v11101_v18 = vor.u32 %v12432_v0, %v11100_v62  ;;  %v12429_v19 = vld [vmem:[%s13743_s13 + $0xda8] sm:$0xf0]  ;;  %v15487_v31 = vsel %vm1633_vm5, %v5872_v26, %v15462_v30 }
 0x4e1   : >> { %v15428_v44 = vpop.f32.mrf.mxu1  ;;  %6197 = vmatmul.bf16.vlgmr.msrb.gmra.mxu0 %v15426_v25  ;;  %v11193_v56 = vor.u32 %v12454_v20, %v11190_v3  ;;  %6330 = vmatpush.bf16.msra.mxu3 %v11125_v12  ;;  %v11088_v3 = vld [vmem:[%s13743_s13 + $0xda0] sm:$0xf]  ;;  %v12453_v51 = vld [vmem:[%s13743_s13 + $0xe68] sm:$0xf0]  ;;  %v12450_v26 = vld [vmem:[%s13743_s13 + $0xe50] sm:$0xf0] }
 0x4e2   : >> { %6353 = vmatpush.bf16.msrb.mxu2 %v11221_v40  ;;  %v11089_v12 = vor.u32 %v12429_v19, %v11088_v3 }
 0x4e3   : >> { %11282 = vmatmul.msk.bf16.vlgmr.msrb.gmra.mxu3 %vm817_vm3, %v15434_v41  ;;  %6266 = vmatmul.bf16.vlgmr.msra.gmra.mxu2 %v15426_v25 }
 0x4e4   : >> { %11285 = vmatmul.msk.bf16.vlgmr.msrb.gmra.mxu1 %vm817_vm3, %v15434_v41  ;;  %6286 = vmatpush.bf16.msra.mxu0 %v11193_v56  ;;  %v11184_v56 = vld [vmem:[%s13743_s13 + $0xe60] sm:$0xf] }
 0x4e5   : >> { %6331 = vmatpush.bf16.msra.mxu3 %v11113_v60  ;;  %v11185_v40 = vor.u32 %v12453_v51, %v11184_v56  ;;  %v12477_v60 = vld [vmem:[%s13743_s13 + $0xf28] sm:$0xf0] }
 0x4e6   : >> { %v5260_v6 = vpop.f32.mrf.mxu3  ;;  %v5592_v27 = vpop.f32.mrf.mxu2  ;;  %6354 = vmatpush.bf16.msrb.mxu2 %v11209_v55 }
 0x4e7   : >> { %v5216_v33 = vpop.f32.mrf.mxu0  ;;  %v15453_v45 = vadd.f32 %v5260_v6, %v5238_v50  ;;  %v15456_v52 = vadd.f32 %v5592_v27, %v15296_v38  ;;  %v12456_v38 = vld [vmem:[%s13743_s13 + $0xe80] sm:$0xf0]  ;;  %v11172_v6 = vld [vmem:[%s13743_s13 + $0xe48] sm:$0xf]  ;;  %v11280_v27 = vld [vmem:[%s13743_s13 + $0xf20] sm:$0xf] }
 0x4e8   : >> { %v5240_v32 = vadd.f32 %v15327_v23, %v5216_v33  ;;  %6287 = vmatpush.bf16.msra.mxu0 %v11181_v10  ;;  %v12448_v50 = vld [vmem:[%s13743_s13 + $0xe44] sm:$0xf]  ;;  %v11197_v20 = vor.u32 %v12456_v38, %v11196_v11  ;;  %v11173_v4 = vor.u32 %v12450_v26, %v11172_v6 }
 0x4e9   : >> { %v15459_v53 = vpop.f32.mrf.mxu1  ;;  %v11169_v23 = vor.u32 %v12448_v50, %v11166_v34  ;;  %6332 = vmatpush.bf16.msra.mxu3 %v11101_v18 }
 0x4ea   : >> { %6355 = vmatpush.bf16.msrb.mxu2 %v11197_v20 }
 0x4ec   : >> { %6288 = vmatpush.bf16.msra.mxu0 %v11169_v23 }
 0x4ed   : >> { %6333 = vmatpush.bf16.msra.mxu3 %v11089_v12 }
 0x4ee   : >> { %v5262_v43 = vpop.f32.mrf.mxu3  ;;  %v5594_v61 = vpop.f32.mrf.mxu2  ;;  %6356 = vmatpush.bf16.msrb.mxu2 %v11185_v40 }
 0x4ef   : >> { %v5219_v1 = vpop.f32.mrf.mxu0  ;;  %v15477_v13 = vadd.f32 %v5262_v43, %v5240_v32  ;;  %v15480_v36 = vadd.f32 %v5594_v61, %v15323_v63  ;;  %v15496_v63 = vsel %vm1633_vm5, %v5878_v21, %v15475_v57  ;;  %v11281_v21 = vor.u32 %v12477_v60, %v11280_v27  ;;  %v11268_v43 = vld [vmem:[%s13743_s13 + $0xf08] sm:$0xf] }
 0x4f0   : >> { %v5243_v42 = vadd.f32 %v15348_v37, %v5219_v1  ;;  %v12426_v37 = vld [vmem:[%s13743_s13 + $0xd90] sm:$0xf0] }
 0x4f1   : >> { %v15489_v9 = vpop.f32.mrf.mxu1  ;;  %6202 = vmatmul.bf16.gmra.mxu0 %v15487_v31  ;;  %v11077_v48 = vor.u32 %v12426_v37, %v11076_v16 }
 0x4f2   : >> { %6357 = vmatpush.bf16.msrb.mxu2 %v11173_v4  ;;  %6379 = vmatpush.bf16.msrb.mxu0 %v11281_v21 }
 0x4f3   : >> { %11283 = vmatmul.msk.bf16.gmra.mxu3 %vm817_vm3, %v15496_v63  ;;  %6271 = vmatmul.bf16.gmra.mxu2 %v15487_v31 }
 0x4f4   : >> { %11286 = vmatmul.msk.bf16.gmra.mxu1 %vm817_vm3, %v15496_v63  ;;  %6334 = vmatpush.bf16.msra.mxu3 %v11077_v48 }
 0x4f6   : >> { %v5265_v55 = vpop.f32.mrf.mxu3  ;;  %v5597_v10 = vpop.f32.mrf.mxu2 }
 0x4f7   : >> { %v5221_v33 = vpop.f32.mrf.mxu0  ;;  %v5266_v32 = vadd.f32 %v5265_v55, %v5243_v42  ;;  %v5598_v62 = vadd.f32 %v5597_v10, %v15344_v39 }
 0x4f9   : >> { %v5645_v0 = vpop.f32.mrf.mxu1 }
 0x4fe   : >> { %v5267_v11 = vpop.f32.mrf.mxu3  ;;  %v5599_v18 = vpop.f32.mrf.mxu2 }
 0x4ff   : >> { %v5610_v38 = vpop.f32.mrf.mxu0 }
 0x500   : >> { %v5611_v50 = vadd.f32 %v5610_v38, %v15396_v7 }
 0x501   : >> { %v5725_v34 = vpop.f32.mrf.mxu1  ;;  %6207 = vmatmul.bf16.gmra.mxu0 %v15462_v30 }
 0x502   : >> { %v15513_v20 = vadd.f32 %v15378_v47, %v5611_v50  ;;  %v15516_v23 = vadd.f32 %v5725_v34, %v15393_v49  ;;  %v12474_v49 = vld [vmem:[%s13743_s13 + $0xf10] sm:$0xf0] }
 0x503   : >> { %11284 = vmatmul.msk.bf16.gmra.mxu3 %vm817_vm3, %v15475_v57  ;;  %6276 = vmatmul.bf16.gmra.mxu2 %v15462_v30  ;;  %v11269_v40 = vor.u32 %v12474_v49, %v11268_v43 }
 0x504   : >> { %11287 = vmatmul.msk.bf16.gmra.mxu1 %vm817_vm3, %v15475_v57 }
 0x505   : >> { %6380 = vmatpush.bf16.msrb.mxu0 %v11269_v40 }
 0x506   : >> { %v5656_v39 = vpop.f32.mrf.mxu3  ;;  %v5679_v7 = vpop.f32.mrf.mxu2 }
 0x507   : >> { %v5612_v3 = vpop.f32.mrf.mxu0  ;;  %v5657_v19 = vadd.f32 %v5656_v39, %v15280_v17 }
 0x508   : >> { %v5613_v56 = vadd.f32 %v5612_v3, %v15420_v29 }
 0x509   : >> { %v5680_v47 = vadd.f32 %v5679_v7, %v5657_v19  ;;  %v5727_v51 = vpop.f32.mrf.mxu1 }
 0x50a   : >> { %v15528_v61 = vadd.f32 %v15399_v35, %v5613_v56  ;;  %v5728_v12 = vadd.f32 %v5727_v51, %v15417_v28 }
 0x50e   : >> { %v5658_v1 = vpop.f32.mrf.mxu3  ;;  %v5681_v42 = vpop.f32.mrf.mxu2 }
 0x50f   : >> { %v5615_v16 = vpop.f32.mrf.mxu0  ;;  %v5659_v37 = vadd.f32 %v5658_v1, %v15300_v8 }
 0x510   : >> { %v5616_v17 = vadd.f32 %v5615_v16, %v15456_v52 }
 0x511   : >> { %v5682_v6 = vadd.f32 %v5681_v42, %v5659_v37  ;;  %v5730_v29 = vpop.f32.mrf.mxu1  ;;  %6289 = vmatmul.bf16.vlgmr.msra.gmra.mxu0 %v15314_v54 }
 0x512   : >> { %v15535_v48 = vadd.f32 %v15428_v44, %v5616_v17  ;;  %v5731_v35 = vadd.f32 %v5730_v29, %v15453_v45 }
 0x513   : >> { %6335 = vmatmul.bf16.vlgmr.msra.gmra.mxu3 %v15426_v25  ;;  %6358 = vmatmul.bf16.vlgmr.msrb.gmra.mxu2 %v15314_v54 }
 0x516   : >> { %v5661_v28 = vpop.f32.mrf.mxu3  ;;  %v5684_v26 = vpop.f32.mrf.mxu2 }
 0x517   : >> { %v5617_v27 = vpop.f32.mrf.mxu0  ;;  %v5662_v8 = vadd.f32 %v5661_v28, %v15325_v58 }
 0x518   : >> { %v5618_v52 = vadd.f32 %v5617_v27, %v15480_v36 }
 0x519   : >> { %v5685_v60 = vadd.f32 %v5684_v26, %v5662_v8  ;;  %v5732_v4 = vpop.f32.mrf.mxu1 }
 0x51a   : >> { %v15543_v21 = vadd.f32 %v15459_v53, %v5618_v52  ;;  %v5733_v44 = vadd.f32 %v5732_v4, %v15477_v13 }
 0x51e   : >> { %v5663_v55 = vpop.f32.mrf.mxu3  ;;  %v5686_v45 = vpop.f32.mrf.mxu2 }
 0x51f   : >> { %v5620_v10 = vpop.f32.mrf.mxu0  ;;  %v5664_v25 = vadd.f32 %v5663_v55, %v15346_v59 }
 0x520   : >> { %v5621_v54 = vadd.f32 %v5620_v10, %v5598_v62 }
 0x521   : >> { %v5687_v33 = vadd.f32 %v5686_v45, %v5664_v25  ;;  %v5735_v0 = vpop.f32.mrf.mxu1  ;;  %6294 = vmatmul.bf16.gmra.mxu0 %v15365_v22 }
 0x522   : >> { %v15549_v58 = vadd.f32 %v15489_v9, %v5621_v54  ;;  %v5736_v36 = vadd.f32 %v5735_v0, %v5266_v32 }
 0x523   : >> { %6340 = vmatmul.bf16.gmra.mxu3 %v15487_v31  ;;  %6363 = vmatmul.bf16.gmra.mxu2 %v15365_v22 }
 0x526   : >> { %v5666_v53 = vpop.f32.mrf.mxu3  ;;  %v5689_v13 = vpop.f32.mrf.mxu2 }
 0x527   : >> { %v5622_v11 = vpop.f32.mrf.mxu0  ;;  %v5667_v18 = vadd.f32 %v5666_v53, %v15373_v14 }
 0x529   : >> { %v5690_v38 = vadd.f32 %v5689_v13, %v5667_v18  ;;  %v5737_v59 = vpop.f32.mrf.mxu1 }
 0x52e   : >> { %v5668_v62 = vpop.f32.mrf.mxu3  ;;  %v5691_v50 = vpop.f32.mrf.mxu2 }
 0x52f   : >> { %v5702_v34 = vpop.f32.mrf.mxu0  ;;  %v16420_v62 = vld [vmem:[#allocation23_spill] sm:$0xff] }
 0x530   : >> { %v15554_v39 = vadd.f32 %v5702_v34, %v5680_v47 }
 0x531   : >> { %v6221_v7 = vpop.f32.mrf.mxu1  ;;  %6299 = vmatmul.bf16.gmra.mxu0 %v15341_v46 }
 0x533   : >> { %6345 = vmatmul.bf16.gmra.mxu3 %v15462_v30  ;;  %6368 = vmatmul.bf16.gmra.mxu2 %v15341_v46 }
 0x536   : >> { %v5748_v22 = vpop.f32.mrf.mxu3  ;;  %v5771_v31 = vpop.f32.mrf.mxu2 }
 0x537   : >> { %v5704_v9 = vpop.f32.mrf.mxu0  ;;  %v5749_v32 = vadd.f32 %v5748_v22, %v15516_v23 }
 0x538   : >> { %v15560_v14 = vadd.f32 %v5704_v9, %v5682_v6 }
 0x539   : >> { %v15562_v3 = vadd.f32 %v5771_v31, %v5749_v32  ;;  %v6223_v19 = vpop.f32.mrf.mxu1 }
 0x53e   : >> { %v5750_v56 = vpop.f32.mrf.mxu3  ;;  %v5773_v47 = vpop.f32.mrf.mxu2 }
 0x53f   : >> { %v5707_v51 = vpop.f32.mrf.mxu0  ;;  %v5751_v43 = vadd.f32 %v5750_v56, %v5728_v12 }
 0x540   : >> { %v15564_v49 = vadd.f32 %v5707_v51, %v5685_v60 }
 0x541   : >> { %v15566_v40 = vadd.f32 %v5773_v47, %v5751_v43  ;;  %v6226_v30 = vpop.f32.mrf.mxu1  ;;  %11288 = vmatmul.msk.bf16.vlgmr.msrb.gmra.mxu0 %vm817_vm3, %v15434_v41  ;;  %v16422_v43 = vld [vmem:[#allocation20_spill] sm:$0xff] }
 0x546   : >> { %v5753_v46 = vpop.f32.mrf.mxu3  ;;  %v5776_v1 = vpop.f32.mrf.mxu2 }
 0x547   : >> { %v5709_v23 = vpop.f32.mrf.mxu0  ;;  %v5754_v42 = vadd.f32 %v5753_v46, %v5731_v35 }
 0x548   : >> { %v15570_v16 = vadd.f32 %v5709_v23, %v5687_v33  ;;  %v15585_v33 = vld [vmem:[%s14708_s15 + $0x6] sm:$0x7] }
 0x549   : >> { %v15572_v37 = vadd.f32 %v5776_v1, %v5754_v42  ;;  %v6228_v17 = vpop.f32.mrf.mxu1  ;;  %v6414_v11 = vperm.slane %v15585_v33, 0 }
 0x54e   : >> { %v5755_v6 = vpop.f32.mrf.mxu3  ;;  %v5778_v29 = vpop.f32.mrf.mxu2 }
 0x54f   : >> { %v5712_v12 = vpop.f32.mrf.mxu0  ;;  %v5756_v28 = vadd.f32 %v5755_v6, %v5733_v44 }
 0x550   : >> { %v15574_v26 = vadd.f32 %v5712_v12, %v5690_v38 }
 0x551   : >> { %v15576_v27 = vadd.f32 %v5778_v29, %v5756_v28  ;;  %v6231_v8 = vpop.f32.mrf.mxu1  ;;  %11289 = vmatmul.msk.bf16.gmra.mxu0 %vm817_vm3, %v15496_v63  ;;  %v16423_v28 = vld [vmem:[#allocation17_spill] sm:$0xff] }
 0x556   : >> { %v5758_v41 = vpop.f32.mrf.mxu3  ;;  %v5781_v35 = vpop.f32.mrf.mxu2 }
 0x557   : >> { %v5714_v52 = vpop.f32.mrf.mxu0  ;;  %v5759_v60 = vadd.f32 %v5758_v41, %v5736_v36 }
 0x559   : >> { %v15580_v4 = vadd.f32 %v5781_v35, %v5759_v60  ;;  %v6233_v55 = vpop.f32.mrf.mxu1 }
 0x55e   : >> { %v5760_v45 = vpop.f32.mrf.mxu3  ;;  %v5783_v10 = vpop.f32.mrf.mxu2 }
 0x55f   : >> { %v6198_v25 = vpop.f32.mrf.mxu0 }
 0x560   : >> { %v6222_v44 = vadd.f32 %v6221_v7, %v6198_v25 }
 0x561   : >> { %v6313_v54 = vpop.f32.mrf.mxu1  ;;  %11290 = vmatmul.msk.bf16.gmra.mxu0 %vm817_vm3, %v15475_v57 }
 0x566   : >> { %v6244_v0 = vpop.f32.mrf.mxu3  ;;  %v6267_v53 = vpop.f32.mrf.mxu2 }
 0x567   : >> { %v6200_v63 = vpop.f32.mrf.mxu0  ;;  %v6245_v13 = vadd.f32 %v6244_v0, %v6222_v44 }
 0x568   : >> { %v6224_v36 = vadd.f32 %v6223_v19, %v6200_v63 }
 0x569   : >> { %v6396_v18 = vadd.f32 %v6245_v13, %v15513_v20  ;;  %v6315_v38 = vpop.f32.mrf.mxu1 }
 0x56b   : >> { %v6420_v59 = vadd.f32 %v6414_v11, %v6396_v18 }
 0x56d   : >> { %v15590_v32 = vadd.f32 %v16420_v62, %v6420_v59 }
 0x56e   : >> { %v6246_v50 = vpop.f32.mrf.mxu3  ;;  %v6269_v7 = vpop.f32.mrf.mxu2 }
 0x56f   : >> { %v16421_v34 = vmov %v15590_v32  ;;  %v6203_v22 = vpop.f32.mrf.mxu0  ;;  %v6247_v31 = vadd.f32 %v6246_v50, %v6224_v36 }
 0x570   : >> { %v6450_v57 = vmax.f32 %v16421_v34, 0.0   ;;  %v6227_v9 = vadd.f32 %v6226_v30, %v6203_v22  ;;  %v16427_v22 = vld [vmem:[#allocation11_spill] sm:$0xff] }
 0x571   : >> { %v6399_v56 = vadd.f32 %v6247_v31, %v15528_v61  ;;  %v6318_v47 = vpop.f32.mrf.mxu1 }
 0x573   : >> { %v6423_v51 = vadd.f32 %v6414_v11, %v6399_v56 }
 0x575   : >> { %v15595_v19 = vadd.f32 %v16422_v43, %v6423_v51 }
 0x576   : >> { %v6249_v20 = vpop.f32.mrf.mxu3  ;;  %v6272_v46 = vpop.f32.mrf.mxu2 }
 0x577   : >> { %v6453_v1 = vmax.f32 %v15595_v19, 0.0   ;;  %v6205_v23 = vpop.f32.mrf.mxu0  ;;  %v6250_v32 = vadd.f32 %v6249_v20, %v6227_v9  ;;  %v6415_v20 = vperm.slane %v15585_v33, 1 }
 0x578   : >> { %v6229_v42 = vadd.f32 %v6228_v17, %v6205_v23  ;;  %v16425_v17 = vld [vmem:[#allocation14_spill] sm:$0xff] }
 0x579   : >> { %v6402_v6 = vadd.f32 %v6250_v32, %v15535_v48  ;;  %v6320_v29 = vpop.f32.mrf.mxu1 }
 0x57b   : >> { %v6426_v12 = vadd.f32 %v6414_v11, %v6402_v6 }
 0x57d   : >> { %v6441_v30 = vadd.f32 %v16423_v28, %v6426_v12 }
 0x57e   : >> { %v6251_v41 = vpop.f32.mrf.mxu3  ;;  %v6274_v61 = vpop.f32.mrf.mxu2 }
 0x57f   : >> { %v6456_v35 = vmax.f32 %v6441_v30, 0.0  ;;  %v6208_v52 = vpop.f32.mrf.mxu0  ;;  %v6252_v60 = vadd.f32 %v6251_v41, %v6229_v42 }
 0x580   : >> { %v6232_v55 = vadd.f32 %v6231_v8, %v6208_v52 }
 0x581   : >> { %v15601_v28 = vmul.f32 %v6456_v35, %v13580_v2   ;;  %v6405_v10 = vadd.f32 %v6252_v60, %v15543_v21  ;;  %v6323_v25 = vpop.f32.mrf.mxu1 }
 0x583   : >> { %v16424_v45 = vmov %v15601_v28  ;;  %v6429_v44 = vadd.f32 %v6414_v11, %v6405_v10  ;;  %v16431_v10 = vld [vmem:[#allocation19_spill] sm:$0xff] }
 0x585   : >> { %v15605_v63 = vadd.f32 %v16425_v17, %v6429_v44 }
 0x586   : >> { %v6254_v48 = vpop.f32.mrf.mxu3  ;;  %v6277_v13 = vpop.f32.mrf.mxu2 }
 0x587   : >> { %v16426_v0 = vmov %v15605_v63  ;;  %v6210_v18 = vpop.f32.mrf.mxu0  ;;  %v6255_v59 = vadd.f32 %v6254_v48, %v6232_v55 }
 0x588   : >> { %v6459_v36 = vmax.f32 %v16426_v0, 0.0   ;;  %v12584_v0 = vld [vmem:[#allocation3 + $0x26a8] sm:$0xf0] (%p15658_p7) }
 0x589   : >> { %v6408_v62 = vadd.f32 %v6255_v59, %v15549_v58  ;;  %v6325_v50 = vpop.f32.mrf.mxu1 }
 0x58b   : >> { %v6432_v8 = vadd.f32 %v6414_v11, %v6408_v62  ;;  %v16429_v11 = vld [vmem:[#allocation22_spill] sm:$0xff] }
 0x58d   : >> { %v15610_v41 = vadd.f32 %v16427_v22, %v6432_v8 }
 0x58e   : >> { %v6256_v9 = vpop.f32.mrf.mxu3  ;;  %v6279_v21 = vpop.f32.mrf.mxu2 }
 0x58f   : >> { %v16428_v31 = vmov %v15610_v41  ;;  %v6290_v56 = vpop.f32.mrf.mxu0 }
 0x590   : >> { %v6462_v51 = vmax.f32 %v16428_v31, 0.0   ;;  %v6291_v43 = vadd.f32 %v6290_v56, %v6267_v53 }
 0x592   : >> { %v6314_v63 = vadd.f32 %v6313_v54, %v6291_v43 }
 0x594   : >> { %v6397_v23 = vadd.f32 %v6314_v63, %v15554_v39 }
 0x596   : >> { %v6421_v32 = vadd.f32 %v6415_v20, %v6397_v23  ;;  %v6336_v42 = vpop.f32.mrf.mxu3  ;;  %v6359_v6 = vpop.f32.mrf.mxu2  ;;  %v16434_v23 = vld [vmem:[#allocation13_spill] sm:$0xff] }
 0x597   : >> { %v6292_v58 = vpop.f32.mrf.mxu0  ;;  %v6360_v12 = vadd.f32 %v6359_v6, %v6336_v42 }
 0x598   : >> { %v15616_v50 = vadd.f32 %v16429_v11, %v6421_v32  ;;  %v6293_v28 = vadd.f32 %v6292_v58, %v6269_v7 }
 0x59a   : >> { %v16430_v30 = vmov %v15616_v50  ;;  %v6316_v41 = vadd.f32 %v6315_v38, %v6293_v28  ;;  %v16432_v38 = vld [vmem:[#allocation16_spill] sm:$0xff] }
 0x59b   : >> { %v6451_v35 = vmax.f32 %v16430_v30, 0.0  }
 0x59c   : >> { %v6400_v52 = vadd.f32 %v6316_v41, %v15560_v14 }
 0x59e   : >> { %v6424_v53 = vadd.f32 %v6415_v20, %v6400_v52  ;;  %v6338_v54 = vpop.f32.mrf.mxu3  ;;  %v6361_v60 = vpop.f32.mrf.mxu2 }
 0x59f   : >> { %v6295_v55 = vpop.f32.mrf.mxu0 }
 0x5a0   : >> { %v15621_v39 = vadd.f32 %v16431_v10, %v6424_v53  ;;  %v6296_v44 = vadd.f32 %v6295_v55, %v6272_v46 }
 0x5a2   : >> { %v6454_v17 = vmax.f32 %v15621_v39, 0.0   ;;  %v6319_v48 = vadd.f32 %v6318_v47, %v6296_v44 }
 0x5a4   : >> { %v6403_v18 = vadd.f32 %v6319_v48, %v15564_v49 }
 0x5a6   : >> { %v6427_v59 = vadd.f32 %v6415_v20, %v6403_v18  ;;  %v6341_v7 = vpop.f32.mrf.mxu3  ;;  %v6364_v62 = vpop.f32.mrf.mxu2  ;;  %v6362_v18 = vadd.f32 %v6361_v60, %v6338_v54  ;;  %v16442_v60 = vld [vmem:[#allocation15_spill] sm:$0xff] }
 0x5a7   : >> { %v6297_v50 = vpop.f32.mrf.mxu0 }
 0x5a8   : >> { %v6442_v8 = vadd.f32 %v16432_v38, %v6427_v59  ;;  %v6298_v14 = vadd.f32 %v6297_v50, %v6274_v61 }
 0x5aa   : >> { %v6457_v22 = vmax.f32 %v6442_v8, 0.0  ;;  %v6321_v9 = vadd.f32 %v6320_v29, %v6298_v14 }
 0x5ac   : >> { %v15627_v61 = vmul.f32 %v6457_v22, %v13580_v2   ;;  %v6406_v56 = vadd.f32 %v6321_v9, %v15570_v16  ;;  %v6365_v22 = vadd.f32 %v6364_v62, %v6341_v7  ;;  %v16440_v9 = vld [vmem:[#allocation18_spill] sm:$0xff] }
 0x5ae   : >> { %v16433_v21 = vmov %v15627_v61  ;;  %v6430_v46 = vadd.f32 %v6415_v20, %v6406_v56  ;;  %v6343_v43 = vpop.f32.mrf.mxu3  ;;  %v6366_v63 = vpop.f32.mrf.mxu2  ;;  %v16436_v61 = vld [vmem:[#allocation10_spill] sm:$0xff] }
 0x5af   : >> { %v6300_v47 = vpop.f32.mrf.mxu0  ;;  %v6367_v54 = vadd.f32 %v6366_v63, %v6343_v43  ;;  %v16444_v43 = vld [vmem:[#allocation9_spill] sm:$0xff]  ;;  %v15749_v34 = vpack.c.bf16 (%p15658_p7), %v16433_v21, %v16424_v45 }
 0x5b0   : >> { %v15631_v48 = vadd.f32 %v16434_v23, %v6430_v46  ;;  %v6301_v32 = vadd.f32 %v6300_v47, %v6277_v13  ;;  %v6416_v13 = vperm.slane %v15585_v33, 2 }
 0x5b2   : >> { %v16435_v49 = vmov %v15631_v48  ;;  %v6324_v6 = vadd.f32 %v6323_v25, %v6301_v32 }
 0x5b3   : >> { %v6460_v42 = vmax.f32 %v16435_v49, 0.0   ;;  %v11320_v49 = vld [vmem:[#allocation3 + $0x2538] sm:$0xf] (%p15658_p7) }
 0x5b4   : >> { %v6409_v58 = vadd.f32 %v6324_v6, %v15574_v26  ;;  %v16438_v26 = vld [vmem:[#allocation21_spill] sm:$0xff] }
 0x5b6   : >> { %v6433_v11 = vadd.f32 %v6415_v20, %v6409_v58  ;;  %v6346_v29 = vpop.f32.mrf.mxu3  ;;  %v6369_v28 = vpop.f32.mrf.mxu2 }
 0x5b7   : >> { %v6302_v41 = vpop.f32.mrf.mxu0  ;;  %v6370_v62 = vadd.f32 %v6369_v28, %v6346_v29  ;;  %v16455_v28 = vmov %v16424_v45  ;;  %v11488_v29 = vld [vmem:[#allocation3 + $0x2688] sm:$0xf] (%p15658_p7) }
 0x5b8   : >> { %v15636_v56 = vadd.f32 %v16436_v61, %v6433_v11  ;;  %v16443_v61 = vld [vmem:[#allocation12_spill] sm:$0xff]  ;;  %v12548_v28 = vld [vmem:[#allocation3 + $0x2588] sm:$0xf0] (%p15658_p7) }
 0x5ba   : >> { %v16437_v16 = vmov %v15636_v56 }
 0x5bb   : >> { %v6463_v52 = vmax.f32 %v16437_v16, 0.0  }
 0x5bd   : > { %v15761_v19 = vpack.c.bf16 (%p15658_p7), %v6463_v52, %v6462_v51 }
 0x5be   : >> { %v6348_v53 = vpop.f32.mrf.mxu3  ;;  %v6371_v55 = vpop.f32.mrf.mxu2 }
 0x5bf   : >> { %v6382_v10 = vpop.f32.mrf.mxu0 }
 0x5c0   : >> { %v6383_v44 = vadd.f32 %v6382_v10, %v6360_v12 }
 0x5c2   : >> { %v6398_v48 = vadd.f32 %v6383_v44, %v15562_v3 }
 0x5c4   : >> { %v6422_v25 = vadd.f32 %v6416_v13, %v6398_v48 }
 0x5c6   : >> { %v6437_v20 = vadd.f32 %v16438_v26, %v6422_v25  ;;  %v12581_v26 = vld [vmem:[#allocation3 + $0x2690] sm:$0xf0] (%p15658_p7) }
 0x5c7   : >> { %v6384_v59 = vpop.f32.mrf.mxu0 }
 0x5c8   : >> { %v15642_v53 = vmax.f32 %v6437_v20, 0.0   ;;  %v6385_v50 = vadd.f32 %v6384_v59, %v6362_v18  ;;  %v11380_v20 = vld [vmem:[#allocation3 + $0x25b0] sm:$0xf] (%p15658_p7)  ;;  %v12554_v59 = vld [vmem:[#allocation3 + $0x25b8] sm:$0xf0] (%p15658_p7) }
 0x5ca   : >> { %v16439_v38 = vmov %v15642_v53  ;;  %v6401_v8 = vadd.f32 %v6385_v50, %v15566_v40  ;;  %v16460_v50 = vmov %v6451_v35 }
 0x5cb   : > { %v15719_v50 = vld [vmem:[#allocation3 + $0x2648] sm:$0xf0] (%p15658_p7) }
 0x5cc   : >> { %v6425_v14 = vadd.f32 %v6416_v13, %v6401_v8  ;;  %v11489_v8 = vor.u32 (%p15658_p7), %v12581_v26, %v11488_v29  ;;  %v12580_v26 = vld [vmem:[#allocation3 + $0x268c] sm:$0xf] (%p15658_p7) }
 0x5ce   : >> { %v6440_v56 = vadd.f32 %v16440_v9, %v6425_v14  ;;  %v11476_v14 = vld [vmem:[#allocation3 + $0x2670] sm:$0xf] (%p15658_p7)  ;;  %7212 = vmatpush.bf16.msra.mxu1 (%p15658_p7), %v11489_v8 }
 0x5cf   : >> { %v6387_v46 = vpop.f32.mrf.mxu0 }
 0x5d0   : >> { %v15646_v40 = vmax.f32 %v6440_v56, 0.0   ;;  %v6388_v33 = vadd.f32 %v6387_v46, %v6365_v22  ;;  %v16448_v56 = vmov %v6463_v52  ;;  %v12578_v22 = vld [vmem:[#allocation3 + $0x2678] sm:$0xf0] (%p15658_p7)  ;;  %v11381_v46 = vor.u32 (%p15658_p7), %v12554_v59, %v11380_v20 }
 0x5d1   : > { %v11344_v56 = vld [vmem:[#allocation3 + $0x2568] sm:$0xf] (%p15658_p7) }
 0x5d2   : >> { %v16441_v12 = vmov %v15646_v40  ;;  %v6404_v3 = vadd.f32 %v6388_v33, %v15572_v37  ;;  %v16457_v33 = vmov %v6454_v17 }
 0x5d3   : > { %v12545_v33 = vld [vmem:[#allocation3 + $0x2570] sm:$0xf0] (%p15658_p7) }
 0x5d4   : >> { %v6428_v47 = vadd.f32 %v6416_v13, %v6404_v3  ;;  %v11368_v3 = vld [vmem:[#allocation3 + $0x2598] sm:$0xf] (%p15658_p7)  ;;  %v15765_v39 = vor.u32 (%p15658_p7), %v12545_v33, %v11344_v56 }
 0x5d6   : >> { %v6443_v23 = vadd.f32 %v16442_v60, %v6428_v47  ;;  %v12551_v47 = vld [vmem:[#allocation3 + $0x25a0] sm:$0xf0] (%p15658_p7)  ;;  %v11464_v60 = vld [vmem:[#allocation3 + $0x2658] sm:$0xf] (%p15658_p7) }
 0x5d7   : >> { %v6389_v32 = vpop.f32.mrf.mxu0 }
 0x5d8   : >> { %v6458_v6 = vmax.f32 %v6443_v23, 0.0  ;;  %v6390_v58 = vadd.f32 %v6389_v32, %v6367_v54  ;;  %v16461_v32 = vmov %v6450_v57  ;;  %v11477_v54 = vor.u32 (%p15658_p7), %v12578_v22, %v11476_v14  ;;  %v12575_v23 = vld [vmem:[#allocation3 + $0x2660] sm:$0xf0] (%p15658_p7)  ;;  %v6600_v22 = vld [vmem:[#allocation2 + $0x8] sm:$0xf] (%p15658_p7) }
 0x5d9   : > { %v11356_v32 = vld [vmem:[#allocation3 + $0x2580] sm:$0xf] (%p15658_p7) }
 0x5da   : >> { %v6473_v11 = vmul.f32 %v6458_v6, %v13580_v2   ;;  %v6407_v41 = vadd.f32 %v6390_v58, %v15576_v27  ;;  %v11392_v27 = vld [vmem:[#allocation3 + $0x25c8] sm:$0xf] (%p15658_p7)  ;;  %v11512_v6 = vld [vmem:[#allocation3 + $0x26b8] sm:$0xf] (%p15658_p7)  ;;  %v15725_v58 = vpack.c.bf16 (%p15658_p7), %v16441_v12, %v16441_v12  ;;  %7213 = vmatpush.bf16.msra.mxu1 (%p15658_p7), %v11477_v54 }
 0x5dc   : >> { %v6431_v7 = vadd.f32 %v6416_v13, %v6407_v41  ;;  %v16449_v41 = vmov %v6462_v51 }
 0x5dd   : > { %v15727_v41 = vpack.c.bf16 (%p15658_p7), %v6473_v11, %v6473_v11 }
 0x5de   : >> { %v6446_v53 = vadd.f32 %v16443_v61, %v6431_v7  ;;  %v16454_v61 = vmov %v16433_v21  ;;  %v16458_v7 = vmov %v6453_v1  ;;  %v15769_v21 = vld [vmem:[#allocation3 + $0x2618] sm:$0xf0] (%p15658_p7) }
 0x5df   : >> { %v6392_v55 = vpop.f32.mrf.mxu0  ;;  %v15737_v61 = vld [vmem:[#allocation3 + $0x2628] sm:$0xf] (%p15658_p7) }
 0x5e0   : >> { %v6461_v10 = vmax.f32 %v6446_v53, 0.0   ;;  %v6393_v40 = vadd.f32 %v6392_v55, %v6370_v62  ;;  %v16453_v55 = vmov %v6473_v11  ;;  %v16459_v53 = vmov %v16439_v38  ;;  %v12542_v11 = vld [vmem:[#allocation3 + $0x2558] sm:$0xf0] (%p15658_p7) }
 0x5e1   : > { %v15735_v62 = vpack.c.bf16 (%p15658_p7), %v6451_v35, %v6450_v57  ;;  %v15739_v53 = vld [vmem:[#allocation3 + $0x2630] sm:$0xf0] (%p15658_p7)  ;;  %v12587_v55 = vld [vmem:[#allocation3 + $0x26c0] sm:$0xf0] (%p15658_p7)  ;;  %v11465_v57 = vor.u32 (%p15658_p7), %v12575_v23, %v11464_v60  ;;  %v11332_v35 = vld [vmem:[#allocation3 + $0x2550] sm:$0xf] (%p15658_p7) }
 0x5e2   : >> { %v6410_v37 = vadd.f32 %v6393_v40, %v15580_v4  ;;  %v16450_v9 = vmov %v6461_v10  ;;  %v16456_v40 = vmov %v16441_v12  ;;  %v12557_v4 = vld [vmem:[#allocation3 + $0x25d0] sm:$0xf0] (%p15658_p7)  ;;  %v15729_v7 = vpack.c.bf16 (%p15658_p7), %v6461_v10, %v6461_v10  ;;  %v11500_v10 = vld [vmem:[#allocation3 + $0x26a0] sm:$0xf] (%p15658_p7) }
 0x5e3   : > { %v6481_v9 = vpack.c.bf16 (%p15658_p7), %v16439_v38, %v16439_v38  ;;  %v11369_v38 = vor.u32 (%p15658_p7), %v12551_v47, %v11368_v3  ;;  %v15745_v12 = vpack.c.bf16 (%p15658_p7), %v6454_v17, %v6453_v1  ;;  %v11513_v30 = vor.u32 (%p15658_p7), %v12587_v55, %v11512_v6  ;;  %v15767_v17 = vld [vmem:[#allocation3 + $0x2610] sm:$0xf] (%p15658_p7)  ;;  %7214 = vmatpush.bf16.msra.mxu1 (%p15658_p7), %v11465_v57  ;;  %v11308_v23 = vld [vmem:[#allocation3 + $0x2520] sm:$0xf] (%p15658_p7) }
 0x5e4   : >> { %v6434_v44 = vadd.f32 %v6416_v13, %v6410_v37  ;;  %v11393_v13 = vor.u32 (%p15658_p7), %v12557_v4, %v11392_v27  ;;  %v15755_v40 = vpack.c.bf16 (%p15658_p7), %v6460_v42, %v6459_v36  ;;  %v11357_v1 = vor.u32 (%p15658_p7), %v12548_v28, %v11356_v32  ;;  %v12536_v32 = vld [vmem:[#allocation3 + $0x2528] sm:$0xf0] (%p15658_p7) }
 0x5e5   : > { %v11441_v31 = vor.u32 (%p15658_p7), %v15739_v53, %v15737_v61  ;;  %7241 = vmatpush.bf16.msra.mxu2 (%p15658_p7), %v11513_v30  ;;  %v11501_v51 = vor.u32 (%p15658_p7), %v12584_v0, %v11500_v10  ;;  %v6500_v16 = vshrl.u32 (%p15658_p7), %v6481_v9, 16  ;;  %v6503_v52 = vshll.u32 (%p15658_p7), %v6481_v9, 16  ;;  %v6595_v0 = vld [vmem:[#allocation2] sm:$0xff] (%p15658_p7) }
 0x5e6   : >> { %v6449_v63 = vadd.f32 %v16444_v43, %v6434_v44  ;;  %7189 = vmatpush.bf16.msra.mxu0 (%p15658_p7), %v11393_v13  ;;  %12661 = vmatpush.bf16.msra.mxu3 (%p15658_p7), %v11393_v13  ;;  %v15777_v37 = vor.u32 (%p15658_p7), %v12542_v11, %v11332_v35  ;;  %v15779_v44 = vld [vmem:[#allocation3 + $0x25f8] sm:$0xf] (%p15658_p7)  ;;  %v15781_v43 = vld [vmem:[#allocation3 + $0x2600] sm:$0xf0] (%p15658_p7)  ;;  %v6538_v4 = vshll.u32 (%p15658_p7), %v15727_v41, 16  ;;  %v6553_v29 = vshrl.u32 (%p15658_p7), %v15729_v7, 16 }
 0x5e7   : >> { %v6394_v48 = vpop.f32.mrf.mxu0  ;;  %2231 = sbr.rel (!%p15658_p7) target bundleno = 505 (0x1f9), region = 92  ;;  %v6502_v27 = vrot.slane (%p15658_p7), %v6500_v16, 7  ;;  %v6556_v13 = vshll.u32 (%p15658_p7), %v15729_v7, 16  ;;  %v11429_v20 = vor.u32 (%p15658_p7), %v15769_v21, %v15767_v17  ;;  %v11417_v56 = vor.u32 (%p15658_p7), %v15781_v43, %v15779_v44  ;;  %v12577_v7 = vld [vmem:[#allocation3 + $0x2674] sm:$0xf] (%p15658_p7) }
 0x5e8   : >> { %v15655_v18 = vmax.f32 %v6449_v63, 0.0   ;;  %v16451_v48 = vmov %v6460_v42  ;;  %v16452_v63 = vmov %v6459_v36  ;;  %v12539_v42 = vld [vmem:[#allocation3 + $0x2540] sm:$0xf0] (%p15658_p7)  ;;  %v15793_v54 = vrot.slane (%p15658_p7), %v6553_v29, 7  ;;  %v11478_v35 = vld [vmem:[#allocation3 + $0x267c] sm:$0xf0] (%p15658_p7) }
 0x5e9   : > { %v6517_v63 = vshrl.u32 (%p15658_p7), %v15725_v58, 16  ;;  %v6520_v48 = vshll.u32 (%p15658_p7), %v15725_v58, 16  ;;  %v15791_v59 = vor.u32 (%p15658_p7), %v12539_v42, %v11320_v49  ;;  %7242 = vmatpush.bf16.msra.mxu2 (%p15658_p7), %v11501_v51  ;;  %v6505_v3 = vor.u32 (%p15658_p7), %v6503_v52, %v6502_v27  ;;  %v15882_v43 = vld [vmem:[#allocation3 + $0x259c] sm:$0xf] (%p15658_p7) }
 0x5ea   : >> { %v16445_v25 = vmov %v15655_v18  ;;  %7190 = vmatpush.bf16.msra.mxu0 (%p15658_p7), %v11381_v46  ;;  %12662 = vmatpush.bf16.msra.mxu3 (%p15658_p7), %v11381_v46  ;;  %v11490_v46 = vld [vmem:[#allocation3 + $0x2694] sm:$0xf0] (%p15658_p7)  ;;  %v6515_v47 = vrot.slane (%p15658_p7), %v6502_v27, 4  ;;  %v6558_v33 = vor.u32 (%p15658_p7), %v6556_v13, %v15793_v54  ;;  %v15805_v57 = vor.u32 (%p15658_p7), %v12536_v32, %v11308_v23  ;;  %v15843_v23 = vld [vmem:[#allocation3 + $0x25bc] sm:$0xf0] (%p15658_p7) }
 0x5eb   : >> { %v16447_v18 = vmov %v16445_v25  ;;  %v15773_v36 = vpack.c.bf16 (%p15658_p7), %v16445_v25, %v16445_v25  ;;  %v6535_v25 = vshrl.u32 (%p15658_p7), %v15727_v41, 16  ;;  %v6519_v8 = vrot.slane (%p15658_p7), %v6517_v63, 7  ;;  %v15825_v63 = vld [vmem:[#allocation3 + $0x25e0] sm:$0xf] (%p15658_p7) }
 0x5ec   : > { %v15717_v18 = vld [vmem:[#allocation3 + $0x2640] sm:$0xf]  ;;  %v11493_v60 = vor.u32 %v12580_v26, %v11490_v46  ;;  %v6601_v58 = vsel %vm13823_vm14, %v6505_v3, %v6600_v22  ;;  %v6493_v41 = vshrl.u32 %v15735_v62, 16  ;;  %v6496_v30 = vshll.u32 %v15735_v62, 16  ;;  %v11394_v22 = vld [vmem:[#allocation3 + $0x25d4] sm:$0xf0] }
 0x5ed   : > { %v11453_v45 = vor.u32 %v15719_v50, %v15717_v18  ;;  %v6537_v14 = vrot.slane %v6535_v25, 7  ;;  %v6522_v28 = vor.u32 %v6520_v48, %v6519_v8  ;;  %v6533_v18 = vrot.slane %v6519_v8, 4  ;;  %6602 = vst [vmem:[#allocation2 + $0x8] sm:$0xf] %v6601_v58 }
 0x5ee   : > { %7191 = vmatpush.bf16.msra.mxu0 %v11369_v38  ;;  %12663 = vmatpush.bf16.msra.mxu3 %v11369_v38  ;;  %v6495_v10 = vrot.slane %v6493_v41, 7  ;;  %v6526_v62 = vshrl.u32 %v15749_v34, 16  ;;  %v6529_v51 = vshll.u32 %v15749_v34, 16  ;;  %v6544_v49 = vshrl.u32 %v15755_v40, 16  ;;  %v11466_v41 = vld [vmem:[#allocation3 + $0x2664] sm:$0xf0] }
 0x5ef   : > { %v6540_v50 = vor.u32 %v6538_v4, %v6537_v14  ;;  %v6551_v9 = vrot.slane %v6537_v14, 4  ;;  %7215 = vmatpush.bf16.msra.mxu1 %v11453_v45  ;;  %7281 = vmatpush.bf16.msrb.mxu2 %v11493_v60  ;;  %v6523_v38 = vsel %vm13813_vm13, %v6515_v47, %v6522_v28  ;;  %v6511_v45 = vshll.u32 %v15745_v12, 16  ;;  %v15828_v4 = vld [vmem:[#allocation3 + $0x25e8] sm:$0xf0] }
 0x5f0   : > { %6605 = vst.msk [vmem:[#allocation2 + $0x14] sm:$0xf] %vm2366_vm11, %v6523_v38  ;;  %v6547_v42 = vshll.u32 %v15755_v40, 16  ;;  %v6506_v16 = vrot.slane %v6495_v10, 4  ;;  %v6528_v48 = vrot.slane %v6526_v62, 7  ;;  %v6546_v25 = vrot.slane %v6544_v49, 7 }
 0x5f1   : > { %v6541_v55 = vsel %vm13813_vm13, %v6533_v18, %v6540_v50  ;;  %v6559_v11 = vsel %vm13813_vm13, %v6551_v9, %v6558_v33  ;;  %v6565_v34 = vshll.u32 %v15761_v19, 16  ;;  %v11481_v27 = vor.u32 %v12577_v7, %v11478_v35  ;;  %v12574_v18 = vld [vmem:[#allocation3 + $0x265c] sm:$0xf] }
 0x5f2   : > { %7192 = vmatpush.bf16.msra.mxu0 %v11357_v1  ;;  %12664 = vmatpush.bf16.msra.mxu3 %v11357_v1  ;;  %v6508_v1 = vshrl.u32 %v15745_v12, 16  ;;  %6607 = vst.msk [vmem:[#allocation2 + $0x20] sm:$0xf] %vm2366_vm11, %v6541_v55  ;;  %v6498_v12 = vor.u32 %v6496_v30, %v6495_v10  ;;  %v6531_v13 = vor.u32 %v6529_v51, %v6528_v48  ;;  %v6542_v26 = vrot.slane %v6528_v48, 4  ;;  %v12586_v10 = vld [vmem:[#allocation3 + $0x26bc] sm:$0xf] }
 0x5f3   : > { %7216 = vmatpush.bf16.msra.mxu1 %v11441_v31  ;;  %6609 = vst.msk [vmem:[#allocation2 + $0x2c] sm:$0xf] %vm2366_vm11, %v6559_v11  ;;  %v6617_v31 = vld [vmem:[#allocation2 + $0x30] sm:$0x33]  ;;  %v6549_v8 = vor.u32 %v6547_v42, %v6546_v25  ;;  %v6560_v3 = vrot.slane %v6546_v25, 4  ;;  %7282 = vmatpush.bf16.msrb.mxu2 %v11481_v27  ;;  %v11405_v33 = vor.u32 %v15828_v4, %v15825_v63  ;;  %v6571_v63 = vshrl.u32 %v15773_v36, 16 }
 0x5f4   : > { %v6510_v52 = vrot.slane %v6508_v1, 7  ;;  %v6596_v61 = vsel %vm13908_vm8, %v6498_v12, %v6595_v0  ;;  %v6626_v46 = vld [vmem:[#allocation2 + $0x8] sm:$0xf]  ;;  %v11514_v1 = vld [vmem:[#allocation3 + $0x26c4] sm:$0xf0]  ;;  %v11469_v44 = vor.u32 %v12574_v18, %v11466_v41  ;;  %v6569_v0 = vrot.slane %v15793_v54, 4 }
 0x5f5   : > { %6597 = vst [vmem:[#allocation2] sm:$0xff] %v6596_v61  ;;  %v6793_v14 = vunpack.c.l.b16 %v6596_v61  ;;  %v6794_v60 = vunpack.c.h.b16 %v6596_v61  ;;  %v6795_v28 = vunpack.c.l.b16 %v6626_v46  ;;  %v6550_v21 = vsel %vm13813_vm13, %v6542_v26, %v6549_v8  ;;  %v12571_v12 = vld [vmem:[#allocation3 + $0x2644] sm:$0xf]  ;;  %v11454_v54 = vld [vmem:[#allocation3 + $0x264c] sm:$0xf0] }
 0x5f6   : > { %7193 = vmatpush.bf16.msra.mxu0 %v15765_v39  ;;  %12665 = vmatpush.bf16.msra.mxu3 %v15765_v39  ;;  %v6562_v39 = vshrl.u32 %v15761_v19, 16  ;;  %v6513_v40 = vor.u32 %v6511_v45, %v6510_v52  ;;  %v6524_v29 = vrot.slane %v6510_v52, 4  ;;  %v12556_v19 = vld [vmem:[#allocation3 + $0x25cc] sm:$0xf]  ;;  %6608 = vst [vmem:[#allocation2 + $0x24] sm:$0xff] %v6550_v21  ;;  %v6574_v27 = vshll.u32 %v15773_v36, 16 }
 0x5f7   : > { %7217 = vmatpush.bf16.msra.mxu1 %v11429_v20  ;;  %v15845_v32 = vld [vmem:[#allocation2 + $0x14] sm:$0xf]  ;;  %v11397_v30 = vor.u32 %v12556_v19, %v11394_v22  ;;  %v12583_v4 = vld [vmem:[#allocation3 + $0x26a4] sm:$0xf]  ;;  %7283 = vmatpush.bf16.msrb.mxu2 %v11469_v44  ;;  %v6573_v61 = vrot.slane %v6571_v63, 7 }
 0x5f8   : > { %v6564_v53 = vrot.slane %v6562_v39, 7  ;;  %v15839_v5 = vsel %vm13813_vm13, %v6506_v16, %v6513_v40  ;;  %v6532_v17 = vsel %vm13813_vm13, %v6524_v29, %v6531_v13  ;;  %v6798_v9 = vunpack.c.l.b16 %v15845_v32  ;;  %v11502_v19 = vld [vmem:[#allocation3 + $0x26ac] sm:$0xf0]  ;;  %v12565_v63 = vld [vmem:[#allocation3 + $0x2614] sm:$0xf] }
 0x5f9   : > { %v6796_v20 = vunpack.c.l.b16 %v15839_v5  ;;  %v11304_v50 = vld [vmem:[#allocation2 + $0x20] sm:$0xf]  ;;  %6606 = vst [vmem:[#allocation2 + $0x18] sm:$0xff] %v6532_v17  ;;  %v6797_v58 = vunpack.c.h.b16 %v15839_v5  ;;  %v11517_v39 = vor.u32 %v12586_v10, %v11514_v1  ;;  %v11505_v21 = vor.u32 %v12583_v4, %v11502_v19  ;;  %v11400_v18 = vld [vmem:[#allocation3 + $0x25d0] sm:$0xf] }
 0x5fa   : > { %7194 = vmatpush.bf16.msra.mxu0 %v15777_v37  ;;  %12666 = vmatpush.bf16.msra.mxu3 %v15777_v37  ;;  %v6567_v47 = vor.u32 %v6565_v34, %v6564_v53  ;;  %v15841_v37 = vld [vmem:[#allocation3 + $0x25b4] sm:$0xf]  ;;  %v12480_v7 = vld [vmem:[#allocation2 + $0x28] sm:$0xf0]  ;;  %v15871_v35 = vpack.c.b16 %v6798_v9, %v6795_v28  ;;  %v6622_v53 = vld [vmem:[#allocation2 + $0x38] sm:$0x3] }
 0x5fb   : > { %v15862_v38 = vpack.c.b16 %v6796_v20, %v6793_v14  ;;  %7218 = vmatpush.bf16.msra.mxu1 %v11417_v56  ;;  %v15873_v11 = vor.u32 %v12480_v7, %v11304_v50  ;;  %v11385_v45 = vor.u32 %v15841_v37, %v15843_v23  ;;  %v15884_v56 = vld [vmem:[#allocation3 + $0x25a4] sm:$0xf0]  ;;  %v11457_v14 = vor.u32 %v12571_v12, %v11454_v54  ;;  %v11358_v37 = vld [vmem:[#allocation3 + $0x258c] sm:$0xf0]  ;;  %v12558_v50 = vld [vmem:[#allocation3 + $0x25d8] sm:$0xf0] }
 0x5fc   : > { %v6568_v6 = vsel %vm13813_vm13, %v6560_v3, %v6567_v47  ;;  %v6842_v62 = vshrl.u32 %v15871_v35, 16  ;;  %v6844_v51 = vshll.u32 %v15871_v35, 16  ;;  %v11373_v8 = vor.u32 %v15882_v43, %v15884_v56  ;;  %v11430_v54 = vld [vmem:[#allocation3 + $0x261c] sm:$0xf0]  ;;  %v11364_v19 = vld [vmem:[#allocation3 + $0x2588] sm:$0xf] }
 0x5fd   : > { %v6618_v55 = vsel %vm13949_vm2, %v6568_v6, %v6617_v31  ;;  %v6820_v24 = vshll.u32 %v15862_v38, 16  ;;  %v6849_v49 = vshll.u32 %v15873_v11, 16  ;;  %v6818_v42 = vshrl.u32 %v15862_v38, 16  ;;  %v12479_v13 = vld [vmem:[#allocation2 + $0x20] sm:$0xf0]  ;;  %7284 = vmatpush.bf16.msrb.mxu2 %v11457_v14 }
 0x5fe   : > { %7195 = vmatpush.bf16.msra.mxu0 %v15791_v59  ;;  %12667 = vmatpush.bf16.msra.mxu3 %v15791_v59  ;;  %6619 = vst [vmem:[#allocation2 + $0x30] sm:$0x33] %v6618_v55  ;;  %v15877_v59 = vpack.c.b16 %v6797_v58, %v6794_v60  ;;  %v6846_v48 = vrot.slane %v6844_v51, 1  ;;  %v11298_v26 = vld [vmem:[#allocation2 + $0x24] sm:$0xf0]  ;;  %v6576_v47 = vor.u32 %v6574_v27, %v6573_v61  ;;  %v6869_v4 = vshrl.u32 %v15873_v11, 16 }
 0x5ff   : > { %v6822_v16 = vrot.slane %v6820_v24, 1  ;;  %v15895_v25 = vrot.slane %v6849_v49, 1  ;;  %7219 = vmatpush.bf16.msra.mxu1 %v11405_v33  ;;  %v12547_v60 = vld [vmem:[#allocation3 + $0x2584] sm:$0xf]  ;;  %v12568_v33 = vld [vmem:[#allocation3 + $0x262c] sm:$0xf]  ;;  %v11401_v56 = vor.u32 %v12558_v50, %v11400_v18 }
 0x600   : > { %v6832_v52 = vshll.u32 %v15877_v59, 16  ;;  %v6830_v34 = vshrl.u32 %v15877_v59, 16  ;;  %v11296_v40 = vld [vmem:[#allocation2 + $0x18] sm:$0xf]  ;;  %v12478_v29 = vld [vmem:[#allocation2 + $0x1c] sm:$0xf]  ;;  %v6847_v31 = vor.u32 %v6846_v48, %v6842_v62  ;;  %v6577_v55 = vsel %vm13813_vm13, %v6569_v0, %v6576_v47 }
 0x601   : > { %v15901_v22 = vor.u32 %v12479_v13, %v11296_v40  ;;  %v6823_v46 = vor.u32 %v6822_v16, %v6818_v42  ;;  %v15903_v3 = vor.u32 %v12478_v29, %v11298_v26  ;;  %v6623_v24 = vsel %vm13985_vm7, %v6577_v55, %v6622_v53  ;;  %v11388_v62 = vld [vmem:[#allocation3 + $0x25b8] sm:$0xf]  ;;  %v12544_v0 = vld [vmem:[#allocation3 + $0x256c] sm:$0xf]  ;;  %v12555_v42 = vld [vmem:[#allocation3 + $0x25c0] sm:$0xf0] }
 0x602   : > { %7196 = vmatpush.bf16.msra.mxu0 %v15805_v57  ;;  %12668 = vmatpush.bf16.msra.mxu3 %v15805_v57  ;;  %v6834_v57 = vrot.slane %v6832_v52, 1  ;;  %v15907_v23 = vsel %vm453_vm4, %v6847_v31, %v15895_v25  ;;  %6624 = vst [vmem:[#allocation2 + $0x38] sm:$0x3] %v6623_v24  ;;  %v11361_v15 = vor.u32 %v12547_v60, %v11358_v37  ;;  %v11376_v27 = vld [vmem:[#allocation3 + $0x25a0] sm:$0xf] }
 0x603   : > { %11522 = vmatmul.msk.bf16.vlgmr.msra.gmra.mxu2 %vm817_vm3, %v15907_v23  ;;  %v6825_v6 = vshll.u32 %v15901_v22, 16  ;;  %v6853_v41 = vshrl.u32 %v15901_v22, 16  ;;  %v6837_v7 = vshll.u32 %v15903_v3, 16  ;;  %7327 = vmatpush.bf16.msrb.mxu1 %v11401_v56  ;;  %v6861_v29 = vshrl.u32 %v15903_v3, 16  ;;  %v12552_v61 = vld [vmem:[#allocation3 + $0x25a8] sm:$0xf0] }
 0x604   : > { %v6835_v17 = vor.u32 %v6834_v57, %v6830_v34  ;;  %v11389_v34 = vor.u32 %v12555_v42, %v11388_v62  ;;  %v11433_v57 = vor.u32 %v12565_v63, %v11430_v54  ;;  %v12541_v13 = vld [vmem:[#allocation3 + $0x2554] sm:$0xf]  ;;  %v11334_v26 = vld [vmem:[#allocation3 + $0x255c] sm:$0xf0]  ;;  %v11377_v14 = vor.u32 %v12552_v61, %v11376_v27  ;;  %v12503_v37 = vld [vmem:[#allocation3 + $0x2420] sm:$0xf0] }
 0x605   : > { %v6708_v36 = vld [vmem:[#allocation2 + $0x30] sm:$0x33]  ;;  %v15920_v44 = vrot.slane %v6837_v7, 1  ;;  %v11605_v7 = vld [vmem:[#allocation3 + $0x2400] sm:$0xf] }
 0x606   : > { %7258 = vmatpush.bf16.msrb.mxu3 %v11397_v30  ;;  %7310 = vmatpush.bf16.msrb.mxu0 %v11517_v39  ;;  %v6805_v28 = vunpack.c.l.b16 %v6708_v36  ;;  %v11442_v30 = vld [vmem:[#allocation3 + $0x2634] sm:$0xf0]  ;;  %v6806_v43 = vunpack.c.h.b16 %v6708_v36  ;;  %v12549_v60 = vld [vmem:[#allocation3 + $0x2590] sm:$0xf0]  ;;  %v11352_v24 = vld [vmem:[#allocation3 + $0x2570] sm:$0xf] }
 0x607   : > { %v11445_v49 = vor.u32 %v12568_v33, %v11442_v30  ;;  %v15928_v52 = vsel %vm453_vm4, %v6835_v17, %v15920_v44  ;;  %v11346_v39 = vld [vmem:[#allocation3 + $0x2574] sm:$0xf0]  ;;  %7328 = vmatpush.bf16.msrb.mxu1 %v11389_v34  ;;  %v11337_v33 = vor.u32 %v12541_v13, %v11334_v26  ;;  %v11322_v30 = vld [vmem:[#allocation3 + $0x2544] sm:$0xf0]  ;;  %v11365_v1 = vor.u32 %v12549_v60, %v11364_v19  ;;  %v12546_v56 = vld [vmem:[#allocation3 + $0x2578] sm:$0xf0] }
 0x608   : > { %v15916_v10 = vpack.c.b16 %v6805_v28, %v6805_v28  ;;  %7220 = vmatmul.bf16.vlgmr.msra.gmra.mxu1 %v15928_v52  ;;  %v15935_v40 = vpack.c.b16 %v6806_v43, %v6806_v43  ;;  %v11349_v31 = vor.u32 %v12544_v0, %v11346_v39  ;;  %v11617_v36 = vld [vmem:[#allocation3 + $0x2418] sm:$0xf]  ;;  %v6871_v43 = vor.u32 %v6869_v4, %v15895_v25  ;;  %v12535_v34 = vld [vmem:[#allocation3 + $0x2524] sm:$0xf]  ;;  %v11310_v27 = vld [vmem:[#allocation3 + $0x252c] sm:$0xf0] }
 0x609   : > { %7285 = vmatpush.bf16.msrb.mxu2 %v11445_v49  ;;  %v6709_v47 = vld [vmem:[#allocation2 + $0x38] sm:$0x3]  ;;  %v11618_v50 = vor.u32 %v12503_v37, %v11617_v36  ;;  %v6863_v49 = vor.u32 %v6861_v29, %v15920_v44  ;;  %v11353_v25 = vor.u32 %v12546_v56, %v11352_v24  ;;  %v12543_v61 = vld [vmem:[#allocation3 + $0x2560] sm:$0xf0]  ;;  %v11313_v29 = vor.u32 %v12535_v34, %v11310_v27  ;;  %v11520_v13 = vld [vmem:[#allocation3 + $0x26c0] sm:$0xf] }
 0x60a   : > { %7259 = vmatpush.bf16.msrb.mxu3 %v11385_v45  ;;  %7311 = vmatpush.bf16.msrb.mxu0 %v11505_v21  ;;  %v6827_v45 = vrot.slane %v6825_v6, 1  ;;  %v6857_v51 = vshll.u32 %v15916_v10, 16  ;;  %v6807_v28 = vunpack.c.l.b16 %v6709_v47  ;;  %v6865_v17 = vshll.u32 %v15935_v40, 16  ;;  %v12538_v21 = vld [vmem:[#allocation3 + $0x253c] sm:$0xf] }
 0x60b   : > { %v12559_v6 = vld [vmem:[#allocation3 + $0x25e4] sm:$0xf]  ;;  %7329 = vmatpush.bf16.msrb.mxu1 %v11377_v14  ;;  %v11325_v39 = vor.u32 %v12538_v21, %v11322_v30  ;;  %v6877_v54 = vshrl.u32 %v15916_v10, 16  ;;  %v12588_v26 = vld [vmem:[#allocation3 + $0x26c8] sm:$0xf0] }
 0x60c   : > { %v15924_v12 = vsel %vm453_vm4, %v6823_v46, %v6827_v45  ;;  %v6855_v16 = vor.u32 %v6853_v41, %v6827_v45  ;;  %v15931_v48 = vrot.slane %v6857_v51, 1  ;;  %v11418_v46 = vld [vmem:[#allocation3 + $0x2604] sm:$0xf0]  ;;  %v11406_v41 = vld [vmem:[#allocation3 + $0x25ec] sm:$0xf0]  ;;  %v15944_v55 = vpack.c.b16 %v6807_v28, %v6807_v28 }
 0x60d   : > { %7197 = vmatmul.bf16.vlgmr.msra.gmra.mxu0 %v15924_v12  ;;  %7286 = vmatpush.bf16.msrb.mxu2 %v11433_v57  ;;  %v12500_v45 = vld [vmem:[#allocation3 + $0x2408] sm:$0xf0]  ;;  %v11593_v51 = vld [vmem:[#allocation3 + $0x23e8] sm:$0xf]  ;;  %v15949_v42 = vrot.slane %v6865_v17, 1  ;;  %v11521_v36 = vor.u32 %v12588_v26, %v11520_v13 }
 0x60e   : > { %7260 = vmatpush.bf16.msrb.mxu3 %v11373_v8  ;;  %v15940_v53 = vsel %vm453_vm4, %v6855_v16, %v15931_v48  ;;  %v12562_v8 = vld [vmem:[#allocation3 + $0x25fc] sm:$0xf]  ;;  %7705 = vmatpush.bf16.msra.mxu0 %v11618_v50  ;;  %v11606_v62 = vor.u32 %v12500_v45, %v11605_v7  ;;  %v6873_v0 = vshll.u32 %v15944_v55, 16  ;;  %v11409_v16 = vor.u32 %v12559_v6, %v11406_v41  ;;  %v11340_v57 = vld [vmem:[#allocation3 + $0x2558] sm:$0xf] }
 0x60f   : > { %7202 = vmatmul.bf16.vlgmr.msra.gmra.mxu3 %v15940_v53  ;;  %v11421_v18 = vor.u32 %v12562_v8, %v11418_v46  ;;  %7330 = vmatpush.bf16.msrb.mxu1 %v11365_v1  ;;  %v15957_v44 = vsel %vm453_vm4, %v6863_v49, %v15949_v42  ;;  %v11496_v8 = vld [vmem:[#allocation3 + $0x2690] sm:$0xf]  ;;  %v15962_v14 = vor.u32 %v6877_v54, %v15931_v48  ;;  %v11328_v46 = vld [vmem:[#allocation3 + $0x2540] sm:$0xf]  ;;  %v12582_v47 = vld [vmem:[#allocation3 + $0x2698] sm:$0xf0] }
 0x610   : > { %v6875_v63 = vrot.slane %v6873_v0, 1  ;;  %v11341_v19 = vor.u32 %v12543_v61, %v11340_v57  ;;  %v12540_v60 = vld [vmem:[#allocation3 + $0x2548] sm:$0xf0]  ;;  %v11497_v37 = vor.u32 %v12582_v47, %v11496_v8  ;;  %v11581_v28 = vld [vmem:[#allocation3 + $0x23d0] sm:$0xf] }
 0x611   : > { %7287 = vmatpush.bf16.msrb.mxu2 %v11421_v18  ;;  %v12494_v17 = vld [vmem:[#allocation3 + $0x23d8] sm:$0xf0]  ;;  %v11569_v48 = vld [vmem:[#allocation3 + $0x23b8] sm:$0xf]  ;;  %v12491_v18 = vld [vmem:[#allocation3 + $0x23c0] sm:$0xf0]  ;;  %v11329_v50 = vor.u32 %v12540_v60, %v11328_v46 }
 0x612   : > { %7261 = vmatpush.bf16.msrb.mxu3 %v11361_v15  ;;  %v12497_v15 = vld [vmem:[#allocation3 + $0x23f0] sm:$0xf0]  ;;  %7706 = vmatpush.bf16.msra.mxu0 %v11606_v62  ;;  %v11582_v21 = vor.u32 %v12494_v17, %v11581_v28  ;;  %v12579_v6 = vld [vmem:[#allocation3 + $0x2680] sm:$0xf0]  ;;  %v11316_v41 = vld [vmem:[#allocation3 + $0x2528] sm:$0xf]  ;;  %v11570_v30 = vor.u32 %v12491_v18, %v11569_v48 }
 0x613   : > { %v11594_v4 = vor.u32 %v12497_v15, %v11593_v51  ;;  %7331 = vmatpush.bf16.msrb.mxu1 %v11353_v25  ;;  %v12537_v7 = vld [vmem:[#allocation3 + $0x2530] sm:$0xf0]  ;;  %v11557_v24 = vld [vmem:[#allocation3 + $0x23a0] sm:$0xf]  ;;  %v12488_v45 = vld [vmem:[#allocation3 + $0x23a8] sm:$0xf0] }
 0x614   : > { %v12576_v56 = vld [vmem:[#allocation3 + $0x2668] sm:$0xf0]  ;;  %v6883_v62 = vshrl.u32 %v15944_v55, 16  ;;  %v11317_v51 = vor.u32 %v12537_v7, %v11316_v41  ;;  %v6880_v15 = vshrl.u32 %v15935_v40, 16  ;;  %v11558_v0 = vor.u32 %v12488_v45, %v11557_v24  ;;  %v12485_v54 = vld [vmem:[#allocation3 + $0x2390] sm:$0xf0] }
 0x615   : > { %7288 = vmatpush.bf16.msrb.mxu2 %v11409_v16  ;;  %v11460_v25 = vld [vmem:[#allocation3 + $0x2648] sm:$0xf]  ;;  %v11533_v57 = vld [vmem:[#allocation3 + $0x2370] sm:$0xf]  ;;  %v12570_v13 = vld [vmem:[#allocation3 + $0x2638] sm:$0xf0] }
 0x616   : > { %7262 = vmatpush.bf16.msrb.mxu3 %v11349_v31  ;;  %v15953_v31 = vsel %vm453_vm4, %v6871_v43, %v6875_v63  ;;  %7707 = vmatpush.bf16.msra.mxu0 %v11594_v4  ;;  %v11472_v43 = vld [vmem:[#allocation3 + $0x2660] sm:$0xf]  ;;  %v15970_v16 = vor.u32 %v6883_v62, %v6875_v63  ;;  %v15973_v34 = vor.u32 %v6880_v15, %v15949_v42  ;;  %v12573_v4 = vld [vmem:[#allocation3 + $0x2650] sm:$0xf0]  ;;  %v11448_v63 = vld [vmem:[#allocation3 + $0x2630] sm:$0xf] }
 0x617   : > { %11523 = vmatmul.msk.bf16.gmra.mxu2 %vm817_vm3, %v15953_v31  ;;  %7332 = vmatpush.bf16.msrb.mxu1 %v11341_v19  ;;  %v11473_v49 = vor.u32 %v12576_v56, %v11472_v43  ;;  %v11461_v61 = vor.u32 %v12573_v4, %v11460_v25  ;;  %v11713_v26 = vld [vmem:[#allocation3 + $0x24d8] sm:$0xf]  ;;  %v11449_v8 = vor.u32 %v12570_v13, %v11448_v63  ;;  %v12527_v19 = vld [vmem:[#allocation3 + $0x24e0] sm:$0xf0]  ;;  %v11508_v46 = vld [vmem:[#allocation3 + $0x26a8] sm:$0xf] }
 0x618   : > { %7225 = vmatmul.bf16.gmra.mxu1 %v15957_v44  ;;  %v11714_v47 = vor.u32 %v12527_v19, %v11713_v26  ;;  %v12567_v28 = vld [vmem:[#allocation3 + $0x2620] sm:$0xf0]  ;;  %v11701_v17 = vld [vmem:[#allocation3 + $0x24c0] sm:$0xf]  ;;  %v12524_v48 = vld [vmem:[#allocation3 + $0x24c8] sm:$0xf0] }
 0x619   : > { %7379 = vmatpush.bf16.msra.mxu2 %v11521_v36  ;;  %v12585_v36 = vld [vmem:[#allocation3 + $0x26b0] sm:$0xf0]  ;;  %v11702_v18 = vor.u32 %v12524_v48, %v11701_v17  ;;  %v11677_v45 = vld [vmem:[#allocation3 + $0x2490] sm:$0xf]  ;;  %v12518_v56 = vld [vmem:[#allocation3 + $0x2498] sm:$0xf0] }
 0x61a   : > { %7263 = vmatpush.bf16.msrb.mxu3 %v11337_v33  ;;  %v11484_v33 = vld [vmem:[#allocation3 + $0x2678] sm:$0xf]  ;;  %7708 = vmatpush.bf16.msra.mxu0 %v11582_v21  ;;  %v11509_v60 = vor.u32 %v12585_v36, %v11508_v46  ;;  %v12521_v41 = vld [vmem:[#allocation3 + $0x24b0] sm:$0xf0]  ;;  %v11678_v62 = vor.u32 %v12518_v56, %v11677_v45  ;;  %v11715_v15 = vld [vmem:[#allocation3 + $0x24e4] sm:$0xf0] }
 0x61b   : > { %v11485_v1 = vor.u32 %v12579_v6, %v11484_v33  ;;  %7333 = vmatpush.bf16.msrb.mxu1 %v11329_v50  ;;  %v11424_v50 = vld [vmem:[#allocation3 + $0x2600] sm:$0xf]  ;;  %v12564_v33 = vld [vmem:[#allocation3 + $0x2608] sm:$0xf0]  ;;  %v11689_v6 = vld [vmem:[#allocation3 + $0x24a8] sm:$0xf] }
 0x61c   : > { %v11425_v7 = vor.u32 %v12564_v33, %v11424_v50  ;;  %v12561_v24 = vld [vmem:[#allocation3 + $0x25f0] sm:$0xf0]  ;;  %v12523_v4 = vld [vmem:[#allocation3 + $0x24c4] sm:$0xf]  ;;  %v11641_v63 = vld [vmem:[#allocation3 + $0x2448] sm:$0xf] }
 0x61d   : > { %11525 = vmatmul.msk.bf16.vlgmr.msrb.gmra.mxu0 %vm817_vm3, %v15907_v23  ;;  %7380 = vmatpush.bf16.msra.mxu2 %v11509_v60  ;;  %v12509_v13 = vld [vmem:[#allocation3 + $0x2450] sm:$0xf0]  ;;  %v12502_v19 = vld [vmem:[#allocation3 + $0x241c] sm:$0xf]  ;;  %v11619_v46 = vld [vmem:[#allocation3 + $0x2424] sm:$0xf0] }
 0x61e   : > { %7264 = vmatpush.bf16.msrb.mxu3 %v11325_v39  ;;  %7709 = vmatpush.bf16.msra.mxu0 %v11570_v30  ;;  %v11545_v39 = vld [vmem:[#allocation3 + $0x2388] sm:$0xf]  ;;  %v11690_v30 = vor.u32 %v12521_v41, %v11689_v6  ;;  %v12533_v60 = vld [vmem:[#allocation3 + $0x2510] sm:$0xf0]  ;;  %v12514_v33 = vld [vmem:[#allocation3 + $0x247c] sm:$0xf] }
 0x61f   : > { %7207 = vmatmul.bf16.gmra.mxu3 %v15962_v14  ;;  %7334 = vmatpush.bf16.msrb.mxu1 %v11317_v51  ;;  %v11546_v27 = vor.u32 %v12485_v54, %v11545_v39  ;;  %v12526_v51 = vld [vmem:[#allocation3 + $0x24dc] sm:$0xf]  ;;  %v12515_v39 = vld [vmem:[#allocation3 + $0x2480] sm:$0xf0]  ;;  %v11653_v54 = vld [vmem:[#allocation3 + $0x2460] sm:$0xf] }
 0x620   : > { %v11737_v36 = vld [vmem:[#allocation3 + $0x2508] sm:$0xf]  ;;  %v12517_v48 = vld [vmem:[#allocation3 + $0x2494] sm:$0xf]  ;;  %v12499_v41 = vld [vmem:[#allocation3 + $0x2404] sm:$0xf] }
 0x621   : > { %v11738_v17 = vor.u32 %v12533_v60, %v11737_v36  ;;  %v11667_v6 = vld [vmem:[#allocation3 + $0x2484] sm:$0xf0]  ;;  %v12496_v45 = vld [vmem:[#allocation3 + $0x23ec] sm:$0xf]  ;;  %v11559_v36 = vld [vmem:[#allocation3 + $0x23ac] sm:$0xf0] }
 0x622   : > { %7265 = vmatpush.bf16.msrb.mxu3 %v11313_v29  ;;  %7710 = vmatpush.bf16.msra.mxu0 %v11558_v0  ;;  %v12482_v29 = vld [vmem:[#allocation3 + $0x2378] sm:$0xf0]  ;;  %v11665_v0 = vld [vmem:[#allocation3 + $0x2478] sm:$0xf]  ;;  %v12484_v60 = vld [vmem:[#allocation3 + $0x238c] sm:$0xf] }
 0x623   : > { %v11534_v42 = vor.u32 %v12482_v29, %v11533_v57  ;;  %7728 = vmatpush.bf16.msra.mxu1 %v11714_v47  ;;  %v11666_v25 = vor.u32 %v12515_v39, %v11665_v0  ;;  %v11703_v57 = vld [vmem:[#allocation3 + $0x24cc] sm:$0xf0]  ;;  %v11622_v47 = vor.u32 %v12502_v19, %v11619_v46  ;;  %v11583_v39 = vld [vmem:[#allocation3 + $0x23dc] sm:$0xf0]  ;;  %v12487_v46 = vld [vmem:[#allocation3 + $0x23a4] sm:$0xf] }
 0x624   : > { %v12637_v32 = vld [vmem:[#allocation3 + $0x2854] sm:$0xf] }
 0x626   : > { %7350 = vmatpush.bf16.msra.mxu3 %v11497_v37  ;;  %7711 = vmatpush.bf16.msra.mxu0 %v11546_v27  ;;  %v11436_v37 = vld [vmem:[#allocation3 + $0x2618] sm:$0xf]  ;;  %v12512_v27 = vld [vmem:[#allocation3 + $0x2468] sm:$0xf0] }
 0x627   : > { %11524 = vmatmul.msk.bf16.gmra.mxu2 %vm817_vm3, %v15970_v16  ;;  %v11437_v21 = vor.u32 %v12567_v28, %v11436_v37  ;;  %7729 = vmatpush.bf16.msra.mxu1 %v11702_v18  ;;  %v11654_v29 = vor.u32 %v12512_v27, %v11653_v54  ;;  %v11629_v37 = vld [vmem:[#allocation3 + $0x2430] sm:$0xf]  ;;  %v12506_v28 = vld [vmem:[#allocation3 + $0x2438] sm:$0xf0]  ;;  %v11679_v18 = vld [vmem:[#allocation3 + $0x249c] sm:$0xf0] }
 0x628   : > { %7230 = vmatmul.bf16.gmra.mxu1 %v15973_v34  ;;  %v11682_v50 = vor.u32 %v12517_v48, %v11679_v18  ;;  %v12505_v54 = vld [vmem:[#allocation3 + $0x2434] sm:$0xf] }
 0x629   : > { %v12529_v18 = vld [vmem:[#allocation3 + $0x24f4] sm:$0xf] }
 0x62a   : > { %7351 = vmatpush.bf16.msra.mxu3 %v11485_v1  ;;  %7712 = vmatpush.bf16.msra.mxu0 %v11534_v42  ;;  %v11412_v1 = vld [vmem:[#allocation3 + $0x25e8] sm:$0xf]  ;;  %v11691_v42 = vld [vmem:[#allocation3 + $0x24b4] sm:$0xf0] }
 0x62b   : > { %7730 = vmatpush.bf16.msra.mxu1 %v11690_v30  ;;  %v11413_v43 = vor.u32 %v12561_v24, %v11412_v1  ;;  %v11670_v30 = vor.u32 %v12514_v33, %v11667_v6  ;;  %v12511_v1 = vld [vmem:[#allocation3 + $0x2464] sm:$0xf]  ;;  %v11655_v24 = vld [vmem:[#allocation3 + $0x246c] sm:$0xf0]  ;;  %v12528_v6 = vld [vmem:[#allocation3 + $0x24e8] sm:$0xf0] }
 0x62d   : > { %11526 = vmatmul.msk.bf16.gmra.mxu0 %vm817_vm3, %v15953_v31 }
 0x62e   : > { %7352 = vmatpush.bf16.msra.mxu3 %v11473_v49  ;;  %v11718_v49 = vor.u32 %v12526_v51, %v11715_v15  ;;  %v12508_v51 = vld [vmem:[#allocation3 + $0x244c] sm:$0xf]  ;;  %v11643_v15 = vld [vmem:[#allocation3 + $0x2454] sm:$0xf0] }
 0x62f   : > { %7266 = vmatmul.bf16.vlgmr.msrb.gmra.mxu3 %v15924_v12  ;;  %7731 = vmatpush.bf16.msra.mxu1 %v11678_v62  ;;  %v11658_v62 = vor.u32 %v12511_v1, %v11655_v24  ;;  %v11646_v0 = vor.u32 %v12508_v51, %v11643_v15  ;;  %v12525_v1 = vld [vmem:[#allocation3 + $0x24d0] sm:$0xf0]  ;;  %v12522_v51 = vld [vmem:[#allocation3 + $0x24b8] sm:$0xf0]  ;;  %v11601_v15 = vld [vmem:[#allocation3 + $0x23f0] sm:$0xf] }
 0x630   : > { %7797 = vmatpush.bf16.msrb.mxu0 %v11718_v49  ;;  %v12493_v49 = vld [vmem:[#allocation3 + $0x23d4] sm:$0xf] }
 0x631   : > { %v11586_v27 = vor.u32 %v12493_v49, %v11583_v39  ;;  %v12498_v49 = vld [vmem:[#allocation3 + $0x23f8] sm:$0xf0]  ;;  %v11842_v39 = vld [vmem:[#allocation3 + $0x2778] sm:$0xf] }
 0x632   : > { %7353 = vmatpush.bf16.msra.mxu3 %v11461_v61  ;;  %v11706_v61 = vor.u32 %v12523_v4, %v11703_v57  ;;  %v12490_v57 = vld [vmem:[#allocation3 + $0x23bc] sm:$0xf] }
 0x633   : > { %7732 = vmatpush.bf16.msra.mxu1 %v11666_v25  ;;  %v11631_v25 = vld [vmem:[#allocation3 + $0x243c] sm:$0xf0] }
 0x634   : > { %7798 = vmatpush.bf16.msrb.mxu0 %v11706_v61  ;;  %v11634_v4 = vor.u32 %v12505_v54, %v11631_v25  ;;  %v11571_v61 = vld [vmem:[#allocation3 + $0x23c4] sm:$0xf0]  ;;  %v12611_v54 = vld [vmem:[#allocation3 + $0x2780] sm:$0xf0]  ;;  %v11602_v25 = vor.u32 %v12498_v49, %v11601_v15  ;;  %v11794_v15 = vld [vmem:[#allocation3 + $0x2718] sm:$0xf] }
 0x636   : > { %7354 = vmatpush.bf16.msra.mxu3 %v11449_v8  ;;  %v11642_v8 = vor.u32 %v12509_v13, %v11641_v63  ;;  %v11725_v63 = vld [vmem:[#allocation3 + $0x24f0] sm:$0xf]  ;;  %v12530_v13 = vld [vmem:[#allocation3 + $0x24f8] sm:$0xf0] }
 0x637   : > { %7289 = vmatmul.bf16.vlgmr.msrb.gmra.mxu2 %v15928_v52  ;;  %7733 = vmatpush.bf16.msra.mxu1 %v11654_v29  ;;  %v12532_v29 = vld [vmem:[#allocation3 + $0x250c] sm:$0xf]  ;;  %v11726_v19 = vor.u32 %v12530_v13, %v11725_v63  ;;  %v11589_v63 = vld [vmem:[#allocation3 + $0x23d8] sm:$0xf] }
 0x638   : > { %7335 = vmatmul.bf16.vlgmr.msrb.gmra.mxu1 %v15924_v12  ;;  %v12520_v12 = vld [vmem:[#allocation3 + $0x24ac] sm:$0xf]  ;;  %7774 = vmatpush.bf16.msrb.mxu2 %v11622_v47 }
 0x639   : > { %v11694_v26 = vor.u32 %v12520_v12, %v11691_v42  ;;  %v11574_v12 = vor.u32 %v12490_v57, %v11571_v61  ;;  %v11739_v42 = vld [vmem:[#allocation3 + $0x2514] sm:$0xf0] }
 0x63a   : > { %7355 = vmatpush.bf16.msra.mxu3 %v11437_v21  ;;  %v11630_v21 = vor.u32 %v12506_v28, %v11629_v37  ;;  %v11547_v37 = vld [vmem:[#allocation3 + $0x2394] sm:$0xf0] }
 0x63b   : > { %7799 = vmatpush.bf16.msrb.mxu0 %v11694_v26  ;;  %7734 = vmatpush.bf16.msra.mxu1 %v11642_v8  ;;  %v6633_v26 = vld [vmem:[#allocation2 + $0x30] sm:$0x11]  ;;  %v11742_v8 = vor.u32 %v12532_v29, %v11739_v42  ;;  %v11550_v28 = vor.u32 %v12484_v60, %v11547_v37  ;;  %v12519_v42 = vld [vmem:[#allocation3 + $0x24a0] sm:$0xf0]  ;;  %v11818_v60 = vld [vmem:[#allocation3 + $0x2748] sm:$0xf] }
 0x63c   : > { %v7398_v47 = vunpack.c.l.b16 %v6633_v26 }
 0x63d   : > { %11527 = vmatmul.msk.bf16.gmra.mxu0 %vm817_vm3, %v15970_v16 }
 0x63e   : > { %7356 = vmatpush.bf16.msra.mxu3 %v11425_v7  ;;  %v11607_v7 = vld [vmem:[#allocation3 + $0x240c] sm:$0xf0] }
 0x63f   : > { %7271 = vmatmul.bf16.gmra.mxu3 %v15940_v53  ;;  %7735 = vmatpush.bf16.msra.mxu1 %v11630_v21  ;;  %v11535_v21 = vld [vmem:[#allocation3 + $0x237c] sm:$0xf0] }
 0x640   : > { %7800 = vmatpush.bf16.msrb.mxu0 %v11682_v50  ;;  %v11727_v50 = vld [vmem:[#allocation3 + $0x24fc] sm:$0xf0] }
 0x641   : > { %v11730_v33 = vor.u32 %v12529_v18, %v11727_v50 }
 0x642   : > { %7357 = vmatpush.bf16.msra.mxu3 %v11413_v43  ;;  %v11595_v43 = vld [vmem:[#allocation3 + $0x23f4] sm:$0xf0] }
 0x643   : > { %v11598_v56 = vor.u32 %v12496_v45, %v11595_v43  ;;  %12669 = vmatpush.bf16.msrb.mxu1 %v11742_v8  ;;  %v12501_v45 = vld [vmem:[#allocation3 + $0x2410] sm:$0xf0] }
 0x644   : > { %7801 = vmatpush.bf16.msrb.mxu0 %v11670_v30 }
 0x646   : > { %7757 = vmatpush.bf16.msrb.mxu3 %v11738_v17  ;;  %v12481_v17 = vld [vmem:[#allocation3 + $0x2374] sm:$0xf] }
 0x647   : > { %7294 = vmatmul.bf16.gmra.mxu2 %v15957_v44  ;;  %v11538_v48 = vor.u32 %v12481_v17, %v11535_v21  ;;  %12670 = vmatpush.bf16.msrb.mxu1 %v11730_v33  ;;  %v11673_v17 = vld [vmem:[#allocation3 + $0x2480] sm:$0xf]  ;;  %v12516_v21 = vld [vmem:[#allocation3 + $0x2488] sm:$0xf0] }
 0x648   : > { %7340 = vmatmul.bf16.gmra.mxu1 %v15940_v53  ;;  %v11610_v53 = vor.u32 %v12499_v41, %v11607_v7  ;;  %7802 = vmatpush.bf16.msrb.mxu0 %v11658_v62  ;;  %v11625_v41 = vld [vmem:[#allocation3 + $0x2420] sm:$0xf]  ;;  %v12504_v7 = vld [vmem:[#allocation3 + $0x2428] sm:$0xf0]  ;;  %v11697_v62 = vld [vmem:[#allocation3 + $0x24b0] sm:$0xf]  ;;  %v11674_v18 = vor.u32 %v12516_v21, %v11673_v17 }
 0x649   : > { %v11626_v30 = vor.u32 %v12504_v7, %v11625_v41  ;;  %v11565_v41 = vld [vmem:[#allocation3 + $0x23a8] sm:$0xf]  ;;  %v12489_v7 = vld [vmem:[#allocation3 + $0x23b0] sm:$0xf0] }
 0x64a   : > { %7775 = vmatpush.bf16.msrb.mxu2 %v11610_v53  ;;  %7758 = vmatpush.bf16.msrb.mxu3 %v11726_v19  ;;  %v11613_v53 = vld [vmem:[#allocation3 + $0x2408] sm:$0xf]  ;;  %v12608_v19 = vld [vmem:[#allocation3 + $0x2768] sm:$0xf0] }
 0x64b   : > { %v11614_v43 = vor.u32 %v12501_v45, %v11613_v53  ;;  %v11661_v45 = vld [vmem:[#allocation3 + $0x2468] sm:$0xf] }
 0x64c   : > { %7803 = vmatpush.bf16.msrb.mxu0 %v11646_v0  ;;  %v11698_v0 = vor.u32 %v12522_v51, %v11697_v62  ;;  %v12486_v51 = vld [vmem:[#allocation3 + $0x2398] sm:$0xf0] }
 0x64d   : > { %7713 = vmatmul.bf16.vlgmr.msra.gmra.mxu0 %v15862_v38 }
 0x64e   : > { %7776 = vmatpush.bf16.msrb.mxu2 %v11598_v56  ;;  %v7399_v56 = vunpack.c.h.b16 %v6633_v26  ;;  %v12495_v26 = vld [vmem:[#allocation3 + $0x23e0] sm:$0xf0] }
 0x64f   : > { %7276 = vmatmul.bf16.gmra.mxu3 %v15962_v14 }
 0x650   : > { %7804 = vmatpush.bf16.msrb.mxu0 %v11634_v4 }
 0x652   : > { %7777 = vmatpush.bf16.msrb.mxu2 %v11586_v27  ;;  %v16006_v27 = vpack.c.b16 %v7399_v56, %v7399_v56  ;;  %v11553_v56 = vld [vmem:[#allocation3 + $0x2390] sm:$0xf] }
 0x653   : > { %v11554_v49 = vor.u32 %v12486_v51, %v11553_v56  ;;  %v16034_v51 = vld [vmem:[#allocation2] sm:$0xee] }
 0x654   : > { %7826 = vmatpush.bf16.msra.mxu0 %v11742_v8  ;;  %v11830_v8 = vld [vmem:[#allocation3 + $0x2760] sm:$0xf] }
 0x656   : > { %7778 = vmatpush.bf16.msrb.mxu2 %v11574_v12  ;;  %v11685_v12 = vld [vmem:[#allocation3 + $0x2498] sm:$0xf] }
 0x657   : > { %7299 = vmatmul.bf16.gmra.mxu2 %v15973_v34  ;;  %v11686_v13 = vor.u32 %v12519_v42, %v11685_v12  ;;  %v12596_v42 = vld [vmem:[#allocation3 + $0x2708] sm:$0xf0] }
 0x658   : > { %7345 = vmatmul.bf16.gmra.mxu1 %v15962_v14  ;;  %v11562_v14 = vor.u32 %v12487_v46, %v11559_v36  ;;  %7827 = vmatpush.bf16.msra.mxu0 %v11730_v33  ;;  %v11590_v36 = vor.u32 %v12495_v26, %v11589_v63 }
 0x65a   : > { %7779 = vmatpush.bf16.msrb.mxu2 %v11562_v14  ;;  %v11831_v14 = vor.u32 %v12608_v19, %v11830_v8  ;;  %v11649_v8 = vld [vmem:[#allocation3 + $0x2450] sm:$0xf]  ;;  %v12510_v19 = vld [vmem:[#allocation3 + $0x2458] sm:$0xf0] }
 0x65d   : > { %7718 = vmatmul.bf16.gmra.mxu0 %v15901_v22 }
 0x65e   : > { %7780 = vmatpush.bf16.msrb.mxu2 %v11550_v28  ;;  %v12605_v28 = vld [vmem:[#allocation3 + $0x2750] sm:$0xf0] }
 0x65f   : > { %7358 = vmatmul.bf16.vlgmr.msra.gmra.mxu3 %v15928_v52  ;;  %v15994_v52 = vpack.c.b16 %v7398_v47, %v7398_v47  ;;  %v12492_v47 = vld [vmem:[#allocation3 + $0x23c8] sm:$0xf0] }
 0x660   : > { %7843 = vmatpush.bf16.msra.mxu3 %v11626_v30 }
 0x662   : > { %7781 = vmatpush.bf16.msrb.mxu2 %v11538_v48  ;;  %v11819_v48 = vor.u32 %v12605_v28, %v11818_v60  ;;  %v12593_v60 = vld [vmem:[#allocation3 + $0x26f0] sm:$0xf0] }
 0x664   : > { %7844 = vmatpush.bf16.msra.mxu3 %v11614_v43  ;;  %v12513_v43 = vld [vmem:[#allocation3 + $0x2470] sm:$0xf0] }
 0x665   : > { %v11662_v62 = vor.u32 %v12513_v43, %v11661_v45 }
 0x667   : > { %11528 = vmatmul.msk.bf16.vlgmr.msra.gmra.mxu2 %vm817_vm3, %v15907_v23  ;;  %v11721_v23 = vld [vmem:[#allocation3 + $0x24e0] sm:$0xf] }
 0x668   : > { %7736 = vmatmul.bf16.vlgmr.msra.gmra.mxu1 %v15877_v59  ;;  %7845 = vmatpush.bf16.msra.mxu3 %v11602_v25 }
 0x66c   : > { %7846 = vmatpush.bf16.msra.mxu3 %v11590_v36  ;;  %v11745_v36 = vld [vmem:[#allocation3 + $0x2510] sm:$0xf] }
 0x66d   : > { %7723 = vmatmul.bf16.gmra.mxu0 %v15994_v52 }
 0x66f   : > { %7363 = vmatmul.bf16.gmra.mxu3 %v15957_v44  ;;  %v11722_v44 = vor.u32 %v12528_v6, %v11721_v23 }
 0x671   : > { %7866 = vmatpush.bf16.msra.mxu2 %v11722_v44  ;;  %v11806_v44 = vld [vmem:[#allocation3 + $0x2730] sm:$0xf] }
 0x677   : > { %11529 = vmatmul.msk.bf16.gmra.mxu2 %vm817_vm3, %v15953_v31  ;;  %v11709_v31 = vld [vmem:[#allocation3 + $0x24c8] sm:$0xf] }
 0x678   : > { %7741 = vmatmul.bf16.gmra.mxu1 %v15903_v3  ;;  %v11710_v24 = vor.u32 %v12525_v1, %v11709_v31  ;;  %v11566_v31 = vor.u32 %v12489_v7, %v11565_v41  ;;  %v12602_v1 = vld [vmem:[#allocation3 + $0x2738] sm:$0xf0]  ;;  %v12531_v7 = vld [vmem:[#allocation3 + $0x2500] sm:$0xf0] }
 0x67a   : > { %7867 = vmatpush.bf16.msra.mxu2 %v11710_v24  ;;  %v11807_v24 = vor.u32 %v12602_v1, %v11806_v44  ;;  %v11758_v44 = vld [vmem:[#allocation3 + $0x26d0] sm:$0xf] }
 0x67d   : > { %7805 = vmatmul.bf16.vlgmr.msrb.gmra.mxu0 %v15877_v59 }
 0x67e   : > { %7868 = vmatpush.bf16.msra.mxu2 %v11698_v0  ;;  %v12599_v0 = vld [vmem:[#allocation3 + $0x2720] sm:$0xf0] }
 0x67f   : > { %7368 = vmatmul.bf16.gmra.mxu3 %v15973_v34  ;;  %v11843_v34 = vor.u32 %v12611_v54, %v11842_v39  ;;  %v11795_v39 = vor.u32 %v12599_v0, %v11794_v15 }
 0x681   : > { %8313 = vmatpush.bf16.msra.mxu1 %v11843_v34 }
 0x682   : > { %7869 = vmatpush.bf16.msra.mxu2 %v11686_v13 }
 0x685   : > { %v7221_v57 = vpop.f32.mrf.mxu1  ;;  %8314 = vmatpush.bf16.msra.mxu1 %v11831_v14  ;;  %v11650_v14 = vor.u32 %v12510_v19, %v11649_v8  ;;  %v11926_v8 = vld [vmem:[#allocation3 + $0x2820] sm:$0xf] }
 0x686   : > { %v7244_v29 = vpop.f32.mrf.mxu2  ;;  %7870 = vmatpush.bf16.msra.mxu2 %v11674_v18 }
 0x687   : > { %11530 = vmatmul.msk.bf16.gmra.mxu2 %vm817_vm3, %v15970_v16  ;;  %v11577_v16 = vld [vmem:[#allocation3 + $0x23c0] sm:$0xf] }
 0x688   : > { %7746 = vmatmul.bf16.gmra.mxu1 %v16006_v27  ;;  %v11578_v37 = vor.u32 %v12492_v47, %v11577_v16  ;;  %v12534_v16 = vld [vmem:[#allocation3 + $0x2518] sm:$0xf0]  ;;  %v11770_v47 = vld [vmem:[#allocation3 + $0x26e8] sm:$0xf] }
 0x689   : > { %8315 = vmatpush.bf16.msra.mxu1 %v11819_v48  ;;  %v11771_v28 = vor.u32 %v12593_v60, %v11770_v47  ;;  %v6634_v48 = vld [vmem:[#allocation2 + $0x38] sm:$0x1] }
 0x68a   : > { %v7198_v4 = vpop.f32.mrf.mxu0  ;;  %7847 = vmatpush.bf16.msra.mxu3 %v11578_v37  ;;  %7871 = vmatpush.bf16.msra.mxu2 %v11662_v62  ;;  %v11746_v37 = vor.u32 %v12534_v16, %v11745_v36  ;;  %v7400_v43 = vunpack.c.l.b16 %v6634_v48  ;;  %v12632_v36 = vld [vmem:[#allocation3 + $0x2828] sm:$0xf0]  ;;  %v11940_v16 = vld [vmem:[#allocation3 + $0x2844] sm:$0xf0] }
 0x68b   : > { %v7222_v61 = vadd.f32 %v7221_v57, %v7198_v4  ;;  %v11541_v57 = vld [vmem:[#allocation3 + $0x2378] sm:$0xf] }
 0x68c   : > { %7895 = vmatpush.bf16.msrb.mxu0 %v11746_v37 }
 0x68d   : > { %v16010_v46 = vadd.f32 %v7244_v29, %v7222_v61  ;;  %7810 = vmatmul.bf16.gmra.mxu0 %v15903_v3  ;;  %v7223_v23 = vpop.f32.mrf.mxu1  ;;  %8316 = vmatpush.bf16.msra.mxu1 %v11807_v24  ;;  %v12483_v61 = vld [vmem:[#allocation3 + $0x2380] sm:$0xf0]  ;;  %v11782_v29 = vld [vmem:[#allocation3 + $0x2700] sm:$0xf] }
 0x68e   : > { %v7246_v30 = vpop.f32.mrf.mxu2  ;;  %7848 = vmatpush.bf16.msra.mxu3 %v11566_v31  ;;  %v11542_v12 = vor.u32 %v12483_v61, %v11541_v57  ;;  %v11783_v63 = vor.u32 %v12596_v42, %v11782_v29  ;;  %7872 = vmatpush.bf16.msra.mxu2 %v11650_v14  ;;  %v12635_v57 = vld [vmem:[#allocation3 + $0x2840] sm:$0xf0]  ;;  %v12634_v14 = vld [vmem:[#allocation3 + $0x283c] sm:$0xf] }
 0x68f   : > { %11747 = vmatmul.msk.bf16.vlgmr.msrb.gmra.mxu3 %vm817_vm3, %v15871_v35 }
 0x691   : > { %8317 = vmatpush.bf16.msra.mxu1 %v11795_v39  ;;  %v11962_v39 = vld [vmem:[#allocation3 + $0x2868] sm:$0xf] }
 0x692   : > { %v7200_v50 = vpop.f32.mrf.mxu0  ;;  %v7203_v33 = vpop.f32.mrf.mxu3  ;;  %7849 = vmatpush.bf16.msra.mxu3 %v11554_v49  ;;  %v16037_v49 = vpack.c.b16 %v7400_v43, %v7400_v43 }
 0x693   : > { %v7224_v6 = vadd.f32 %v7223_v23, %v7200_v50  ;;  %v11637_v23 = vld [vmem:[#allocation3 + $0x2438] sm:$0xf] }
 0x695   : > { %v16016_v53 = vadd.f32 %v7246_v30, %v7224_v6  ;;  %v7226_v54 = vpop.f32.mrf.mxu1  ;;  %8318 = vmatpush.bf16.msra.mxu1 %v11783_v63  ;;  %v11733_v6 = vld [vmem:[#allocation3 + $0x24f8] sm:$0xf]  ;;  %v12590_v30 = vld [vmem:[#allocation3 + $0x26d8] sm:$0xf0] }
 0x696   : > { %v7227_v4 = vadd.f32 %v7226_v54, %v7203_v33  ;;  %7850 = vmatpush.bf16.msra.mxu3 %v11542_v12  ;;  %v12507_v33 = vld [vmem:[#allocation3 + $0x2440] sm:$0xf0]  ;;  %v11734_v31 = vor.u32 %v12531_v7, %v11733_v6  ;;  %v11759_v1 = vor.u32 %v12590_v30, %v11758_v44  ;;  %v12641_v54 = vld [vmem:[#allocation3 + $0x2870] sm:$0xf0]  ;;  %v7989_v12 = vunpack.c.l.b16 %v16034_v51  ;;  %v12610_v63 = vld [vmem:[#allocation3 + $0x277c] sm:$0xf] }
 0x697   : > { %7782 = vmatmul.bf16.vlgmr.msrb.gmra.mxu2 %v15862_v38  ;;  %v11638_v41 = vor.u32 %v12507_v33, %v11637_v23  ;;  %v7996_v23 = vrot.slane %v15901_v22, 1  ;;  %v12607_v33 = vld [vmem:[#allocation3 + $0x2764] sm:$0xf]  ;;  %v11832_v6 = vld [vmem:[#allocation3 + $0x276c] sm:$0xf0] }
 0x698   : > { %11751 = vmatmul.msk.bf16.vlgmr.msrb.gmra.mxu1 %vm817_vm3, %v15873_v11  ;;  %7896 = vmatpush.bf16.msrb.mxu0 %v11734_v31  ;;  %v7992_v37 = vpack.c.b16 %v6796_v20, %v7989_v12  ;;  %v11835_v7 = vor.u32 %v12607_v33, %v11832_v6  ;;  %v12629_v44 = vld [vmem:[#allocation3 + $0x2810] sm:$0xf0]  ;;  %v12631_v30 = vld [vmem:[#allocation3 + $0x2824] sm:$0xf]  ;;  %v11928_v31 = vld [vmem:[#allocation3 + $0x282c] sm:$0xf0] }
 0x699   : > { %8319 = vmatpush.bf16.msra.mxu1 %v11771_v28  ;;  %7873 = vmatpush.bf16.msra.mxu2 %v11638_v41  ;;  %v11927_v28 = vor.u32 %v12632_v36, %v11926_v8  ;;  %v11914_v41 = vld [vmem:[#allocation3 + $0x2808] sm:$0xf]  ;;  %v12628_v12 = vld [vmem:[#allocation3 + $0x280c] sm:$0xf]  ;;  %v11950_v36 = vld [vmem:[#allocation3 + $0x2850] sm:$0xf] }
 0x69a   : > { %v16018_v25 = vpop.f32.mrf.mxu0  ;;  %v7205_v34 = vpop.f32.mrf.mxu3  ;;  %v11904_v33 = vld [vmem:[#allocation3 + $0x27fc] sm:$0xf0] }
 0x69b   : > { %v7249_v13 = vpop.f32.mrf.mxu2  ;;  %v11878_v6 = vld [vmem:[#allocation3 + $0x27c0] sm:$0xf] }
 0x69c   : > { %v16024_v26 = vadd.f32 %v7249_v13, %v7227_v4  ;;  %v11963_v4 = vor.u32 %v12641_v54, %v11962_v39  ;;  %v11844_v13 = vld [vmem:[#allocation3 + $0x2784] sm:$0xf0]  ;;  %v11820_v39 = vld [vmem:[#allocation3 + $0x2754] sm:$0xf0]  ;;  %v11902_v54 = vld [vmem:[#allocation3 + $0x27f0] sm:$0xf] }
 0x69d   : > { %7815 = vmatmul.bf16.gmra.mxu0 %v16006_v27  ;;  %v7228_v17 = vpop.f32.mrf.mxu1  ;;  %8320 = vmatpush.bf16.msra.mxu1 %v11759_v1  ;;  %v11847_v19 = vor.u32 %v12610_v63, %v11844_v13  ;;  %v11915_v1 = vor.u32 %v12629_v44, %v11914_v41  ;;  %v11916_v63 = vld [vmem:[#allocation3 + $0x2814] sm:$0xf0]  ;;  %v16073_v44 = vrot.slane %v15916_v10, 1 }
 0x69e   : > { %v7229_v50 = vadd.f32 %v7228_v17, %v7205_v34  ;;  %v11938_v34 = vld [vmem:[#allocation3 + $0x2838] sm:$0xf]  ;;  %8365 = vmatpush.bf16.msrb.mxu2 %v11963_v4  ;;  %v11943_v17 = vor.u32 %v12634_v14, %v11940_v16  ;;  %v12626_v4 = vld [vmem:[#allocation3 + $0x27f8] sm:$0xf0]  ;;  %v11919_v8 = vor.u32 %v12628_v12, %v11916_v63 }
 0x69f   : > { %11748 = vmatmul.msk.bf16.gmra.mxu3 %vm817_vm3, %v15873_v11  ;;  %v11939_v61 = vor.u32 %v12635_v57, %v11938_v34  ;;  %v11903_v57 = vor.u32 %v12626_v4, %v11902_v54  ;;  %v11890_v13 = vld [vmem:[#allocation3 + $0x27d8] sm:$0xf]  ;;  %v12638_v14 = vld [vmem:[#allocation3 + $0x2858] sm:$0xf0]  ;;  %v12617_v54 = vld [vmem:[#allocation3 + $0x27b0] sm:$0xf0]  ;;  %v16084_v63 = vsel %vm1633_vm5, %v7996_v23, %v16073_v44 }
 0x6a0   : > { %v11892_v4 = vld [vmem:[#allocation3 + $0x27e4] sm:$0xf0] }
 0x6a1   : > { %8336 = vmatpush.bf16.msrb.mxu3 %v11939_v61  ;;  %8405 = vmatpush.bf16.msrb.mxu1 %v11943_v17 }
 0x6a2   : > { %v16028_v21 = vpop.f32.mrf.mxu0  ;;  %v7208_v18 = vpop.f32.mrf.mxu3 }
 0x6a3   : > { %v7251_v24 = vpop.f32.mrf.mxu2 }
 0x6a4   : > { %v16030_v45 = vadd.f32 %v7251_v24, %v7229_v50  ;;  %v7995_v50 = vrot.slane %v7992_v37, 1  ;;  %v11931_v24 = vor.u32 %v12631_v30, %v11928_v31  ;;  %v12601_v37 = vld [vmem:[#allocation3 + $0x2734] sm:$0xf]  ;;  %v12598_v31 = vld [vmem:[#allocation3 + $0x271c] sm:$0xf] }
 0x6a5   : > { %v7231_v56 = vpop.f32.mrf.mxu1  ;;  %8337 = vmatpush.bf16.msrb.mxu3 %v11927_v28 }
 0x6a6   : > { %v7232_v0 = vadd.f32 %v7231_v56, %v7208_v18  ;;  %v16060_v56 = vsel %vm1633_vm5, %v7995_v50, %v7996_v23  ;;  %8406 = vmatpush.bf16.msrb.mxu1 %v11931_v24  ;;  %v11866_v24 = vld [vmem:[#allocation3 + $0x27a8] sm:$0xf] }
 0x6a7   : > { %7787 = vmatmul.bf16.gmra.mxu2 %v15901_v22 }
 0x6a8   : > { %11752 = vmatmul.msk.bf16.gmra.mxu1 %vm817_vm3, %v16037_v49 }
 0x6a9   : > { %8338 = vmatpush.bf16.msrb.mxu3 %v11915_v1  ;;  %v11796_v1 = vld [vmem:[#allocation3 + $0x2724] sm:$0xf0] }
 0x6aa   : > { %v16032_v62 = vpop.f32.mrf.mxu0  ;;  %v7210_v15 = vpop.f32.mrf.mxu3  ;;  %8407 = vmatpush.bf16.msrb.mxu1 %v11919_v8  ;;  %v11854_v8 = vld [vmem:[#allocation3 + $0x2790] sm:$0xf] }
 0x6ab   : > { %v7254_v29 = vpop.f32.mrf.mxu2 }
 0x6ac   : > { %v16044_v42 = vadd.f32 %v7254_v29, %v7232_v0  ;;  %v12604_v0 = vld [vmem:[#allocation3 + $0x274c] sm:$0xf] }
 0x6ad   : > { %11750 = vmatmul.msk.bf16.vlgmr.msra.gmra.mxu0 %vm817_vm3, %v15871_v35  ;;  %v7233_v47 = vpop.f32.mrf.mxu1  ;;  %v11823_v34 = vor.u32 %v12604_v0, %v11820_v39  ;;  %8339 = vmatpush.bf16.msrb.mxu3 %v11903_v57  ;;  %v11799_v39 = vor.u32 %v12598_v31, %v11796_v1  ;;  %v11867_v57 = vor.u32 %v12617_v54, %v11866_v24  ;;  %v12589_v31 = vld [vmem:[#allocation3 + $0x26d4] sm:$0xf]  ;;  %v11760_v1 = vld [vmem:[#allocation3 + $0x26dc] sm:$0xf0] }
 0x6ae   : > { %8382 = vmatpush.bf16.msra.mxu0 %v11847_v19  ;;  %v12623_v19 = vld [vmem:[#allocation3 + $0x27e0] sm:$0xf0]  ;;  %v11951_v47 = vor.u32 %v12638_v14, %v11950_v36  ;;  %v11784_v14 = vld [vmem:[#allocation3 + $0x270c] sm:$0xf0]  ;;  %v12613_v24 = vld [vmem:[#allocation3 + $0x2794] sm:$0xf] }
 0x6af   : > { %11749 = vmatmul.msk.bf16.gmra.mxu3 %vm817_vm3, %v16037_v49  ;;  %v11891_v16 = vor.u32 %v12623_v19, %v11890_v13  ;;  %v12595_v19 = vld [vmem:[#allocation3 + $0x2704] sm:$0xf] }
 0x6b0   : > { %8366 = vmatpush.bf16.msrb.mxu2 %v11951_v47  ;;  %v11880_v47 = vld [vmem:[#allocation3 + $0x27cc] sm:$0xf0]  ;;  %v11787_v23 = vor.u32 %v12595_v19, %v11784_v14  ;;  %v12640_v19 = vld [vmem:[#allocation3 + $0x286c] sm:$0xf] }
 0x6b1   : > { %8340 = vmatpush.bf16.msrb.mxu3 %v11891_v16  ;;  %v12619_v16 = vld [vmem:[#allocation3 + $0x27c4] sm:$0xf] }
 0x6b2   : > { %v16048_v60 = vpop.f32.mrf.mxu0  ;;  %v7267_v48 = vpop.f32.mrf.mxu3  ;;  %8383 = vmatpush.bf16.msra.mxu0 %v11835_v7  ;;  %v12620_v7 = vld [vmem:[#allocation3 + $0x27c8] sm:$0xf0] }
 0x6b3   : > { %v7256_v18 = vpop.f32.mrf.mxu2  ;;  %v11879_v30 = vor.u32 %v12620_v7, %v11878_v6 }
 0x6b5   : > { %v16055_v43 = vpop.f32.mrf.mxu1  ;;  %8341 = vmatpush.bf16.msrb.mxu3 %v11879_v30 }
 0x6b6   : > { %8384 = vmatpush.bf16.msra.mxu0 %v11823_v34  ;;  %v12622_v34 = vld [vmem:[#allocation3 + $0x27dc] sm:$0xf] }
 0x6b7   : > { %7792 = vmatmul.bf16.gmra.mxu2 %v15994_v52 }
 0x6b8   : > { %8321 = vmatmul.bf16.vlgmr.msra.gmra.mxu1 %v16060_v56 }
 0x6b9   : > { %8342 = vmatpush.bf16.msrb.mxu3 %v11867_v57 }
 0x6ba   : > { %v16053_v20 = vpop.f32.mrf.mxu0  ;;  %v7269_v15 = vpop.f32.mrf.mxu3 }
 0x6bb   : > { %v7290_v61 = vpop.f32.mrf.mxu2 }
 0x6bc   : > { %v7291_v29 = vadd.f32 %v7290_v61, %v7267_v48  ;;  %v11895_v61 = vor.u32 %v12622_v34, %v11892_v4 }
 0x6bd   : > { %11753 = vmatmul.msk.bf16.vlgmr.msrb.gmra.mxu0 %vm817_vm3, %v15871_v35  ;;  %v11808_v35 = vld [vmem:[#allocation3 + $0x273c] sm:$0xf0]  ;;  %v16070_v18 = vpop.f32.mrf.mxu1 }
 0x6be   : > { %v16068_v28 = vadd.f32 %v16018_v25, %v7291_v29  ;;  %v11811_v48 = vor.u32 %v12601_v37, %v11808_v35  ;;  %v11883_v37 = vor.u32 %v12619_v16, %v11880_v47  ;;  %v7990_v16 = vunpack.c.h.b16 %v16034_v51  ;;  %v12609_v47 = vld [vmem:[#allocation3 + $0x2770] sm:$0xf0] }
 0x6bf   : > { %7851 = vmatmul.bf16.vlgmr.msra.gmra.mxu3 %v15862_v38  ;;  %v12625_v38 = vld [vmem:[#allocation3 + $0x27f4] sm:$0xf] }
 0x6c0   : > { %8385 = vmatpush.bf16.msra.mxu0 %v11811_v48  ;;  %v11907_v41 = vor.u32 %v12625_v38, %v11904_v33  ;;  %v12616_v48 = vld [vmem:[#allocation3 + $0x27ac] sm:$0xf]  ;;  %v11868_v33 = vld [vmem:[#allocation3 + $0x27b4] sm:$0xf0]  ;;  %v7993_v51 = vpack.c.b16 %v6797_v58, %v7990_v16 }
 0x6c1   : > { %v11871_v6 = vor.u32 %v12616_v48, %v11868_v33  ;;  %v12600_v16 = vld [vmem:[#allocation3 + $0x2728] sm:$0xf0] }
 0x6c2   : > { %v7325_v17 = vpop.f32.mrf.mxu0  ;;  %v7272_v50 = vpop.f32.mrf.mxu3  ;;  %8408 = vmatpush.bf16.msrb.mxu1 %v11907_v41 }
 0x6c3   : > { %v7292_v25 = vpop.f32.mrf.mxu2  ;;  %v11772_v17 = vld [vmem:[#allocation3 + $0x26f4] sm:$0xf0] }
 0x6c4   : > { %v7293_v0 = vadd.f32 %v7292_v25, %v7269_v15  ;;  %8386 = vmatpush.bf16.msra.mxu0 %v11799_v39 }
 0x6c5   : > { %v16078_v10 = vpop.f32.mrf.mxu1 }
 0x6c6   : > { %v16076_v29 = vadd.f32 %v16028_v21, %v7293_v0  ;;  %8409 = vmatpush.bf16.msrb.mxu1 %v11895_v61  ;;  %v12614_v21 = vld [vmem:[#allocation3 + $0x2798] sm:$0xf0]  ;;  %v11856_v0 = vld [vmem:[#allocation3 + $0x279c] sm:$0xf0] }
 0x6c7   : > { %7874 = vmatmul.bf16.vlgmr.msra.gmra.mxu2 %v15877_v59  ;;  %v11855_v36 = vor.u32 %v12614_v21, %v11854_v8  ;;  %v11859_v39 = vor.u32 %v12613_v24, %v11856_v0  ;;  %v12612_v8 = vld [vmem:[#allocation3 + $0x2788] sm:$0xf0]  ;;  %v7998_v24 = vrot.slane %v7993_v51, 1  ;;  %v11790_v51 = vld [vmem:[#allocation3 + $0x2708] sm:$0xf] }
 0x6c8   : > { %8326 = vmatmul.bf16.gmra.mxu1 %v16084_v63  ;;  %8387 = vmatpush.bf16.msra.mxu0 %v11787_v23  ;;  %v11946_v23 = vld [vmem:[#allocation3 + $0x2840] sm:$0xf] }
 0x6c9   : > { %8343 = vmatpush.bf16.msrb.mxu3 %v11855_v36  ;;  %v11964_v36 = vld [vmem:[#allocation3 + $0x2874] sm:$0xf0] }
 0x6ca   : > { %v7714_v12 = vpop.f32.mrf.mxu0  ;;  %v7274_v15 = vpop.f32.mrf.mxu3  ;;  %8410 = vmatpush.bf16.msrb.mxu1 %v11883_v37 }
 0x6cb   : > { %v16088_v13 = vadd.f32 %v7714_v12, %v16010_v46  ;;  %v7295_v59 = vpop.f32.mrf.mxu2  ;;  %v12592_v46 = vld [vmem:[#allocation3 + $0x26ec] sm:$0xf]  ;;  %v11850_v12 = vld [vmem:[#allocation3 + $0x2780] sm:$0xf] }
 0x6cc   : > { %v7296_v35 = vadd.f32 %v7295_v59, %v7272_v50  ;;  %v11775_v38 = vor.u32 %v12592_v46, %v11772_v17  ;;  %v11851_v21 = vor.u32 %v12612_v8, %v11850_v12  ;;  %v12636_v59 = vld [vmem:[#allocation3 + $0x2848] sm:$0xf0]  ;;  %v12642_v46 = vld [vmem:[#allocation3 + $0x2878] sm:$0xf0]  ;;  %v12603_v12 = vld [vmem:[#allocation3 + $0x2740] sm:$0xf0] }
 0x6cd   : > { %11754 = vmatmul.msk.bf16.gmra.mxu0 %vm817_vm3, %v15873_v11  ;;  %v16097_v7 = vpop.f32.mrf.mxu1  ;;  %v11922_v8 = vld [vmem:[#allocation3 + $0x2810] sm:$0xf] }
 0x6ce   : > { %v16095_v41 = vadd.f32 %v16032_v62, %v7296_v35  ;;  %8388 = vmatpush.bf16.msra.mxu0 %v11775_v38  ;;  %8411 = vmatpush.bf16.msrb.mxu1 %v11871_v6  ;;  %v11970_v35 = vld [vmem:[#allocation3 + $0x2870] sm:$0xf]  ;;  %v11947_v38 = vor.u32 %v12636_v59, %v11946_v23  ;;  %v12627_v23 = vld [vmem:[#allocation3 + $0x2800] sm:$0xf0] }
 0x6cf   : > { %7856 = vmatmul.bf16.gmra.mxu3 %v15901_v22  ;;  %v11763_v22 = vor.u32 %v12589_v31, %v11760_v1  ;;  %8451 = vmatpush.bf16.msra.mxu2 %v11851_v21  ;;  %v11971_v33 = vor.u32 %v12642_v46, %v11970_v35  ;;  %v11826_v31 = vld [vmem:[#allocation3 + $0x2750] sm:$0xf]  ;;  %v11934_v1 = vld [vmem:[#allocation3 + $0x2828] sm:$0xf] }
 0x6d2   : > { %v7716_v30 = vpop.f32.mrf.mxu0  ;;  %v7277_v25 = vpop.f32.mrf.mxu3  ;;  %8389 = vmatpush.bf16.msra.mxu0 %v11763_v22  ;;  %8412 = vmatpush.bf16.msrb.mxu1 %v11859_v39  ;;  %v7999_v22 = vrot.slane %v15903_v3, 1  ;;  %v12633_v39 = vld [vmem:[#allocation3 + $0x2830] sm:$0xf0] }
 0x6d3   : > { %v16100_v50 = vadd.f32 %v7716_v30, %v16016_v53  ;;  %v7297_v54 = vpop.f32.mrf.mxu2 }
 0x6d4   : > { %v7298_v34 = vadd.f32 %v7297_v54, %v7274_v15  ;;  %v7913_v54 = vld [vmem:[#allocation2 + $0x8] sm:$0xe] }
 0x6d5   : > { %v16105_v4 = vpop.f32.mrf.mxu1 }
 0x6d6   : > { %v16103_v62 = vadd.f32 %v16048_v60, %v7298_v34  ;;  %v11967_v60 = vor.u32 %v12640_v19, %v11964_v36  ;;  %8474 = vmatpush.bf16.msrb.mxu0 %v11947_v38  ;;  %8503 = vmatpush.bf16.msra.mxu1 %v11971_v33  ;;  %v16137_v19 = vsel %vm1633_vm5, %v7998_v24, %v7999_v22  ;;  %v7991_v36 = vunpack.c.l.b16 %v7913_v54 }
 0x6d7   : > { %7879 = vmatmul.bf16.gmra.mxu2 %v15903_v3  ;;  %v8002_v33 = vrot.slane %v15873_v11, 1  ;;  %v16159_v24 = vrot.slane %v15935_v40, 1 }
 0x6d8   : > { %8331 = vmatmul.bf16.gmra.mxu1 %v16073_v44  ;;  %8434 = vmatpush.bf16.msra.mxu3 %v11967_v60  ;;  %v12630_v60 = vld [vmem:[#allocation3 + $0x2818] sm:$0xf0] }
 0x6d9   : > { %v16173_v40 = vsel %vm1633_vm5, %v7999_v22, %v16159_v24  ;;  %v12618_v22 = vld [vmem:[#allocation3 + $0x27b8] sm:$0xf0] }
 0x6da   : > { %v7719_v57 = vpop.f32.mrf.mxu0  ;;  %v7279_v53 = vpop.f32.mrf.mxu3 }
 0x6db   : > { %v16109_v61 = vadd.f32 %v7719_v57, %v16024_v26  ;;  %v7300_v15 = vpop.f32.mrf.mxu2  ;;  %v11838_v26 = vld [vmem:[#allocation3 + $0x2768] sm:$0xf]  ;;  %v11814_v53 = vld [vmem:[#allocation3 + $0x2738] sm:$0xf] }
 0x6dc   : > { %v7301_v14 = vadd.f32 %v7300_v15, %v7277_v25  ;;  %v11839_v37 = vor.u32 %v12609_v47, %v11838_v26  ;;  %v11910_v26 = vld [vmem:[#allocation3 + $0x27f8] sm:$0xf] }
 0x6dd   : > { %11755 = vmatmul.msk.bf16.gmra.mxu0 %vm817_vm3, %v16037_v49  ;;  %v7348_v17 = vpop.f32.mrf.mxu1  ;;  %v11911_v35 = vor.u32 %v12627_v23, %v11910_v26  ;;  %v12615_v23 = vld [vmem:[#allocation3 + $0x27a0] sm:$0xf0] }
 0x6de   : > { %v16117_v49 = vadd.f32 %v16053_v20, %v7301_v14  ;;  %8452 = vmatpush.bf16.msra.mxu2 %v11839_v37  ;;  %v12606_v20 = vld [vmem:[#allocation3 + $0x2758] sm:$0xf0]  ;;  %v11802_v14 = vld [vmem:[#allocation3 + $0x2720] sm:$0xf] }
 0x6df   : > { %7861 = vmatmul.bf16.gmra.mxu3 %v15994_v52  ;;  %v11827_v0 = vor.u32 %v12606_v20, %v11826_v31  ;;  %v11803_v47 = vor.u32 %v12600_v16, %v11802_v14  ;;  %v11898_v31 = vld [vmem:[#allocation3 + $0x27e0] sm:$0xf] }
 0x6e2   : > { %v7721_v48 = vpop.f32.mrf.mxu0  ;;  %v7359_v6 = vpop.f32.mrf.mxu3  ;;  %8453 = vmatpush.bf16.msra.mxu2 %v11827_v0 }
 0x6e3   : > { %v16120_v30 = vadd.f32 %v7721_v48, %v16030_v45  ;;  %v7360_v52 = vadd.f32 %v7359_v6, %v16055_v43  ;;  %v7302_v25 = vpop.f32.mrf.mxu2  ;;  %v11935_v45 = vor.u32 %v12633_v39, %v11934_v1 }
 0x6e4   : > { %v12597_v25 = vld [vmem:[#allocation3 + $0x2710] sm:$0xf0] }
 0x6e5   : > { %v7737_v57 = vpop.f32.mrf.mxu1  ;;  %8475 = vmatpush.bf16.msrb.mxu0 %v11935_v45  ;;  %v11791_v1 = vor.u32 %v12597_v25, %v11790_v51 }
 0x6e6   : > { %v16131_v43 = vadd.f32 %v7737_v57, %v16088_v13  ;;  %v11958_v57 = vld [vmem:[#allocation3 + $0x2858] sm:$0xf] }
 0x6e7   : > { %7884 = vmatmul.bf16.gmra.mxu2 %v16006_v27  ;;  %v11815_v27 = vor.u32 %v12603_v12, %v11814_v53  ;;  %v11886_v53 = vld [vmem:[#allocation3 + $0x27c8] sm:$0xf] }
 0x6e8   : > { %8413 = vmatmul.bf16.vlgmr.msrb.gmra.mxu1 %v16137_v19 }
 0x6e9   : > { %8454 = vmatpush.bf16.msra.mxu2 %v11815_v27 }
 0x6ea   : > { %v7724_v34 = vpop.f32.mrf.mxu0  ;;  %v7361_v5 = vpop.f32.mrf.mxu3 }
 0x6eb   : > { %v16128_v58 = vadd.f32 %v7724_v34, %v16044_v42  ;;  %v7362_v21 = vadd.f32 %v7361_v5, %v16070_v18  ;;  %v11923_v42 = vor.u32 %v12630_v60, %v11922_v8  ;;  %v7382_v13 = vpop.f32.mrf.mxu2  ;;  %v7994_v18 = vpack.c.b16 %v6798_v9, %v7991_v36  ;;  %v11952_v9 = vld [vmem:[#allocation3 + $0x285c] sm:$0xf0]  ;;  %v12639_v5 = vld [vmem:[#allocation3 + $0x2860] sm:$0xf0]  ;;  %v11778_v60 = vld [vmem:[#allocation3 + $0x26f0] sm:$0xf] }
 0x6ec   : > { %v16141_v15 = vadd.f32 %v7382_v13, %v7360_v52  ;;  %v11955_v6 = vor.u32 %v12637_v32, %v11952_v9  ;;  %v11959_v8 = vor.u32 %v12639_v5, %v11958_v57 }
 0x6ed   : > { %8390 = vmatmul.bf16.vlgmr.msra.gmra.mxu0 %v16060_v56  ;;  %v7739_v59 = vpop.f32.mrf.mxu1  ;;  %8455 = vmatpush.bf16.msra.mxu2 %v11803_v47  ;;  %v8001_v38 = vrot.slane %v7994_v18, 1  ;;  %v11862_v47 = vld [vmem:[#allocation3 + $0x2798] sm:$0xf] }
 0x6ee   : > { %8476 = vmatpush.bf16.msrb.mxu0 %v11923_v42  ;;  %v16147_v17 = vadd.f32 %v7739_v59, %v16100_v50  ;;  %8435 = vmatpush.bf16.msra.mxu3 %v11955_v6  ;;  %v12624_v50 = vld [vmem:[#allocation3 + $0x27e8] sm:$0xf0]  ;;  %v11874_v42 = vld [vmem:[#allocation3 + $0x27b0] sm:$0xf]  ;;  %v16183_v59 = vrot.slane %v15944_v55, 1 }
 0x6ef   : > { %8344 = vmatmul.bf16.vlgmr.msrb.gmra.mxu3 %v16137_v19  ;;  %v11899_v0 = vor.u32 %v12624_v50, %v11898_v31  ;;  %8504 = vmatpush.bf16.msra.mxu1 %v11959_v8  ;;  %v11875_v13 = vor.u32 %v12618_v22, %v11874_v42 }
 0x6f1   : > { %8456 = vmatpush.bf16.msra.mxu2 %v11791_v1 }
 0x6f2   : > { %v7726_v37 = vpop.f32.mrf.mxu0  ;;  %v7364_v46 = vpop.f32.mrf.mxu3  ;;  %8477 = vmatpush.bf16.msrb.mxu0 %v11911_v35  ;;  %v11766_v35 = vld [vmem:[#allocation3 + $0x26d8] sm:$0xf] }
 0x6f3   : > { %v7365_v48 = vadd.f32 %v7364_v46, %v16078_v10  ;;  %v7384_v52 = vpop.f32.mrf.mxu2  ;;  %v16156_v10 = vsel %vm1633_vm5, %v8001_v38, %v8002_v33  ;;  %v12591_v46 = vld [vmem:[#allocation3 + $0x26e0] sm:$0xf0] }
 0x6f4   : > { %v16151_v20 = vadd.f32 %v7384_v52, %v7362_v21  ;;  %v12621_v21 = vld [vmem:[#allocation3 + $0x27d0] sm:$0xf0]  ;;  %v11767_v38 = vor.u32 %v12591_v46, %v11766_v35 }
 0x6f5   : > { %v7742_v39 = vpop.f32.mrf.mxu1  ;;  %v11887_v36 = vor.u32 %v12621_v21, %v11886_v53 }
 0x6f6   : > { %8478 = vmatpush.bf16.msrb.mxu0 %v11899_v0  ;;  %v16166_v34 = vadd.f32 %v7742_v39, %v16109_v61 }
 0x6f7   : > { %11972 = vmatmul.msk.bf16.vlgmr.msrb.gmra.mxu2 %vm817_vm3, %v16156_v10 }
 0x6f8   : > { %8418 = vmatmul.bf16.gmra.mxu1 %v16173_v40 }
 0x6fa   : > { %v16161_v54 = vpop.f32.mrf.mxu0  ;;  %v7366_v45 = vpop.f32.mrf.mxu3  ;;  %8479 = vmatpush.bf16.msrb.mxu0 %v11887_v36 }
 0x6fb   : > { %v7367_v12 = vadd.f32 %v7366_v45, %v16097_v7  ;;  %v7387_v61 = vpop.f32.mrf.mxu2  ;;  %v12594_v7 = vld [vmem:[#allocation3 + $0x26f8] sm:$0xf0] }
 0x6fc   : > { %v16177_v27 = vadd.f32 %v7387_v61, %v7365_v48  ;;  %v11779_v3 = vor.u32 %v12594_v7, %v11778_v60  ;;  %v11863_v48 = vor.u32 %v12615_v23, %v11862_v47 }
 0x6fd   : > { %8395 = vmatmul.bf16.gmra.mxu0 %v16084_v63  ;;  %v7744_v18 = vpop.f32.mrf.mxu1 }
 0x6fe   : > { %8457 = vmatpush.bf16.msra.mxu2 %v11779_v3  ;;  %v7745_v26 = vadd.f32 %v7744_v18, %v16120_v30  ;;  %8480 = vmatpush.bf16.msrb.mxu0 %v11875_v13  ;;  %v8009_v30 = vsel %vm1633_vm5, %v8002_v33, %v16183_v59 }
 0x6ff   : > { %8349 = vmatmul.bf16.gmra.mxu3 %v16173_v40 }
 0x702   : > { %v7808_v14 = vpop.f32.mrf.mxu0  ;;  %v7369_v16 = vpop.f32.mrf.mxu3  ;;  %8458 = vmatpush.bf16.msra.mxu2 %v11767_v38  ;;  %8481 = vmatpush.bf16.msrb.mxu0 %v11863_v48 }
 0x703   : > { %v7370_v37 = vadd.f32 %v7369_v16, %v16105_v4  ;;  %v7389_v32 = vpop.f32.mrf.mxu2 }
 0x704   : > { %v16185_v9 = vadd.f32 %v7389_v32, %v7367_v12 }
 0x705   : > { %v7747_v6 = vpop.f32.mrf.mxu1 }
 0x706   : > { %v7748_v4 = vadd.f32 %v7747_v6, %v16128_v58 }
 0x707   : > { %11973 = vmatmul.msk.bf16.gmra.mxu2 %vm817_vm3, %v8009_v30 }
 0x708   : > { %8423 = vmatmul.bf16.gmra.mxu1 %v16159_v24 }
 0x70a   : > { %v7811_v52 = vpop.f32.mrf.mxu0  ;;  %v7371_v55 = vpop.f32.mrf.mxu3 }
 0x70b   : > { %v7392_v51 = vpop.f32.mrf.mxu2 }
 0x70c   : > { %v16195_v25 = vadd.f32 %v7392_v51, %v7370_v37 }
 0x70d   : > { %8400 = vmatmul.bf16.gmra.mxu0 %v16073_v44  ;;  %v7749_v11 = vpop.f32.mrf.mxu1 }
 0x70f   : > { %8354 = vmatmul.bf16.gmra.mxu3 %v16159_v24 }
 0x712   : > { %v7813_v31 = vpop.f32.mrf.mxu0  ;;  %v7760_v1 = vpop.f32.mrf.mxu3 }
 0x713   : > { %v16199_v33 = vadd.f32 %v7760_v1, %v16131_v43  ;;  %v7394_v50 = vpop.f32.mrf.mxu2 }
 0x715   : > { %v7834_v39 = vpop.f32.mrf.mxu1 }
 0x717   : > { %11974 = vmatmul.msk.bf16.gmra.mxu2 %vm817_vm3, %v16183_v59 }
 0x718   : > { %11978 = vmatmul.msk.bf16.vlgmr.msra.gmra.mxu1 %vm817_vm3, %v16156_v10 }
 0x71a   : > { %v7816_v0 = vpop.f32.mrf.mxu0  ;;  %v7762_v58 = vpop.f32.mrf.mxu3 }
 0x71b   : > { %v16204_v45 = vadd.f32 %v7762_v58, %v16147_v17  ;;  %v7783_v57 = vpop.f32.mrf.mxu2 }
 0x71c   : > { %v7784_v5 = vadd.f32 %v7783_v57, %v16068_v28 }
 0x71d   : > { %8482 = vmatmul.bf16.vlgmr.msrb.gmra.mxu0 %v16137_v19  ;;  %v7836_v12 = vpop.f32.mrf.mxu1 }
 0x71e   : > { %v7807_v43 = vadd.f32 %v16161_v54, %v7784_v5 }
 0x71f   : > { %11975 = vmatmul.msk.bf16.vlgmr.msra.gmra.mxu3 %vm817_vm3, %v16156_v10 }
 0x722   : > { %v7818_v53 = vpop.f32.mrf.mxu0  ;;  %v7765_v8 = vpop.f32.mrf.mxu3 }
 0x723   : > { %v16214_v21 = vadd.f32 %v7765_v8, %v16166_v34  ;;  %v7785_v17 = vpop.f32.mrf.mxu2 }
 0x724   : > { %v7786_v19 = vadd.f32 %v7785_v17, %v16076_v29 }
 0x725   : > { %v7839_v60 = vpop.f32.mrf.mxu1 }
 0x726   : > { %v7809_v36 = vadd.f32 %v7808_v14, %v7786_v19 }
 0x727   : > { %8459 = vmatmul.bf16.vlgmr.msra.gmra.mxu2 %v16060_v56 }
 0x728   : > { %11979 = vmatmul.msk.bf16.gmra.mxu1 %vm817_vm3, %v8009_v30 }
 0x72a   : > { %v7829_v61 = vpop.f32.mrf.mxu0  ;;  %v7767_v28 = vpop.f32.mrf.mxu3 }
 0x72b   : > { %v16218_v7 = vadd.f32 %v7829_v61, %v7807_v43  ;;  %v16220_v10 = vadd.f32 %v7767_v28, %v7745_v26  ;;  %v7788_v54 = vpop.f32.mrf.mxu2 }
 0x72c   : > { %v7789_v34 = vadd.f32 %v7788_v54, %v16095_v41 }
 0x72d   : > { %8487 = vmatmul.bf16.gmra.mxu0 %v16173_v40  ;;  %v7841_v3 = vpop.f32.mrf.mxu1 }
 0x72e   : > { %v7812_v29 = vadd.f32 %v7811_v52, %v7789_v34 }
 0x72f   : > { %11976 = vmatmul.msk.bf16.gmra.mxu3 %vm817_vm3, %v8009_v30 }
 0x730   : > { %v16228_v56 = vadd.f32 %v7834_v39, %v7812_v29 }
 0x732   : > { %v7831_v42 = vpop.f32.mrf.mxu0  ;;  %v7770_v22 = vpop.f32.mrf.mxu3 }
 0x733   : > { %v16226_v13 = vadd.f32 %v7831_v42, %v7809_v36  ;;  %v16230_v18 = vadd.f32 %v7770_v22, %v7748_v4  ;;  %v7790_v14 = vpop.f32.mrf.mxu2 }
 0x734   : > { %v7791_v40 = vadd.f32 %v7790_v14, %v16103_v62 }
 0x735   : > { %v8322_v47 = vpop.f32.mrf.mxu1 }
 0x736   : > { %v7814_v16 = vadd.f32 %v7813_v31, %v7791_v40 }
 0x737   : > { %8464 = vmatmul.bf16.gmra.mxu2 %v16084_v63 }
 0x738   : > { %v16234_v23 = vadd.f32 %v7836_v12, %v7814_v16  ;;  %11980 = vmatmul.msk.bf16.gmra.mxu1 %vm817_vm3, %v16183_v59  ;;  %v16272_v16 = vld [vmem:[#allocation5 + $0x15] sm:$0x7] }
 0x73a   : > { %v7898_v26 = vpop.f32.mrf.mxu0  ;;  %v7772_v41 = vpop.f32.mrf.mxu3 }
 0x73b   : > { %v7793_v37 = vpop.f32.mrf.mxu2 }
 0x73c   : > { %v7794_v35 = vadd.f32 %v7793_v37, %v16117_v49 }
 0x73d   : > { %8492 = vmatmul.bf16.gmra.mxu0 %v16159_v24  ;;  %v8324_v48 = vpop.f32.mrf.mxu1 }
 0x73e   : > { %v7817_v62 = vadd.f32 %v7816_v0, %v7794_v35  ;;  %v8538_v35 = vperm.slane %v16272_v16, 0 }
 0x73f   : > { %11977 = vmatmul.msk.bf16.gmra.mxu3 %vm817_vm3, %v16183_v59 }
 0x740   : > { %v16242_v32 = vadd.f32 %v7839_v60, %v7817_v62 }
 0x742   : > { %v7900_v46 = vpop.f32.mrf.mxu0  ;;  %v7852_v38 = vpop.f32.mrf.mxu3 }
 0x743   : > { %v7853_v63 = vadd.f32 %v7852_v38, %v16141_v15  ;;  %v7795_v30 = vpop.f32.mrf.mxu2 }
 0x745   : > { %v8327_v24 = vpop.f32.mrf.mxu1 }
 0x747   : > { %8469 = vmatmul.bf16.gmra.mxu2 %v16073_v44 }
 0x74a   : > { %v7903_v6 = vpop.f32.mrf.mxu0  ;;  %v7854_v52 = vpop.f32.mrf.mxu3 }
 0x74b   : > { %v7855_v55 = vadd.f32 %v7854_v52, %v16151_v20  ;;  %v7875_v49 = vpop.f32.mrf.mxu2 }
 0x74c   : > { %v7876_v4 = vadd.f32 %v7875_v49, %v7853_v63 }
 0x74d   : > { %v16249_v31 = vpop.f32.mrf.mxu1 }
 0x74e   : > { %v16247_v51 = vadd.f32 %v7898_v26, %v7876_v4 }
 0x752   : > { %v7905_v59 = vpop.f32.mrf.mxu0  ;;  %v7857_v11 = vpop.f32.mrf.mxu3 }
 0x753   : > { %v7858_v1 = vadd.f32 %v7857_v11, %v16177_v27  ;;  %v7877_v50 = vpop.f32.mrf.mxu2 }
 0x754   : > { %v7878_v15 = vadd.f32 %v7877_v50, %v7855_v55 }
 0x755   : > { %v16254_v58 = vpop.f32.mrf.mxu1 }
 0x756   : > { %v16252_v0 = vadd.f32 %v7900_v46, %v7878_v15 }
 0x75a   : > { %v7908_v39 = vpop.f32.mrf.mxu0  ;;  %v7859_v44 = vpop.f32.mrf.mxu3 }
 0x75b   : > { %v7860_v20 = vadd.f32 %v7859_v44, %v16185_v9  ;;  %v7880_v57 = vpop.f32.mrf.mxu2 }
 0x75c   : > { %v7881_v5 = vadd.f32 %v7880_v57, %v7858_v1 }
 0x75d   : > { %v8334_v12 = vpop.f32.mrf.mxu1 }
 0x75e   : > { %v16257_v43 = vadd.f32 %v7903_v6, %v7881_v5 }
 0x762   : > { %v7910_v53 = vpop.f32.mrf.mxu0  ;;  %v7862_v8 = vpop.f32.mrf.mxu3 }
 0x763   : > { %v7863_v17 = vadd.f32 %v7862_v8, %v16195_v25  ;;  %v7882_v27 = vpop.f32.mrf.mxu2 }
 0x764   : > { %v7883_v19 = vadd.f32 %v7882_v27, %v7860_v20 }
 0x765   : > { %v8414_v60 = vpop.f32.mrf.mxu1 }
 0x766   : > { %v16260_v36 = vadd.f32 %v7905_v59, %v7883_v19 }
 0x76a   : > { %v8391_v61 = vpop.f32.mrf.mxu0  ;;  %v7864_v28 = vpop.f32.mrf.mxu3 }
 0x76b   : > { %v7885_v54 = vpop.f32.mrf.mxu2 }
 0x76c   : > { %v7886_v34 = vadd.f32 %v7885_v54, %v7863_v17 }
 0x76d   : > { %v16266_v42 = vpop.f32.mrf.mxu1 }
 0x76e   : > { %v16262_v29 = vadd.f32 %v7908_v39, %v7886_v34 }
 0x772   : > { %v16264_v9 = vpop.f32.mrf.mxu0  ;;  %v8345_v3 = vpop.f32.mrf.mxu3 }
 0x773   : > { %v7887_v22 = vpop.f32.mrf.mxu2  ;;  %v8346_v26 = vadd.f32 %v8345_v3, %v8322_v47 }
 0x775   : > { %v16270_v25 = vpop.f32.mrf.mxu1 }
 0x77a   : > { %v16268_v14 = vpop.f32.mrf.mxu0  ;;  %v8347_v40 = vpop.f32.mrf.mxu3 }
 0x77b   : > { %v8368_v41 = vpop.f32.mrf.mxu2  ;;  %v8348_v6 = vadd.f32 %v8347_v40, %v8324_v48  ;;  %v8415_v40 = vadd.f32 %v8414_v60, %v8391_v61 }
 0x77c   : > { %v8369_v37 = vadd.f32 %v8368_v41, %v8346_v26 }
 0x77d   : > { %v16278_v38 = vpop.f32.mrf.mxu1 }
 0x77e   : > { %v8520_v62 = vadd.f32 %v8369_v37, %v16199_v33 }
 0x780   : > { %v8544_v63 = vadd.f32 %v8538_v35, %v8520_v62 }
 0x782   : > { %v16276_v46 = vpop.f32.mrf.mxu0  ;;  %v8350_v30 = vpop.f32.mrf.mxu3  ;;  %v8559_v52 = vmax.f32 %v8544_v63, 0.0  ;;  %v16296_v63 = vperm.slane %v16272_v16, 1 }
 0x783   : > { %v8370_v55 = vpop.f32.mrf.mxu2  ;;  %v8351_v1 = vadd.f32 %v8350_v30, %v8327_v24 }
 0x784   : > { %8589 = vst [vmem:[%s13133_s6] sm:$0xff] %v8559_v52  ;;  %v8371_v49 = vadd.f32 %v8370_v55, %v8348_v6 }
 0x785   : > { %v16284_v59 = vpop.f32.mrf.mxu1 }
 0x786   : > { %v8523_v47 = vadd.f32 %v8371_v49, %v16204_v45 }
 0x788   : > { %v8547_v11 = vadd.f32 %v8538_v35, %v8523_v47 }
 0x78a   : > { %v16282_v4 = vpop.f32.mrf.mxu0  ;;  %v8352_v33 = vpop.f32.mrf.mxu3  ;;  %v8562_v50 = vmax.f32 %v8547_v11, 0.0 }
 0x78b   : > { %v8373_v15 = vpop.f32.mrf.mxu2  ;;  %v8353_v45 = vadd.f32 %v8352_v33, %v16249_v31 }
 0x78c   : > { %8592 = vst [vmem:[%s13133_s6 + $0x18] sm:$0xff] %v8562_v50  ;;  %v8374_v39 = vadd.f32 %v8373_v15, %v8351_v1  ;;  %v8540_v50 = vperm.slane %v16272_v16, 2 }
 0x78d   : > { %v8426_v20 = vpop.f32.mrf.mxu1 }
 0x78e   : > { %v8526_v48 = vadd.f32 %v8374_v39, %v16214_v21 }
 0x790   : > { %v8550_v57 = vadd.f32 %v8538_v35, %v8526_v48 }
 0x792   : > { %v8403_v44 = vpop.f32.mrf.mxu0  ;;  %v8355_v5 = vpop.f32.mrf.mxu3  ;;  %v8565_v53 = vmax.f32 %v8550_v57, 0.0 }
 0x793   : > { %v8375_v12 = vpop.f32.mrf.mxu2  ;;  %v8356_v21 = vadd.f32 %v8355_v5, %v16254_v58 }
 0x794   : > { %v8580_v8 = vmul.f32 %v8565_v53, %v13580_v2  ;;  %v8376_v17 = vadd.f32 %v8375_v12, %v8353_v45 }
 0x795   : > { %v8506_v19 = vpop.f32.mrf.mxu1 }
 0x796   : > { %8595 = vst [vmem:[%s13133_s6 + $0x30] sm:$0xff] %v8580_v8  ;;  %v8529_v24 = vadd.f32 %v8376_v17, %v16220_v10 }
 0x798   : > { %v8553_v28 = vadd.f32 %v8538_v35, %v8529_v24 }
 0x79a   : > { %v8483_v27 = vpop.f32.mrf.mxu0  ;;  %v8357_v54 = vpop.f32.mrf.mxu3  ;;  %v8568_v34 = vmax.f32 %v8553_v28, 0.0 }
 0x79b   : > { %v8378_v3 = vpop.f32.mrf.mxu2 }
 0x79c   : > { %8598 = vst [vmem:[%s13133_s6 + $0x48] sm:$0xff] %v8568_v34  ;;  %v8379_v22 = vadd.f32 %v8378_v3, %v8356_v21 }
 0x79d   : > { %v8508_v41 = vpop.f32.mrf.mxu1 }
 0x79e   : > { %v8532_v31 = vadd.f32 %v8379_v22, %v16230_v18  ;;  %v8417_v18 = vadd.f32 %v16266_v42, %v16264_v9  ;;  %v8420_v9 = vadd.f32 %v16270_v25, %v16268_v14  ;;  %v8422_v25 = vadd.f32 %v16278_v38, %v16276_v46 }
 0x7a0   : > { %v8556_v37 = vadd.f32 %v8538_v35, %v8532_v31 }
 0x7a2   : > { %v8485_v26 = vpop.f32.mrf.mxu0  ;;  %v8437_v62 = vpop.f32.mrf.mxu3  ;;  %v8571_v30 = vmax.f32 %v8556_v37, 0.0 }
 0x7a3   : > { %v8438_v10 = vadd.f32 %v8437_v62, %v8415_v40  ;;  %v8380_v6 = vpop.f32.mrf.mxu2 }
 0x7a4   : > { %8601 = vst [vmem:[%s13133_s6 + $0x60] sm:$0x3] %v8571_v30 }
 0x7a5   : > { %v8521_v58 = vadd.f32 %v8438_v10, %v16218_v7  ;;  %v8511_v55 = vpop.f32.mrf.mxu1 }
 0x7a7   : > { %v8545_v52 = vadd.f32 %v16296_v63, %v8521_v58 }
 0x7a9   : > { %v8560_v61 = vmax.f32 %v8545_v52, 0.0 }
 0x7aa   : > { %v8488_v60 = vpop.f32.mrf.mxu0  ;;  %v8439_v35 = vpop.f32.mrf.mxu3 }
 0x7ab   : > { %8590 = vst [vmem:[%s13133_s6 + $0x8] sm:$0xff] %v8560_v61  ;;  %v8440_v49 = vadd.f32 %v8439_v35, %v8417_v18  ;;  %v8460_v11 = vpop.f32.mrf.mxu2 }
 0x7ac   : > { %v8484_v33 = vadd.f32 %v8483_v27, %v8460_v11 }
 0x7ad   : > { %v8524_v47 = vadd.f32 %v8440_v49, %v16226_v13  ;;  %v8513_v39 = vpop.f32.mrf.mxu1 }
 0x7ae   : > { %v8507_v1 = vadd.f32 %v8506_v19, %v8484_v33 }
 0x7af   : > { %v8548_v7 = vadd.f32 %v16296_v63, %v8524_v47 }
 0x7b0   : > { %v8522_v48 = vadd.f32 %v8507_v1, %v16247_v51 }
 0x7b1   : > { %v8563_v42 = vmax.f32 %v8548_v7, 0.0 }
 0x7b2   : > { %v8490_v15 = vpop.f32.mrf.mxu0  ;;  %v8442_v44 = vpop.f32.mrf.mxu3  ;;  %v8546_v13 = vadd.f32 %v8540_v50, %v8522_v48 }
 0x7b3   : > { %8593 = vst [vmem:[%s13133_s6 + $0x20] sm:$0xff] %v8563_v42  ;;  %v8443_v20 = vadd.f32 %v8442_v44, %v8420_v9  ;;  %v8462_v5 = vpop.f32.mrf.mxu2 }
 0x7b4   : > { %v8561_v45 = vmax.f32 %v8546_v13, 0.0  ;;  %v8486_v53 = vadd.f32 %v8485_v26, %v8462_v5 }
 0x7b5   : > { %v8527_v57 = vadd.f32 %v8443_v20, %v16228_v56  ;;  %v8516_v8 = vpop.f32.mrf.mxu1 }
 0x7b6   : > { %8591 = vst.msk [vmem:[%s13133_s6 + $0x10] sm:$0xff] %vm817_vm3, %v8561_v45  ;;  %v8509_v14 = vadd.f32 %v8508_v41, %v8486_v53 }
 0x7b7   : > { %v8551_v16 = vadd.f32 %v16296_v63, %v8527_v57 }
 0x7b8   : > { %v8525_v17 = vadd.f32 %v8509_v14, %v16252_v0  ;;  %v8425_v0 = vadd.f32 %v16284_v59, %v16282_v4 }
 0x7b9   : > { %v8566_v51 = vmax.f32 %v8551_v16, 0.0 }
 0x7ba   : > { %v8493_v12 = vpop.f32.mrf.mxu0  ;;  %v8444_v24 = vpop.f32.mrf.mxu3  ;;  %v8549_v19 = vadd.f32 %v8540_v50, %v8525_v17 }
 0x7bb   : > { %v8581_v56 = vmul.f32 %v8566_v51, %v13580_v2  ;;  %v8445_v27 = vadd.f32 %v8444_v24, %v8422_v25  ;;  %v8465_v54 = vpop.f32.mrf.mxu2 }
 0x7bc   : > { %v8564_v21 = vmax.f32 %v8549_v19, 0.0  ;;  %v8489_v34 = vadd.f32 %v8488_v60, %v8465_v54 }
 0x7bd   : > { %8596 = vst [vmem:[%s13133_s6 + $0x38] sm:$0xff] %v8581_v56  ;;  %v8530_v28 = vadd.f32 %v8445_v27, %v16234_v23  ;;  %v8518_v31 = vpop.f32.mrf.mxu1 }
 0x7be   : > { %8594 = vst.msk [vmem:[%s13133_s6 + $0x28] sm:$0xff] %vm817_vm3, %v8564_v21  ;;  %v8512_v46 = vadd.f32 %v8511_v55, %v8489_v34 }
 0x7bf   : > { %v8554_v3 = vadd.f32 %v16296_v63, %v8530_v28 }
 0x7c0   : > { %v8528_v40 = vadd.f32 %v8512_v46, %v16257_v43 }
 0x7c1   : > { %v8569_v38 = vmax.f32 %v8554_v3, 0.0 }
 0x7c2   : > { %v8495_v22 = vpop.f32.mrf.mxu0  ;;  %v8447_v26 = vpop.f32.mrf.mxu3  ;;  %v8552_v41 = vadd.f32 %v8540_v50, %v8528_v40 }
 0x7c3   : > { %8599 = vst [vmem:[%s13133_s6 + $0x50] sm:$0xff] %v8569_v38  ;;  %v8448_v23 = vadd.f32 %v8447_v26, %v8425_v0  ;;  %v8467_v62 = vpop.f32.mrf.mxu2 }
 0x7c4   : > { %v8567_v10 = vmax.f32 %v8552_v41, 0.0  ;;  %v8491_v30 = vadd.f32 %v8490_v15, %v8467_v62 }
 0x7c5   : > { %v8533_v37 = vadd.f32 %v8448_v23, %v16242_v32 }
 0x7c6   : > { %v8582_v4 = vmul.f32 %v8567_v10, %v13580_v2  ;;  %v8514_v59 = vadd.f32 %v8513_v39, %v8491_v30 }
 0x7c7   : > { %v8557_v58 = vadd.f32 %v16296_v63, %v8533_v37 }
 0x7c8   : > { %8597 = vst.msk [vmem:[%s13133_s6 + $0x40] sm:$0xff] %vm817_vm3, %v8582_v4  ;;  %v8531_v43 = vadd.f32 %v8514_v59, %v16260_v36 }
 0x7c9   : > { %v8572_v6 = vmax.f32 %v8557_v58, 0.0 }
 0x7ca   : > { %v8449_v52 = vpop.f32.mrf.mxu3  ;;  %v8555_v18 = vadd.f32 %v8540_v50, %v8531_v43 }
 0x7cb   : > { %8602 = vst [vmem:[%s13133_s6 + $0x68] sm:$0x3] %v8572_v6  ;;  %v8470_v61 = vpop.f32.mrf.mxu2 }
 0x7cc   : > { %v8570_v32 = vmax.f32 %v8555_v18, 0.0  ;;  %v8494_v60 = vadd.f32 %v8493_v12, %v8470_v61 }
 0x7ce   : > { %8600 = vst.msk [vmem:[%s13133_s6 + $0x58] sm:$0xff] %vm817_vm3, %v8570_v32  ;;  %v8517_v55 = vadd.f32 %v8516_v8, %v8494_v60 }
 0x7d0   : > { %v8534_v63 = vadd.f32 %v8517_v55, %v16262_v29 }
 0x7d2   : > { %v8558_v35 = vadd.f32 %v8540_v50, %v8534_v63 }
 0x7d3   : > { %v8472_v2 = vpop.f32.mrf.mxu2 }
 0x7d4   : > { %v8573_v49 = vmax.f32 %v8558_v35, 0.0 }
 0x7d6   : > { %8604 = vst.msk [vmem:[%s13133_s6 + $0x70] sm:$0x3] %vm2388_vm6, %v8573_v49 }
 0x7d7 PF: > { %s15_s12 = sadd.s32 1, %s12974_s12  }
 0x7d8   : > { %p12_p8 = scmp.ge.s32.totalorder %s15_s12, 4  }
 0x7da   :  { %14 = sbr.rel (!%p12_p8) target bundleno = 2 (0x2), region = 103 }
 0x7df   :  { %8626 = vsyncpa [#allocation4], 1 }
 0x7e0   :  { %8628 = vsyncpa [#allocation4 + $0x1], 1 }
 0x7e1   :  { %8629 = vsyncpa [#allocation6], 1 }

</bundles_post_ra>
